<compile_context>
chip_gen: v7x
topology: tpu7x:2x2x1
jax: 0.10.0
libtpu: 0.0.40
codegen_flags: <defaults>
</compile_context>

<pallas_src>
import jax
import jax.numpy as jnp
from jax.experimental import pallas as pl
from jax.experimental.pallas import tpu as pltpu


_VMEM_LIMIT = 32 * 1024 * 1024  # fits every generation (v7x physical VMEM = 64 MiB)


# ----------------------------------------------------------------------------
# Pallas kernels
# ----------------------------------------------------------------------------
def _conv_bias_leaky_kernel(p_ref, w_ref, b_ref, o_ref):
    """bf16 GEMM (fp32 acc) + bias + LeakyReLU(0.2).  One M-tile per grid step."""
    y = jnp.dot(p_ref[...], w_ref[...], preferred_element_type=jnp.float32)
    y = y + b_ref[...]
    o_ref[...] = jnp.where(y >= 0, y, 0.2 * y)


def _conv_bn_leaky_kernel(p_ref, w_ref, g_ref, beta_ref, o_ref):
    """bf16 GEMM (fp32 acc) + BatchNorm(batch stats, biased var) + LeakyReLU(0.2)."""
    y = jnp.dot(p_ref[...], w_ref[...], preferred_element_type=jnp.float32)
    mean = jnp.mean(y, axis=0, keepdims=True)
    var = jnp.mean(jnp.square(y - mean), axis=0, keepdims=True)
    y = (y - mean) * jax.lax.rsqrt(var + 1e-5)
    y = y * g_ref[...] + beta_ref[...]
    o_ref[...] = jnp.where(y >= 0, y, 0.2 * y)


def _conv_bn_leaky_head_kernel(p_ref, w_ref, g_ref, beta_ref,
                               w5_ref, seg_ref, b5_ref, o_ref):
    """Layer 4 (GEMM+BN+LeakyReLU) with layer 5 (4x4 valid conv + Sigmoid) fused.

    Layer 5 on a 4x4 spatial map is a full per-sample reduction, so it is computed
    here on the VPU from the VMEM-resident layer-4 activations instead of a separate
    lane-sparse (N_out=1) GEMM pallas_call.
    """
    y = jnp.dot(p_ref[...], w_ref[...], preferred_element_type=jnp.float32)
    mean = jnp.mean(y, axis=0, keepdims=True)
    var = jnp.mean(jnp.square(y - mean), axis=0, keepdims=True)
    y = (y - mean) * jax.lax.rsqrt(var + 1e-5)
    y = y * g_ref[...] + beta_ref[...]
    y = jnp.where(y >= 0, y, 0.2 * y)                      # [N*16, 512]
    # per-sample reduction: seg is a [N, N*16] 0/1 block-indicator matrix
    z = jnp.dot(seg_ref[...], y * w5_ref[...],
                preferred_element_type=jnp.float32)        # [N, 512]
    logits = jnp.sum(z, axis=-1, keepdims=True) + b5_ref[0]
    o_ref[...] = jax.nn.sigmoid(logits)


# ----------------------------------------------------------------------------
# Pallas call wrappers
# ----------------------------------------------------------------------------
def _full_spec(shape):
    # full-array block (block_shape == array dims, so (8,128) divisibility not required)
    return pl.BlockSpec(shape, lambda *_: (0,) * len(shape))


def _layer1(patches, w, b):
    """Elementwise-epilogue layer: M-tiled grid, pipelined, megacore-parallel."""
    M, K = patches.shape
    C = w.shape[1]
    tm = next((t for t in (512, 256, 128, 64, 32, 16, 8) if M % t == 0), M)
    return pl.pallas_call(
        _conv_bias_leaky_kernel,
        out_shape=jax.ShapeDtypeStruct((M, C), jnp.float32),
        grid=(M // tm,),
        in_specs=[
            pl.BlockSpec((tm, K), lambda i: (i, 0)),
            pl.BlockSpec((K, C), lambda i: (0, 0)),
            pl.BlockSpec((1, C), lambda i: (0, 0)),
        ],
        out_specs=pl.BlockSpec((tm, C), lambda i: (i, 0)),
        compiler_params=pltpu.CompilerParams(
            dimension_semantics=("parallel",),
            vmem_limit_bytes=_VMEM_LIMIT),
    )(patches, w, b)


def _layer_bn(patches, w, gamma, beta):
    """BN layers keep a single M tile so the batch statistics stay exact."""
    M, K = patches.shape
    C = w.shape[1]
    return pl.pallas_call(
        _conv_bn_leaky_kernel,
        out_shape=jax.ShapeDtypeStruct((M, C), jnp.float32),
        grid=(1,),
        in_specs=[_full_spec((M, K)), _full_spec((K, C)),
                  _full_spec((1, C)), _full_spec((1, C))],
        out_specs=_full_spec((M, C)),
        compiler_params=pltpu.CompilerParams(
            dimension_semantics=("arbitrary",),
            vmem_limit_bytes=_VMEM_LIMIT),
    )(patches, w, gamma, beta)


def _layer4_with_head(patches, w4, gamma, beta, w5_tiled, seg, b5):
    M, K = patches.shape
    C = w4.shape[1]
    Nb = seg.shape[0]
    return pl.pallas_call(
        _conv_bn_leaky_head_kernel,
        out_shape=jax.ShapeDtypeStruct((Nb, 1), jnp.float32),
        grid=(1,),
        in_specs=[_full_spec((M, K)), _full_spec((K, C)),
                  _full_spec((1, C)), _full_spec((1, C)),
                  _full_spec((M, C)), _full_spec((Nb, M)),
                  pl.BlockSpec(memory_space=pltpu.MemorySpace.SMEM)],
        out_specs=_full_spec((Nb, 1)),
        compiler_params=pltpu.CompilerParams(
            dimension_semantics=("arbitrary",),
            vmem_limit_bytes=_VMEM_LIMIT),
    )(patches, w4, gamma, beta, w5_tiled, seg, b5)


# ----------------------------------------------------------------------------
# Glue: gather-free im2col (static strided slices, fused by XLA), weight reshape
# ----------------------------------------------------------------------------
def _im2col(x_nhwc, ksize, stride, pad):
    x = x_nhwc.astype(jnp.bfloat16)
    if pad:
        x = jnp.pad(x, ((0, 0), (pad, pad), (pad, pad), (0, 0)))
    N, H, W, C = x.shape
    Ho = (H - ksize) // stride + 1
    Wo = (W - ksize) // stride + 1
    taps = []
    for dh in range(ksize):
        for dw in range(ksize):
            taps.append(jax.lax.slice(
                x, (0, dh, dw, 0),
                (N, dh + stride * (Ho - 1) + 1, dw + stride * (Wo - 1) + 1, C),
                (1, stride, stride, 1)))
    p = jnp.stack(taps, axis=3)                    # [N, Ho, Wo, k*k, C] (dh, dw, c) order
    return p.reshape(N * Ho * Wo, ksize * ksize * C), Ho, Wo


def _weight_to_gemm(w_oihw):
    # [Cout, Cin, kh, kw] -> [kh*kw*Cin, Cout]  (matches im2col (kh, kw, Cin) ordering)
    co = w_oihw.shape[0]
    return w_oihw.transpose(2, 3, 1, 0).reshape(-1, co)


# ----------------------------------------------------------------------------
# Discriminator forward
# ----------------------------------------------------------------------------
def discriminator_forward(x_nchw, params):
    x = jnp.transpose(x_nchw, (0, 2, 3, 1)).astype(jnp.float32)  # NCHW -> NHWC
    N = x.shape[0]
    bf16 = jnp.bfloat16

    w1 = _weight_to_gemm(params["w1"]).astype(bf16)
    w2 = _weight_to_gemm(params["w2"]).astype(bf16)
    w3 = _weight_to_gemm(params["w3"]).astype(bf16)
    w4 = _weight_to_gemm(params["w4"]).astype(bf16)
    w5 = _weight_to_gemm(params["w5"]).reshape(16, -1).astype(jnp.float32)  # [16, 512]

    # layer 1: conv(s=2,p=1,bias) + LeakyReLU   (M-tiled grid, megacore-parallel)
    p, Ho, Wo = _im2col(x, 4, 2, 1)
    y = _layer1(p, w1, params["b1"][None, :].astype(jnp.float32))
    x = y.reshape(N, Ho, Wo, -1)

    # layers 2-3: conv(s=2,p=1,no bias) + BatchNorm(batch stats) + LeakyReLU
    for li, w in ((2, w2), (3, w3)):
        p, Ho, Wo = _im2col(x, 4, 2, 1)
        y = _layer_bn(p, w,
                      params[f"gamma{li}"][None, :], params[f"beta{li}"][None, :])
        x = y.reshape(N, Ho, Wo, -1)

    # layer 4 (conv+BN+LeakyReLU) with layer 5 (4x4 valid conv + Sigmoid) fused
    p, Ho, Wo = _im2col(x, 4, 2, 1)
    assert Ho == 4 and Wo == 4, "head fusion assumes a 4x4 map before layer 5 (64x64 input)"
    w5_tiled = jnp.tile(w5, (N, 1))                                    # [N*16, 512]
    seg = jnp.repeat(jnp.eye(N, dtype=jnp.float32), Ho * Wo, axis=1)   # [N, N*16]
    out = _layer4_with_head(
        p, w4, params["gamma4"][None, :], params["beta4"][None, :],
        w5_tiled, seg, params["b5"].astype(jnp.float32))
    return out.reshape(N, 1, 1, 1)  # NHWC == NCHW for 1x1x1 maps


# ----------------------------------------------------------------------------
# Deterministic parameter init (mirrors Discriminator.init_weights)
# ----------------------------------------------------------------------------
def make_params(key, input_channels=3):
    ks = jax.random.split(key, 16)
    chans = [input_channels, 64, 128, 256, 512, 1]
    params = {}
    ki = 0
    for li in range(1, 6):
        cin, cout = chans[li - 1], chans[li]
        params[f"w{li}"] = 0.02 * jax.random.normal(
            ks[ki], (cout, cin, 4, 4), jnp.float32); ki += 1
    params["b1"] = 0.01 * jax.random.normal(ks[ki], (64,), jnp.float32); ki += 1
    params["b5"] = 0.01 * jax.random.normal(ks[ki], (1,), jnp.float32); ki += 1
    # BatchNorm affine params (layers 2-4): gamma ~ N(0, 0.02), beta = 0 (per init_weights)
    for li in (2, 3, 4):
        c = chans[li]
        params[f"gamma{li}"] = 0.02 * jax.random.normal(ks[ki], (c,), jnp.float32); ki += 1
        params[f"beta{li}"] = jnp.zeros((c,), jnp.float32)
    return params


# ----------------------------------------------------------------------------
# Pure-JAX fp32 reference (lax.conv) for correctness check
# ----------------------------------------------------------------------------
def _reference_forward(x_nchw, params):
    def conv(x, w, stride, pad):
        return jax.lax.conv_general_dilated(
            x, w, (stride, stride), [(pad, pad), (pad, pad)],
            dimension_numbers=("NCHW", "OIHW", "NCHW"))

    def leaky(x):
        return jnp.where(x >= 0, x, 0.2 * x)

    def bn(x, g, b):
        mean = jnp.mean(x, axis=(0, 2, 3), keepdims=True)
        var = jnp.mean(jnp.square(x - mean), axis=(0, 2, 3), keepdims=True)
        xh = (x - mean) * jax.lax.rsqrt(var + 1e-5)
        return xh * g[None, :, None, None] + b[None, :, None, None]

    x = conv(x_nchw, params["w1"], 2, 1) + params["b1"][None, :, None, None]
    x = leaky(x)
    for li in (2, 3, 4):
        x = conv(x, params[f"w{li}"], 2, 1)
        x = leaky(bn(x, params[f"gamma{li}"], params[f"beta{li}"]))
    x = conv(x, params["w5"], 2, 0) + params["b5"][None, :, None, None]
    return jax.nn.sigmoid(x)


if __name__ == "__main__":
    key = jax.random.PRNGKey(0)
    pkey, xkey = jax.random.split(key)
    params = make_params(pkey, input_channels=3)

    # input: batch=2, channels=3, 64x64 (minimum spatial size for 5 downsamples)
    x = jax.random.normal(xkey, (2, 3, 64, 64), jnp.float32)

    fwd = jax.jit(discriminator_forward)
    out = jax.block_until_ready(fwd(x, params))

    ref = jax.block_until_ready(jax.jit(_reference_forward)(x, params))
    assert out.shape == (2, 1, 1, 1), out.shape
    assert bool(jnp.all(jnp.isfinite(out)))
    # bf16 MXU inputs vs fp32 reference -> loosened tolerance (per review)
    assert jnp.allclose(out, ref, atol=1e-2, rtol=1e-2), (out, ref)

    print("KERNEL_OK")
</pallas_src>

<mosaic_0001>
module attributes {stable_mosaic.version = 11 : i64} {
  func.func @_conv_bias_leaky_kernel(%arg0: i32, %arg1: memref<512x48xbf16, #tpu.memory_space<vmem>>, %arg2: memref<48x64xbf16, #tpu.memory_space<vmem>>, %arg3: memref<1x64xf32, #tpu.memory_space<vmem>>, %arg4: memref<512x64xf32, #tpu.memory_space<vmem>>) attributes {dimension_semantics = [#tpu.dimension_semantics<parallel>], iteration_bounds = array<i64: 4>, scalar_prefetch = 0 : i64, scratch_operands = 0 : i64, tpu.core_type = #tpu.core_type<tc>, window_params = [{transform_indices = @transform_0, window_bounds = array<i64: 512, 48>}, {pipeline_mode = #tpu.pipeline_mode<synchronous>, transform_indices = @transform_1, window_bounds = array<i64: 48, 64>}, {pipeline_mode = #tpu.pipeline_mode<synchronous>, transform_indices = @transform_2, window_bounds = array<i64: 1, 64>}, {transform_indices = @transform_3, window_bounds = array<i64: 512, 64>}]} {
    %c0 = arith.constant 0 : index
    %c0_0 = arith.constant 0 : index
    %0 = vector.load %arg1[%c0, %c0_0] : memref<512x48xbf16, #tpu.memory_space<vmem>>, vector<512x48xbf16>
    %c0_1 = arith.constant 0 : index
    %c0_2 = arith.constant 0 : index
    %1 = vector.load %arg2[%c0_1, %c0_2] : memref<48x64xbf16, #tpu.memory_space<vmem>>, vector<48x64xbf16>
    %cst = arith.constant dense<0.000000e+00> : vector<512x64xf32>
    %2 = tpu.matmul %0, %1, %cst {dimension_numbers = #tpu.dot_dimension_numbers<[1], [0], [0], [1], [0, 0, 1, 1], [], []>} : vector<512x48xbf16>, vector<48x64xbf16>, vector<512x64xf32> -> vector<512x64xf32>
    %c0_3 = arith.constant 0 : index
    %c0_4 = arith.constant 0 : index
    %3 = vector.load %arg3[%c0_3, %c0_4] : memref<1x64xf32, #tpu.memory_space<vmem>>, vector<1x64xf32>
    %4 = vector.broadcast %3 : vector<1x64xf32> to vector<512x64xf32>
    %5 = arith.addf %2, %4 : vector<512x64xf32>
    %cst_5 = arith.constant 0.000000e+00 : f32
    %6 = vector.broadcast %cst_5 : f32 to vector<512x64xf32>
    %7 = arith.cmpf oge, %5, %6 : vector<512x64xf32>
    %cst_6 = arith.constant 2.000000e-01 : f32
    %8 = vector.broadcast %cst_6 : f32 to vector<512x64xf32>
    %9 = arith.mulf %8, %5 : vector<512x64xf32>
    %10 = arith.select %7, %5, %9 : vector<512x64xi1>, vector<512x64xf32>
    %c0_7 = arith.constant 0 : index
    %c0_8 = arith.constant 0 : index
    %11 = vector.load %arg4[%c0_7, %c0_8] : memref<512x64xf32, #tpu.memory_space<vmem>>, vector<512x64xf32>
    tpu.vector_store %arg4[%c0_7, %c0_8], %10 {strides = array<i32>} : memref<512x64xf32, #tpu.memory_space<vmem>>, vector<512x64xf32>,
    return
  }
  func.func @transform_0(%arg0: i32) -> (i32, i32) {
    %c0_i32 = arith.constant 0 : i32
    %c0_i32_0 = arith.constant 0 : i32
    return %arg0, %c0_i32 : i32, i32
  }
  func.func @transform_1(%arg0: i32) -> (i32, i32) {
    %c0_i32 = arith.constant 0 : i32
    %c0_i32_0 = arith.constant 0 : i32
    %c0_i32_1 = arith.constant 0 : i32
    return %c0_i32, %c0_i32_0 : i32, i32
  }
  func.func @transform_2(%arg0: i32) -> (i32, i32) {
    %c0_i32 = arith.constant 0 : i32
    %c0_i32_0 = arith.constant 0 : i32
    %c0_i32_1 = arith.constant 0 : i32
    return %c0_i32, %c0_i32_0 : i32, i32
  }
  func.func @transform_3(%arg0: i32) -> (i32, i32) {
    %c0_i32 = arith.constant 0 : i32
    %c0_i32_0 = arith.constant 0 : i32
    return %arg0, %c0_i32 : i32, i32
  }
}

module attributes {stable_mosaic.version = 11 : i64} {
  func.func @_conv_bn_leaky_kernel(%arg0: i32, %arg1: memref<512x1024xbf16, #tpu.memory_space<vmem>>, %arg2: memref<1024x128xbf16, #tpu.memory_space<vmem>>, %arg3: memref<1x128xf32, #tpu.memory_space<vmem>>, %arg4: memref<1x128xf32, #tpu.memory_space<vmem>>, %arg5: memref<512x128xf32, #tpu.memory_space<vmem>>) attributes {dimension_semantics = [#tpu.dimension_semantics<arbitrary>], iteration_bounds = array<i64: 1>, scalar_prefetch = 0 : i64, scratch_operands = 0 : i64, tpu.core_type = #tpu.core_type<tc>, window_params = [{pipeline_mode = #tpu.pipeline_mode<synchronous>, transform_indices = @transform_0, window_bounds = array<i64: 512, 1024>}, {pipeline_mode = #tpu.pipeline_mode<synchronous>, transform_indices = @transform_1, window_bounds = array<i64: 1024, 128>}, {pipeline_mode = #tpu.pipeline_mode<synchronous>, transform_indices = @transform_2, window_bounds = array<i64: 1, 128>}, {pipeline_mode = #tpu.pipeline_mode<synchronous>, transform_indices = @transform_3, window_bounds = array<i64: 1, 128>}, {pipeline_mode = #tpu.pipeline_mode<synchronous>, transform_indices = @transform_4, window_bounds = array<i64: 512, 128>}]} {
    %c0 = arith.constant 0 : index
    %c0_0 = arith.constant 0 : index
    %0 = vector.load %arg1[%c0, %c0_0] : memref<512x1024xbf16, #tpu.memory_space<vmem>>, vector<512x1024xbf16>
    %c0_1 = arith.constant 0 : index
    %c0_2 = arith.constant 0 : index
    %1 = vector.load %arg2[%c0_1, %c0_2] : memref<1024x128xbf16, #tpu.memory_space<vmem>>, vector<1024x128xbf16>
    %cst = arith.constant dense<0.000000e+00> : vector<512x128xf32>
    %2 = tpu.matmul %0, %1, %cst {dimension_numbers = #tpu.dot_dimension_numbers<[1], [0], [0], [1], [0, 0, 1, 1], [], []>} : vector<512x1024xbf16>, vector<1024x128xbf16>, vector<512x128xf32> -> vector<512x128xf32>
    %cst_3 = arith.constant dense<0.000000e+00> : vector<128xf32>
    %3 = vector.multi_reduction <add>, %2, %cst_3 [0] : vector<512x128xf32> to vector<128xf32>
    %4 = vector.shape_cast %3 : vector<128xf32> to vector<1x128xf32>
    %cst_4 = arith.constant 5.120000e+02 : f32
    %5 = vector.broadcast %cst_4 : f32 to vector<1x128xf32>
    %6 = arith.divf %4, %5 : vector<1x128xf32>
    %7 = vector.broadcast %6 : vector<1x128xf32> to vector<512x128xf32>
    %8 = arith.subf %2, %7 : vector<512x128xf32>
    %9 = arith.mulf %8, %8 : vector<512x128xf32>
    %cst_5 = arith.constant dense<0.000000e+00> : vector<128xf32>
    %10 = vector.multi_reduction <add>, %9, %cst_5 [0] : vector<512x128xf32> to vector<128xf32>
    %11 = vector.shape_cast %10 : vector<128xf32> to vector<1x128xf32>
    %cst_6 = arith.constant 5.120000e+02 : f32
    %12 = vector.broadcast %cst_6 : f32 to vector<1x128xf32>
    %13 = arith.divf %11, %12 : vector<1x128xf32>
    %14 = vector.broadcast %6 : vector<1x128xf32> to vector<512x128xf32>
    %15 = arith.subf %2, %14 : vector<512x128xf32>
    %cst_7 = arith.constant 9.99999974E-6 : f32
    %16 = vector.broadcast %cst_7 : f32 to vector<1x128xf32>
    %17 = arith.addf %13, %16 : vector<1x128xf32>
    %18 = math.rsqrt %17 : vector<1x128xf32>
    %19 = vector.broadcast %18 : vector<1x128xf32> to vector<512x128xf32>
    %20 = arith.mulf %15, %19 : vector<512x128xf32>
    %c0_8 = arith.constant 0 : index
    %c0_9 = arith.constant 0 : index
    %21 = vector.load %arg3[%c0_8, %c0_9] : memref<1x128xf32, #tpu.memory_space<vmem>>, vector<1x128xf32>
    %22 = vector.broadcast %21 : vector<1x128xf32> to vector<512x128xf32>
    %23 = arith.mulf %20, %22 : vector<512x128xf32>
    %c0_10 = arith.constant 0 : index
    %c0_11 = arith.constant 0 : index
    %24 = vector.load %arg4[%c0_10, %c0_11] : memref<1x128xf32, #tpu.memory_space<vmem>>, vector<1x128xf32>
    %25 = vector.broadcast %24 : vector<1x128xf32> to vector<512x128xf32>
    %26 = arith.addf %23, %25 : vector<512x128xf32>
    %cst_12 = arith.constant 0.000000e+00 : f32
    %27 = vector.broadcast %cst_12 : f32 to vector<512x128xf32>
    %28 = arith.cmpf oge, %26, %27 : vector<512x128xf32>
    %cst_13 = arith.constant 2.000000e-01 : f32
    %29 = vector.broadcast %cst_13 : f32 to vector<512x128xf32>
    %30 = arith.mulf %29, %26 : vector<512x128xf32>
    %31 = arith.select %28, %26, %30 : vector<512x128xi1>, vector<512x128xf32>
    %c0_14 = arith.constant 0 : index
    %c0_15 = arith.constant 0 : index
    %32 = vector.load %arg5[%c0_14, %c0_15] : memref<512x128xf32, #tpu.memory_space<vmem>>, vector<512x128xf32>
    tpu.vector_store %arg5[%c0_14, %c0_15], %31 {strides = array<i32>} : memref<512x128xf32, #tpu.memory_space<vmem>>, vector<512x128xf32>,
    return
  }
  func.func @transform_0(%arg0: i32) -> (i32, i32) {
    %c0_i32 = arith.constant 0 : i32
    %c0_i32_0 = arith.constant 0 : i32
    %c0_i32_1 = arith.constant 0 : i32
    return %c0_i32, %c0_i32_0 : i32, i32
  }
  func.func @transform_1(%arg0: i32) -> (i32, i32) {
    %c0_i32 = arith.constant 0 : i32
    %c0_i32_0 = arith.constant 0 : i32
    %c0_i32_1 = arith.constant 0 : i32
    return %c0_i32, %c0_i32_0 : i32, i32
  }
  func.func @transform_2(%arg0: i32) -> (i32, i32) {
    %c0_i32 = arith.constant 0 : i32
    %c0_i32_0 = arith.constant 0 : i32
    %c0_i32_1 = arith.constant 0 : i32
    return %c0_i32, %c0_i32_0 : i32, i32
  }
  func.func @transform_3(%arg0: i32) -> (i32, i32) {
    %c0_i32 = arith.constant 0 : i32
    %c0_i32_0 = arith.constant 0 : i32
    %c0_i32_1 = arith.constant 0 : i32
    return %c0_i32, %c0_i32_0 : i32, i32
  }
  func.func @transform_4(%arg0: i32) -> (i32, i32) {
    %c0_i32 = arith.constant 0 : i32
    %c0_i32_0 = arith.constant 0 : i32
    %c0_i32_1 = arith.constant 0 : i32
    return %c0_i32, %c0_i32_0 : i32, i32
  }
}

module attributes {stable_mosaic.version = 11 : i64} {
  func.func @_conv_bn_leaky_kernel(%arg0: i32, %arg1: memref<128x2048xbf16, #tpu.memory_space<vmem>>, %arg2: memref<2048x256xbf16, #tpu.memory_space<vmem>>, %arg3: memref<1x256xf32, #tpu.memory_space<vmem>>, %arg4: memref<1x256xf32, #tpu.memory_space<vmem>>, %arg5: memref<128x256xf32, #tpu.memory_space<vmem>>) attributes {dimension_semantics = [#tpu.dimension_semantics<arbitrary>], iteration_bounds = array<i64: 1>, scalar_prefetch = 0 : i64, scratch_operands = 0 : i64, tpu.core_type = #tpu.core_type<tc>, window_params = [{pipeline_mode = #tpu.pipeline_mode<synchronous>, transform_indices = @transform_0, window_bounds = array<i64: 128, 2048>}, {pipeline_mode = #tpu.pipeline_mode<synchronous>, transform_indices = @transform_1, window_bounds = array<i64: 2048, 256>}, {pipeline_mode = #tpu.pipeline_mode<synchronous>, transform_indices = @transform_2, window_bounds = array<i64: 1, 256>}, {pipeline_mode = #tpu.pipeline_mode<synchronous>, transform_indices = @transform_3, window_bounds = array<i64: 1, 256>}, {pipeline_mode = #tpu.pipeline_mode<synchronous>, transform_indices = @transform_4, window_bounds = array<i64: 128, 256>}]} {
    %c0 = arith.constant 0 : index
    %c0_0 = arith.constant 0 : index
    %0 = vector.load %arg1[%c0, %c0_0] : memref<128x2048xbf16, #tpu.memory_space<vmem>>, vector<128x2048xbf16>
    %c0_1 = arith.constant 0 : index
    %c0_2 = arith.constant 0 : index
    %1 = vector.load %arg2[%c0_1, %c0_2] : memref<2048x256xbf16, #tpu.memory_space<vmem>>, vector<2048x256xbf16>
    %cst = arith.constant dense<0.000000e+00> : vector<128x256xf32>
    %2 = tpu.matmul %0, %1, %cst {dimension_numbers = #tpu.dot_dimension_numbers<[1], [0], [0], [1], [0, 0, 1, 1], [], []>} : vector<128x2048xbf16>, vector<2048x256xbf16>, vector<128x256xf32> -> vector<128x256xf32>
    %cst_3 = arith.constant dense<0.000000e+00> : vector<256xf32>
    %3 = vector.multi_reduction <add>, %2, %cst_3 [0] : vector<128x256xf32> to vector<256xf32>
    %4 = vector.shape_cast %3 : vector<256xf32> to vector<1x256xf32>
    %cst_4 = arith.constant 1.280000e+02 : f32
    %5 = vector.broadcast %cst_4 : f32 to vector<1x256xf32>
    %6 = arith.divf %4, %5 : vector<1x256xf32>
    %7 = vector.broadcast %6 : vector<1x256xf32> to vector<128x256xf32>
    %8 = arith.subf %2, %7 : vector<128x256xf32>
    %9 = arith.mulf %8, %8 : vector<128x256xf32>
    %cst_5 = arith.constant dense<0.000000e+00> : vector<256xf32>
    %10 = vector.multi_reduction <add>, %9, %cst_5 [0] : vector<128x256xf32> to vector<256xf32>
    %11 = vector.shape_cast %10 : vector<256xf32> to vector<1x256xf32>
    %cst_6 = arith.constant 1.280000e+02 : f32
    %12 = vector.broadcast %cst_6 : f32 to vector<1x256xf32>
    %13 = arith.divf %11, %12 : vector<1x256xf32>
    %14 = vector.broadcast %6 : vector<1x256xf32> to vector<128x256xf32>
    %15 = arith.subf %2, %14 : vector<128x256xf32>
    %cst_7 = arith.constant 9.99999974E-6 : f32
    %16 = vector.broadcast %cst_7 : f32 to vector<1x256xf32>
    %17 = arith.addf %13, %16 : vector<1x256xf32>
    %18 = math.rsqrt %17 : vector<1x256xf32>
    %19 = vector.broadcast %18 : vector<1x256xf32> to vector<128x256xf32>
    %20 = arith.mulf %15, %19 : vector<128x256xf32>
    %c0_8 = arith.constant 0 : index
    %c0_9 = arith.constant 0 : index
    %21 = vector.load %arg3[%c0_8, %c0_9] : memref<1x256xf32, #tpu.memory_space<vmem>>, vector<1x256xf32>
    %22 = vector.broadcast %21 : vector<1x256xf32> to vector<128x256xf32>
    %23 = arith.mulf %20, %22 : vector<128x256xf32>
    %c0_10 = arith.constant 0 : index
    %c0_11 = arith.constant 0 : index
    %24 = vector.load %arg4[%c0_10, %c0_11] : memref<1x256xf32, #tpu.memory_space<vmem>>, vector<1x256xf32>
    %25 = vector.broadcast %24 : vector<1x256xf32> to vector<128x256xf32>
    %26 = arith.addf %23, %25 : vector<128x256xf32>
    %cst_12 = arith.constant 0.000000e+00 : f32
    %27 = vector.broadcast %cst_12 : f32 to vector<128x256xf32>
    %28 = arith.cmpf oge, %26, %27 : vector<128x256xf32>
    %cst_13 = arith.constant 2.000000e-01 : f32
    %29 = vector.broadcast %cst_13 : f32 to vector<128x256xf32>
    %30 = arith.mulf %29, %26 : vector<128x256xf32>
    %31 = arith.select %28, %26, %30 : vector<128x256xi1>, vector<128x256xf32>
    %c0_14 = arith.constant 0 : index
    %c0_15 = arith.constant 0 : index
    %32 = vector.load %arg5[%c0_14, %c0_15] : memref<128x256xf32, #tpu.memory_space<vmem>>, vector<128x256xf32>
    tpu.vector_store %arg5[%c0_14, %c0_15], %31 {strides = array<i32>} : memref<128x256xf32, #tpu.memory_space<vmem>>, vector<128x256xf32>,
    return
  }
  func.func @transform_0(%arg0: i32) -> (i32, i32) {
    %c0_i32 = arith.constant 0 : i32
    %c0_i32_0 = arith.constant 0 : i32
    %c0_i32_1 = arith.constant 0 : i32
    return %c0_i32, %c0_i32_0 : i32, i32
  }
  func.func @transform_1(%arg0: i32) -> (i32, i32) {
    %c0_i32 = arith.constant 0 : i32
    %c0_i32_0 = arith.constant 0 : i32
    %c0_i32_1 = arith.constant 0 : i32
    return %c0_i32, %c0_i32_0 : i32, i32
  }
  func.func @transform_2(%arg0: i32) -> (i32, i32) {
    %c0_i32 = arith.constant 0 : i32
    %c0_i32_0 = arith.constant 0 : i32
    %c0_i32_1 = arith.constant 0 : i32
    return %c0_i32, %c0_i32_0 : i32, i32
  }
  func.func @transform_3(%arg0: i32) -> (i32, i32) {
    %c0_i32 = arith.constant 0 : i32
    %c0_i32_0 = arith.constant 0 : i32
    %c0_i32_1 = arith.constant 0 : i32
    return %c0_i32, %c0_i32_0 : i32, i32
  }
  func.func @transform_4(%arg0: i32) -> (i32, i32) {
    %c0_i32 = arith.constant 0 : i32
    %c0_i32_0 = arith.constant 0 : i32
    %c0_i32_1 = arith.constant 0 : i32
    return %c0_i32, %c0_i32_0 : i32, i32
  }
}

module attributes {stable_mosaic.version = 11 : i64} {
  func.func @_conv_bn_leaky_head_kernel(%arg0: i32, %arg1: memref<32x4096xbf16, #tpu.memory_space<vmem>>, %arg2: memref<4096x512xbf16, #tpu.memory_space<vmem>>, %arg3: memref<1x512xf32, #tpu.memory_space<vmem>>, %arg4: memref<1x512xf32, #tpu.memory_space<vmem>>, %arg5: memref<32x512xf32, #tpu.memory_space<vmem>>, %arg6: memref<2x32xf32, #tpu.memory_space<vmem>>, %arg7: memref<1xf32, #tpu.memory_space<smem>>, %arg8: memref<2x1xf32, #tpu.memory_space<vmem>>) attributes {dimension_semantics = [#tpu.dimension_semantics<arbitrary>], iteration_bounds = array<i64: 1>, scalar_prefetch = 0 : i64, scratch_operands = 0 : i64, tpu.core_type = #tpu.core_type<tc>, window_params = [{pipeline_mode = #tpu.pipeline_mode<synchronous>, transform_indices = @transform_0, window_bounds = array<i64: 32, 4096>}, {pipeline_mode = #tpu.pipeline_mode<synchronous>, transform_indices = @transform_1, window_bounds = array<i64: 4096, 512>}, {pipeline_mode = #tpu.pipeline_mode<synchronous>, transform_indices = @transform_2, window_bounds = array<i64: 1, 512>}, {pipeline_mode = #tpu.pipeline_mode<synchronous>, transform_indices = @transform_3, window_bounds = array<i64: 1, 512>}, {pipeline_mode = #tpu.pipeline_mode<synchronous>, transform_indices = @transform_4, window_bounds = array<i64: 32, 512>}, {pipeline_mode = #tpu.pipeline_mode<synchronous>, transform_indices = @transform_5, window_bounds = array<i64: 2, 32>}, {transform_indices = @transform_6, window_bounds = array<i64: 1>}, {pipeline_mode = #tpu.pipeline_mode<synchronous>, transform_indices = @transform_7, window_bounds = array<i64: 2, 1>}]} {
    %c0 = arith.constant 0 : index
    %c0_0 = arith.constant 0 : index
    %0 = vector.load %arg1[%c0, %c0_0] : memref<32x4096xbf16, #tpu.memory_space<vmem>>, vector<32x4096xbf16>
    %c0_1 = arith.constant 0 : index
    %c0_2 = arith.constant 0 : index
    %1 = vector.load %arg2[%c0_1, %c0_2] : memref<4096x512xbf16, #tpu.memory_space<vmem>>, vector<4096x512xbf16>
    %cst = arith.constant dense<0.000000e+00> : vector<32x512xf32>
    %2 = tpu.matmul %0, %1, %cst {dimension_numbers = #tpu.dot_dimension_numbers<[1], [0], [0], [1], [0, 0, 1, 1], [], []>} : vector<32x4096xbf16>, vector<4096x512xbf16>, vector<32x512xf32> -> vector<32x512xf32>
    %cst_3 = arith.constant dense<0.000000e+00> : vector<512xf32>
    %3 = vector.multi_reduction <add>, %2, %cst_3 [0] : vector<32x512xf32> to vector<512xf32>
    %4 = vector.shape_cast %3 : vector<512xf32> to vector<1x512xf32>
    %cst_4 = arith.constant 3.200000e+01 : f32
    %5 = vector.broadcast %cst_4 : f32 to vector<1x512xf32>
    %6 = arith.divf %4, %5 : vector<1x512xf32>
    %7 = vector.broadcast %6 : vector<1x512xf32> to vector<32x512xf32>
    %8 = arith.subf %2, %7 : vector<32x512xf32>
    %9 = arith.mulf %8, %8 : vector<32x512xf32>
    %cst_5 = arith.constant dense<0.000000e+00> : vector<512xf32>
    %10 = vector.multi_reduction <add>, %9, %cst_5 [0] : vector<32x512xf32> to vector<512xf32>
    %11 = vector.shape_cast %10 : vector<512xf32> to vector<1x512xf32>
    %cst_6 = arith.constant 3.200000e+01 : f32
    %12 = vector.broadcast %cst_6 : f32 to vector<1x512xf32>
    %13 = arith.divf %11, %12 : vector<1x512xf32>
    %14 = vector.broadcast %6 : vector<1x512xf32> to vector<32x512xf32>
    %15 = arith.subf %2, %14 : vector<32x512xf32>
    %cst_7 = arith.constant 9.99999974E-6 : f32
    %16 = vector.broadcast %cst_7 : f32 to vector<1x512xf32>
    %17 = arith.addf %13, %16 : vector<1x512xf32>
    %18 = math.rsqrt %17 : vector<1x512xf32>
    %19 = vector.broadcast %18 : vector<1x512xf32> to vector<32x512xf32>
    %20 = arith.mulf %15, %19 : vector<32x512xf32>
    %c0_8 = arith.constant 0 : index
    %c0_9 = arith.constant 0 : index
    %21 = vector.load %arg3[%c0_8, %c0_9] : memref<1x512xf32, #tpu.memory_space<vmem>>, vector<1x512xf32>
    %22 = vector.broadcast %21 : vector<1x512xf32> to vector<32x512xf32>
    %23 = arith.mulf %20, %22 : vector<32x512xf32>
    %c0_10 = arith.constant 0 : index
    %c0_11 = arith.constant 0 : index
    %24 = vector.load %arg4[%c0_10, %c0_11] : memref<1x512xf32, #tpu.memory_space<vmem>>, vector<1x512xf32>
    %25 = vector.broadcast %24 : vector<1x512xf32> to vector<32x512xf32>
    %26 = arith.addf %23, %25 : vector<32x512xf32>
    %cst_12 = arith.constant 0.000000e+00 : f32
    %27 = vector.broadcast %cst_12 : f32 to vector<32x512xf32>
    %28 = arith.cmpf oge, %26, %27 : vector<32x512xf32>
    %cst_13 = arith.constant 2.000000e-01 : f32
    %29 = vector.broadcast %cst_13 : f32 to vector<32x512xf32>
    %30 = arith.mulf %29, %26 : vector<32x512xf32>
    %31 = arith.select %28, %26, %30 : vector<32x512xi1>, vector<32x512xf32>
    %c0_14 = arith.constant 0 : index
    %c0_15 = arith.constant 0 : index
    %32 = vector.load %arg6[%c0_14, %c0_15] : memref<2x32xf32, #tpu.memory_space<vmem>>, vector<2x32xf32>
    %c0_16 = arith.constant 0 : index
    %c0_17 = arith.constant 0 : index
    %33 = vector.load %arg5[%c0_16, %c0_17] : memref<32x512xf32, #tpu.memory_space<vmem>>, vector<32x512xf32>
    %34 = arith.mulf %31, %33 : vector<32x512xf32>
    %cst_18 = arith.constant dense<0.000000e+00> : vector<2x512xf32>
    %35 = tpu.matmul %32, %34, %cst_18 {dimension_numbers = #tpu.dot_dimension_numbers<[1], [0], [0], [1], [0, 0, 1, 1], [], []>} : vector<2x32xf32>, vector<32x512xf32>, vector<2x512xf32> -> vector<2x512xf32>
    %cst_19 = arith.constant dense<0.000000e+00> : vector<2xf32>
    %36 = vector.multi_reduction <add>, %35, %cst_19 [1] : vector<2x512xf32> to vector<2xf32>
    %37 = vector.shape_cast %36 : vector<2xf32> to vector<2x1xf32>
    %c0_20 = arith.constant 0 : index
    %38 = memref.load %arg7[%c0_20] : memref<1xf32, #tpu.memory_space<smem>>
    %39 = vector.broadcast %38 : f32 to vector<2x1xf32>
    %40 = arith.addf %37, %39 : vector<2x1xf32>
    %41 = arith.negf %40 : vector<2x1xf32>
    %42 = math.exp %41 : vector<2x1xf32>
    %cst_21 = arith.constant 1.000000e+00 : f32
    %43 = vector.broadcast %cst_21 : f32 to vector<2x1xf32>
    %44 = arith.addf %43, %42 : vector<2x1xf32>
    %45 = arith.divf %43, %44 : vector<2x1xf32>
    %c0_22 = arith.constant 0 : index
    %c0_23 = arith.constant 0 : index
    %46 = vector.load %arg8[%c0_22, %c0_23] : memref<2x1xf32, #tpu.memory_space<vmem>>, vector<2x1xf32>
    tpu.vector_store %arg8[%c0_22, %c0_23], %45 {strides = array<i32>} : memref<2x1xf32, #tpu.memory_space<vmem>>, vector<2x1xf32>,
    return
  }
  func.func @transform_0(%arg0: i32) -> (i32, i32) {
    %c0_i32 = arith.constant 0 : i32
    %c0_i32_0 = arith.constant 0 : i32
    %c0_i32_1 = arith.constant 0 : i32
    return %c0_i32, %c0_i32_0 : i32, i32
  }
  func.func @transform_1(%arg0: i32) -> (i32, i32) {
    %c0_i32 = arith.constant 0 : i32
    %c0_i32_0 = arith.constant 0 : i32
    %c0_i32_1 = arith.constant 0 : i32
    return %c0_i32, %c0_i32_0 : i32, i32
  }
  func.func @transform_2(%arg0: i32) -> (i32, i32) {
    %c0_i32 = arith.constant 0 : i32
    %c0_i32_0 = arith.constant 0 : i32
    %c0_i32_1 = arith.constant 0 : i32
    return %c0_i32, %c0_i32_0 : i32, i32
  }
  func.func @transform_3(%arg0: i32) -> (i32, i32) {
    %c0_i32 = arith.constant 0 : i32
    %c0_i32_0 = arith.constant 0 : i32
    %c0_i32_1 = arith.constant 0 : i32
    return %c0_i32, %c0_i32_0 : i32, i32
  }
  func.func @transform_4(%arg0: i32) -> (i32, i32) {
    %c0_i32 = arith.constant 0 : i32
    %c0_i32_0 = arith.constant 0 : i32
    %c0_i32_1 = arith.constant 0 : i32
    return %c0_i32, %c0_i32_0 : i32, i32
  }
  func.func @transform_5(%arg0: i32) -> (i32, i32) {
    %c0_i32 = arith.constant 0 : i32
    %c0_i32_0 = arith.constant 0 : i32
    %c0_i32_1 = arith.constant 0 : i32
    return %c0_i32, %c0_i32_0 : i32, i32
  }
  func.func @transform_6(%arg0: i32) -> i32 {
    %c0_i32 = arith.constant 0 : i32
    %c0_i32_0 = arith.constant 0 : i32
    return %c0_i32 : i32
  }
  func.func @transform_7(%arg0: i32) -> (i32, i32) {
    %c0_i32 = arith.constant 0 : i32
    %c0_i32_0 = arith.constant 0 : i32
    %c0_i32_1 = arith.constant 0 : i32
    return %c0_i32, %c0_i32_0 : i32, i32
  }
}

</mosaic_0001>

<bundles_post_ra>
// kernel: discriminator_forward.4
= control target key start
LH: loop header
LB: loop body
LE: loop exit
PB: predicated region body
PF: predicated region fallthrough
CT: control target
= control target key end

     0   :  { %s1390_s12 = smov 0   ;;  %s1685_s0 = inlined_call_operand.vmem [shape: bf16[2048,48], index: 0, kind: input, shape index: {}]   ;;  %s1686_s1 = inlined_call_operand.vmem [shape: bf16[48,64], index: 1, kind: input, shape index: {}]   ;;  %s1687_s2 = inlined_call_operand.vmem [shape: f32[1,64], index: 2, kind: input, shape index: {}]   ;;  %s1688_s3 = inlined_call_operand.vmem [shape: f32[2048,64], index: 3, kind: output, shape index: {}]  }
   0x1 LB: > { %s1129_s13 = sadd.s32 4294967295, %s1368_s12   ;;  %p1133_p0 = scmp.ge.s32.totalorder %s1368_s12, 1  ;;  %s1368_s12 = sphi %s1390_s12, %s13_s12  }
   0x2   : > { %p138_p1 = scmp.lt.s32.totalorder %s1368_s12, 5 }
   0x4   : > { %p139_p2 = pnand %p1133_p0, %p138_p1 }
   0x5   : > { %v1327_v0 = vld [vmem:[%s1686_s1] sm:$0xff] (!%p139_p2)   ;;  %s1134_s16 = sshll.u32 (!%p139_p2), %s1129_s13, 6  ;;  %v1328_v1 = vld [vmem:[%s1686_s1 + $0x8] sm:$0xff] (!%p139_p2)   ;;  %v1329_v2 = vld [vmem:[%s1686_s1 + $0x10] sm:$0xff] (!%p139_p2)   ;;  %vm430_vm0 = vcmask (!%p139_p2), 392192   ;;  %vm1008_vm1 = vcmask (!%p139_p2), 523264  }
   0x6   : > { %142 = sbr.rel (%p139_p2) target bundleno = 300 (0x12c), region = 32  ;;  %p163_p3 = scmp.lt.s32.totalorder (!%p139_p2), %s1134_s16, 255  ;;  %1243 = vmatprep.subr.bf16.mxu0 (!%p139_p2), %v1327_v0  ;;  %1313 = vmatprep.subr.bf16.mxu1 (!%p139_p2), %v1327_v0  ;;  %v1482_v35 = vld [vmem:[%s1687_s2] ss:$0 sm:$0xff] (!%p139_p2) }
   0x7   : > { %1244 = vmatpush3.bf16.msra.mxu0 (!%p139_p2), %v1327_v0  ;;  %1316 = vmatpush3.bf16.msra.mxu1 (!%p139_p2), %v1327_v0 }
   0x8   : > { %1245 = vmatprep.subr.bf16.mxu0 (!%p139_p2), %v1328_v1  ;;  %1314 = vmatprep.subr.bf16.mxu1 (!%p139_p2), %v1328_v1 }
   0xb   : > { %1246 = vmatpush3.bf16.msra.mxu0 (!%p139_p2), %v1328_v1  ;;  %1317 = vmatpush3.bf16.msra.mxu1 (!%p139_p2), %v1328_v1 }
   0xc   : > { %1247 = vmatprep.subr.bf16.mxu0 (!%p139_p2), %v1329_v2  ;;  %1315 = vmatprep.subr.bf16.mxu1 (!%p139_p2), %v1329_v2 }
   0xd   : > { %s1690_s16 = smov (!%p163_p3, %s1134_s16), 255 }
   0xe   : > { %s1135_s21 = sshll.u32 %s1690_s16, 2  ;;  %s1137_s27 = sshll.u32 %s1690_s16, 3 }
   0xf   : > { %s1413_s24 = scalar_lea.vmem %s1685_s0, %s1135_s21  ;;  %1248 = vmatpush3.bf16.msra.mxu0 %v1329_v2  ;;  %1318 = vmatpush3.bf16.msra.mxu1 %v1329_v2  ;;  %s1492_s30 = scalar_lea.vmem %s1688_s3, %s1137_s27 }
  0x10   : > { %v1330_v3 = vld [vmem:[%s1413_s24] sm:$0xff]   ;;  %v1332_v5 = vld [vmem:[%s1413_s24 + $0x8] sm:$0xff]   ;;  %v1334_v7 = vld [vmem:[%s1413_s24 + $0x10] sm:$0xff]  }
  0x11   : > { %v1331_v4 = vld [vmem:[%s1413_s24 + $0x80] sm:$0xff]   ;;  %1249 = vmatprep.mubr.msk.bf16.mxu0 %vm430_vm0, %v1330_v3  ;;  %v1333_v6 = vld [vmem:[%s1413_s24 + $0x88] sm:$0xff]   ;;  %v1335_v8 = vld [vmem:[%s1413_s24 + $0x90] sm:$0xff]  }
  0x12   : > { %1281 = vmatprep.mubr.msk.bf16.mxu1 %vm430_vm0, %v1331_v4  ;;  %1250 = vmatmul.mubr.msk.bf16.vlgmr.msra.gmra.mrb[0].mxu0 %vm430_vm0, %v1332_v5  ;;  %v1336_v9 = vld [vmem:[%s1413_s24 + $0x18] sm:$0xff]   ;;  %v1338_v11 = vld [vmem:[%s1413_s24 + $0x20] sm:$0xff]   ;;  %v1340_v13 = vld [vmem:[%s1413_s24 + $0x28] sm:$0xff]  }
  0x13   : > { %1282 = vmatmul.mubr.msk.bf16.vlgmr.msra.gmra.mrb[0].mxu1 %vm430_vm0, %v1333_v6  ;;  %1253 = vmatprep.mubr.msk.bf16.mxu0 %vm430_vm0, %v1334_v7  ;;  %v1337_v10 = vld [vmem:[%s1413_s24 + $0x98] sm:$0xff]   ;;  %v1339_v12 = vld [vmem:[%s1413_s24 + $0xa0] sm:$0xff]   ;;  %v1341_v14 = vld [vmem:[%s1413_s24 + $0xa8] sm:$0xff]  }
  0x14   : > { %1285 = vmatprep.mubr.msk.bf16.mxu1 %vm430_vm0, %v1335_v8  ;;  %v1342_v15 = vld [vmem:[%s1413_s24 + $0x30] sm:$0xff]   ;;  %v1344_v17 = vld [vmem:[%s1413_s24 + $0x38] sm:$0xff]   ;;  %v1346_v19 = vld [vmem:[%s1413_s24 + $0x40] sm:$0xff]  }
  0x15   : > { %v1343_v16 = vld [vmem:[%s1413_s24 + $0xb0] sm:$0xff]   ;;  %v1345_v18 = vld [vmem:[%s1413_s24 + $0xb8] sm:$0xff]   ;;  %v1347_v20 = vld [vmem:[%s1413_s24 + $0xc0] sm:$0xff]  }
  0x16   : > { %v1348_v21 = vld [vmem:[%s1413_s24 + $0x48] sm:$0xff]   ;;  %v1350_v23 = vld [vmem:[%s1413_s24 + $0x50] sm:$0xff]   ;;  %v1352_v25 = vld [vmem:[%s1413_s24 + $0x58] sm:$0xff]  }
  0x17   : > { %v1349_v22 = vld [vmem:[%s1413_s24 + $0xc8] sm:$0xff]   ;;  %v1351_v24 = vld [vmem:[%s1413_s24 + $0xd0] sm:$0xff]   ;;  %v1353_v26 = vld [vmem:[%s1413_s24 + $0xd8] sm:$0xff]  }
  0x18   : > { %v1354_v27 = vld [vmem:[%s1413_s24 + $0x60] sm:$0xff]   ;;  %v1356_v29 = vld [vmem:[%s1413_s24 + $0x68] sm:$0xff]   ;;  %v1358_v31 = vld [vmem:[%s1413_s24 + $0x70] sm:$0xff]  }
  0x19   : > { %v1355_v28 = vld [vmem:[%s1413_s24 + $0xe0] sm:$0xff]   ;;  %v1357_v30 = vld [vmem:[%s1413_s24 + $0xe8] sm:$0xff]   ;;  %v1359_v32 = vld [vmem:[%s1413_s24 + $0xf0] sm:$0xff]  }
  0x1a   : > { %1254 = vmatmul.mubr.msk.bf16.gmra.mrb[4].mxu0 %vm430_vm0, %v1336_v9  ;;  %v1360_v33 = vld [vmem:[%s1413_s24 + $0x78] sm:$0xff]  }
  0x1b   : > { %1286 = vmatmul.mubr.msk.bf16.gmra.mrb[4].mxu1 %vm430_vm0, %v1337_v10  ;;  %1257 = vmatprep.mubr.msk.bf16.mxu0 %vm430_vm0, %v1338_v11  ;;  %v1361_v34 = vld [vmem:[%s1413_s24 + $0xf8] sm:$0xff]  }
  0x1c   : > { %1289 = vmatprep.mubr.msk.bf16.mxu1 %vm430_vm0, %v1339_v12 }
  0x22   : > { %1258 = vmatmul.mubr.msk.bf16.gmra.mrb[8].mxu0 %vm430_vm0, %v1340_v13 }
  0x23   : > { %1290 = vmatmul.mubr.msk.bf16.gmra.mrb[8].mxu1 %vm430_vm0, %v1341_v14  ;;  %1261 = vmatprep.mubr.msk.bf16.mxu0 %vm430_vm0, %v1342_v15 }
  0x24   : > { %1293 = vmatprep.mubr.msk.bf16.mxu1 %vm430_vm0, %v1343_v16 }
  0x2a   : > { %1262 = vmatmul.mubr.msk.bf16.gmra.mrb[12].mxu0 %vm430_vm0, %v1344_v17 }
  0x2b   : > { %1294 = vmatmul.mubr.msk.bf16.gmra.mrb[12].mxu1 %vm430_vm0, %v1345_v18  ;;  %1265 = vmatprep.mubr.msk.bf16.mxu0 %vm430_vm0, %v1346_v19 }
  0x2c   : > { %1297 = vmatprep.mubr.msk.bf16.mxu1 %vm430_vm0, %v1347_v20 }
  0x32   : > { %1266 = vmatmul.mubr.msk.bf16.gmra.mrb[16].mxu0 %vm430_vm0, %v1348_v21 }
  0x33   : > { %1298 = vmatmul.mubr.msk.bf16.gmra.mrb[16].mxu1 %vm430_vm0, %v1349_v22  ;;  %1269 = vmatprep.mubr.msk.bf16.mxu0 %vm430_vm0, %v1350_v23 }
  0x34   : > { %1301 = vmatprep.mubr.msk.bf16.mxu1 %vm430_vm0, %v1351_v24 }
  0x3a   : > { %1270 = vmatmul.mubr.msk.bf16.gmra.mrb[20].mxu0 %vm430_vm0, %v1352_v25 }
  0x3b   : > { %1302 = vmatmul.mubr.msk.bf16.gmra.mrb[20].mxu1 %vm430_vm0, %v1353_v26  ;;  %1273 = vmatprep.mubr.msk.bf16.mxu0 %vm430_vm0, %v1354_v27 }
  0x3c   : > { %1305 = vmatprep.mubr.msk.bf16.mxu1 %vm430_vm0, %v1355_v28 }
  0x42   : > { %1274 = vmatmul.mubr.msk.bf16.gmra.mrb[24].mxu0 %vm430_vm0, %v1356_v29 }
  0x43   : > { %1306 = vmatmul.mubr.msk.bf16.gmra.mrb[24].mxu1 %vm430_vm0, %v1357_v30  ;;  %1277 = vmatprep.mubr.msk.bf16.mxu0 %vm430_vm0, %v1358_v31 }
  0x44   : > { %1309 = vmatprep.mubr.msk.bf16.mxu1 %vm430_vm0, %v1359_v32 }
  0x4a   : > { %1278 = vmatmul.mubr.msk.bf16.gmra.mrb[28].mxu0 %vm430_vm0, %v1360_v33 }
  0x4b   : > { %1310 = vmatmul.mubr.msk.bf16.gmra.mrb[28].mxu1 %vm430_vm0, %v1361_v34 }
  0xe5   : > { %v1251_v36 = vpop.f32.mrb[0].mxu0 }
  0xe6   : > { %v1283_v37 = vpop.f32.mrb[0].mxu1  ;;  %v570_v38 = vadd.f32 %v1251_v36, %v1482_v35  ;;  %v561_v40 = vpop.f32.mrb[1].mxu0 }
  0xe7   : > { %v698_v39 = vadd.f32 %v1283_v37, %v1482_v35  ;;  %v689_v41 = vpop.f32.mrb[1].mxu1  ;;  %v562_v42 = vadd.f32 %v1482_v35, %v561_v40  ;;  %v1252_v44 = vpop.f32.mrb[2].mxu0 }
  0xe8   : > { %v690_v43 = vadd.f32 %v1482_v35, %v689_v41  ;;  %v1284_v45 = vpop.f32.mrb[2].mxu1  ;;  %vm818_vm2 = vcmp.ge.f32.partialorder %v570_v38, 0.0  ;;  %v882_v46 = vmul.f32 0.2, %v570_v38  ;;  %v573_v52 = vadd.f32 %v1252_v44, %v1482_v35  ;;  %v564_v54 = vpop.f32.mrb[3].mxu0 }
  0xe9   : > { %vm850_vm3 = vcmp.ge.f32.partialorder %v698_v39, 0.0  ;;  %v914_v47 = vmul.f32 0.2, %v698_v39  ;;  %vm816_vm4 = vcmp.ge.f32.partialorder %v562_v42, 0.0  ;;  %v880_v48 = vmul.f32 0.2, %v562_v42 }
  0xea   : > { %vm848_vm5 = vcmp.ge.f32.partialorder %v690_v43, 0.0  ;;  %v912_v49 = vmul.f32 0.2, %v690_v43  ;;  %v946_v50 = vsel %vm818_vm2, %v570_v38, %v882_v46  ;;  %v701_v53 = vadd.f32 %v1284_v45, %v1482_v35  ;;  %v692_v55 = vpop.f32.mrb[3].mxu1 }
  0xeb   : > { %v978_v51 = vsel %vm850_vm3, %v698_v39, %v914_v47  ;;  %1011 = vst.msk [vmem:[%s1492_s30 + $0x10] sm:$0xff] %vm1008_vm1, %v946_v50  ;;  %v944_v56 = vsel %vm816_vm4, %v562_v42, %v880_v48  ;;  %v565_v58 = vadd.f32 %v1482_v35, %v564_v54  ;;  %v693_v59 = vadd.f32 %v1482_v35, %v692_v55 }
  0xec   : > { %1043 = vst.msk [vmem:[%s1492_s30 + $0x110] sm:$0xff] %vm1008_vm1, %v978_v51  ;;  %v976_v57 = vsel %vm848_vm5, %v690_v43, %v912_v49  ;;  %1009 = vst.msk [vmem:[%s1492_s30] sm:$0xff] %vm1008_vm1, %v944_v56  ;;  %vm819_vm6 = vcmp.ge.f32.partialorder %v573_v52, 0.0  ;;  %v883_v60 = vmul.f32 0.2, %v573_v52  ;;  %vm851_vm7 = vcmp.ge.f32.partialorder %v701_v53, 0.0 }
  0xed   : > { %1041 = vst.msk [vmem:[%s1492_s30 + $0x100] sm:$0xff] %vm1008_vm1, %v976_v57  ;;  %v915_v61 = vmul.f32 0.2, %v701_v53  ;;  %vm817_vm8 = vcmp.ge.f32.partialorder %v565_v58, 0.0  ;;  %v881_v62 = vmul.f32 0.2, %v565_v58 }
  0xee   : > { %vm849_vm9 = vcmp.ge.f32.partialorder %v693_v59, 0.0  ;;  %v913_v63 = vmul.f32 0.2, %v693_v59  ;;  %v947_v0 = vsel %vm819_vm6, %v573_v52, %v883_v60  ;;  %v1255_v2 = vpop.f32.mrb[4].mxu0  ;;  %v1287_v3 = vpop.f32.mrb[4].mxu1 }
  0xef   : > { %v979_v1 = vsel %vm851_vm7, %v701_v53, %v915_v61  ;;  %1012 = vst.msk [vmem:[%s1492_s30 + $0x18] sm:$0xff] %vm1008_vm1, %v947_v0  ;;  %v945_v4 = vsel %vm817_vm8, %v565_v58, %v881_v62  ;;  %v586_v6 = vadd.f32 %v1255_v2, %v1482_v35  ;;  %v714_v7 = vadd.f32 %v1287_v3, %v1482_v35  ;;  %v577_v8 = vpop.f32.mrb[5].mxu0  ;;  %v705_v9 = vpop.f32.mrb[5].mxu1 }
  0xf0   : > { %1044 = vst.msk [vmem:[%s1492_s30 + $0x118] sm:$0xff] %vm1008_vm1, %v979_v1  ;;  %v977_v5 = vsel %vm849_vm9, %v693_v59, %v913_v63  ;;  %1010 = vst.msk [vmem:[%s1492_s30 + $0x8] sm:$0xff] %vm1008_vm1, %v945_v4  ;;  %v578_v10 = vadd.f32 %v1482_v35, %v577_v8  ;;  %v706_v11 = vadd.f32 %v1482_v35, %v705_v9  ;;  %v1256_v12 = vpop.f32.mrb[6].mxu0  ;;  %v1288_v13 = vpop.f32.mrb[6].mxu1 }
  0xf1   : > { %1042 = vst.msk [vmem:[%s1492_s30 + $0x108] sm:$0xff] %vm1008_vm1, %v977_v5  ;;  %vm822_vm10 = vcmp.ge.f32.partialorder %v586_v6, 0.0  ;;  %v886_v14 = vmul.f32 0.2, %v586_v6  ;;  %vm854_vm11 = vcmp.ge.f32.partialorder %v714_v7, 0.0  ;;  %v589_v20 = vadd.f32 %v1256_v12, %v1482_v35  ;;  %v580_v22 = vpop.f32.mrb[7].mxu0 }
  0xf2   : > { %v918_v15 = vmul.f32 0.2, %v714_v7  ;;  %vm820_vm12 = vcmp.ge.f32.partialorder %v578_v10, 0.0  ;;  %v884_v16 = vmul.f32 0.2, %v578_v10  ;;  %vm852_vm13 = vcmp.ge.f32.partialorder %v706_v11, 0.0 }
  0xf3   : > { %v916_v17 = vmul.f32 0.2, %v706_v11  ;;  %v950_v18 = vsel %vm822_vm10, %v586_v6, %v886_v14  ;;  %v717_v21 = vadd.f32 %v1288_v13, %v1482_v35  ;;  %v708_v23 = vpop.f32.mrb[7].mxu1  ;;  %v581_v26 = vadd.f32 %v1482_v35, %v580_v22 }
  0xf4   : > { %v982_v19 = vsel %vm854_vm11, %v714_v7, %v918_v15  ;;  %1015 = vst.msk [vmem:[%s1492_s30 + $0x30] sm:$0xff] %vm1008_vm1, %v950_v18  ;;  %v948_v24 = vsel %vm820_vm12, %v578_v10, %v884_v16  ;;  %v709_v27 = vadd.f32 %v1482_v35, %v708_v23  ;;  %vm823_vm14 = vcmp.ge.f32.partialorder %v589_v20, 0.0 }
  0xf5   : > { %1047 = vst.msk [vmem:[%s1492_s30 + $0x130] sm:$0xff] %vm1008_vm1, %v982_v19  ;;  %v980_v25 = vsel %vm852_vm13, %v706_v11, %v916_v17  ;;  %1013 = vst.msk [vmem:[%s1492_s30 + $0x20] sm:$0xff] %vm1008_vm1, %v948_v24  ;;  %v887_v28 = vmul.f32 0.2, %v589_v20  ;;  %vm855_vm15 = vcmp.ge.f32.partialorder %v717_v21, 0.0  ;;  %vm821_vm0 = vcmp.ge.f32.partialorder %v581_v26, 0.0 }
  0xf6   : > { %1045 = vst.msk [vmem:[%s1492_s30 + $0x120] sm:$0xff] %vm1008_vm1, %v980_v25  ;;  %v919_v29 = vmul.f32 0.2, %v717_v21  ;;  %v885_v30 = vmul.f32 0.2, %v581_v26  ;;  %vm853_vm2 = vcmp.ge.f32.partialorder %v709_v27, 0.0 }
  0xf7   : > { %v917_v31 = vmul.f32 0.2, %v709_v27  ;;  %v951_v32 = vsel %vm823_vm14, %v589_v20, %v887_v28  ;;  %v1259_v34 = vpop.f32.mrb[8].mxu0  ;;  %v1291_v36 = vpop.f32.mrb[8].mxu1 }
  0xf8   : > { %v983_v33 = vsel %vm855_vm15, %v717_v21, %v919_v29  ;;  %1016 = vst.msk [vmem:[%s1492_s30 + $0x38] sm:$0xff] %vm1008_vm1, %v951_v32  ;;  %v949_v37 = vsel %vm821_vm0, %v581_v26, %v885_v30  ;;  %v602_v39 = vadd.f32 %v1259_v34, %v1482_v35  ;;  %v730_v40 = vadd.f32 %v1291_v36, %v1482_v35  ;;  %v593_v41 = vpop.f32.mrb[9].mxu0  ;;  %v721_v42 = vpop.f32.mrb[9].mxu1 }
  0xf9   : > { %1048 = vst.msk [vmem:[%s1492_s30 + $0x138] sm:$0xff] %vm1008_vm1, %v983_v33  ;;  %v981_v38 = vsel %vm853_vm2, %v709_v27, %v917_v31  ;;  %1014 = vst.msk [vmem:[%s1492_s30 + $0x28] sm:$0xff] %vm1008_vm1, %v949_v37  ;;  %v594_v43 = vadd.f32 %v1482_v35, %v593_v41  ;;  %v722_v44 = vadd.f32 %v1482_v35, %v721_v42  ;;  %v1260_v45 = vpop.f32.mrb[10].mxu0  ;;  %v1292_v46 = vpop.f32.mrb[10].mxu1 }
  0xfa   : > { %1046 = vst.msk [vmem:[%s1492_s30 + $0x128] sm:$0xff] %vm1008_vm1, %v981_v38  ;;  %vm826_vm3 = vcmp.ge.f32.partialorder %v602_v39, 0.0  ;;  %v890_v47 = vmul.f32 0.2, %v602_v39  ;;  %vm858_vm4 = vcmp.ge.f32.partialorder %v730_v40, 0.0  ;;  %v605_v53 = vadd.f32 %v1260_v45, %v1482_v35  ;;  %v596_v55 = vpop.f32.mrb[11].mxu0 }
  0xfb   : > { %v922_v48 = vmul.f32 0.2, %v730_v40  ;;  %vm824_vm5 = vcmp.ge.f32.partialorder %v594_v43, 0.0  ;;  %v888_v49 = vmul.f32 0.2, %v594_v43  ;;  %vm856_vm6 = vcmp.ge.f32.partialorder %v722_v44, 0.0 }
  0xfc   : > { %v920_v50 = vmul.f32 0.2, %v722_v44  ;;  %v954_v51 = vsel %vm826_vm3, %v602_v39, %v890_v47  ;;  %v733_v54 = vadd.f32 %v1292_v46, %v1482_v35  ;;  %v724_v56 = vpop.f32.mrb[11].mxu1  ;;  %v597_v59 = vadd.f32 %v1482_v35, %v596_v55 }
  0xfd   : > { %v986_v52 = vsel %vm858_vm4, %v730_v40, %v922_v48  ;;  %1019 = vst.msk [vmem:[%s1492_s30 + $0x50] sm:$0xff] %vm1008_vm1, %v954_v51  ;;  %v952_v57 = vsel %vm824_vm5, %v594_v43, %v888_v49  ;;  %v725_v60 = vadd.f32 %v1482_v35, %v724_v56  ;;  %v1263_v61 = vpop.f32.mrb[12].mxu0  ;;  %vm827_vm7 = vcmp.ge.f32.partialorder %v605_v53, 0.0 }
  0xfe   : > { %1051 = vst.msk [vmem:[%s1492_s30 + $0x150] sm:$0xff] %vm1008_vm1, %v986_v52  ;;  %v984_v58 = vsel %vm856_vm6, %v722_v44, %v920_v50  ;;  %v1295_v62 = vpop.f32.mrb[12].mxu1  ;;  %1017 = vst.msk [vmem:[%s1492_s30 + $0x40] sm:$0xff] %vm1008_vm1, %v952_v57  ;;  %v891_v63 = vmul.f32 0.2, %v605_v53  ;;  %vm859_vm8 = vcmp.ge.f32.partialorder %v733_v54, 0.0  ;;  %v618_v5 = vadd.f32 %v1263_v61, %v1482_v35 }
  0xff   : > { %1049 = vst.msk [vmem:[%s1492_s30 + $0x140] sm:$0xff] %vm1008_vm1, %v984_v58  ;;  %v923_v0 = vmul.f32 0.2, %v733_v54  ;;  %vm825_vm9 = vcmp.ge.f32.partialorder %v597_v59, 0.0  ;;  %v889_v1 = vmul.f32 0.2, %v597_v59  ;;  %v746_v6 = vadd.f32 %v1295_v62, %v1482_v35 }
 0x100   : > { %vm857_vm10 = vcmp.ge.f32.partialorder %v725_v60, 0.0  ;;  %v921_v2 = vmul.f32 0.2, %v725_v60  ;;  %v955_v3 = vsel %vm827_vm7, %v605_v53, %v891_v63  ;;  %v609_v7 = vpop.f32.mrb[13].mxu0  ;;  %v737_v8 = vpop.f32.mrb[13].mxu1  ;;  %vm830_vm11 = vcmp.ge.f32.partialorder %v618_v5, 0.0 }
 0x101   : > { %v987_v4 = vsel %vm859_vm8, %v733_v54, %v923_v0  ;;  %1020 = vst.msk [vmem:[%s1492_s30 + $0x58] sm:$0xff] %vm1008_vm1, %v955_v3  ;;  %v953_v9 = vsel %vm825_vm9, %v597_v59, %v889_v1  ;;  %v610_v11 = vadd.f32 %v1482_v35, %v609_v7  ;;  %v738_v12 = vadd.f32 %v1482_v35, %v737_v8  ;;  %v1264_v13 = vpop.f32.mrb[14].mxu0  ;;  %v1296_v14 = vpop.f32.mrb[14].mxu1 }
 0x102   : > { %1052 = vst.msk [vmem:[%s1492_s30 + $0x158] sm:$0xff] %vm1008_vm1, %v987_v4  ;;  %v985_v10 = vsel %vm857_vm10, %v725_v60, %v921_v2  ;;  %1018 = vst.msk [vmem:[%s1492_s30 + $0x48] sm:$0xff] %vm1008_vm1, %v953_v9  ;;  %v894_v15 = vmul.f32 0.2, %v618_v5  ;;  %vm862_vm12 = vcmp.ge.f32.partialorder %v746_v6, 0.0  ;;  %v621_v21 = vadd.f32 %v1264_v13, %v1482_v35  ;;  %v612_v23 = vpop.f32.mrb[15].mxu0 }
 0x103   : > { %1050 = vst.msk [vmem:[%s1492_s30 + $0x148] sm:$0xff] %vm1008_vm1, %v985_v10  ;;  %v926_v16 = vmul.f32 0.2, %v746_v6  ;;  %vm828_vm13 = vcmp.ge.f32.partialorder %v610_v11, 0.0  ;;  %v892_v17 = vmul.f32 0.2, %v610_v11  ;;  %v749_v22 = vadd.f32 %v1296_v14, %v1482_v35 }
 0x104   : > { %vm860_vm14 = vcmp.ge.f32.partialorder %v738_v12, 0.0  ;;  %v924_v18 = vmul.f32 0.2, %v738_v12  ;;  %v958_v19 = vsel %vm830_vm11, %v618_v5, %v894_v15  ;;  %v740_v24 = vpop.f32.mrb[15].mxu1  ;;  %v613_v27 = vadd.f32 %v1482_v35, %v612_v23 }
 0x105   : > { %v990_v20 = vsel %vm862_vm12, %v746_v6, %v926_v16  ;;  %1023 = vst.msk [vmem:[%s1492_s30 + $0x70] sm:$0xff] %vm1008_vm1, %v958_v19  ;;  %v956_v25 = vsel %vm828_vm13, %v610_v11, %v892_v17  ;;  %v741_v28 = vadd.f32 %v1482_v35, %v740_v24  ;;  %v1267_v29 = vpop.f32.mrb[16].mxu0  ;;  %vm831_vm15 = vcmp.ge.f32.partialorder %v621_v21, 0.0 }
 0x106   : > { %1055 = vst.msk [vmem:[%s1492_s30 + $0x170] sm:$0xff] %vm1008_vm1, %v990_v20  ;;  %v988_v26 = vsel %vm860_vm14, %v738_v12, %v924_v18  ;;  %v1299_v30 = vpop.f32.mrb[16].mxu1  ;;  %1021 = vst.msk [vmem:[%s1492_s30 + $0x60] sm:$0xff] %vm1008_vm1, %v956_v25  ;;  %v895_v31 = vmul.f32 0.2, %v621_v21  ;;  %vm863_vm0 = vcmp.ge.f32.partialorder %v749_v22, 0.0  ;;  %v634_v38 = vadd.f32 %v1267_v29, %v1482_v35 }
 0x107   : > { %1053 = vst.msk [vmem:[%s1492_s30 + $0x160] sm:$0xff] %vm1008_vm1, %v988_v26  ;;  %v927_v32 = vmul.f32 0.2, %v749_v22  ;;  %vm829_vm2 = vcmp.ge.f32.partialorder %v613_v27, 0.0  ;;  %v893_v33 = vmul.f32 0.2, %v613_v27  ;;  %v762_v39 = vadd.f32 %v1299_v30, %v1482_v35 }
 0x108   : > { %vm861_vm3 = vcmp.ge.f32.partialorder %v741_v28, 0.0  ;;  %v925_v34 = vmul.f32 0.2, %v741_v28  ;;  %v959_v36 = vsel %vm831_vm15, %v621_v21, %v895_v31  ;;  %v625_v40 = vpop.f32.mrb[17].mxu0  ;;  %v753_v41 = vpop.f32.mrb[17].mxu1  ;;  %vm834_vm4 = vcmp.ge.f32.partialorder %v634_v38, 0.0 }
 0x109   : > { %v991_v37 = vsel %vm863_vm0, %v749_v22, %v927_v32  ;;  %1024 = vst.msk [vmem:[%s1492_s30 + $0x78] sm:$0xff] %vm1008_vm1, %v959_v36  ;;  %v957_v42 = vsel %vm829_vm2, %v613_v27, %v893_v33  ;;  %v626_v44 = vadd.f32 %v1482_v35, %v625_v40  ;;  %v754_v45 = vadd.f32 %v1482_v35, %v753_v41  ;;  %v1268_v46 = vpop.f32.mrb[18].mxu0  ;;  %v1300_v47 = vpop.f32.mrb[18].mxu1 }
 0x10a   : > { %1056 = vst.msk [vmem:[%s1492_s30 + $0x178] sm:$0xff] %vm1008_vm1, %v991_v37  ;;  %v989_v43 = vsel %vm861_vm3, %v741_v28, %v925_v34  ;;  %1022 = vst.msk [vmem:[%s1492_s30 + $0x68] sm:$0xff] %vm1008_vm1, %v957_v42  ;;  %v898_v48 = vmul.f32 0.2, %v634_v38  ;;  %vm866_vm5 = vcmp.ge.f32.partialorder %v762_v39, 0.0  ;;  %v637_v54 = vadd.f32 %v1268_v46, %v1482_v35  ;;  %v628_v56 = vpop.f32.mrb[19].mxu0 }
 0x10b   : > { %1054 = vst.msk [vmem:[%s1492_s30 + $0x168] sm:$0xff] %vm1008_vm1, %v989_v43  ;;  %v930_v49 = vmul.f32 0.2, %v762_v39  ;;  %vm832_vm6 = vcmp.ge.f32.partialorder %v626_v44, 0.0  ;;  %v896_v50 = vmul.f32 0.2, %v626_v44  ;;  %v765_v55 = vadd.f32 %v1300_v47, %v1482_v35 }
 0x10c   : > { %vm864_vm7 = vcmp.ge.f32.partialorder %v754_v45, 0.0  ;;  %v928_v51 = vmul.f32 0.2, %v754_v45  ;;  %v962_v52 = vsel %vm834_vm4, %v634_v38, %v898_v48  ;;  %v756_v57 = vpop.f32.mrb[19].mxu1  ;;  %v629_v60 = vadd.f32 %v1482_v35, %v628_v56 }
 0x10d   : > { %v994_v53 = vsel %vm866_vm5, %v762_v39, %v930_v49  ;;  %1027 = vst.msk [vmem:[%s1492_s30 + $0x90] sm:$0xff] %vm1008_vm1, %v962_v52  ;;  %v960_v58 = vsel %vm832_vm6, %v626_v44, %v896_v50  ;;  %v757_v61 = vadd.f32 %v1482_v35, %v756_v57  ;;  %v1271_v62 = vpop.f32.mrb[20].mxu0  ;;  %vm835_vm8 = vcmp.ge.f32.partialorder %v637_v54, 0.0 }
 0x10e   : > { %1059 = vst.msk [vmem:[%s1492_s30 + $0x190] sm:$0xff] %vm1008_vm1, %v994_v53  ;;  %v992_v59 = vsel %vm864_vm7, %v754_v45, %v928_v51  ;;  %v1303_v63 = vpop.f32.mrb[20].mxu1  ;;  %1025 = vst.msk [vmem:[%s1492_s30 + $0x80] sm:$0xff] %vm1008_vm1, %v960_v58  ;;  %v899_v0 = vmul.f32 0.2, %v637_v54  ;;  %vm867_vm9 = vcmp.ge.f32.partialorder %v765_v55, 0.0  ;;  %v650_v6 = vadd.f32 %v1271_v62, %v1482_v35 }
 0x10f   : > { %1057 = vst.msk [vmem:[%s1492_s30 + $0x180] sm:$0xff] %vm1008_vm1, %v992_v59  ;;  %v931_v1 = vmul.f32 0.2, %v765_v55  ;;  %vm833_vm10 = vcmp.ge.f32.partialorder %v629_v60, 0.0  ;;  %v897_v2 = vmul.f32 0.2, %v629_v60  ;;  %v778_v7 = vadd.f32 %v1303_v63, %v1482_v35 }
 0x110   : > { %vm865_vm11 = vcmp.ge.f32.partialorder %v757_v61, 0.0  ;;  %v929_v3 = vmul.f32 0.2, %v757_v61  ;;  %v963_v4 = vsel %vm835_vm8, %v637_v54, %v899_v0  ;;  %v641_v8 = vpop.f32.mrb[21].mxu0  ;;  %v769_v9 = vpop.f32.mrb[21].mxu1  ;;  %vm838_vm12 = vcmp.ge.f32.partialorder %v650_v6, 0.0 }
 0x111   : > { %v995_v5 = vsel %vm867_vm9, %v765_v55, %v931_v1  ;;  %1028 = vst.msk [vmem:[%s1492_s30 + $0x98] sm:$0xff] %vm1008_vm1, %v963_v4  ;;  %v961_v10 = vsel %vm833_vm10, %v629_v60, %v897_v2  ;;  %v642_v12 = vadd.f32 %v1482_v35, %v641_v8  ;;  %v770_v13 = vadd.f32 %v1482_v35, %v769_v9  ;;  %v1272_v14 = vpop.f32.mrb[22].mxu0  ;;  %v1304_v15 = vpop.f32.mrb[22].mxu1 }
 0x112   : > { %1060 = vst.msk [vmem:[%s1492_s30 + $0x198] sm:$0xff] %vm1008_vm1, %v995_v5  ;;  %v993_v11 = vsel %vm865_vm11, %v757_v61, %v929_v3  ;;  %1026 = vst.msk [vmem:[%s1492_s30 + $0x88] sm:$0xff] %vm1008_vm1, %v961_v10  ;;  %v902_v16 = vmul.f32 0.2, %v650_v6  ;;  %vm870_vm13 = vcmp.ge.f32.partialorder %v778_v7, 0.0  ;;  %v653_v22 = vadd.f32 %v1272_v14, %v1482_v35  ;;  %v644_v24 = vpop.f32.mrb[23].mxu0 }
 0x113   : > { %1058 = vst.msk [vmem:[%s1492_s30 + $0x188] sm:$0xff] %vm1008_vm1, %v993_v11  ;;  %v934_v17 = vmul.f32 0.2, %v778_v7  ;;  %vm836_vm14 = vcmp.ge.f32.partialorder %v642_v12, 0.0  ;;  %v900_v18 = vmul.f32 0.2, %v642_v12  ;;  %v781_v23 = vadd.f32 %v1304_v15, %v1482_v35 }
 0x114   : > { %vm868_vm15 = vcmp.ge.f32.partialorder %v770_v13, 0.0  ;;  %v932_v19 = vmul.f32 0.2, %v770_v13  ;;  %v966_v20 = vsel %vm838_vm12, %v650_v6, %v902_v16  ;;  %v772_v25 = vpop.f32.mrb[23].mxu1  ;;  %v645_v28 = vadd.f32 %v1482_v35, %v644_v24 }
 0x115   : > { %v998_v21 = vsel %vm870_vm13, %v778_v7, %v934_v17  ;;  %1031 = vst.msk [vmem:[%s1492_s30 + $0xb0] sm:$0xff] %vm1008_vm1, %v966_v20  ;;  %v964_v26 = vsel %vm836_vm14, %v642_v12, %v900_v18  ;;  %v773_v29 = vadd.f32 %v1482_v35, %v772_v25  ;;  %v1275_v30 = vpop.f32.mrb[24].mxu0  ;;  %vm839_vm0 = vcmp.ge.f32.partialorder %v653_v22, 0.0 }
 0x116   : > { %1063 = vst.msk [vmem:[%s1492_s30 + $0x1b0] sm:$0xff] %vm1008_vm1, %v998_v21  ;;  %v996_v27 = vsel %vm868_vm15, %v770_v13, %v932_v19  ;;  %v1307_v31 = vpop.f32.mrb[24].mxu1  ;;  %1029 = vst.msk [vmem:[%s1492_s30 + $0xa0] sm:$0xff] %vm1008_vm1, %v964_v26  ;;  %v903_v32 = vmul.f32 0.2, %v653_v22  ;;  %vm871_vm2 = vcmp.ge.f32.partialorder %v781_v23, 0.0  ;;  %v666_v39 = vadd.f32 %v1275_v30, %v1482_v35 }
 0x117   : > { %1061 = vst.msk [vmem:[%s1492_s30 + $0x1a0] sm:$0xff] %vm1008_vm1, %v996_v27  ;;  %v935_v33 = vmul.f32 0.2, %v781_v23  ;;  %vm837_vm3 = vcmp.ge.f32.partialorder %v645_v28, 0.0  ;;  %v901_v34 = vmul.f32 0.2, %v645_v28  ;;  %v794_v40 = vadd.f32 %v1307_v31, %v1482_v35 }
 0x118   : > { %vm869_vm4 = vcmp.ge.f32.partialorder %v773_v29, 0.0  ;;  %v933_v36 = vmul.f32 0.2, %v773_v29  ;;  %v967_v37 = vsel %vm839_vm0, %v653_v22, %v903_v32  ;;  %v657_v41 = vpop.f32.mrb[25].mxu0  ;;  %v785_v42 = vpop.f32.mrb[25].mxu1  ;;  %vm842_vm5 = vcmp.ge.f32.partialorder %v666_v39, 0.0 }
 0x119   : > { %v999_v38 = vsel %vm871_vm2, %v781_v23, %v935_v33  ;;  %1032 = vst.msk [vmem:[%s1492_s30 + $0xb8] sm:$0xff] %vm1008_vm1, %v967_v37  ;;  %v965_v43 = vsel %vm837_vm3, %v645_v28, %v901_v34  ;;  %v658_v45 = vadd.f32 %v1482_v35, %v657_v41  ;;  %v786_v46 = vadd.f32 %v1482_v35, %v785_v42  ;;  %v1276_v47 = vpop.f32.mrb[26].mxu0  ;;  %v1308_v48 = vpop.f32.mrb[26].mxu1 }
 0x11a   : > { %1064 = vst.msk [vmem:[%s1492_s30 + $0x1b8] sm:$0xff] %vm1008_vm1, %v999_v38  ;;  %v997_v44 = vsel %vm869_vm4, %v773_v29, %v933_v36  ;;  %1030 = vst.msk [vmem:[%s1492_s30 + $0xa8] sm:$0xff] %vm1008_vm1, %v965_v43  ;;  %v906_v49 = vmul.f32 0.2, %v666_v39  ;;  %vm874_vm6 = vcmp.ge.f32.partialorder %v794_v40, 0.0  ;;  %v669_v55 = vadd.f32 %v1276_v47, %v1482_v35  ;;  %v660_v57 = vpop.f32.mrb[27].mxu0 }
 0x11b   : > { %1062 = vst.msk [vmem:[%s1492_s30 + $0x1a8] sm:$0xff] %vm1008_vm1, %v997_v44  ;;  %v938_v50 = vmul.f32 0.2, %v794_v40  ;;  %vm840_vm7 = vcmp.ge.f32.partialorder %v658_v45, 0.0  ;;  %v904_v51 = vmul.f32 0.2, %v658_v45  ;;  %v797_v56 = vadd.f32 %v1308_v48, %v1482_v35 }
 0x11c   : > { %vm872_vm8 = vcmp.ge.f32.partialorder %v786_v46, 0.0  ;;  %v936_v52 = vmul.f32 0.2, %v786_v46  ;;  %v970_v53 = vsel %vm842_vm5, %v666_v39, %v906_v49  ;;  %v788_v58 = vpop.f32.mrb[27].mxu1  ;;  %v661_v61 = vadd.f32 %v1482_v35, %v660_v57 }
 0x11d   : > { %v1002_v54 = vsel %vm874_vm6, %v794_v40, %v938_v50  ;;  %1035 = vst.msk [vmem:[%s1492_s30 + $0xd0] sm:$0xff] %vm1008_vm1, %v970_v53  ;;  %v968_v59 = vsel %vm840_vm7, %v658_v45, %v904_v51  ;;  %v789_v62 = vadd.f32 %v1482_v35, %v788_v58  ;;  %v1279_v63 = vpop.f32.mrb[28].mxu0  ;;  %vm843_vm9 = vcmp.ge.f32.partialorder %v669_v55, 0.0 }
 0x11e   : > { %1067 = vst.msk [vmem:[%s1492_s30 + $0x1d0] sm:$0xff] %vm1008_vm1, %v1002_v54  ;;  %v1000_v60 = vsel %vm872_vm8, %v786_v46, %v936_v52  ;;  %v1311_v0 = vpop.f32.mrb[28].mxu1  ;;  %1033 = vst.msk [vmem:[%s1492_s30 + $0xc0] sm:$0xff] %vm1008_vm1, %v968_v59  ;;  %v907_v1 = vmul.f32 0.2, %v669_v55  ;;  %vm875_vm10 = vcmp.ge.f32.partialorder %v797_v56, 0.0  ;;  %v682_v7 = vadd.f32 %v1279_v63, %v1482_v35 }
 0x11f   : > { %1065 = vst.msk [vmem:[%s1492_s30 + $0x1c0] sm:$0xff] %vm1008_vm1, %v1000_v60  ;;  %v939_v2 = vmul.f32 0.2, %v797_v56  ;;  %vm841_vm11 = vcmp.ge.f32.partialorder %v661_v61, 0.0  ;;  %v905_v3 = vmul.f32 0.2, %v661_v61  ;;  %v810_v8 = vadd.f32 %v1311_v0, %v1482_v35 }
 0x120   : > { %vm873_vm12 = vcmp.ge.f32.partialorder %v789_v62, 0.0  ;;  %v937_v4 = vmul.f32 0.2, %v789_v62  ;;  %v971_v5 = vsel %vm843_vm9, %v669_v55, %v907_v1  ;;  %v673_v9 = vpop.f32.mrb[29].mxu0  ;;  %v801_v10 = vpop.f32.mrb[29].mxu1  ;;  %vm846_vm13 = vcmp.ge.f32.partialorder %v682_v7, 0.0 }
 0x121   : > { %v1003_v6 = vsel %vm875_vm10, %v797_v56, %v939_v2  ;;  %1036 = vst.msk [vmem:[%s1492_s30 + $0xd8] sm:$0xff] %vm1008_vm1, %v971_v5  ;;  %v969_v11 = vsel %vm841_vm11, %v661_v61, %v905_v3  ;;  %v674_v13 = vadd.f32 %v1482_v35, %v673_v9  ;;  %v802_v14 = vadd.f32 %v1482_v35, %v801_v10  ;;  %v1280_v15 = vpop.f32.mrb[30].mxu0  ;;  %v1312_v16 = vpop.f32.mrb[30].mxu1 }
 0x122   : > { %1068 = vst.msk [vmem:[%s1492_s30 + $0x1d8] sm:$0xff] %vm1008_vm1, %v1003_v6  ;;  %v1001_v12 = vsel %vm873_vm12, %v789_v62, %v937_v4  ;;  %1034 = vst.msk [vmem:[%s1492_s30 + $0xc8] sm:$0xff] %vm1008_vm1, %v969_v11  ;;  %v910_v17 = vmul.f32 0.2, %v682_v7  ;;  %vm878_vm14 = vcmp.ge.f32.partialorder %v810_v8, 0.0  ;;  %v685_v23 = vadd.f32 %v1280_v15, %v1482_v35  ;;  %v676_v25 = vpop.f32.mrb[31].mxu0 }
 0x123   : > { %1066 = vst.msk [vmem:[%s1492_s30 + $0x1c8] sm:$0xff] %vm1008_vm1, %v1001_v12  ;;  %v942_v18 = vmul.f32 0.2, %v810_v8  ;;  %vm844_vm15 = vcmp.ge.f32.partialorder %v674_v13, 0.0  ;;  %v908_v19 = vmul.f32 0.2, %v674_v13  ;;  %v813_v24 = vadd.f32 %v1312_v16, %v1482_v35 }
 0x124   : > { %vm876_vm0 = vcmp.ge.f32.partialorder %v802_v14, 0.0  ;;  %v940_v20 = vmul.f32 0.2, %v802_v14  ;;  %v974_v21 = vsel %vm846_vm13, %v682_v7, %v910_v17  ;;  %v804_v26 = vpop.f32.mrb[31].mxu1  ;;  %v677_v29 = vadd.f32 %v1482_v35, %v676_v25 }
 0x125   : > { %v1006_v22 = vsel %vm878_vm14, %v810_v8, %v942_v18  ;;  %1039 = vst.msk [vmem:[%s1492_s30 + $0xf0] sm:$0xff] %vm1008_vm1, %v974_v21  ;;  %v972_v27 = vsel %vm844_vm15, %v674_v13, %v908_v19  ;;  %v805_v30 = vadd.f32 %v1482_v35, %v804_v26  ;;  %vm847_vm2 = vcmp.ge.f32.partialorder %v685_v23, 0.0 }
 0x126   : > { %1071 = vst.msk [vmem:[%s1492_s30 + $0x1f0] sm:$0xff] %vm1008_vm1, %v1006_v22  ;;  %v1004_v28 = vsel %vm876_vm0, %v802_v14, %v940_v20  ;;  %1037 = vst.msk [vmem:[%s1492_s30 + $0xe0] sm:$0xff] %vm1008_vm1, %v972_v27  ;;  %v911_v31 = vmul.f32 0.2, %v685_v23  ;;  %vm879_vm3 = vcmp.ge.f32.partialorder %v813_v24, 0.0  ;;  %vm845_vm4 = vcmp.ge.f32.partialorder %v677_v29, 0.0 }
 0x127   : > { %1069 = vst.msk [vmem:[%s1492_s30 + $0x1e0] sm:$0xff] %vm1008_vm1, %v1004_v28  ;;  %v943_v32 = vmul.f32 0.2, %v813_v24  ;;  %v909_v33 = vmul.f32 0.2, %v677_v29  ;;  %vm877_vm5 = vcmp.ge.f32.partialorder %v805_v30, 0.0 }
 0x128   : > { %v941_v34 = vmul.f32 0.2, %v805_v30  ;;  %v975_v36 = vsel %vm847_vm2, %v685_v23, %v911_v31 }
 0x129   : > { %v1007_v37 = vsel %vm879_vm3, %v813_v24, %v943_v32  ;;  %1040 = vst.msk [vmem:[%s1492_s30 + $0xf8] sm:$0xff] %vm1008_vm1, %v975_v36  ;;  %v973_v35 = vsel %vm845_vm4, %v677_v29, %v909_v33 }
 0x12a   : > { %1072 = vst.msk [vmem:[%s1492_s30 + $0x1f8] sm:$0xff] %vm1008_vm1, %v1007_v37  ;;  %v1005_v38 = vsel %vm877_vm5, %v805_v30, %v941_v34  ;;  %1038 = vst.msk [vmem:[%s1492_s30 + $0xe8] sm:$0xff] %vm1008_vm1, %v973_v35 }
 0x12b   : > { %1070 = vst.msk [vmem:[%s1492_s30 + $0x1e8] sm:$0xff] %vm1008_vm1, %v1005_v38 }
 0x12c PF: > { %s13_s12 = sadd.s32 1, %s1368_s12  }
 0x12d   : > { %p10_p4 = scmp.ge.s32.totalorder %s13_s12, 6  }
 0x12f   :  { %12 = sbr.rel (!%p10_p4) target bundleno = 1 (0x1), region = 62 }

// kernel: discriminator_forward.5
= control target key start
LH: loop header
LB: loop body
LE: loop exit
PB: predicated region body
PF: predicated region fallthrough
CT: control target
= control target key end

     0   :  { %v4668_v0 = vmov 0   ;;  %s7712_s1 = inlined_call_operand.vmem [shape: bf16[1024,128], index: 1, kind: input, shape index: {}]   ;;  %s7713_s0 = inlined_call_operand.vmem [shape: bf16[512,1024], index: 0, kind: input, shape index: {}]   ;;  %s7714_s2 = inlined_call_operand.vmem [shape: f32[1,128], index: 2, kind: input, shape index: {}]   ;;  %s7715_s3 = inlined_call_operand.vmem [shape: f32[1,128], index: 3, kind: input, shape index: {}]   ;;  %s7716_s4 = inlined_call_operand.vmem [shape: f32[512,128], index: 4, kind: output, shape index: {}]  }
   0x1   :  { %2066 = vmatprep.subr.bf16.mxu1 %v4668_v0  ;;  %2644 = vmatprep.subr.bf16.mxu0 %v4668_v0  ;;  %v4602_v1 = vld [vmem:[%s7712_s1] sm:$0xff]   ;;  %v4604_v3 = vld [vmem:[%s7712_s1 + $0x8] sm:$0xff]   ;;  %v4606_v5 = vld [vmem:[%s7712_s1 + $0x10] sm:$0xff]  }
   0x2   :  { %v4603_v2 = vld [vmem:[%s7712_s1 + $0x100] sm:$0xff]   ;;  %2067 = vmatpush1.bf16.msra.mxu1 %v4602_v1  ;;  %v4605_v4 = vld [vmem:[%s7712_s1 + $0x108] sm:$0xff]   ;;  %v4607_v6 = vld [vmem:[%s7712_s1 + $0x110] sm:$0xff]  }
   0x3   :  { %2645 = vmatpush1.bf16.msra.mxu0 %v4603_v2  ;;  %2068 = vmatprep.subr.bf16.mxu1 %v4668_v0  ;;  %v4608_v7 = vld [vmem:[%s7712_s1 + $0x18] sm:$0xff]   ;;  %v4610_v9 = vld [vmem:[%s7712_s1 + $0x20] sm:$0xff]   ;;  %v4612_v11 = vld [vmem:[%s7712_s1 + $0x28] sm:$0xff]  }
   0x4   :  { %2646 = vmatprep.subr.bf16.mxu0 %v4668_v0  ;;  %v4609_v8 = vld [vmem:[%s7712_s1 + $0x118] sm:$0xff]   ;;  %v4611_v10 = vld [vmem:[%s7712_s1 + $0x120] sm:$0xff]   ;;  %v4613_v12 = vld [vmem:[%s7712_s1 + $0x128] sm:$0xff]  }
   0x5   :  { %v4614_v13 = vld [vmem:[%s7712_s1 + $0x30] sm:$0xff]   ;;  %v4616_v15 = vld [vmem:[%s7712_s1 + $0x38] sm:$0xff]   ;;  %v4618_v17 = vld [vmem:[%s7712_s1 + $0x40] sm:$0xff]  }
   0x6   :  { %2069 = vmatpush1.bf16.msra.mxu1 %v4604_v3  ;;  %v4615_v14 = vld [vmem:[%s7712_s1 + $0x130] sm:$0xff]   ;;  %v4617_v16 = vld [vmem:[%s7712_s1 + $0x138] sm:$0xff]   ;;  %v4619_v18 = vld [vmem:[%s7712_s1 + $0x140] sm:$0xff]  }
   0x7   :  { %2647 = vmatpush1.bf16.msra.mxu0 %v4605_v4  ;;  %2070 = vmatprep.subr.bf16.mxu1 %v4668_v0  ;;  %v4769_v19 = vld [vmem:[%s7713_s0] sm:$0xff]  ;;  %v4779_v21 = vld [vmem:[%s7713_s0 + $0x10] sm:$0xff]  ;;  %v4620_v24 = vld [vmem:[%s7712_s1 + $0x48] sm:$0xff]  }
   0x8   :  { %2648 = vmatprep.subr.bf16.mxu0 %v4668_v0  ;;  %v4774_v20 = vld [vmem:[%s7713_s0 + $0x20] sm:$0xff]  ;;  %v4786_v23 = vld [vmem:[%s7713_s0 + $0x30] sm:$0xff]  ;;  %v4621_v26 = vld [vmem:[%s7712_s1 + $0x148] sm:$0xff]  }
   0x9   :  { %v3960_v22 = vcombine.high %v4769_v19, %v4774_v20  ;;  %v3964_v25 = vcombine.high %v4779_v21, %v4786_v23  ;;  %v4622_v27 = vld [vmem:[%s7712_s1 + $0x50] sm:$0xff]   ;;  %v4624_v29 = vld [vmem:[%s7712_s1 + $0x58] sm:$0xff]   ;;  %v4626_v31 = vld [vmem:[%s7712_s1 + $0x60] sm:$0xff]   ;;  %v3959_v42 = vcombine.low %v4769_v19, %v4774_v20  ;;  %v3963_v44 = vcombine.low %v4779_v21, %v4786_v23 }
   0xa   :  { %2071 = vmatpush1.bf16.msra.mxu1 %v4606_v5  ;;  %v4623_v28 = vld [vmem:[%s7712_s1 + $0x150] sm:$0xff]   ;;  %v4625_v30 = vld [vmem:[%s7712_s1 + $0x158] sm:$0xff]   ;;  %v4627_v32 = vld [vmem:[%s7712_s1 + $0x160] sm:$0xff]  }
   0xb   :  { %2649 = vmatpush1.bf16.msra.mxu0 %v4607_v6  ;;  %2072 = vmatprep.subr.bf16.mxu1 %v4668_v0  ;;  %v4628_v33 = vld [vmem:[%s7712_s1 + $0x68] sm:$0xff]   ;;  %v4630_v35 = vld [vmem:[%s7712_s1 + $0x70] sm:$0xff]   ;;  %v4632_v37 = vld [vmem:[%s7712_s1 + $0x78] sm:$0xff]  }
   0xc   :  { %2650 = vmatprep.subr.bf16.mxu0 %v4668_v0  ;;  %2098 = vmatprep.mubr.bf16.mxu1 %v3960_v22  ;;  %v4629_v34 = vld [vmem:[%s7712_s1 + $0x168] sm:$0xff]   ;;  %v4631_v36 = vld [vmem:[%s7712_s1 + $0x170] sm:$0xff]   ;;  %v4633_v38 = vld [vmem:[%s7712_s1 + $0x178] sm:$0xff]  }
   0xd   :  { %2676 = vmatprep.mubr.bf16.mxu0 %v3964_v25  ;;  %v26_v39 = vld [vmem:[%s7713_s0 + $0x40] sm:$0xff]  ;;  %v28_v41 = vld [vmem:[%s7713_s0 + $0x50] sm:$0xff]  ;;  %v4636_v51 = vld [vmem:[%s7712_s1 + $0x88] sm:$0xff]  }
   0xe   :  { %2073 = vmatpush1.bf16.msra.mxu1 %v4608_v7  ;;  %v30_v40 = vld [vmem:[%s7713_s0 + $0x60] sm:$0xff]  ;;  %v32_v43 = vld [vmem:[%s7713_s0 + $0x70] sm:$0xff]  ;;  %v4637_v52 = vld [vmem:[%s7712_s1 + $0x188] sm:$0xff]  }
   0xf   :  { %2651 = vmatpush1.bf16.msra.mxu0 %v4609_v8  ;;  %2074 = vmatprep.subr.bf16.mxu1 %v4668_v0  ;;  %v4634_v45 = vld [vmem:[%s7712_s1 + $0x80] sm:$0xff]   ;;  %v3968_v47 = vcombine.high %v26_v39, %v30_v40  ;;  %v3972_v48 = vcombine.high %v28_v41, %v32_v43  ;;  %v36_v53 = vld [vmem:[%s7713_s0 + $0x90] sm:$0xff]  ;;  %v3967_v55 = vcombine.low %v26_v39, %v30_v40  ;;  %v4640_v2 = vld [vmem:[%s7712_s1 + $0x98] sm:$0xff]  }
  0x10   :  { %2652 = vmatprep.subr.bf16.mxu0 %v4668_v0  ;;  %v4635_v46 = vld [vmem:[%s7712_s1 + $0x180] sm:$0xff]   ;;  %v40_v54 = vld [vmem:[%s7713_s0 + $0xb0] sm:$0xff]  ;;  %v3971_v56 = vcombine.low %v28_v41, %v32_v43  ;;  %v4641_v3 = vld [vmem:[%s7712_s1 + $0x198] sm:$0xff]  }
  0x11   :  { %v34_v49 = vld [vmem:[%s7713_s0 + $0x80] sm:$0xff]  ;;  %v3980_v58 = vcombine.high %v36_v53, %v40_v54  ;;  %v4638_v59 = vld [vmem:[%s7712_s1 + $0x90] sm:$0xff]   ;;  %v3979_v6 = vcombine.low %v36_v53, %v40_v54  ;;  %v4653_v39 = vld [vmem:[%s7712_s1 + $0x1c8] sm:$0xff]  }
  0x12   :  { %2075 = vmatpush1.bf16.msra.mxu1 %v4610_v9  ;;  %v38_v50 = vld [vmem:[%s7713_s0 + $0xa0] sm:$0xff]  ;;  %v4639_v60 = vld [vmem:[%s7712_s1 + $0x190] sm:$0xff]   ;;  %v4656_v54 = vld [vmem:[%s7712_s1 + $0xd8] sm:$0xff]  }
  0x13   :  { %2653 = vmatpush1.bf16.msra.mxu0 %v4611_v10  ;;  %2076 = vmatprep.subr.bf16.mxu1 %v4668_v0  ;;  %v3976_v57 = vcombine.high %v34_v49, %v38_v50  ;;  %v42_v61 = vld [vmem:[%s7713_s0 + $0xc0] sm:$0xff]  ;;  %v44_v63 = vld [vmem:[%s7713_s0 + $0xd0] sm:$0xff]  ;;  %v3975_v4 = vcombine.low %v34_v49, %v38_v50 }
  0x14   :  { %2654 = vmatprep.subr.bf16.mxu0 %v4668_v0  ;;  %v46_v62 = vld [vmem:[%s7713_s0 + $0xe0] sm:$0xff]  ;;  %v48_v1 = vld [vmem:[%s7713_s0 + $0xf0] sm:$0xff] }
  0x15   :  { %v4642_v5 = vld [vmem:[%s7712_s1 + $0xa0] sm:$0xff]   ;;  %v3984_v7 = vcombine.high %v42_v61, %v46_v62  ;;  %v3988_v9 = vcombine.high %v44_v63, %v48_v1  ;;  %v4646_v20 = vld [vmem:[%s7712_s1 + $0xb0] sm:$0xff]  }
  0x16   :  { %2077 = vmatpush1.bf16.msra.mxu1 %v4612_v11  ;;  %v4643_v8 = vld [vmem:[%s7712_s1 + $0x1a0] sm:$0xff]   ;;  %v4647_v21 = vld [vmem:[%s7712_s1 + $0x1b0] sm:$0xff]  }
  0x17   :  { %2655 = vmatpush1.bf16.msra.mxu0 %v4613_v12  ;;  %2078 = vmatprep.subr.bf16.mxu1 %v4668_v0  ;;  %v50_v10 = vld [vmem:[%s7713_s0 + $0x100] sm:$0xff]  ;;  %v52_v12 = vld [vmem:[%s7713_s0 + $0x110] sm:$0xff] }
  0x18   :  { %2656 = vmatprep.subr.bf16.mxu0 %v4668_v0  ;;  %v54_v11 = vld [vmem:[%s7713_s0 + $0x120] sm:$0xff]  ;;  %v60_v25 = vld [vmem:[%s7713_s0 + $0x150] sm:$0xff] }
  0x19   :  { %v58_v22 = vld [vmem:[%s7713_s0 + $0x140] sm:$0xff]  ;;  %v80_v49 = vld [vmem:[%s7713_s0 + $0x1f0] sm:$0xff] }
  0x1a   :  { %2079 = vmatpush1.bf16.msra.mxu1 %v4614_v13  ;;  %v56_v13 = vld [vmem:[%s7713_s0 + $0x130] sm:$0xff]  ;;  %v62_v23 = vld [vmem:[%s7713_s0 + $0x160] sm:$0xff] }
  0x1b   :  { %2657 = vmatpush1.bf16.msra.mxu0 %v4615_v14  ;;  %2080 = vmatprep.subr.bf16.mxu1 %v4668_v0  ;;  %v4644_v14 = vld [vmem:[%s7712_s1 + $0xa8] sm:$0xff]   ;;  %v3996_v19 = vcombine.high %v52_v12, %v56_v13  ;;  %v3999_v40 = vcombine.low %v58_v22, %v62_v23 }
  0x1c   :  { %2658 = vmatprep.subr.bf16.mxu0 %v4668_v0 }
  0x1e   :  { %2081 = vmatpush1.bf16.msra.mxu1 %v4616_v15  ;;  %v4645_v15 = vld [vmem:[%s7712_s1 + $0x1a8] sm:$0xff]  }
  0x1f   :  { %2659 = vmatpush1.bf16.msra.mxu0 %v4617_v16  ;;  %2082 = vmatprep.subr.bf16.mxu1 %v4668_v0  ;;  %v3983_v16 = vcombine.low %v42_v61, %v46_v62 }
  0x20   :  { %2660 = vmatprep.subr.bf16.mxu0 %v4668_v0 }
  0x22   :  { %2083 = vmatpush1.bf16.msra.mxu1 %v4618_v17  ;;  %v3987_v17 = vcombine.low %v44_v63, %v48_v1  ;;  %v90_v1 = vld [vmem:[%s7713_s0 + $0x240] sm:$0xff] }
  0x23   :  { %2661 = vmatpush1.bf16.msra.mxu0 %v4619_v18  ;;  %2084 = vmatprep.subr.bf16.mxu1 %v4668_v0  ;;  %v3992_v18 = vcombine.high %v50_v10, %v54_v11 }
  0x24   :  { %2662 = vmatprep.subr.bf16.mxu0 %v4668_v0 }
  0x26   :  { %2085 = vmatpush1.bf16.msra.mxu1 %v4620_v24  ;;  %v4648_v24 = vld [vmem:[%s7712_s1 + $0xb8] sm:$0xff]  }
  0x27   :  { %2663 = vmatpush1.bf16.msra.mxu0 %v4621_v26  ;;  %2086 = vmatprep.subr.bf16.mxu1 %v4668_v0  ;;  %v64_v26 = vld [vmem:[%s7713_s0 + $0x170] sm:$0xff] }
  0x28   :  { %2664 = vmatprep.subr.bf16.mxu0 %v4668_v0  ;;  %v4003_v41 = vcombine.low %v60_v25, %v64_v26 }
  0x2a   :  { %2087 = vmatpush1.bf16.msra.mxu1 %v4622_v27  ;;  %v4649_v27 = vld [vmem:[%s7712_s1 + $0x1b8] sm:$0xff]  }
  0x2b   :  { %2665 = vmatpush1.bf16.msra.mxu0 %v4623_v28  ;;  %2088 = vmatprep.subr.bf16.mxu1 %v4668_v0  ;;  %v3991_v28 = vcombine.low %v50_v10, %v54_v11  ;;  %v4659_v10 = vld [vmem:[%s7712_s1 + $0x1e0] sm:$0xff]  }
  0x2c   :  { %2666 = vmatprep.subr.bf16.mxu0 %v4668_v0  ;;  %v98_v11 = vld [vmem:[%s7713_s0 + $0x280] sm:$0xff] }
  0x2e   :  { %2089 = vmatpush1.bf16.msra.mxu1 %v4624_v29  ;;  %v3995_v29 = vcombine.low %v52_v12, %v56_v13  ;;  %v102_v12 = vld [vmem:[%s7713_s0 + $0x2a0] sm:$0xff]  ;;  %v100_v13 = vld [vmem:[%s7713_s0 + $0x290] sm:$0xff] }
  0x2f   :  { %2667 = vmatpush1.bf16.msra.mxu0 %v4625_v30  ;;  %2090 = vmatprep.subr.bf16.mxu1 %v4668_v0  ;;  %v4000_v30 = vcombine.high %v58_v22, %v62_v23  ;;  %v112_v22 = vld [vmem:[%s7713_s0 + $0x2f0] sm:$0xff]  ;;  %v4039_v23 = vcombine.low %v98_v11, %v102_v12 }
  0x30   :  { %2668 = vmatprep.subr.bf16.mxu0 %v4668_v0 }
  0x32   :  { %2091 = vmatpush1.bf16.msra.mxu1 %v4626_v31  ;;  %v4004_v31 = vcombine.high %v60_v25, %v64_v26 }
  0x33   :  { %2669 = vmatpush1.bf16.msra.mxu0 %v4627_v32  ;;  %2092 = vmatprep.subr.bf16.mxu1 %v4668_v0  ;;  %v4650_v32 = vld [vmem:[%s7712_s1 + $0xc0] sm:$0xff]  }
  0x34   :  { %2670 = vmatprep.subr.bf16.mxu0 %v4668_v0 }
  0x36   :  { %2093 = vmatpush1.bf16.msra.mxu1 %v4628_v33  ;;  %v4651_v33 = vld [vmem:[%s7712_s1 + $0x1c0] sm:$0xff]  }
  0x37   :  { %2671 = vmatpush1.bf16.msra.mxu0 %v4629_v34  ;;  %2094 = vmatprep.subr.bf16.mxu1 %v4668_v0  ;;  %v66_v34 = vld [vmem:[%s7713_s0 + $0x180] sm:$0xff] }
  0x38   :  { %2672 = vmatprep.subr.bf16.mxu0 %v4668_v0 }
  0x3a   :  { %2095 = vmatpush1.bf16.msra.mxu1 %v4630_v35  ;;  %v70_v35 = vld [vmem:[%s7713_s0 + $0x1a0] sm:$0xff] }
  0x3b   :  { %2673 = vmatpush1.bf16.msra.mxu0 %v4631_v36  ;;  %2096 = vmatprep.subr.bf16.mxu1 %v4668_v0  ;;  %v4652_v36 = vld [vmem:[%s7712_s1 + $0xc8] sm:$0xff]   ;;  %v4007_v50 = vcombine.low %v66_v34, %v70_v35 }
  0x3c   :  { %2674 = vmatprep.subr.bf16.mxu0 %v4668_v0 }
  0x3e   :  { %2097 = vmatpush1.bf16.msra.mxu1 %v4632_v37  ;;  %v68_v37 = vld [vmem:[%s7713_s0 + $0x190] sm:$0xff] }
  0x3f   :  { %2675 = vmatpush1.bf16.msra.mxu0 %v4633_v38  ;;  %2355 = vmatprep.subr.bf16.mxu1 %v4668_v0  ;;  %v72_v38 = vld [vmem:[%s7713_s0 + $0x1b0] sm:$0xff] }
  0x40   :  { %2933 = vmatprep.subr.bf16.mxu0 %v4668_v0  ;;  %v4012_v43 = vcombine.high %v68_v37, %v72_v38 }
  0x41   :  { %2099 = vmatmul.mubr.bf16.vlgmr.msra.gmra.mrb[0].mxu1 %v3959_v42  ;;  %v4008_v42 = vcombine.high %v66_v34, %v70_v35 }
  0x42   :  { %2677 = vmatmul.mubr.bf16.vlgmr.msra.gmra.mrb[0].mxu0 %v3963_v44  ;;  %2356 = vmatpush1.bf16.msra.mxu1 %v4634_v45  ;;  %v4654_v44 = vld [vmem:[%s7712_s1 + $0xd0] sm:$0xff]  }
  0x43   :  { %2934 = vmatpush1.bf16.msra.mxu0 %v4635_v46  ;;  %2106 = vmatprep.mubr.bf16.mxu1 %v3968_v47  ;;  %v4655_v45 = vld [vmem:[%s7712_s1 + $0x1d0] sm:$0xff]   ;;  %v74_v46 = vld [vmem:[%s7713_s0 + $0x1c0] sm:$0xff] }
  0x44   :  { %2684 = vmatprep.mubr.bf16.mxu0 %v3972_v48  ;;  %2357 = vmatprep.subr.bf16.mxu1 %v4668_v0  ;;  %v78_v47 = vld [vmem:[%s7713_s0 + $0x1e0] sm:$0xff]  ;;  %v76_v48 = vld [vmem:[%s7713_s0 + $0x1d0] sm:$0xff] }
  0x45   :  { %2935 = vmatprep.subr.bf16.mxu0 %v4668_v0  ;;  %v4020_v53 = vcombine.high %v76_v48, %v80_v49  ;;  %v4019_v61 = vcombine.low %v76_v48, %v80_v49  ;;  %v134_v48 = vld [vmem:[%s7713_s0 + $0x3a0] sm:$0xff]  ;;  %v132_v49 = vld [vmem:[%s7713_s0 + $0x390] sm:$0xff] }
  0x46   :  { %2358 = vmatpush1.bf16.msra.mxu1 %v4636_v51  ;;  %v4011_v51 = vcombine.low %v68_v37, %v72_v38  ;;  %v122_v37 = vld [vmem:[%s7713_s0 + $0x340] sm:$0xff] }
  0x47   :  { %2936 = vmatpush1.bf16.msra.mxu0 %v4637_v52  ;;  %2359 = vmatprep.subr.bf16.mxu1 %v4668_v0  ;;  %v4016_v52 = vcombine.high %v74_v46, %v78_v47  ;;  %v126_v38 = vld [vmem:[%s7713_s0 + $0x360] sm:$0xff] }
  0x48   :  { %2937 = vmatprep.subr.bf16.mxu0 %v4668_v0 }
  0x49   :  { %2107 = vmatmul.mubr.bf16.gmra.mrb[4].mxu1 %v3967_v55  ;;  %v4657_v55 = vld [vmem:[%s7712_s1 + $0x1d8] sm:$0xff]  }
  0x4a   :  { %2685 = vmatmul.mubr.bf16.gmra.mrb[4].mxu0 %v3971_v56  ;;  %2114 = vmatprep.mubr.bf16.mxu1 %v3976_v57  ;;  %v82_v56 = vld [vmem:[%s7713_s0 + $0x200] sm:$0xff] }
  0x4b   :  { %2692 = vmatprep.mubr.bf16.mxu0 %v3980_v58  ;;  %2360 = vmatpush1.bf16.msra.mxu1 %v4638_v59  ;;  %v86_v57 = vld [vmem:[%s7713_s0 + $0x220] sm:$0xff]  ;;  %v84_v58 = vld [vmem:[%s7713_s0 + $0x210] sm:$0xff] }
  0x4c   :  { %2938 = vmatpush1.bf16.msra.mxu0 %v4639_v60  ;;  %2361 = vmatprep.subr.bf16.mxu1 %v4668_v0  ;;  %v88_v59 = vld [vmem:[%s7713_s0 + $0x230] sm:$0xff]  ;;  %v4015_v60 = vcombine.low %v74_v46, %v78_v47  ;;  %v4024_v62 = vcombine.high %v82_v56, %v86_v57  ;;  %v130_v47 = vld [vmem:[%s7713_s0 + $0x380] sm:$0xff] }
  0x4d   :  { %2939 = vmatprep.subr.bf16.mxu0 %v4668_v0  ;;  %v4028_v63 = vcombine.high %v84_v58, %v88_v59  ;;  %v4663_v46 = vld [vmem:[%s7712_s1 + $0x1f0] sm:$0xff]  }
  0x4f   :  { %2362 = vmatpush1.bf16.msra.mxu1 %v4640_v2  ;;  %v94_v2 = vld [vmem:[%s7713_s0 + $0x260] sm:$0xff] }
  0x50   :  { %2940 = vmatpush1.bf16.msra.mxu0 %v4641_v3  ;;  %2363 = vmatprep.subr.bf16.mxu1 %v4668_v0  ;;  %v92_v3 = vld [vmem:[%s7713_s0 + $0x250] sm:$0xff] }
  0x51   :  { %2115 = vmatmul.mubr.bf16.gmra.mrb[8].mxu1 %v3975_v4  ;;  %2941 = vmatprep.subr.bf16.mxu0 %v4668_v0  ;;  %v96_v4 = vld [vmem:[%s7713_s0 + $0x270] sm:$0xff] }
  0x52   :  { %2693 = vmatmul.mubr.bf16.gmra.mrb[8].mxu0 %v3979_v6  ;;  %2122 = vmatprep.mubr.bf16.mxu1 %v3984_v7  ;;  %v4027_v6 = vcombine.low %v84_v58, %v88_v59  ;;  %v4032_v7 = vcombine.high %v90_v1, %v94_v2  ;;  %v4071_v58 = vcombine.low %v130_v47, %v134_v48 }
  0x53   :  { %2700 = vmatprep.mubr.bf16.mxu0 %v3988_v9  ;;  %2364 = vmatpush1.bf16.msra.mxu1 %v4642_v5  ;;  %v4023_v5 = vcombine.low %v82_v56, %v86_v57  ;;  %v4658_v9 = vld [vmem:[%s7712_s1 + $0xe0] sm:$0xff]   ;;  %v140_v57 = vld [vmem:[%s7713_s0 + $0x3d0] sm:$0xff] }
  0x54   :  { %2942 = vmatpush1.bf16.msra.mxu0 %v4643_v8  ;;  %2365 = vmatprep.subr.bf16.mxu1 %v4668_v0  ;;  %v4036_v8 = vcombine.high %v92_v3, %v96_v4  ;;  %v142_v56 = vld [vmem:[%s7713_s0 + $0x3e0] sm:$0xff] }
  0x55   :  { %2943 = vmatprep.subr.bf16.mxu0 %v4668_v0 }
  0x57   :  { %2366 = vmatpush1.bf16.msra.mxu1 %v4644_v14  ;;  %v104_v14 = vld [vmem:[%s7713_s0 + $0x2b0] sm:$0xff] }
  0x58   :  { %2944 = vmatpush1.bf16.msra.mxu0 %v4645_v15  ;;  %2367 = vmatprep.subr.bf16.mxu1 %v4668_v0  ;;  %v4031_v15 = vcombine.low %v90_v1, %v94_v2  ;;  %v146_v1 = vld [vmem:[%s7713_s0 + $0x400] sm:$0xff] }
  0x59   :  { %2123 = vmatmul.mubr.bf16.gmra.mrb[12].mxu1 %v3983_v16  ;;  %2945 = vmatprep.subr.bf16.mxu0 %v4668_v0  ;;  %v4035_v16 = vcombine.low %v92_v3, %v96_v4  ;;  %v150_v2 = vld [vmem:[%s7713_s0 + $0x420] sm:$0xff]  ;;  %v148_v3 = vld [vmem:[%s7713_s0 + $0x410] sm:$0xff] }
  0x5a   :  { %2701 = vmatmul.mubr.bf16.gmra.mrb[12].mxu0 %v3987_v17  ;;  %2130 = vmatprep.mubr.bf16.mxu1 %v3992_v18  ;;  %v4040_v17 = vcombine.high %v98_v11, %v102_v12  ;;  %v4044_v18 = vcombine.high %v100_v13, %v104_v14  ;;  %v152_v4 = vld [vmem:[%s7713_s0 + $0x430] sm:$0xff] }
  0x5b   :  { %2708 = vmatprep.mubr.bf16.mxu0 %v3996_v19  ;;  %2368 = vmatpush1.bf16.msra.mxu1 %v4646_v20  ;;  %v106_v19 = vld [vmem:[%s7713_s0 + $0x2c0] sm:$0xff]  ;;  %v156_v11 = vld [vmem:[%s7713_s0 + $0x450] sm:$0xff] }
  0x5c   :  { %2946 = vmatpush1.bf16.msra.mxu0 %v4647_v21  ;;  %2369 = vmatprep.subr.bf16.mxu1 %v4668_v0  ;;  %v110_v20 = vld [vmem:[%s7713_s0 + $0x2e0] sm:$0xff]  ;;  %v108_v21 = vld [vmem:[%s7713_s0 + $0x2d0] sm:$0xff] }
  0x5d   :  { %2947 = vmatprep.subr.bf16.mxu0 %v4668_v0  ;;  %v4048_v25 = vcombine.high %v106_v19, %v110_v20  ;;  %v4052_v26 = vcombine.high %v108_v21, %v112_v22  ;;  %v4051_v34 = vcombine.low %v108_v21, %v112_v22  ;;  %v160_v12 = vld [vmem:[%s7713_s0 + $0x470] sm:$0xff] }
  0x5e   :  { %v4099_v22 = vcombine.low %v156_v11, %v160_v12 }
  0x5f   :  { %2370 = vmatpush1.bf16.msra.mxu1 %v4648_v24  ;;  %v4043_v24 = vcombine.low %v100_v13, %v104_v14  ;;  %v4087_v13 = vcombine.low %v146_v1, %v150_v2  ;;  %v4091_v14 = vcombine.low %v148_v3, %v152_v4 }
  0x60   :  { %2948 = vmatpush1.bf16.msra.mxu0 %v4649_v27  ;;  %2371 = vmatprep.subr.bf16.mxu1 %v4668_v0  ;;  %v4660_v27 = vld [vmem:[%s7712_s1 + $0xe8] sm:$0xff]  }
  0x61   :  { %2131 = vmatmul.mubr.bf16.gmra.mrb[16].mxu1 %v3991_v28  ;;  %2949 = vmatprep.subr.bf16.mxu0 %v4668_v0  ;;  %v4661_v28 = vld [vmem:[%s7712_s1 + $0x1e8] sm:$0xff]  }
  0x62   :  { %2709 = vmatmul.mubr.bf16.gmra.mrb[16].mxu0 %v3995_v29  ;;  %2138 = vmatprep.mubr.bf16.mxu1 %v4000_v30  ;;  %v114_v29 = vld [vmem:[%s7713_s0 + $0x300] sm:$0xff] }
  0x63   :  { %2716 = vmatprep.mubr.bf16.mxu0 %v4004_v31  ;;  %2372 = vmatpush1.bf16.msra.mxu1 %v4650_v32  ;;  %v118_v30 = vld [vmem:[%s7713_s0 + $0x320] sm:$0xff]  ;;  %v116_v31 = vld [vmem:[%s7713_s0 + $0x310] sm:$0xff] }
  0x64   :  { %2950 = vmatpush1.bf16.msra.mxu0 %v4651_v33  ;;  %2373 = vmatprep.subr.bf16.mxu1 %v4668_v0  ;;  %v120_v32 = vld [vmem:[%s7713_s0 + $0x330] sm:$0xff]  ;;  %v4047_v33 = vcombine.low %v106_v19, %v110_v20  ;;  %v4056_v35 = vcombine.high %v114_v29, %v118_v30 }
  0x65   :  { %2951 = vmatprep.subr.bf16.mxu0 %v4668_v0  ;;  %v164_v19 = vld [vmem:[%s7713_s0 + $0x490] sm:$0xff] }
  0x66   :  { %v168_v20 = vld [vmem:[%s7713_s0 + $0x4b0] sm:$0xff] }
  0x67   :  { %2374 = vmatpush1.bf16.msra.mxu1 %v4652_v36  ;;  %v4060_v36 = vcombine.high %v116_v31, %v120_v32 }
  0x68   :  { %2952 = vmatpush1.bf16.msra.mxu0 %v4653_v39  ;;  %2375 = vmatprep.subr.bf16.mxu1 %v4668_v0  ;;  %v124_v39 = vld [vmem:[%s7713_s0 + $0x350] sm:$0xff] }
  0x69   :  { %2139 = vmatmul.mubr.bf16.gmra.mrb[20].mxu1 %v3999_v40  ;;  %2953 = vmatprep.subr.bf16.mxu0 %v4668_v0  ;;  %v128_v40 = vld [vmem:[%s7713_s0 + $0x370] sm:$0xff] }
  0x6a   :  { %2717 = vmatmul.mubr.bf16.gmra.mrb[20].mxu0 %v4003_v41  ;;  %2146 = vmatprep.mubr.bf16.mxu1 %v4008_v42  ;;  %v4055_v41 = vcombine.low %v114_v29, %v118_v30  ;;  %v4059_v42 = vcombine.low %v116_v31, %v120_v32  ;;  %v4107_v30 = vcombine.low %v164_v19, %v168_v20 }
  0x6b   :  { %2724 = vmatprep.mubr.bf16.mxu0 %v4012_v43  ;;  %2376 = vmatpush1.bf16.msra.mxu1 %v4654_v44  ;;  %v4064_v43 = vcombine.high %v122_v37, %v126_v38  ;;  %v4068_v44 = vcombine.high %v124_v39, %v128_v40 }
  0x6c   :  { %2954 = vmatpush1.bf16.msra.mxu0 %v4655_v45  ;;  %2377 = vmatprep.subr.bf16.mxu1 %v4668_v0  ;;  %v4662_v45 = vld [vmem:[%s7712_s1 + $0xf0] sm:$0xff]  }
  0x6d   :  { %2955 = vmatprep.subr.bf16.mxu0 %v4668_v0 }
  0x6f   :  { %2378 = vmatpush1.bf16.msra.mxu1 %v4656_v54 }
  0x70   :  { %2956 = vmatpush1.bf16.msra.mxu0 %v4657_v55  ;;  %2379 = vmatprep.subr.bf16.mxu1 %v4668_v0  ;;  %v138_v55 = vld [vmem:[%s7713_s0 + $0x3c0] sm:$0xff] }
  0x71   :  { %2147 = vmatmul.mubr.bf16.gmra.mrb[24].mxu1 %v4007_v50  ;;  %2957 = vmatprep.subr.bf16.mxu0 %v4668_v0  ;;  %v136_v50 = vld [vmem:[%s7713_s0 + $0x3b0] sm:$0xff] }
  0x72   :  { %2725 = vmatmul.mubr.bf16.gmra.mrb[24].mxu0 %v4011_v51  ;;  %2154 = vmatprep.mubr.bf16.mxu1 %v4016_v52  ;;  %v4063_v51 = vcombine.low %v122_v37, %v126_v38  ;;  %v4067_v52 = vcombine.low %v124_v39, %v128_v40  ;;  %v4076_v54 = vcombine.high %v132_v49, %v136_v50 }
  0x73   :  { %2732 = vmatprep.mubr.bf16.mxu0 %v4020_v53  ;;  %2380 = vmatpush1.bf16.msra.mxu1 %v4658_v9  ;;  %v4072_v53 = vcombine.high %v130_v47, %v134_v48  ;;  %v4075_v59 = vcombine.low %v132_v49, %v136_v50  ;;  %v154_v9 = vld [vmem:[%s7713_s0 + $0x440] sm:$0xff] }
  0x74   :  { %2958 = vmatpush1.bf16.msra.mxu0 %v4659_v10  ;;  %2381 = vmatprep.subr.bf16.mxu1 %v4668_v0  ;;  %v158_v10 = vld [vmem:[%s7713_s0 + $0x460] sm:$0xff] }
  0x75   :  { %2959 = vmatprep.subr.bf16.mxu0 %v4668_v0  ;;  %v4095_v21 = vcombine.low %v154_v9, %v158_v10  ;;  %v194_v49 = vld [vmem:[%s7713_s0 + $0x580] sm:$0xff] }
  0x76   :  { %v198_v50 = vld [vmem:[%s7713_s0 + $0x5a0] sm:$0xff] }
  0x77   :  { %2382 = vmatpush1.bf16.msra.mxu1 %v4660_v27  ;;  %v172_v27 = vld [vmem:[%s7713_s0 + $0x4d0] sm:$0xff] }
  0x78   :  { %2960 = vmatpush1.bf16.msra.mxu0 %v4661_v28  ;;  %2383 = vmatprep.subr.bf16.mxu1 %v4668_v0  ;;  %v176_v28 = vld [vmem:[%s7713_s0 + $0x4f0] sm:$0xff] }
  0x79   :  { %2155 = vmatmul.mubr.bf16.gmra.mrb[28].mxu1 %v4015_v60  ;;  %2961 = vmatprep.subr.bf16.mxu0 %v4668_v0  ;;  %v4080_v60 = vcombine.high %v138_v55, %v142_v56  ;;  %v4116_v32 = vcombine.high %v172_v27, %v176_v28  ;;  %v4115_v38 = vcombine.low %v172_v27, %v176_v28  ;;  %v236_v27 = vld [vmem:[%s7713_s0 + $0x6d0] sm:$0xff] }
  0x7a   :  { %2733 = vmatmul.mubr.bf16.gmra.mrb[28].mxu0 %v4019_v61  ;;  %2162 = vmatprep.mubr.bf16.mxu1 %v4024_v62  ;;  %v4664_v62 = vld [vmem:[%s7712_s1 + $0xf8] sm:$0xff]   ;;  %v240_v28 = vld [vmem:[%s7713_s0 + $0x6f0] sm:$0xff] }
  0x7b   :  { %2740 = vmatprep.mubr.bf16.mxu0 %v4028_v63  ;;  %2384 = vmatpush1.bf16.msra.mxu1 %v4662_v45  ;;  %v4665_v63 = vld [vmem:[%s7712_s1 + $0x1f8] sm:$0xff]  }
  0x7c   :  { %2962 = vmatpush1.bf16.msra.mxu0 %v4663_v46  ;;  %2385 = vmatprep.subr.bf16.mxu1 %v4668_v0 }
  0x7d   :  { %2963 = vmatprep.subr.bf16.mxu0 %v4668_v0  ;;  %v144_v0 = vld [vmem:[%s7713_s0 + $0x3f0] sm:$0xff] }
  0x7e   :  { %v4084_v61 = vcombine.high %v140_v57, %v144_v0 }
  0x7f   :  { %2386 = vmatpush1.bf16.msra.mxu1 %v4664_v62 }
  0x80   :  { %2964 = vmatpush1.bf16.msra.mxu0 %v4665_v63 }
  0x81   :  { %2163 = vmatmul.mubr.bf16.gmra.mrb[32].mxu1 %v4023_v5  ;;  %v4079_v5 = vcombine.low %v138_v55, %v142_v56  ;;  %v4136_v55 = vcombine.high %v194_v49, %v198_v50 }
  0x82   :  { %2741 = vmatmul.mubr.bf16.gmra.mrb[32].mxu0 %v4027_v6  ;;  %2170 = vmatprep.mubr.bf16.mxu1 %v4032_v7  ;;  %v4083_v6 = vcombine.low %v140_v57, %v144_v0  ;;  %v4088_v7 = vcombine.high %v146_v1, %v150_v2  ;;  %v202_v57 = vld [vmem:[%s7713_s0 + $0x5c0] sm:$0xff] }
  0x83   :  { %2748 = vmatprep.mubr.bf16.mxu0 %v4036_v8  ;;  %v4092_v8 = vcombine.high %v148_v3, %v152_v4  ;;  %v206_v0 = vld [vmem:[%s7713_s0 + $0x5e0] sm:$0xff]  ;;  %v212_v3 = vld [vmem:[%s7713_s0 + $0x610] sm:$0xff] }
  0x84   :  { %v4144_v62 = vcombine.high %v202_v57, %v206_v0  ;;  %v210_v1 = vld [vmem:[%s7713_s0 + $0x600] sm:$0xff]  ;;  %v216_v4 = vld [vmem:[%s7713_s0 + $0x630] sm:$0xff] }
  0x85   :  { %v214_v2 = vld [vmem:[%s7713_s0 + $0x620] sm:$0xff] }
  0x89   :  { %2171 = vmatmul.mubr.bf16.gmra.mrb[36].mxu1 %v4031_v15  ;;  %v4096_v15 = vcombine.high %v154_v9, %v158_v10  ;;  %v218_v9 = vld [vmem:[%s7713_s0 + $0x640] sm:$0xff] }
  0x8a   :  { %2749 = vmatmul.mubr.bf16.gmra.mrb[36].mxu0 %v4035_v16  ;;  %2178 = vmatprep.mubr.bf16.mxu1 %v4040_v17  ;;  %v4100_v16 = vcombine.high %v156_v11, %v160_v12  ;;  %v162_v17 = vld [vmem:[%s7713_s0 + $0x480] sm:$0xff]  ;;  %v220_v11 = vld [vmem:[%s7713_s0 + $0x650] sm:$0xff] }
  0x8b   :  { %2756 = vmatprep.mubr.bf16.mxu0 %v4044_v18  ;;  %v166_v18 = vld [vmem:[%s7713_s0 + $0x4a0] sm:$0xff]  ;;  %v224_v12 = vld [vmem:[%s7713_s0 + $0x670] sm:$0xff] }
  0x8c   :  { %v4103_v29 = vcombine.low %v162_v17, %v166_v18  ;;  %v222_v10 = vld [vmem:[%s7713_s0 + $0x660] sm:$0xff] }
  0x91   :  { %2179 = vmatmul.mubr.bf16.gmra.mrb[40].mxu1 %v4039_v23  ;;  %v4104_v23 = vcombine.high %v162_v17, %v166_v18  ;;  %v226_v17 = vld [vmem:[%s7713_s0 + $0x680] sm:$0xff] }
  0x92   :  { %2757 = vmatmul.mubr.bf16.gmra.mrb[40].mxu0 %v4043_v24  ;;  %2186 = vmatprep.mubr.bf16.mxu1 %v4048_v25  ;;  %v4108_v24 = vcombine.high %v164_v19, %v168_v20  ;;  %v170_v25 = vld [vmem:[%s7713_s0 + $0x4c0] sm:$0xff]  ;;  %v228_v19 = vld [vmem:[%s7713_s0 + $0x690] sm:$0xff] }
  0x93   :  { %2764 = vmatprep.mubr.bf16.mxu0 %v4052_v26  ;;  %v174_v26 = vld [vmem:[%s7713_s0 + $0x4e0] sm:$0xff]  ;;  %v232_v20 = vld [vmem:[%s7713_s0 + $0x6b0] sm:$0xff] }
  0x94   :  { %v4112_v31 = vcombine.high %v170_v25, %v174_v26  ;;  %v4111_v37 = vcombine.low %v170_v25, %v174_v26  ;;  %v230_v18 = vld [vmem:[%s7713_s0 + $0x6a0] sm:$0xff] }
  0x95   :  { %v234_v25 = vld [vmem:[%s7713_s0 + $0x6c0] sm:$0xff] }
  0x96   :  { %v238_v26 = vld [vmem:[%s7713_s0 + $0x6e0] sm:$0xff] }
  0x99   :  { %2187 = vmatmul.mubr.bf16.gmra.mrb[44].mxu1 %v4047_v33  ;;  %v178_v33 = vld [vmem:[%s7713_s0 + $0x500] sm:$0xff] }
  0x9a   :  { %2765 = vmatmul.mubr.bf16.gmra.mrb[44].mxu0 %v4051_v34  ;;  %2194 = vmatprep.mubr.bf16.mxu1 %v4056_v35  ;;  %v182_v34 = vld [vmem:[%s7713_s0 + $0x520] sm:$0xff]  ;;  %v180_v35 = vld [vmem:[%s7713_s0 + $0x510] sm:$0xff] }
  0x9b   :  { %2772 = vmatprep.mubr.bf16.mxu0 %v4060_v36  ;;  %v184_v36 = vld [vmem:[%s7713_s0 + $0x530] sm:$0xff]  ;;  %v4120_v39 = vcombine.high %v178_v33, %v182_v34  ;;  %v4119_v45 = vcombine.low %v178_v33, %v182_v34  ;;  %v242_v33 = vld [vmem:[%s7713_s0 + $0x700] sm:$0xff] }
  0x9c   :  { %v4124_v40 = vcombine.high %v180_v35, %v184_v36  ;;  %v4123_v46 = vcombine.low %v180_v35, %v184_v36  ;;  %v246_v34 = vld [vmem:[%s7713_s0 + $0x720] sm:$0xff]  ;;  %v244_v35 = vld [vmem:[%s7713_s0 + $0x710] sm:$0xff] }
  0x9d   :  { %v248_v36 = vld [vmem:[%s7713_s0 + $0x730] sm:$0xff] }
  0xa1   :  { %2195 = vmatmul.mubr.bf16.gmra.mrb[48].mxu1 %v4055_v41  ;;  %v186_v41 = vld [vmem:[%s7713_s0 + $0x540] sm:$0xff] }
  0xa2   :  { %2773 = vmatmul.mubr.bf16.gmra.mrb[48].mxu0 %v4059_v42  ;;  %2202 = vmatprep.mubr.bf16.mxu1 %v4064_v43  ;;  %v190_v42 = vld [vmem:[%s7713_s0 + $0x560] sm:$0xff]  ;;  %v188_v43 = vld [vmem:[%s7713_s0 + $0x550] sm:$0xff] }
  0xa3   :  { %2780 = vmatprep.mubr.bf16.mxu0 %v4068_v44  ;;  %v192_v44 = vld [vmem:[%s7713_s0 + $0x570] sm:$0xff]  ;;  %v4128_v47 = vcombine.high %v186_v41, %v190_v42 }
  0xa4   :  { %v4132_v48 = vcombine.high %v188_v43, %v192_v44 }
  0xa9   :  { %2203 = vmatmul.mubr.bf16.gmra.mrb[52].mxu1 %v4063_v51  ;;  %v196_v51 = vld [vmem:[%s7713_s0 + $0x590] sm:$0xff] }
  0xaa   :  { %2781 = vmatmul.mubr.bf16.gmra.mrb[52].mxu0 %v4067_v52  ;;  %2210 = vmatprep.mubr.bf16.mxu1 %v4072_v53  ;;  %v200_v52 = vld [vmem:[%s7713_s0 + $0x5b0] sm:$0xff]  ;;  %v4127_v53 = vcombine.low %v186_v41, %v190_v42  ;;  %v250_v41 = vld [vmem:[%s7713_s0 + $0x740] sm:$0xff] }
  0xab   :  { %2788 = vmatprep.mubr.bf16.mxu0 %v4076_v54  ;;  %v4131_v54 = vcombine.low %v188_v43, %v192_v44  ;;  %v4140_v56 = vcombine.high %v196_v51, %v200_v52  ;;  %v254_v42 = vld [vmem:[%s7713_s0 + $0x760] sm:$0xff]  ;;  %v252_v43 = vld [vmem:[%s7713_s0 + $0x750] sm:$0xff] }
  0xac   :  { %v256_v44 = vld [vmem:[%s7713_s0 + $0x770] sm:$0xff] }
  0xb1   :  { %2211 = vmatmul.mubr.bf16.gmra.mrb[56].mxu1 %v4071_v58  ;;  %v204_v58 = vld [vmem:[%s7713_s0 + $0x5d0] sm:$0xff] }
  0xb2   :  { %2789 = vmatmul.mubr.bf16.gmra.mrb[56].mxu0 %v4075_v59  ;;  %2218 = vmatprep.mubr.bf16.mxu1 %v4080_v60  ;;  %v208_v59 = vld [vmem:[%s7713_s0 + $0x5f0] sm:$0xff]  ;;  %v4135_v60 = vcombine.low %v194_v49, %v198_v50  ;;  %v258_v49 = vld [vmem:[%s7713_s0 + $0x780] sm:$0xff] }
  0xb3   :  { %2796 = vmatprep.mubr.bf16.mxu0 %v4084_v61  ;;  %v4139_v61 = vcombine.low %v196_v51, %v200_v52  ;;  %v4148_v63 = vcombine.high %v204_v58, %v208_v59  ;;  %v262_v50 = vld [vmem:[%s7713_s0 + $0x7a0] sm:$0xff]  ;;  %v260_v51 = vld [vmem:[%s7713_s0 + $0x790] sm:$0xff] }
  0xb4   :  { %v264_v52 = vld [vmem:[%s7713_s0 + $0x7b0] sm:$0xff] }
  0xb9   :  { %2219 = vmatmul.mubr.bf16.gmra.mrb[60].mxu1 %v4079_v5  ;;  %v4143_v5 = vcombine.low %v202_v57, %v206_v0  ;;  %v266_v57 = vld [vmem:[%s7713_s0 + $0x7c0] sm:$0xff] }
  0xba   :  { %2797 = vmatmul.mubr.bf16.gmra.mrb[60].mxu0 %v4083_v6  ;;  %2226 = vmatprep.mubr.bf16.mxu1 %v4088_v7  ;;  %v4147_v6 = vcombine.low %v204_v58, %v208_v59  ;;  %v4152_v7 = vcombine.high %v210_v1, %v214_v2  ;;  %v270_v0 = vld [vmem:[%s7713_s0 + $0x7e0] sm:$0xff]  ;;  %v268_v58 = vld [vmem:[%s7713_s0 + $0x7d0] sm:$0xff] }
  0xbb   :  { %2804 = vmatprep.mubr.bf16.mxu0 %v4092_v8  ;;  %v4156_v8 = vcombine.high %v212_v3, %v216_v4  ;;  %v272_v59 = vld [vmem:[%s7713_s0 + $0x7f0] sm:$0xff] }
  0xc1   :  { %2227 = vmatmul.mubr.bf16.gmra.mrb[64].mxu1 %v4087_v13  ;;  %v4151_v13 = vcombine.low %v210_v1, %v214_v2  ;;  %v19_v1 = vld [vmem:[%s7713_s0 + $0x8] sm:$0xff] }
  0xc2   :  { %2805 = vmatmul.mubr.bf16.gmra.mrb[64].mxu0 %v4091_v14  ;;  %2234 = vmatprep.mubr.bf16.mxu1 %v4096_v15  ;;  %v4155_v14 = vcombine.low %v212_v3, %v216_v4  ;;  %v4160_v15 = vcombine.high %v218_v9, %v222_v10  ;;  %v23_v2 = vld [vmem:[%s7713_s0 + $0x28] sm:$0xff]  ;;  %v21_v3 = vld [vmem:[%s7713_s0 + $0x18] sm:$0xff] }
  0xc3   :  { %2812 = vmatprep.mubr.bf16.mxu0 %v4100_v16  ;;  %v4164_v16 = vcombine.high %v220_v11, %v224_v12  ;;  %v25_v4 = vld [vmem:[%s7713_s0 + $0x38] sm:$0xff] }
  0xc9   :  { %2235 = vmatmul.mubr.bf16.gmra.mrb[68].mxu1 %v4095_v21  ;;  %v4159_v21 = vcombine.low %v218_v9, %v222_v10  ;;  %v27_v9 = vld [vmem:[%s7713_s0 + $0x48] sm:$0xff] }
  0xca   :  { %2813 = vmatmul.mubr.bf16.gmra.mrb[68].mxu0 %v4099_v22  ;;  %2242 = vmatprep.mubr.bf16.mxu1 %v4104_v23  ;;  %v4163_v22 = vcombine.low %v220_v11, %v224_v12  ;;  %v4168_v23 = vcombine.high %v226_v17, %v230_v18  ;;  %v31_v10 = vld [vmem:[%s7713_s0 + $0x68] sm:$0xff]  ;;  %v29_v11 = vld [vmem:[%s7713_s0 + $0x58] sm:$0xff] }
  0xcb   :  { %2820 = vmatprep.mubr.bf16.mxu0 %v4108_v24  ;;  %v4172_v24 = vcombine.high %v228_v19, %v232_v20  ;;  %v33_v12 = vld [vmem:[%s7713_s0 + $0x78] sm:$0xff] }
  0xd1   :  { %2243 = vmatmul.mubr.bf16.gmra.mrb[72].mxu1 %v4103_v29  ;;  %v4167_v29 = vcombine.low %v226_v17, %v230_v18  ;;  %v35_v17 = vld [vmem:[%s7713_s0 + $0x88] sm:$0xff] }
  0xd2   :  { %2821 = vmatmul.mubr.bf16.gmra.mrb[72].mxu0 %v4107_v30  ;;  %2250 = vmatprep.mubr.bf16.mxu1 %v4112_v31  ;;  %v4171_v30 = vcombine.low %v228_v19, %v232_v20  ;;  %v4176_v31 = vcombine.high %v234_v25, %v238_v26  ;;  %v39_v18 = vld [vmem:[%s7713_s0 + $0xa8] sm:$0xff]  ;;  %v37_v19 = vld [vmem:[%s7713_s0 + $0x98] sm:$0xff] }
  0xd3   :  { %2828 = vmatprep.mubr.bf16.mxu0 %v4116_v32  ;;  %v4180_v32 = vcombine.high %v236_v27, %v240_v28  ;;  %v41_v20 = vld [vmem:[%s7713_s0 + $0xb8] sm:$0xff] }
  0xd9   :  { %2251 = vmatmul.mubr.bf16.gmra.mrb[76].mxu1 %v4111_v37  ;;  %v4175_v37 = vcombine.low %v234_v25, %v238_v26  ;;  %v43_v25 = vld [vmem:[%s7713_s0 + $0xc8] sm:$0xff] }
  0xda   :  { %2829 = vmatmul.mubr.bf16.gmra.mrb[76].mxu0 %v4115_v38  ;;  %2258 = vmatprep.mubr.bf16.mxu1 %v4120_v39  ;;  %v4179_v38 = vcombine.low %v236_v27, %v240_v28  ;;  %v4184_v39 = vcombine.high %v242_v33, %v246_v34  ;;  %v47_v26 = vld [vmem:[%s7713_s0 + $0xe8] sm:$0xff]  ;;  %v45_v27 = vld [vmem:[%s7713_s0 + $0xd8] sm:$0xff] }
  0xdb   :  { %2836 = vmatprep.mubr.bf16.mxu0 %v4124_v40  ;;  %v4188_v40 = vcombine.high %v244_v35, %v248_v36  ;;  %v49_v28 = vld [vmem:[%s7713_s0 + $0xf8] sm:$0xff] }
  0xe1   :  { %2259 = vmatmul.mubr.bf16.gmra.mrb[80].mxu1 %v4119_v45  ;;  %v4183_v45 = vcombine.low %v242_v33, %v246_v34  ;;  %v51_v33 = vld [vmem:[%s7713_s0 + $0x108] sm:$0xff] }
  0xe2   :  { %2837 = vmatmul.mubr.bf16.gmra.mrb[80].mxu0 %v4123_v46  ;;  %2266 = vmatprep.mubr.bf16.mxu1 %v4128_v47  ;;  %v4187_v46 = vcombine.low %v244_v35, %v248_v36  ;;  %v4192_v47 = vcombine.high %v250_v41, %v254_v42  ;;  %v55_v34 = vld [vmem:[%s7713_s0 + $0x128] sm:$0xff]  ;;  %v53_v35 = vld [vmem:[%s7713_s0 + $0x118] sm:$0xff] }
  0xe3   :  { %2844 = vmatprep.mubr.bf16.mxu0 %v4132_v48  ;;  %v4196_v48 = vcombine.high %v252_v43, %v256_v44  ;;  %v57_v36 = vld [vmem:[%s7713_s0 + $0x138] sm:$0xff] }
  0xe9   :  { %2267 = vmatmul.mubr.bf16.gmra.mrb[84].mxu1 %v4127_v53  ;;  %v4191_v53 = vcombine.low %v250_v41, %v254_v42  ;;  %v59_v41 = vld [vmem:[%s7713_s0 + $0x148] sm:$0xff] }
  0xea   :  { %2845 = vmatmul.mubr.bf16.gmra.mrb[84].mxu0 %v4131_v54  ;;  %2274 = vmatprep.mubr.bf16.mxu1 %v4136_v55  ;;  %v4195_v54 = vcombine.low %v252_v43, %v256_v44  ;;  %v4200_v55 = vcombine.high %v258_v49, %v262_v50  ;;  %v63_v42 = vld [vmem:[%s7713_s0 + $0x168] sm:$0xff]  ;;  %v61_v43 = vld [vmem:[%s7713_s0 + $0x158] sm:$0xff] }
  0xeb   :  { %2852 = vmatprep.mubr.bf16.mxu0 %v4140_v56  ;;  %v4204_v56 = vcombine.high %v260_v51, %v264_v52  ;;  %v65_v44 = vld [vmem:[%s7713_s0 + $0x178] sm:$0xff] }
  0xf1   :  { %2275 = vmatmul.mubr.bf16.gmra.mrb[88].mxu1 %v4135_v60  ;;  %v4199_v60 = vcombine.low %v258_v49, %v262_v50  ;;  %v67_v49 = vld [vmem:[%s7713_s0 + $0x188] sm:$0xff] }
  0xf2   :  { %2853 = vmatmul.mubr.bf16.gmra.mrb[88].mxu0 %v4139_v61  ;;  %2282 = vmatprep.mubr.bf16.mxu1 %v4144_v62  ;;  %v4203_v61 = vcombine.low %v260_v51, %v264_v52  ;;  %v4208_v62 = vcombine.high %v266_v57, %v270_v0  ;;  %v71_v50 = vld [vmem:[%s7713_s0 + $0x1a8] sm:$0xff]  ;;  %v69_v51 = vld [vmem:[%s7713_s0 + $0x198] sm:$0xff] }
  0xf3   :  { %2860 = vmatprep.mubr.bf16.mxu0 %v4148_v63  ;;  %v4212_v63 = vcombine.high %v268_v58, %v272_v59  ;;  %v73_v52 = vld [vmem:[%s7713_s0 + $0x1b8] sm:$0xff] }
  0xf9   :  { %2283 = vmatmul.mubr.bf16.gmra.mrb[92].mxu1 %v4143_v5  ;;  %v4207_v5 = vcombine.low %v266_v57, %v270_v0  ;;  %v75_v57 = vld [vmem:[%s7713_s0 + $0x1c8] sm:$0xff] }
  0xfa   :  { %2861 = vmatmul.mubr.bf16.gmra.mrb[92].mxu0 %v4147_v6  ;;  %2290 = vmatprep.mubr.bf16.mxu1 %v4152_v7  ;;  %v4211_v6 = vcombine.low %v268_v58, %v272_v59  ;;  %v3962_v7 = vcombine.high %v19_v1, %v23_v2  ;;  %v79_v0 = vld [vmem:[%s7713_s0 + $0x1e8] sm:$0xff]  ;;  %v77_v58 = vld [vmem:[%s7713_s0 + $0x1d8] sm:$0xff] }
  0xfb   :  { %2868 = vmatprep.mubr.bf16.mxu0 %v4156_v8  ;;  %v3966_v8 = vcombine.high %v21_v3, %v25_v4  ;;  %v81_v59 = vld [vmem:[%s7713_s0 + $0x1f8] sm:$0xff] }
 0x101   :  { %2291 = vmatmul.mubr.bf16.gmra.mrb[96].mxu1 %v4151_v13  ;;  %v3961_v13 = vcombine.low %v19_v1, %v23_v2  ;;  %v83_v1 = vld [vmem:[%s7713_s0 + $0x208] sm:$0xff] }
 0x102   :  { %2869 = vmatmul.mubr.bf16.gmra.mrb[96].mxu0 %v4155_v14  ;;  %2298 = vmatprep.mubr.bf16.mxu1 %v4160_v15  ;;  %v3965_v14 = vcombine.low %v21_v3, %v25_v4  ;;  %v3970_v15 = vcombine.high %v27_v9, %v31_v10  ;;  %v87_v2 = vld [vmem:[%s7713_s0 + $0x228] sm:$0xff]  ;;  %v85_v3 = vld [vmem:[%s7713_s0 + $0x218] sm:$0xff] }
 0x103   :  { %2876 = vmatprep.mubr.bf16.mxu0 %v4164_v16  ;;  %v3974_v16 = vcombine.high %v29_v11, %v33_v12  ;;  %v89_v4 = vld [vmem:[%s7713_s0 + $0x238] sm:$0xff] }
 0x109   :  { %2299 = vmatmul.mubr.bf16.gmra.mrb[100].mxu1 %v4159_v21  ;;  %v3969_v21 = vcombine.low %v27_v9, %v31_v10  ;;  %v91_v9 = vld [vmem:[%s7713_s0 + $0x248] sm:$0xff] }
 0x10a   :  { %2877 = vmatmul.mubr.bf16.gmra.mrb[100].mxu0 %v4163_v22  ;;  %2306 = vmatprep.mubr.bf16.mxu1 %v4168_v23  ;;  %v3973_v22 = vcombine.low %v29_v11, %v33_v12  ;;  %v3978_v23 = vcombine.high %v35_v17, %v39_v18  ;;  %v95_v10 = vld [vmem:[%s7713_s0 + $0x268] sm:$0xff]  ;;  %v93_v11 = vld [vmem:[%s7713_s0 + $0x258] sm:$0xff] }
 0x10b   :  { %2884 = vmatprep.mubr.bf16.mxu0 %v4172_v24  ;;  %v3982_v24 = vcombine.high %v37_v19, %v41_v20  ;;  %v97_v12 = vld [vmem:[%s7713_s0 + $0x278] sm:$0xff] }
 0x111   :  { %2307 = vmatmul.mubr.bf16.gmra.mrb[104].mxu1 %v4167_v29  ;;  %v3977_v29 = vcombine.low %v35_v17, %v39_v18  ;;  %v99_v17 = vld [vmem:[%s7713_s0 + $0x288] sm:$0xff] }
 0x112   :  { %2885 = vmatmul.mubr.bf16.gmra.mrb[104].mxu0 %v4171_v30  ;;  %2314 = vmatprep.mubr.bf16.mxu1 %v4176_v31  ;;  %v3981_v30 = vcombine.low %v37_v19, %v41_v20  ;;  %v3986_v31 = vcombine.high %v43_v25, %v47_v26  ;;  %v103_v18 = vld [vmem:[%s7713_s0 + $0x2a8] sm:$0xff]  ;;  %v101_v19 = vld [vmem:[%s7713_s0 + $0x298] sm:$0xff] }
 0x113   :  { %2892 = vmatprep.mubr.bf16.mxu0 %v4180_v32  ;;  %v3990_v32 = vcombine.high %v45_v27, %v49_v28  ;;  %v105_v20 = vld [vmem:[%s7713_s0 + $0x2b8] sm:$0xff] }
 0x119   :  { %2315 = vmatmul.mubr.bf16.gmra.mrb[108].mxu1 %v4175_v37  ;;  %v3985_v37 = vcombine.low %v43_v25, %v47_v26  ;;  %v107_v25 = vld [vmem:[%s7713_s0 + $0x2c8] sm:$0xff] }
 0x11a   :  { %2893 = vmatmul.mubr.bf16.gmra.mrb[108].mxu0 %v4179_v38  ;;  %2322 = vmatprep.mubr.bf16.mxu1 %v4184_v39  ;;  %v3989_v38 = vcombine.low %v45_v27, %v49_v28  ;;  %v3994_v39 = vcombine.high %v51_v33, %v55_v34  ;;  %v111_v26 = vld [vmem:[%s7713_s0 + $0x2e8] sm:$0xff]  ;;  %v109_v27 = vld [vmem:[%s7713_s0 + $0x2d8] sm:$0xff] }
 0x11b   :  { %2900 = vmatprep.mubr.bf16.mxu0 %v4188_v40  ;;  %v3998_v40 = vcombine.high %v53_v35, %v57_v36  ;;  %v113_v28 = vld [vmem:[%s7713_s0 + $0x2f8] sm:$0xff] }
 0x121   :  { %2323 = vmatmul.mubr.bf16.gmra.mrb[112].mxu1 %v4183_v45  ;;  %v3993_v45 = vcombine.low %v51_v33, %v55_v34  ;;  %v115_v33 = vld [vmem:[%s7713_s0 + $0x308] sm:$0xff] }
 0x122   :  { %2901 = vmatmul.mubr.bf16.gmra.mrb[112].mxu0 %v4187_v46  ;;  %2330 = vmatprep.mubr.bf16.mxu1 %v4192_v47  ;;  %v3997_v46 = vcombine.low %v53_v35, %v57_v36  ;;  %v4002_v47 = vcombine.high %v59_v41, %v63_v42  ;;  %v119_v34 = vld [vmem:[%s7713_s0 + $0x328] sm:$0xff]  ;;  %v117_v35 = vld [vmem:[%s7713_s0 + $0x318] sm:$0xff] }
 0x123   :  { %2908 = vmatprep.mubr.bf16.mxu0 %v4196_v48  ;;  %v4006_v48 = vcombine.high %v61_v43, %v65_v44  ;;  %v121_v36 = vld [vmem:[%s7713_s0 + $0x338] sm:$0xff] }
 0x129   :  { %2331 = vmatmul.mubr.bf16.gmra.mrb[116].mxu1 %v4191_v53  ;;  %v4001_v53 = vcombine.low %v59_v41, %v63_v42  ;;  %v123_v41 = vld [vmem:[%s7713_s0 + $0x348] sm:$0xff] }
 0x12a   :  { %2909 = vmatmul.mubr.bf16.gmra.mrb[116].mxu0 %v4195_v54  ;;  %2338 = vmatprep.mubr.bf16.mxu1 %v4200_v55  ;;  %v4005_v54 = vcombine.low %v61_v43, %v65_v44  ;;  %v4010_v55 = vcombine.high %v67_v49, %v71_v50  ;;  %v127_v42 = vld [vmem:[%s7713_s0 + $0x368] sm:$0xff]  ;;  %v125_v43 = vld [vmem:[%s7713_s0 + $0x358] sm:$0xff] }
 0x12b   :  { %2916 = vmatprep.mubr.bf16.mxu0 %v4204_v56  ;;  %v4014_v56 = vcombine.high %v69_v51, %v73_v52  ;;  %v129_v44 = vld [vmem:[%s7713_s0 + $0x378] sm:$0xff] }
 0x131   :  { %2339 = vmatmul.mubr.bf16.gmra.mrb[120].mxu1 %v4199_v60  ;;  %v4009_v60 = vcombine.low %v67_v49, %v71_v50  ;;  %v131_v49 = vld [vmem:[%s7713_s0 + $0x388] sm:$0xff] }
 0x132   :  { %2917 = vmatmul.mubr.bf16.gmra.mrb[120].mxu0 %v4203_v61  ;;  %2346 = vmatprep.mubr.bf16.mxu1 %v4208_v62  ;;  %v4013_v61 = vcombine.low %v69_v51, %v73_v52  ;;  %v4018_v62 = vcombine.high %v75_v57, %v79_v0  ;;  %v135_v50 = vld [vmem:[%s7713_s0 + $0x3a8] sm:$0xff]  ;;  %v133_v51 = vld [vmem:[%s7713_s0 + $0x398] sm:$0xff] }
 0x133   :  { %2924 = vmatprep.mubr.bf16.mxu0 %v4212_v63  ;;  %v4022_v63 = vcombine.high %v77_v58, %v81_v59  ;;  %v137_v52 = vld [vmem:[%s7713_s0 + $0x3b8] sm:$0xff] }
 0x139   :  { %2347 = vmatmul.mubr.bf16.gmra.mrb[124].mxu1 %v4207_v5  ;;  %v4017_v5 = vcombine.low %v75_v57, %v79_v0  ;;  %v139_v57 = vld [vmem:[%s7713_s0 + $0x3c8] sm:$0xff] }
 0x13a   :  { %2925 = vmatmul.mubr.bf16.gmra.mrb[124].mxu0 %v4211_v6  ;;  %2387 = vmatprep.mubr.bf16.mxu1 %v3962_v7  ;;  %v4021_v6 = vcombine.low %v77_v58, %v81_v59  ;;  %v4026_v7 = vcombine.high %v83_v1, %v87_v2  ;;  %v143_v0 = vld [vmem:[%s7713_s0 + $0x3e8] sm:$0xff]  ;;  %v141_v58 = vld [vmem:[%s7713_s0 + $0x3d8] sm:$0xff] }
 0x13b   :  { %2965 = vmatprep.mubr.bf16.mxu0 %v3966_v8  ;;  %v4030_v8 = vcombine.high %v85_v3, %v89_v4  ;;  %v145_v59 = vld [vmem:[%s7713_s0 + $0x3f8] sm:$0xff] }
 0x141   :  { %2388 = vmatmul.mubr.bf16.vlgmr.msra.gmra.mrb[0].mxu1 %v3961_v13  ;;  %v4025_v13 = vcombine.low %v83_v1, %v87_v2  ;;  %v147_v1 = vld [vmem:[%s7713_s0 + $0x408] sm:$0xff] }
 0x142   :  { %2966 = vmatmul.mubr.bf16.vlgmr.msra.gmra.mrb[0].mxu0 %v3965_v14  ;;  %2395 = vmatprep.mubr.bf16.mxu1 %v3970_v15  ;;  %v4029_v14 = vcombine.low %v85_v3, %v89_v4  ;;  %v4034_v15 = vcombine.high %v91_v9, %v95_v10  ;;  %v151_v2 = vld [vmem:[%s7713_s0 + $0x428] sm:$0xff]  ;;  %v149_v3 = vld [vmem:[%s7713_s0 + $0x418] sm:$0xff] }
 0x143   :  { %2973 = vmatprep.mubr.bf16.mxu0 %v3974_v16  ;;  %v4038_v16 = vcombine.high %v93_v11, %v97_v12  ;;  %v153_v4 = vld [vmem:[%s7713_s0 + $0x438] sm:$0xff] }
 0x149   :  { %2396 = vmatmul.mubr.bf16.gmra.mrb[4].mxu1 %v3969_v21  ;;  %v4033_v21 = vcombine.low %v91_v9, %v95_v10  ;;  %v155_v9 = vld [vmem:[%s7713_s0 + $0x448] sm:$0xff] }
 0x14a   :  { %2974 = vmatmul.mubr.bf16.gmra.mrb[4].mxu0 %v3973_v22  ;;  %2403 = vmatprep.mubr.bf16.mxu1 %v3978_v23  ;;  %v4037_v22 = vcombine.low %v93_v11, %v97_v12  ;;  %v4042_v23 = vcombine.high %v99_v17, %v103_v18  ;;  %v159_v10 = vld [vmem:[%s7713_s0 + $0x468] sm:$0xff]  ;;  %v157_v11 = vld [vmem:[%s7713_s0 + $0x458] sm:$0xff] }
 0x14b   :  { %2981 = vmatprep.mubr.bf16.mxu0 %v3982_v24  ;;  %v4046_v24 = vcombine.high %v101_v19, %v105_v20  ;;  %v161_v12 = vld [vmem:[%s7713_s0 + $0x478] sm:$0xff] }
 0x151   :  { %2404 = vmatmul.mubr.bf16.gmra.mrb[8].mxu1 %v3977_v29  ;;  %v4041_v29 = vcombine.low %v99_v17, %v103_v18  ;;  %v163_v17 = vld [vmem:[%s7713_s0 + $0x488] sm:$0xff] }
 0x152   :  { %2982 = vmatmul.mubr.bf16.gmra.mrb[8].mxu0 %v3981_v30  ;;  %2411 = vmatprep.mubr.bf16.mxu1 %v3986_v31  ;;  %v4045_v30 = vcombine.low %v101_v19, %v105_v20  ;;  %v4050_v31 = vcombine.high %v107_v25, %v111_v26  ;;  %v167_v18 = vld [vmem:[%s7713_s0 + $0x4a8] sm:$0xff]  ;;  %v165_v19 = vld [vmem:[%s7713_s0 + $0x498] sm:$0xff] }
 0x153   :  { %2989 = vmatprep.mubr.bf16.mxu0 %v3990_v32  ;;  %v4054_v32 = vcombine.high %v109_v27, %v113_v28  ;;  %v169_v20 = vld [vmem:[%s7713_s0 + $0x4b8] sm:$0xff] }
 0x159   :  { %2412 = vmatmul.mubr.bf16.gmra.mrb[12].mxu1 %v3985_v37  ;;  %v4049_v37 = vcombine.low %v107_v25, %v111_v26  ;;  %v171_v25 = vld [vmem:[%s7713_s0 + $0x4c8] sm:$0xff] }
 0x15a   :  { %2990 = vmatmul.mubr.bf16.gmra.mrb[12].mxu0 %v3989_v38  ;;  %2419 = vmatprep.mubr.bf16.mxu1 %v3994_v39  ;;  %v4053_v38 = vcombine.low %v109_v27, %v113_v28  ;;  %v4058_v39 = vcombine.high %v115_v33, %v119_v34  ;;  %v175_v26 = vld [vmem:[%s7713_s0 + $0x4e8] sm:$0xff]  ;;  %v173_v27 = vld [vmem:[%s7713_s0 + $0x4d8] sm:$0xff] }
 0x15b   :  { %2997 = vmatprep.mubr.bf16.mxu0 %v3998_v40  ;;  %v4062_v40 = vcombine.high %v117_v35, %v121_v36  ;;  %v177_v28 = vld [vmem:[%s7713_s0 + $0x4f8] sm:$0xff] }
 0x161   :  { %2420 = vmatmul.mubr.bf16.gmra.mrb[16].mxu1 %v3993_v45  ;;  %v4057_v45 = vcombine.low %v115_v33, %v119_v34  ;;  %v179_v33 = vld [vmem:[%s7713_s0 + $0x508] sm:$0xff] }
 0x162   :  { %2998 = vmatmul.mubr.bf16.gmra.mrb[16].mxu0 %v3997_v46  ;;  %2427 = vmatprep.mubr.bf16.mxu1 %v4002_v47  ;;  %v4061_v46 = vcombine.low %v117_v35, %v121_v36  ;;  %v4066_v47 = vcombine.high %v123_v41, %v127_v42  ;;  %v183_v34 = vld [vmem:[%s7713_s0 + $0x528] sm:$0xff]  ;;  %v181_v35 = vld [vmem:[%s7713_s0 + $0x518] sm:$0xff] }
 0x163   :  { %3005 = vmatprep.mubr.bf16.mxu0 %v4006_v48  ;;  %v4070_v48 = vcombine.high %v125_v43, %v129_v44  ;;  %v185_v36 = vld [vmem:[%s7713_s0 + $0x538] sm:$0xff] }
 0x169   :  { %2428 = vmatmul.mubr.bf16.gmra.mrb[20].mxu1 %v4001_v53  ;;  %v4065_v53 = vcombine.low %v123_v41, %v127_v42  ;;  %v187_v41 = vld [vmem:[%s7713_s0 + $0x548] sm:$0xff] }
 0x16a   :  { %3006 = vmatmul.mubr.bf16.gmra.mrb[20].mxu0 %v4005_v54  ;;  %2435 = vmatprep.mubr.bf16.mxu1 %v4010_v55  ;;  %v4069_v54 = vcombine.low %v125_v43, %v129_v44  ;;  %v4074_v55 = vcombine.high %v131_v49, %v135_v50  ;;  %v191_v42 = vld [vmem:[%s7713_s0 + $0x568] sm:$0xff]  ;;  %v189_v43 = vld [vmem:[%s7713_s0 + $0x558] sm:$0xff] }
 0x16b   :  { %3013 = vmatprep.mubr.bf16.mxu0 %v4014_v56  ;;  %v4078_v56 = vcombine.high %v133_v51, %v137_v52  ;;  %v193_v44 = vld [vmem:[%s7713_s0 + $0x578] sm:$0xff] }
 0x171   :  { %2436 = vmatmul.mubr.bf16.gmra.mrb[24].mxu1 %v4009_v60  ;;  %v4073_v60 = vcombine.low %v131_v49, %v135_v50  ;;  %v195_v49 = vld [vmem:[%s7713_s0 + $0x588] sm:$0xff] }
 0x172   :  { %3014 = vmatmul.mubr.bf16.gmra.mrb[24].mxu0 %v4013_v61  ;;  %2443 = vmatprep.mubr.bf16.mxu1 %v4018_v62  ;;  %v4077_v61 = vcombine.low %v133_v51, %v137_v52  ;;  %v4082_v62 = vcombine.high %v139_v57, %v143_v0  ;;  %v199_v50 = vld [vmem:[%s7713_s0 + $0x5a8] sm:$0xff]  ;;  %v197_v51 = vld [vmem:[%s7713_s0 + $0x598] sm:$0xff] }
 0x173   :  { %3021 = vmatprep.mubr.bf16.mxu0 %v4022_v63  ;;  %v4086_v63 = vcombine.high %v141_v58, %v145_v59  ;;  %v201_v52 = vld [vmem:[%s7713_s0 + $0x5b8] sm:$0xff] }
 0x179   :  { %2444 = vmatmul.mubr.bf16.gmra.mrb[28].mxu1 %v4017_v5  ;;  %v4081_v5 = vcombine.low %v139_v57, %v143_v0  ;;  %v203_v57 = vld [vmem:[%s7713_s0 + $0x5c8] sm:$0xff] }
 0x17a   :  { %3022 = vmatmul.mubr.bf16.gmra.mrb[28].mxu0 %v4021_v6  ;;  %2451 = vmatprep.mubr.bf16.mxu1 %v4026_v7  ;;  %v4085_v6 = vcombine.low %v141_v58, %v145_v59  ;;  %v4090_v7 = vcombine.high %v147_v1, %v151_v2  ;;  %v207_v0 = vld [vmem:[%s7713_s0 + $0x5e8] sm:$0xff]  ;;  %v205_v58 = vld [vmem:[%s7713_s0 + $0x5d8] sm:$0xff] }
 0x17b   :  { %3029 = vmatprep.mubr.bf16.mxu0 %v4030_v8  ;;  %v4094_v8 = vcombine.high %v149_v3, %v153_v4  ;;  %v209_v59 = vld [vmem:[%s7713_s0 + $0x5f8] sm:$0xff] }
 0x181   :  { %2452 = vmatmul.mubr.bf16.gmra.mrb[32].mxu1 %v4025_v13  ;;  %v4089_v13 = vcombine.low %v147_v1, %v151_v2  ;;  %v211_v1 = vld [vmem:[%s7713_s0 + $0x608] sm:$0xff] }
 0x182   :  { %3030 = vmatmul.mubr.bf16.gmra.mrb[32].mxu0 %v4029_v14  ;;  %2459 = vmatprep.mubr.bf16.mxu1 %v4034_v15  ;;  %v4093_v14 = vcombine.low %v149_v3, %v153_v4  ;;  %v4098_v15 = vcombine.high %v155_v9, %v159_v10  ;;  %v215_v2 = vld [vmem:[%s7713_s0 + $0x628] sm:$0xff]  ;;  %v213_v3 = vld [vmem:[%s7713_s0 + $0x618] sm:$0xff] }
 0x183   :  { %3037 = vmatprep.mubr.bf16.mxu0 %v4038_v16  ;;  %v4102_v16 = vcombine.high %v157_v11, %v161_v12  ;;  %v217_v4 = vld [vmem:[%s7713_s0 + $0x638] sm:$0xff] }
 0x189   :  { %2460 = vmatmul.mubr.bf16.gmra.mrb[36].mxu1 %v4033_v21  ;;  %v4097_v21 = vcombine.low %v155_v9, %v159_v10  ;;  %v219_v9 = vld [vmem:[%s7713_s0 + $0x648] sm:$0xff] }
 0x18a   :  { %3038 = vmatmul.mubr.bf16.gmra.mrb[36].mxu0 %v4037_v22  ;;  %2467 = vmatprep.mubr.bf16.mxu1 %v4042_v23  ;;  %v4101_v22 = vcombine.low %v157_v11, %v161_v12  ;;  %v4106_v23 = vcombine.high %v163_v17, %v167_v18  ;;  %v223_v10 = vld [vmem:[%s7713_s0 + $0x668] sm:$0xff]  ;;  %v221_v11 = vld [vmem:[%s7713_s0 + $0x658] sm:$0xff] }
 0x18b   :  { %3045 = vmatprep.mubr.bf16.mxu0 %v4046_v24  ;;  %v4110_v24 = vcombine.high %v165_v19, %v169_v20  ;;  %v225_v12 = vld [vmem:[%s7713_s0 + $0x678] sm:$0xff] }
 0x191   :  { %2468 = vmatmul.mubr.bf16.gmra.mrb[40].mxu1 %v4041_v29  ;;  %v4105_v29 = vcombine.low %v163_v17, %v167_v18  ;;  %v227_v17 = vld [vmem:[%s7713_s0 + $0x688] sm:$0xff] }
 0x192   :  { %3046 = vmatmul.mubr.bf16.gmra.mrb[40].mxu0 %v4045_v30  ;;  %2475 = vmatprep.mubr.bf16.mxu1 %v4050_v31  ;;  %v4109_v30 = vcombine.low %v165_v19, %v169_v20  ;;  %v4114_v31 = vcombine.high %v171_v25, %v175_v26  ;;  %v231_v18 = vld [vmem:[%s7713_s0 + $0x6a8] sm:$0xff]  ;;  %v229_v19 = vld [vmem:[%s7713_s0 + $0x698] sm:$0xff] }
 0x193   :  { %3053 = vmatprep.mubr.bf16.mxu0 %v4054_v32  ;;  %v4118_v32 = vcombine.high %v173_v27, %v177_v28  ;;  %v233_v20 = vld [vmem:[%s7713_s0 + $0x6b8] sm:$0xff] }
 0x199   :  { %2476 = vmatmul.mubr.bf16.gmra.mrb[44].mxu1 %v4049_v37  ;;  %v4113_v37 = vcombine.low %v171_v25, %v175_v26  ;;  %v235_v25 = vld [vmem:[%s7713_s0 + $0x6c8] sm:$0xff] }
 0x19a   :  { %3054 = vmatmul.mubr.bf16.gmra.mrb[44].mxu0 %v4053_v38  ;;  %2483 = vmatprep.mubr.bf16.mxu1 %v4058_v39  ;;  %v4117_v38 = vcombine.low %v173_v27, %v177_v28  ;;  %v4122_v39 = vcombine.high %v179_v33, %v183_v34  ;;  %v239_v26 = vld [vmem:[%s7713_s0 + $0x6e8] sm:$0xff]  ;;  %v237_v27 = vld [vmem:[%s7713_s0 + $0x6d8] sm:$0xff] }
 0x19b   :  { %3061 = vmatprep.mubr.bf16.mxu0 %v4062_v40  ;;  %v4126_v40 = vcombine.high %v181_v35, %v185_v36  ;;  %v241_v28 = vld [vmem:[%s7713_s0 + $0x6f8] sm:$0xff] }
 0x1a1   :  { %2484 = vmatmul.mubr.bf16.gmra.mrb[48].mxu1 %v4057_v45  ;;  %v4121_v45 = vcombine.low %v179_v33, %v183_v34  ;;  %v243_v33 = vld [vmem:[%s7713_s0 + $0x708] sm:$0xff] }
 0x1a2   :  { %3062 = vmatmul.mubr.bf16.gmra.mrb[48].mxu0 %v4061_v46  ;;  %2491 = vmatprep.mubr.bf16.mxu1 %v4066_v47  ;;  %v4125_v46 = vcombine.low %v181_v35, %v185_v36  ;;  %v4130_v47 = vcombine.high %v187_v41, %v191_v42  ;;  %v247_v34 = vld [vmem:[%s7713_s0 + $0x728] sm:$0xff]  ;;  %v245_v36 = vld [vmem:[%s7713_s0 + $0x718] sm:$0xff] }
 0x1a3   :  { %3069 = vmatprep.mubr.bf16.mxu0 %v4070_v48  ;;  %v4134_v48 = vcombine.high %v189_v43, %v193_v44 }
 0x1a9   :  { %2492 = vmatmul.mubr.bf16.gmra.mrb[52].mxu1 %v4065_v53  ;;  %v4129_v53 = vcombine.low %v187_v41, %v191_v42 }
 0x1aa   :  { %3070 = vmatmul.mubr.bf16.gmra.mrb[52].mxu0 %v4069_v54  ;;  %2499 = vmatprep.mubr.bf16.mxu1 %v4074_v55  ;;  %v4133_v54 = vcombine.low %v189_v43, %v193_v44  ;;  %v4138_v55 = vcombine.high %v195_v49, %v199_v50  ;;  %v4181_v44 = vcombine.low %v237_v27, %v241_v28 }
 0x1ab   :  { %3077 = vmatprep.mubr.bf16.mxu0 %v4078_v56  ;;  %v4142_v56 = vcombine.high %v197_v51, %v201_v52 }
 0x1b1   :  { %2500 = vmatmul.mubr.bf16.gmra.mrb[56].mxu1 %v4073_v60  ;;  %v4137_v60 = vcombine.low %v195_v49, %v199_v50 }
 0x1b2   :  { %3078 = vmatmul.mubr.bf16.gmra.mrb[56].mxu0 %v4077_v61  ;;  %2507 = vmatprep.mubr.bf16.mxu1 %v4082_v62  ;;  %v4141_v61 = vcombine.low %v197_v51, %v201_v52  ;;  %v4146_v62 = vcombine.high %v203_v57, %v207_v0  ;;  %v251_v51 = vld [vmem:[%s7713_s0 + $0x748] sm:$0xff] }
 0x1b3   :  { %3085 = vmatprep.mubr.bf16.mxu0 %v4086_v63  ;;  %v4150_v63 = vcombine.high %v205_v58, %v209_v59  ;;  %v255_v52 = vld [vmem:[%s7713_s0 + $0x768] sm:$0xff] }
 0x1b9   :  { %2508 = vmatmul.mubr.bf16.gmra.mrb[60].mxu1 %v4081_v5  ;;  %v4145_v5 = vcombine.low %v203_v57, %v207_v0  ;;  %v4185_v0 = vcombine.low %v243_v33, %v247_v34 }
 0x1ba   :  { %3086 = vmatmul.mubr.bf16.gmra.mrb[60].mxu0 %v4085_v6  ;;  %2515 = vmatprep.mubr.bf16.mxu1 %v4090_v7  ;;  %v4149_v6 = vcombine.low %v205_v58, %v209_v59  ;;  %v4154_v7 = vcombine.high %v211_v1, %v215_v2 }
 0x1bb   :  { %3093 = vmatprep.mubr.bf16.mxu0 %v4094_v8  ;;  %v4158_v8 = vcombine.high %v213_v3, %v217_v4 }
 0x1c1   :  { %2516 = vmatmul.mubr.bf16.gmra.mrb[64].mxu1 %v4089_v13  ;;  %v4153_v13 = vcombine.low %v211_v1, %v215_v2 }
 0x1c2   :  { %3094 = vmatmul.mubr.bf16.gmra.mrb[64].mxu0 %v4093_v14  ;;  %2523 = vmatprep.mubr.bf16.mxu1 %v4098_v15  ;;  %v4157_v14 = vcombine.low %v213_v3, %v217_v4  ;;  %v4162_v15 = vcombine.high %v219_v9, %v223_v10 }
 0x1c3   :  { %3101 = vmatprep.mubr.bf16.mxu0 %v4102_v16  ;;  %v4166_v16 = vcombine.high %v221_v11, %v225_v12 }
 0x1c9   :  { %2524 = vmatmul.mubr.bf16.gmra.mrb[68].mxu1 %v4097_v21  ;;  %v4161_v21 = vcombine.low %v219_v9, %v223_v10  ;;  %v265_v9 = vld [vmem:[%s7713_s0 + $0x7b8] sm:$0xff] }
 0x1ca   :  { %3102 = vmatmul.mubr.bf16.gmra.mrb[68].mxu0 %v4101_v22  ;;  %2531 = vmatprep.mubr.bf16.mxu1 %v4106_v23  ;;  %v4165_v22 = vcombine.low %v221_v11, %v225_v12  ;;  %v4170_v23 = vcombine.high %v227_v17, %v231_v18  ;;  %v4193_v12 = vcombine.low %v251_v51, %v255_v52 }
 0x1cb   :  { %3109 = vmatprep.mubr.bf16.mxu0 %v4110_v24  ;;  %v4174_v24 = vcombine.high %v229_v19, %v233_v20 }
 0x1d1   :  { %2532 = vmatmul.mubr.bf16.gmra.mrb[72].mxu1 %v4105_v29  ;;  %v4169_v29 = vcombine.low %v227_v17, %v231_v18 }
 0x1d2   :  { %3110 = vmatmul.mubr.bf16.gmra.mrb[72].mxu0 %v4109_v30  ;;  %2539 = vmatprep.mubr.bf16.mxu1 %v4114_v31  ;;  %v4173_v30 = vcombine.low %v229_v19, %v233_v20  ;;  %v4178_v31 = vcombine.high %v235_v25, %v239_v26 }
 0x1d3   :  { %3117 = vmatprep.mubr.bf16.mxu0 %v4118_v32  ;;  %v4182_v32 = vcombine.high %v237_v27, %v241_v28  ;;  %v273_v27 = vld [vmem:[%s7713_s0 + $0x7f8] sm:$0xff] }
 0x1d9   :  { %2540 = vmatmul.mubr.bf16.gmra.mrb[76].mxu1 %v4113_v37  ;;  %v249_v37 = vld [vmem:[%s7713_s0 + $0x738] sm:$0xff] }
 0x1da   :  { %3118 = vmatmul.mubr.bf16.gmra.mrb[76].mxu0 %v4117_v38  ;;  %2547 = vmatprep.mubr.bf16.mxu1 %v4122_v39 }
 0x1db   :  { %3125 = vmatprep.mubr.bf16.mxu0 %v4126_v40  ;;  %v4177_v40 = vcombine.low %v235_v25, %v239_v26  ;;  %v269_v26 = vld [vmem:[%s7713_s0 + $0x7d8] sm:$0xff] }
 0x1e1   :  { %2548 = vmatmul.mubr.bf16.gmra.mrb[80].mxu1 %v4121_v45  ;;  %v4186_v45 = vcombine.high %v243_v33, %v247_v34 }
 0x1e2   :  { %3126 = vmatmul.mubr.bf16.gmra.mrb[80].mxu0 %v4125_v46  ;;  %2555 = vmatprep.mubr.bf16.mxu1 %v4130_v47 }
 0x1e3   :  { %3133 = vmatprep.mubr.bf16.mxu0 %v4134_v48  ;;  %v4190_v48 = vcombine.high %v245_v36, %v249_v37 }
 0x1e9   :  { %2556 = vmatmul.mubr.bf16.gmra.mrb[84].mxu1 %v4129_v53 }
 0x1ea   :  { %3134 = vmatmul.mubr.bf16.gmra.mrb[84].mxu0 %v4133_v54  ;;  %2563 = vmatprep.mubr.bf16.mxu1 %v4138_v55  ;;  %v253_v54 = vld [vmem:[%s7713_s0 + $0x758] sm:$0xff] }
 0x1eb   :  { %3141 = vmatprep.mubr.bf16.mxu0 %v4142_v56  ;;  %v257_v55 = vld [vmem:[%s7713_s0 + $0x778] sm:$0xff] }
 0x1ec   :  { %v4198_v2 = vcombine.high %v253_v54, %v257_v55 }
 0x1f1   :  { %2564 = vmatmul.mubr.bf16.gmra.mrb[88].mxu1 %v4137_v60 }
 0x1f2   :  { %3142 = vmatmul.mubr.bf16.gmra.mrb[88].mxu0 %v4141_v61  ;;  %2571 = vmatprep.mubr.bf16.mxu1 %v4146_v62  ;;  %v4189_v61 = vcombine.low %v245_v36, %v249_v37  ;;  %v4194_v62 = vcombine.high %v251_v51, %v255_v52 }
 0x1f3   :  { %3149 = vmatprep.mubr.bf16.mxu0 %v4150_v63 }
 0x1f9   :  { %2572 = vmatmul.mubr.bf16.gmra.mrb[92].mxu1 %v4145_v5  ;;  %v259_v5 = vld [vmem:[%s7713_s0 + $0x788] sm:$0xff] }
 0x1fa   :  { %3150 = vmatmul.mubr.bf16.gmra.mrb[92].mxu0 %v4149_v6  ;;  %2579 = vmatprep.mubr.bf16.mxu1 %v4154_v7  ;;  %v263_v6 = vld [vmem:[%s7713_s0 + $0x7a8] sm:$0xff] }
 0x1fb   :  { %3157 = vmatprep.mubr.bf16.mxu0 %v4158_v8  ;;  %v261_v8 = vld [vmem:[%s7713_s0 + $0x798] sm:$0xff]  ;;  %v4202_v17 = vcombine.high %v259_v5, %v263_v6 }
 0x1fc   :  { %v4206_v20 = vcombine.high %v261_v8, %v265_v9  ;;  %v4205_v34 = vcombine.low %v261_v8, %v265_v9 }
 0x201   :  { %2580 = vmatmul.mubr.bf16.gmra.mrb[96].mxu1 %v4153_v13 }
 0x202   :  { %3158 = vmatmul.mubr.bf16.gmra.mrb[96].mxu0 %v4157_v14  ;;  %2587 = vmatprep.mubr.bf16.mxu1 %v4162_v15 }
 0x203   :  { %3165 = vmatprep.mubr.bf16.mxu0 %v4166_v16  ;;  %v4197_v16 = vcombine.low %v253_v54, %v257_v55 }
 0x209   :  { %2588 = vmatmul.mubr.bf16.gmra.mrb[100].mxu1 %v4161_v21 }
 0x20a   :  { %3166 = vmatmul.mubr.bf16.gmra.mrb[100].mxu0 %v4165_v22  ;;  %2595 = vmatprep.mubr.bf16.mxu1 %v4170_v23  ;;  %v267_v23 = vld [vmem:[%s7713_s0 + $0x7c8] sm:$0xff] }
 0x20b   :  { %3173 = vmatprep.mubr.bf16.mxu0 %v4174_v24  ;;  %v271_v24 = vld [vmem:[%s7713_s0 + $0x7e8] sm:$0xff] }
 0x211   :  { %2596 = vmatmul.mubr.bf16.gmra.mrb[104].mxu1 %v4169_v29 }
 0x212   :  { %3174 = vmatmul.mubr.bf16.gmra.mrb[104].mxu0 %v4173_v30  ;;  %2603 = vmatprep.mubr.bf16.mxu1 %v4178_v31  ;;  %v4201_v30 = vcombine.low %v259_v5, %v263_v6 }
 0x213   :  { %3181 = vmatprep.mubr.bf16.mxu0 %v4182_v32 }
 0x214   :  { %v2389_v35 = vpop.f32.mrb[0].mxu1 }
 0x215   :  { %v2967_v38 = vpop.f32.mrb[0].mxu0  ;;  %v2391_v39 = vpop.f32.mrb[1].mxu1 }
 0x216   :  { %v5698_v41 = vadd.f32 %v2967_v38, %v2389_v35  ;;  %v2969_v42 = vpop.f32.mrb[1].mxu0  ;;  %v2392_v43 = vpop.f32.mrb[2].mxu1  ;;  %v4210_v35 = vcombine.high %v267_v23, %v271_v24  ;;  %v4214_v38 = vcombine.high %v269_v26, %v273_v27 }
 0x217   :  { %v2970_v46 = vpop.f32.mrb[2].mxu0  ;;  %v2394_v47 = vpop.f32.mrb[3].mxu1 }
 0x218   :  { %v5700_v49 = vadd.f32 %v2970_v46, %v2392_v43  ;;  %v2972_v50 = vpop.f32.mrb[3].mxu0 }
 0x219   :  { %2604 = vmatmul.mubr.bf16.gmra.mrb[108].mxu1 %v4177_v40  ;;  %v4213_v50 = vcombine.low %v269_v26, %v273_v27 }
 0x21a   :  { %3182 = vmatmul.mubr.bf16.gmra.mrb[108].mxu0 %v4181_v44  ;;  %2611 = vmatprep.mubr.bf16.mxu1 %v4186_v45  ;;  %v4209_v45 = vcombine.low %v267_v23, %v271_v24 }
 0x21b   :  { %3189 = vmatprep.mubr.bf16.mxu0 %v4190_v48 }
 0x21c   :  { %v2397_v53 = vpop.f32.mrb[4].mxu1 }
 0x21d   :  { %v2975_v56 = vpop.f32.mrb[4].mxu0  ;;  %v2399_v57 = vpop.f32.mrb[5].mxu1 }
 0x21e   :  { %v5714_v58 = vadd.f32 %v2975_v56, %v2397_v53  ;;  %v2977_v59 = vpop.f32.mrb[5].mxu0  ;;  %v2400_v60 = vpop.f32.mrb[6].mxu1 }
 0x21f   :  { %v2978_v63 = vpop.f32.mrb[6].mxu0  ;;  %v2402_v1 = vpop.f32.mrb[7].mxu1 }
 0x220   :  { %v5716_v3 = vadd.f32 %v2978_v63, %v2400_v60  ;;  %v2980_v4 = vpop.f32.mrb[7].mxu0 }
 0x221   :  { %2612 = vmatmul.mubr.bf16.gmra.mrb[112].mxu1 %v4185_v0 }
 0x222   :  { %3190 = vmatmul.mubr.bf16.gmra.mrb[112].mxu0 %v4189_v61  ;;  %2619 = vmatprep.mubr.bf16.mxu1 %v4194_v62 }
 0x223   :  { %3197 = vmatprep.mubr.bf16.mxu0 %v4198_v2 }
 0x224   :  { %v2405_v7 = vpop.f32.mrb[8].mxu1 }
 0x225   :  { %v2983_v10 = vpop.f32.mrb[8].mxu0  ;;  %v2407_v11 = vpop.f32.mrb[9].mxu1 }
 0x226   :  { %v5730_v13 = vadd.f32 %v2983_v10, %v2405_v7  ;;  %v2985_v14 = vpop.f32.mrb[9].mxu0  ;;  %v2408_v15 = vpop.f32.mrb[10].mxu1 }
 0x227   :  { %v2986_v18 = vpop.f32.mrb[10].mxu0  ;;  %v2410_v19 = vpop.f32.mrb[11].mxu1 }
 0x228   :  { %v5732_v21 = vadd.f32 %v2986_v18, %v2408_v15  ;;  %v2988_v22 = vpop.f32.mrb[11].mxu0 }
 0x229   :  { %2620 = vmatmul.mubr.bf16.gmra.mrb[116].mxu1 %v4193_v12 }
 0x22a   :  { %3198 = vmatmul.mubr.bf16.gmra.mrb[116].mxu0 %v4197_v16  ;;  %2627 = vmatprep.mubr.bf16.mxu1 %v4202_v17 }
 0x22b   :  { %3205 = vmatprep.mubr.bf16.mxu0 %v4206_v20 }
 0x22c   :  { %v2413_v25 = vpop.f32.mrb[12].mxu1 }
 0x22d   :  { %v2991_v28 = vpop.f32.mrb[12].mxu0  ;;  %v2415_v29 = vpop.f32.mrb[13].mxu1 }
 0x22e   :  { %v5746_v31 = vadd.f32 %v2991_v28, %v2413_v25  ;;  %v2993_v32 = vpop.f32.mrb[13].mxu0  ;;  %v2416_v33 = vpop.f32.mrb[14].mxu1  ;;  %v3222_v25 = vadd.f32 %v5700_v49, %v5698_v41 }
 0x22f   :  { %v2994_v36 = vpop.f32.mrb[14].mxu0  ;;  %v2418_v37 = vpop.f32.mrb[15].mxu1 }
 0x230   :  { %v5748_v39 = vadd.f32 %v2994_v36, %v2416_v33  ;;  %v2996_v40 = vpop.f32.mrb[15].mxu0  ;;  %v3223_v26 = vadd.f32 %v5714_v58, %v3222_v25 }
 0x231   :  { %2628 = vmatmul.mubr.bf16.gmra.mrb[120].mxu1 %v4201_v30 }
 0x232   :  { %3206 = vmatmul.mubr.bf16.gmra.mrb[120].mxu0 %v4205_v34  ;;  %2635 = vmatprep.mubr.bf16.mxu1 %v4210_v35  ;;  %v3224_v36 = vadd.f32 %v5716_v3, %v3223_v26 }
 0x233   :  { %3213 = vmatprep.mubr.bf16.mxu0 %v4214_v38 }
 0x234   :  { %v2421_v42 = vpop.f32.mrb[16].mxu1  ;;  %v3225_v40 = vadd.f32 %v5730_v13, %v3224_v36 }
 0x235   :  { %v2999_v43 = vpop.f32.mrb[16].mxu0  ;;  %v2423_v44 = vpop.f32.mrb[17].mxu1 }
 0x236   :  { %v5750_v46 = vadd.f32 %v2999_v43, %v2421_v42  ;;  %v3001_v47 = vpop.f32.mrb[17].mxu0  ;;  %v2424_v48 = vpop.f32.mrb[18].mxu1 }
 0x237   :  { %v3002_v51 = vpop.f32.mrb[18].mxu0  ;;  %v2426_v52 = vpop.f32.mrb[19].mxu1 }
 0x238   :  { %v5752_v53 = vadd.f32 %v3002_v51, %v2424_v48  ;;  %v3004_v54 = vpop.f32.mrb[19].mxu0 }
 0x239   :  { %2636 = vmatmul.mubr.bf16.gmra.mrb[124].mxu1 %v4209_v45  ;;  %v3226_v45 = vadd.f32 %v5732_v21, %v3225_v40 }
 0x23a   :  { %3214 = vmatmul.mubr.bf16.gmra.mrb[124].mxu0 %v4213_v50 }
 0x23b   :  { %v3227_v54 = vadd.f32 %v5746_v31, %v3226_v45 }
 0x23c   :  { %v2429_v55 = vpop.f32.mrb[20].mxu1 }
 0x23d   :  { %v3007_v56 = vpop.f32.mrb[20].mxu0  ;;  %v2431_v57 = vpop.f32.mrb[21].mxu1 }
 0x23e   :  { %v5754_v0 = vadd.f32 %v3007_v56, %v2429_v55  ;;  %v3009_v59 = vpop.f32.mrb[21].mxu0  ;;  %v2432_v60 = vpop.f32.mrb[22].mxu1  ;;  %v3228_v57 = vadd.f32 %v5748_v39, %v3227_v54 }
 0x23f   :  { %v3010_v61 = vpop.f32.mrb[22].mxu0  ;;  %v2434_v62 = vpop.f32.mrb[23].mxu1 }
 0x240   :  { %v5756_v63 = vadd.f32 %v3010_v61, %v2432_v60  ;;  %v3012_v1 = vpop.f32.mrb[23].mxu0  ;;  %v3229_v62 = vadd.f32 %v5750_v46, %v3228_v57 }
 0x244   :  { %v2437_v2 = vpop.f32.mrb[24].mxu1 }
 0x245   :  { %v3015_v4 = vpop.f32.mrb[24].mxu0  ;;  %v2439_v5 = vpop.f32.mrb[25].mxu1 }
 0x246   :  { %v5758_v6 = vadd.f32 %v3015_v4, %v2437_v2  ;;  %v3017_v7 = vpop.f32.mrb[25].mxu0  ;;  %v2440_v8 = vpop.f32.mrb[26].mxu1 }
 0x247   :  { %v3018_v9 = vpop.f32.mrb[26].mxu0  ;;  %v2442_v10 = vpop.f32.mrb[27].mxu1 }
 0x248   :  { %v5760_v11 = vadd.f32 %v3018_v9, %v2440_v8  ;;  %v3020_v12 = vpop.f32.mrb[27].mxu0  ;;  %v3230_v10 = vadd.f32 %v5752_v53, %v3229_v62 }
 0x24a   :  { %v3231_v12 = vadd.f32 %v5754_v0, %v3230_v10 }
 0x24c   :  { %v2445_v14 = vpop.f32.mrb[28].mxu1  ;;  %v3232_v25 = vadd.f32 %v5756_v63, %v3231_v12 }
 0x24d   :  { %v3023_v15 = vpop.f32.mrb[28].mxu0  ;;  %v2447_v16 = vpop.f32.mrb[29].mxu1 }
 0x24e   :  { %v5762_v17 = vadd.f32 %v3023_v15, %v2445_v14  ;;  %v3025_v18 = vpop.f32.mrb[29].mxu0  ;;  %v2448_v19 = vpop.f32.mrb[30].mxu1 }
 0x24f   :  { %v3026_v20 = vpop.f32.mrb[30].mxu0  ;;  %v2450_v22 = vpop.f32.mrb[31].mxu1 }
 0x250   :  { %v5764_v23 = vadd.f32 %v3026_v20, %v2448_v19  ;;  %v3028_v24 = vpop.f32.mrb[31].mxu0 }
 0x254   :  { %v2453_v27 = vpop.f32.mrb[32].mxu1 }
 0x255   :  { %v3031_v28 = vpop.f32.mrb[32].mxu0  ;;  %v2455_v29 = vpop.f32.mrb[33].mxu1 }
 0x256   :  { %v5769_v30 = vadd.f32 %v3031_v28, %v2453_v27  ;;  %v3033_v32 = vpop.f32.mrb[33].mxu0  ;;  %v2456_v33 = vpop.f32.mrb[34].mxu1  ;;  %v3233_v28 = vadd.f32 %v5758_v6, %v3232_v25 }
 0x257   :  { %v3034_v34 = vpop.f32.mrb[34].mxu0  ;;  %v2458_v35 = vpop.f32.mrb[35].mxu1 }
 0x258   :  { %v5772_v37 = vadd.f32 %v3034_v34, %v2456_v33  ;;  %v3036_v38 = vpop.f32.mrb[35].mxu0  ;;  %v3234_v34 = vadd.f32 %v5760_v11, %v3233_v28 }
 0x25c   :  { %v2461_v42 = vpop.f32.mrb[36].mxu1 }
 0x25d   :  { %v3039_v43 = vpop.f32.mrb[36].mxu0  ;;  %v2463_v44 = vpop.f32.mrb[37].mxu1 }
 0x25e   :  { %v5776_v47 = vadd.f32 %v3039_v43, %v2461_v42  ;;  %v3041_v48 = vpop.f32.mrb[37].mxu0  ;;  %v2464_v50 = vpop.f32.mrb[38].mxu1  ;;  %v3235_v43 = vadd.f32 %v5762_v17, %v3234_v34 }
 0x25f   :  { %v3042_v51 = vpop.f32.mrb[38].mxu0  ;;  %v2466_v52 = vpop.f32.mrb[39].mxu1 }
 0x260   :  { %v5779_v55 = vadd.f32 %v3042_v51, %v2464_v50  ;;  %v3044_v56 = vpop.f32.mrb[39].mxu0  ;;  %v3236_v48 = vadd.f32 %v5764_v23, %v3235_v43 }
 0x262   :  { %v3237_v54 = vadd.f32 %v5769_v30, %v3236_v48 }
 0x264   :  { %v2469_v59 = vpop.f32.mrb[40].mxu1 }
 0x265   :  { %v3047_v60 = vpop.f32.mrb[40].mxu0  ;;  %v2471_v61 = vpop.f32.mrb[41].mxu1 }
 0x266   :  { %v5783_v1 = vadd.f32 %v3047_v60, %v2469_v59  ;;  %v3049_v2 = vpop.f32.mrb[41].mxu0  ;;  %v2472_v4 = vpop.f32.mrb[42].mxu1 }
 0x267   :  { %v3050_v5 = vpop.f32.mrb[42].mxu0  ;;  %v2474_v7 = vpop.f32.mrb[43].mxu1 }
 0x268   :  { %v5785_v8 = vadd.f32 %v3050_v5, %v2472_v4  ;;  %v3052_v9 = vpop.f32.mrb[43].mxu0  ;;  %v3238_v4 = vadd.f32 %v5772_v37, %v3237_v54 }
 0x26a   :  { %v3239_v5 = vadd.f32 %v5776_v47, %v3238_v4 }
 0x26c   :  { %v2477_v14 = vpop.f32.mrb[44].mxu1 }
 0x26d   :  { %v3055_v15 = vpop.f32.mrb[44].mxu0  ;;  %v2479_v16 = vpop.f32.mrb[45].mxu1 }
 0x26e   :  { %v5789_v18 = vadd.f32 %v3055_v15, %v2477_v14  ;;  %v3057_v19 = vpop.f32.mrb[45].mxu0  ;;  %v2480_v20 = vpop.f32.mrb[46].mxu1 }
 0x26f   :  { %v3058_v22 = vpop.f32.mrb[46].mxu0  ;;  %v2482_v24 = vpop.f32.mrb[47].mxu1 }
 0x270   :  { %v5792_v26 = vadd.f32 %v3058_v22, %v2480_v20  ;;  %v3060_v27 = vpop.f32.mrb[47].mxu0  ;;  %v3240_v20 = vadd.f32 %v5779_v55, %v3239_v5 }
 0x272   :  { %v3241_v25 = vadd.f32 %v5783_v1, %v3240_v20 }
 0x274   :  { %v2485_v29 = vpop.f32.mrb[48].mxu1 }
 0x275   :  { %v3063_v32 = vpop.f32.mrb[48].mxu0  ;;  %v2487_v33 = vpop.f32.mrb[49].mxu1 }
 0x276   :  { %v5796_v35 = vadd.f32 %v3063_v32, %v2485_v29  ;;  %v3065_v36 = vpop.f32.mrb[49].mxu0  ;;  %v2488_v38 = vpop.f32.mrb[50].mxu1  ;;  %v3242_v32 = vadd.f32 %v5785_v8, %v3241_v25 }
 0x277   :  { %v3066_v40 = vpop.f32.mrb[50].mxu0  ;;  %v2490_v42 = vpop.f32.mrb[51].mxu1 }
 0x278   :  { %v5799_v44 = vadd.f32 %v3066_v40, %v2488_v38  ;;  %v3068_v45 = vpop.f32.mrb[51].mxu0  ;;  %v3243_v42 = vadd.f32 %v5789_v18, %v3242_v32 }
 0x27a   :  { %v3244_v48 = vadd.f32 %v5792_v26, %v3243_v42 }
 0x27c   :  { %v2493_v50 = vpop.f32.mrb[52].mxu1  ;;  %v3245_v54 = vadd.f32 %v5796_v35, %v3244_v48 }
 0x27d   :  { %v3071_v51 = vpop.f32.mrb[52].mxu0  ;;  %v2495_v52 = vpop.f32.mrb[53].mxu1 }
 0x27e   :  { %v5803_v56 = vadd.f32 %v3071_v51, %v2493_v50  ;;  %v3073_v57 = vpop.f32.mrb[53].mxu0  ;;  %v2496_v59 = vpop.f32.mrb[54].mxu1 }
 0x27f   :  { %v3074_v60 = vpop.f32.mrb[54].mxu0  ;;  %v2498_v61 = vpop.f32.mrb[55].mxu1 }
 0x280   :  { %v5805_v62 = vadd.f32 %v3074_v60, %v2496_v59  ;;  %v3076_v2 = vpop.f32.mrb[55].mxu0 }
 0x284   :  { %v2501_v7 = vpop.f32.mrb[56].mxu1 }
 0x285   :  { %v3079_v9 = vpop.f32.mrb[56].mxu0  ;;  %v2503_v10 = vpop.f32.mrb[57].mxu1 }
 0x286   :  { %v5809_v12 = vadd.f32 %v3079_v9, %v2501_v7  ;;  %v3081_v14 = vpop.f32.mrb[57].mxu0  ;;  %v2504_v15 = vpop.f32.mrb[58].mxu1  ;;  %v3246_v7 = vadd.f32 %v5799_v44, %v3245_v54 }
 0x287   :  { %v3082_v16 = vpop.f32.mrb[58].mxu0  ;;  %v2506_v19 = vpop.f32.mrb[59].mxu1 }
 0x288   :  { %v5812_v22 = vadd.f32 %v3082_v16, %v2504_v15  ;;  %v3084_v24 = vpop.f32.mrb[59].mxu0  ;;  %v3247_v9 = vadd.f32 %v5803_v56, %v3246_v7 }
 0x28c   :  { %v2509_v27 = vpop.f32.mrb[60].mxu1 }
 0x28d   :  { %v3087_v28 = vpop.f32.mrb[60].mxu0  ;;  %v2511_v29 = vpop.f32.mrb[61].mxu1 }
 0x28e   :  { %v5816_v33 = vadd.f32 %v3087_v28, %v2509_v27  ;;  %v3089_v34 = vpop.f32.mrb[61].mxu0  ;;  %v2512_v36 = vpop.f32.mrb[62].mxu1  ;;  %v3248_v27 = vadd.f32 %v5805_v62, %v3247_v9 }
 0x28f   :  { %v3090_v38 = vpop.f32.mrb[62].mxu0  ;;  %v2514_v40 = vpop.f32.mrb[63].mxu1 }
 0x290   :  { %v5819_v43 = vadd.f32 %v3090_v38, %v2512_v36  ;;  %v3092_v45 = vpop.f32.mrb[63].mxu0  ;;  %v3249_v32 = vadd.f32 %v5809_v12, %v3248_v27 }
 0x292   :  { %v3250_v40 = vadd.f32 %v5812_v22, %v3249_v32 }
 0x294   :  { %v2517_v50 = vpop.f32.mrb[64].mxu1 }
 0x295   :  { %v3095_v51 = vpop.f32.mrb[64].mxu0  ;;  %v2519_v52 = vpop.f32.mrb[65].mxu1 }
 0x296   :  { %v5823_v57 = vadd.f32 %v3095_v51, %v2517_v50  ;;  %v3097_v59 = vpop.f32.mrb[65].mxu0  ;;  %v2520_v60 = vpop.f32.mrb[66].mxu1  ;;  %v3251_v52 = vadd.f32 %v5816_v33, %v3250_v40 }
 0x297   :  { %v3098_v61 = vpop.f32.mrb[66].mxu0  ;;  %v2522_v2 = vpop.f32.mrb[67].mxu1 }
 0x298   :  { %v5825_v4 = vadd.f32 %v3098_v61, %v2520_v60  ;;  %v3100_v5 = vpop.f32.mrb[67].mxu0  ;;  %v3252_v60 = vadd.f32 %v5819_v43, %v3251_v52 }
 0x29a   :  { %v3253_v7 = vadd.f32 %v5823_v57, %v3252_v60 }
 0x29c   :  { %v2525_v10 = vpop.f32.mrb[68].mxu1 }
 0x29d   :  { %v3103_v14 = vpop.f32.mrb[68].mxu0  ;;  %v2527_v15 = vpop.f32.mrb[69].mxu1 }
 0x29e   :  { %v5829_v16 = vadd.f32 %v3103_v14, %v2525_v10  ;;  %v3105_v19 = vpop.f32.mrb[69].mxu0  ;;  %v2528_v20 = vpop.f32.mrb[70].mxu1 }
 0x29f   :  { %v3106_v24 = vpop.f32.mrb[70].mxu0  ;;  %v2530_v25 = vpop.f32.mrb[71].mxu1 }
 0x2a0   :  { %7778 = vst [vmem:[#allocation2_spill] sm:$0xff] %v5829_v16  ;;  %v5832_v28 = vadd.f32 %v3106_v24, %v2528_v20  ;;  %v3108_v29 = vpop.f32.mrb[71].mxu0  ;;  %v3254_v25 = vadd.f32 %v5825_v4, %v3253_v7 }
 0x2a2   :  { %7779 = vst [vmem:[#allocation3_spill] sm:$0xff] %v5832_v28  ;;  %v3255_v27 = vadd.f32 %v5829_v16, %v3254_v25 }
 0x2a4   :  { %v2533_v34 = vpop.f32.mrb[72].mxu1 }
 0x2a5   :  { %v3111_v36 = vpop.f32.mrb[72].mxu0  ;;  %v2535_v38 = vpop.f32.mrb[73].mxu1 }
 0x2a6   :  { %v5836_v42 = vadd.f32 %v3111_v36, %v2533_v34  ;;  %v3113_v45 = vpop.f32.mrb[73].mxu0  ;;  %v2536_v48 = vpop.f32.mrb[74].mxu1 }
 0x2a7   :  { %v3114_v50 = vpop.f32.mrb[74].mxu0  ;;  %v2538_v51 = vpop.f32.mrb[75].mxu1 }
 0x2a8   :  { %7780 = vst [vmem:[#allocation4_spill] sm:$0xff] %v5836_v42  ;;  %v5839_v54 = vadd.f32 %v3114_v50, %v2536_v48  ;;  %v3116_v59 = vpop.f32.mrb[75].mxu0  ;;  %v3256_v50 = vadd.f32 %v5832_v28, %v3255_v27 }
 0x2aa   :  { %7781 = vst [vmem:[#allocation5_spill] sm:$0xff] %v5839_v54  ;;  %v3257_v59 = vadd.f32 %v5836_v42, %v3256_v50 }
 0x2ac   :  { %v2541_v61 = vpop.f32.mrb[76].mxu1 }
 0x2ad   :  { %v3119_v2 = vpop.f32.mrb[76].mxu0  ;;  %v2543_v5 = vpop.f32.mrb[77].mxu1 }
 0x2ae   :  { %v5843_v9 = vadd.f32 %v3119_v2, %v2541_v61  ;;  %v3121_v10 = vpop.f32.mrb[77].mxu0  ;;  %v2544_v14 = vpop.f32.mrb[78].mxu1  ;;  %v3258_v5 = vadd.f32 %v5839_v54, %v3257_v59 }
 0x2af   :  { %v3122_v15 = vpop.f32.mrb[78].mxu0  ;;  %v2546_v19 = vpop.f32.mrb[79].mxu1 }
 0x2b0   :  { %7782 = vst [vmem:[#allocation6_spill] sm:$0xff] %v5843_v9  ;;  %v5845_v20 = vadd.f32 %v3122_v15, %v2544_v14  ;;  %v3124_v24 = vpop.f32.mrb[79].mxu0 }
 0x2b1   :  { %v3259_v24 = vadd.f32 %v5843_v9, %v3258_v5 }
 0x2b2   :  { %7783 = vst [vmem:[#allocation7_spill] sm:$0xff] %v5845_v20 }
 0x2b4   :  { %v2549_v29 = vpop.f32.mrb[80].mxu1 }
 0x2b5   :  { %v3127_v32 = vpop.f32.mrb[80].mxu0  ;;  %v2551_v34 = vpop.f32.mrb[81].mxu1 }
 0x2b6   :  { %v5849_v36 = vadd.f32 %v3127_v32, %v2549_v29  ;;  %v3129_v38 = vpop.f32.mrb[81].mxu0  ;;  %v2552_v40 = vpop.f32.mrb[82].mxu1  ;;  %v3260_v29 = vadd.f32 %v5845_v20, %v3259_v24 }
 0x2b7   :  { %v3130_v45 = vpop.f32.mrb[82].mxu0  ;;  %v2554_v48 = vpop.f32.mrb[83].mxu1 }
 0x2b8   :  { %7784 = vst [vmem:[#allocation8_spill] sm:$0xff] %v5849_v36  ;;  %v5852_v51 = vadd.f32 %v3130_v45, %v2552_v40  ;;  %v3132_v52 = vpop.f32.mrb[83].mxu0  ;;  %v3261_v40 = vadd.f32 %v5849_v36, %v3260_v29 }
 0x2ba   :  { %7785 = vst [vmem:[#allocation9_spill] sm:$0xff] %v5852_v51 }
 0x2bc   :  { %v2557_v60 = vpop.f32.mrb[84].mxu1 }
 0x2bd   :  { %v3135_v61 = vpop.f32.mrb[84].mxu0  ;;  %v2559_v2 = vpop.f32.mrb[85].mxu1 }
 0x2be   :  { %v5856_v7 = vadd.f32 %v3135_v61, %v2557_v60  ;;  %v3137_v10 = vpop.f32.mrb[85].mxu0  ;;  %v2560_v14 = vpop.f32.mrb[86].mxu1  ;;  %v3262_v2 = vadd.f32 %v5852_v51, %v3261_v40 }
 0x2bf   :  { %v3138_v15 = vpop.f32.mrb[86].mxu0  ;;  %v2562_v19 = vpop.f32.mrb[87].mxu1 }
 0x2c0   :  { %7786 = vst [vmem:[#allocation10_spill] sm:$0xff] %v5856_v7  ;;  %v5859_v25 = vadd.f32 %v3138_v15, %v2560_v14  ;;  %v3140_v27 = vpop.f32.mrb[87].mxu0  ;;  %v3263_v5 = vadd.f32 %v5856_v7, %v3262_v2 }
 0x2c2   :  { %7787 = vst [vmem:[#allocation11_spill] sm:$0xff] %v5859_v25 }
 0x2c4   :  { %v2565_v32 = vpop.f32.mrb[88].mxu1 }
 0x2c5   :  { %v3143_v34 = vpop.f32.mrb[88].mxu0  ;;  %v2567_v38 = vpop.f32.mrb[89].mxu1 }
 0x2c6   :  { %v5863_v45 = vadd.f32 %v3143_v34, %v2565_v32  ;;  %v3145_v48 = vpop.f32.mrb[89].mxu0  ;;  %v2568_v50 = vpop.f32.mrb[90].mxu1  ;;  %v3264_v34 = vadd.f32 %v5859_v25, %v3263_v5 }
 0x2c7   :  { %v3146_v52 = vpop.f32.mrb[90].mxu0  ;;  %v2570_v59 = vpop.f32.mrb[91].mxu1 }
 0x2c8   :  { %7788 = vst [vmem:[#allocation12_spill] sm:$0xff] %v5863_v45  ;;  %v5865_v60 = vadd.f32 %v3146_v52, %v2568_v50  ;;  %v3148_v61 = vpop.f32.mrb[91].mxu0  ;;  %v3265_v50 = vadd.f32 %v5863_v45, %v3264_v34 }
 0x2ca   :  { %7789 = vst [vmem:[#allocation13_spill] sm:$0xff] %v5865_v60  ;;  %v3266_v61 = vadd.f32 %v5865_v60, %v3265_v50 }
 0x2cc   :  { %v2573_v10 = vpop.f32.mrb[92].mxu1 }
 0x2cd   :  { %v3151_v14 = vpop.f32.mrb[92].mxu0  ;;  %v2575_v15 = vpop.f32.mrb[93].mxu1 }
 0x2ce   :  { %v5869_v19 = vadd.f32 %v3151_v14, %v2573_v10  ;;  %v3153_v24 = vpop.f32.mrb[93].mxu0  ;;  %v2576_v27 = vpop.f32.mrb[94].mxu1 }
 0x2cf   :  { %v3154_v29 = vpop.f32.mrb[94].mxu0  ;;  %v2578_v32 = vpop.f32.mrb[95].mxu1 }
 0x2d0   :  { %7790 = vst [vmem:[#allocation14_spill] sm:$0xff] %v5869_v19  ;;  %v5872_v38 = vadd.f32 %v3154_v29, %v2576_v27  ;;  %v3156_v48 = vpop.f32.mrb[95].mxu0  ;;  %v3267_v32 = vadd.f32 %v5869_v19, %v3266_v61 }
 0x2d2   :  { %7791 = vst [vmem:[#allocation15_spill] sm:$0xff] %v5872_v38  ;;  %v3268_v27 = vadd.f32 %v5872_v38, %v3267_v32 }
 0x2d4   :  { %v2581_v52 = vpop.f32.mrb[96].mxu1 }
 0x2d5   :  { %v3159_v40 = vpop.f32.mrb[96].mxu0  ;;  %v2583_v59 = vpop.f32.mrb[97].mxu1 }
 0x2d6   :  { %v5876_v2 = vadd.f32 %v3159_v40, %v2581_v52  ;;  %v3161_v10 = vpop.f32.mrb[97].mxu0  ;;  %v2584_v14 = vpop.f32.mrb[98].mxu1 }
 0x2d7   :  { %v3162_v15 = vpop.f32.mrb[98].mxu0  ;;  %v2586_v24 = vpop.f32.mrb[99].mxu1 }
 0x2d8   :  { %7792 = vst [vmem:[#allocation16_spill] sm:$0xff] %v5876_v2  ;;  %v5879_v7 = vadd.f32 %v3162_v15, %v2584_v14  ;;  %v3164_v5 = vpop.f32.mrb[99].mxu0  ;;  %v3269_v59 = vadd.f32 %v5876_v2, %v3268_v27 }
 0x2da   :  { %7793 = vst [vmem:[#allocation17_spill] sm:$0xff] %v5879_v7  ;;  %v3270_v61 = vadd.f32 %v5879_v7, %v3269_v59 }
 0x2dc   :  { %v2589_v29 = vpop.f32.mrb[100].mxu1 }
 0x2dd   :  { %v3167_v34 = vpop.f32.mrb[100].mxu0  ;;  %v2591_v48 = vpop.f32.mrb[101].mxu1 }
 0x2de   :  { %v5883_v45 = vadd.f32 %v3167_v34, %v2589_v29  ;;  %v3169_v50 = vpop.f32.mrb[101].mxu0  ;;  %v2592_v52 = vpop.f32.mrb[102].mxu1 }
 0x2df   :  { %v3170_v40 = vpop.f32.mrb[102].mxu0  ;;  %v2594_v10 = vpop.f32.mrb[103].mxu1 }
 0x2e0   :  { %7794 = vst [vmem:[#allocation18_spill] sm:$0xff] %v5883_v45  ;;  %v5885_v60 = vadd.f32 %v3170_v40, %v2592_v52  ;;  %v3172_v24 = vpop.f32.mrb[103].mxu0  ;;  %v3271_v14 = vadd.f32 %v5883_v45, %v3270_v61 }
 0x2e2   :  { %7795 = vst [vmem:[#allocation19_spill] sm:$0xff] %v5885_v60  ;;  %v3272_v50 = vadd.f32 %v5885_v60, %v3271_v14 }
 0x2e4   :  { %v2597_v15 = vpop.f32.mrb[104].mxu1 }
 0x2e5   :  { %v3175_v32 = vpop.f32.mrb[104].mxu0  ;;  %v2599_v5 = vpop.f32.mrb[105].mxu1 }
 0x2e6   :  { %v5889_v38 = vadd.f32 %v3175_v32, %v2597_v15  ;;  %v3177_v48 = vpop.f32.mrb[105].mxu0  ;;  %v2600_v27 = vpop.f32.mrb[106].mxu1 }
 0x2e7   :  { %v3178_v29 = vpop.f32.mrb[106].mxu0  ;;  %v2602_v34 = vpop.f32.mrb[107].mxu1 }
 0x2e8   :  { %7796 = vst [vmem:[#allocation20_spill] sm:$0xff] %v5889_v38  ;;  %v5892_v2 = vadd.f32 %v3178_v29, %v2600_v27  ;;  %v3180_v52 = vpop.f32.mrb[107].mxu0  ;;  %v3273_v40 = vadd.f32 %v5889_v38, %v3272_v50 }
 0x2ea   :  { %7797 = vst [vmem:[#allocation21_spill] sm:$0xff] %v5892_v2  ;;  %v3274_v61 = vadd.f32 %v5892_v2, %v3273_v40 }
 0x2ec   :  { %v2605_v10 = vpop.f32.mrb[108].mxu1 }
 0x2ed   :  { %v3183_v59 = vpop.f32.mrb[108].mxu0  ;;  %v2607_v24 = vpop.f32.mrb[109].mxu1 }
 0x2ee   :  { %v5896_v45 = vadd.f32 %v3183_v59, %v2605_v10  ;;  %v3185_v15 = vpop.f32.mrb[109].mxu0  ;;  %v2608_v32 = vpop.f32.mrb[110].mxu1 }
 0x2ef   :  { %v3186_v5 = vpop.f32.mrb[110].mxu0  ;;  %v2610_v48 = vpop.f32.mrb[111].mxu1 }
 0x2f0   :  { %v3275_v34 = vadd.f32 %v5896_v45, %v3274_v61  ;;  %v4336_v7 = vadd.f32 %v3186_v5, %v2608_v32  ;;  %v3188_v14 = vpop.f32.mrb[111].mxu0 }
 0x2f2   :  { %v3276_v27 = vadd.f32 %v4336_v7, %v3275_v34 }
 0x2f4   :  { %v2613_v29 = vpop.f32.mrb[112].mxu1 }
 0x2f5   :  { %v3191_v52 = vpop.f32.mrb[112].mxu0  ;;  %v2615_v60 = vpop.f32.mrb[113].mxu1 }
 0x2f6   :  { %v4337_v50 = vadd.f32 %v3191_v52, %v2613_v29  ;;  %v3193_v38 = vpop.f32.mrb[113].mxu0  ;;  %v2616_v19 = vpop.f32.mrb[114].mxu1 }
 0x2f7   :  { %v3194_v24 = vpop.f32.mrb[114].mxu0  ;;  %v2618_v25 = vpop.f32.mrb[115].mxu1 }
 0x2f8   :  { %v3277_v40 = vadd.f32 %v4337_v50, %v3276_v27  ;;  %v4338_v10 = vadd.f32 %v3194_v24, %v2616_v19  ;;  %v3196_v59 = vpop.f32.mrb[115].mxu0 }
 0x2fa   :  { %v3278_v15 = vadd.f32 %v4338_v10, %v3277_v40 }
 0x2fc   :  { %v2621_v2 = vpop.f32.mrb[116].mxu1 }
 0x2fd   :  { %v3199_v51 = vpop.f32.mrb[116].mxu0  ;;  %v2623_v48 = vpop.f32.mrb[117].mxu1 }
 0x2fe   :  { %v4339_v36 = vadd.f32 %v3199_v51, %v2621_v2  ;;  %v3201_v61 = vpop.f32.mrb[117].mxu0  ;;  %v2624_v32 = vpop.f32.mrb[118].mxu1 }
 0x2ff   :  { %v3202_v5 = vpop.f32.mrb[118].mxu0  ;;  %v2626_v34 = vpop.f32.mrb[119].mxu1 }
 0x300   :  { %v3279_v14 = vadd.f32 %v4339_v36, %v3278_v15  ;;  %v4340_v20 = vadd.f32 %v3202_v5, %v2624_v32  ;;  %v3204_v60 = vpop.f32.mrb[119].mxu0 }
 0x302   :  { %v3280_v29 = vadd.f32 %v4340_v20, %v3279_v14 }
 0x304   :  { %v2629_v38 = vpop.f32.mrb[120].mxu1 }
 0x305   :  { %v3207_v52 = vpop.f32.mrb[120].mxu0  ;;  %v2631_v9 = vpop.f32.mrb[121].mxu1 }
 0x306   :  { %v4341_v25 = vadd.f32 %v3207_v52, %v2629_v38  ;;  %v3209_v27 = vpop.f32.mrb[121].mxu0  ;;  %v2632_v19 = vpop.f32.mrb[122].mxu1 }
 0x307   :  { %v3210_v24 = vpop.f32.mrb[122].mxu0  ;;  %v2634_v40 = vpop.f32.mrb[123].mxu1 }
 0x308   :  { %v3281_v59 = vadd.f32 %v4341_v25, %v3280_v29  ;;  %v4342_v54 = vadd.f32 %v3210_v24, %v2632_v19  ;;  %v3212_v48 = vpop.f32.mrb[123].mxu0 }
 0x30a   :  { %v3282_v51 = vadd.f32 %v4342_v54, %v3281_v59 }
 0x30c   :  { %v2637_v2 = vpop.f32.mrb[124].mxu1 }
 0x30d   :  { %v3215_v61 = vpop.f32.mrb[124].mxu0  ;;  %v2639_v42 = vpop.f32.mrb[125].mxu1 }
 0x30e   :  { %v4343_v34 = vadd.f32 %v3215_v61, %v2637_v2  ;;  %v3217_v15 = vpop.f32.mrb[125].mxu0  ;;  %v2640_v32 = vpop.f32.mrb[126].mxu1 }
 0x30f   :  { %v3218_v5 = vpop.f32.mrb[126].mxu0  ;;  %v2642_v14 = vpop.f32.mrb[127].mxu1 }
 0x310   :  { %v3283_v60 = vadd.f32 %v4343_v34, %v3282_v51  ;;  %v4344_v28 = vadd.f32 %v3218_v5, %v2640_v32  ;;  %v3220_v9 = vpop.f32.mrb[127].mxu0 }
 0x312   :  { %v3284_v38 = vadd.f32 %v4344_v28, %v3283_v60 }
 0x314   :  { %v3285_v52 = vrot.slane %v3284_v38, 4 }
 0x316   :  { %v3286_v27 = vadd.f32 %v3285_v52, %v3284_v38 }
 0x318   :  { %v3287_v16 = vrot.slane %v3286_v27, 2 }
 0x31a   :  { %v3288_v40 = vadd.f32 %v3287_v16, %v3286_v27 }
 0x31c   :  { %v3289_v29 = vrot.slane %v3288_v40, 1 }
 0x31e   :  { %v3290_v19 = vadd.f32 %v3289_v29, %v3288_v40 }
 0x320   :  { %v5899_v24 = vmul.f32 0.001953125, %v3290_v19 }
 0x322   :  { %v5903_v42 = vsub.f32 %v5896_v45, %v5899_v24  ;;  %v5906_v59 = vsub.f32 %v4336_v7, %v5899_v24  ;;  %v5909_v48 = vsub.f32 %v4337_v50, %v5899_v24  ;;  %v5912_v51 = vsub.f32 %v4338_v10, %v5899_v24 }
 0x323   :  { %v5915_v2 = vsub.f32 %v4339_v36, %v5899_v24  ;;  %v5918_v16 = vsub.f32 %v4340_v20, %v5899_v24  ;;  %v5921_v61 = vsub.f32 %v4341_v25, %v5899_v24  ;;  %v5924_v45 = vsub.f32 %v4342_v54, %v5899_v24 }
 0x324   :  { %7798 = vst [vmem:[#allocation22_spill] sm:$0xff] %v5909_v48  ;;  %7799 = vst [vmem:[#allocation23_spill] sm:$0xff] %v5912_v51  ;;  %v5927_v7 = vsub.f32 %v4343_v34, %v5899_v24  ;;  %v5930_v50 = vsub.f32 %v4344_v28, %v5899_v24  ;;  %v5934_v10 = vsub.f32 %v5698_v41, %v5899_v24 }
 0x325   :  { %7800 = vst [vmem:[#allocation24_spill] sm:$0xff] %v5915_v2  ;;  %7801 = vst [vmem:[#allocation25_spill] sm:$0xff] %v5918_v16  ;;  %v5938_v20 = vsub.f32 %v5700_v49, %v5899_v24  ;;  %v5942_v36 = vsub.f32 %v5714_v58, %v5899_v24  ;;  %v5950_v28 = vsub.f32 %v5716_v3, %v5899_v24 }
 0x326   :  { %7802 = vst [vmem:[#allocation26_spill] sm:$0xff] %v5921_v61  ;;  %v3357_v54 = vmul.f32 %v5934_v10, %v5934_v10  ;;  %v5954_v41 = vsub.f32 %v5730_v13, %v5899_v24  ;;  %v5960_v58 = vsub.f32 %v5732_v21, %v5899_v24  ;;  %v5966_v3 = vsub.f32 %v5746_v31, %v5899_v24 }
 0x327   :  { %v3358_v25 = vmul.f32 %v5938_v20, %v5938_v20  ;;  %v3359_v49 = vmul.f32 %v5942_v36, %v5942_v36  ;;  %v3360_v15 = vmul.f32 %v5950_v28, %v5950_v28  ;;  %v5972_v14 = vsub.f32 %v5748_v39, %v5899_v24 }
 0x328   :  { %v3361_v13 = vmul.f32 %v5954_v41, %v5954_v41  ;;  %v3362_v21 = vmul.f32 %v5960_v58, %v5960_v58  ;;  %v5978_v9 = vsub.f32 %v5750_v46, %v5899_v24  ;;  %v3363_v31 = vmul.f32 %v5966_v3, %v5966_v3 }
 0x329   :  { %v3421_v34 = vadd.f32 %v3358_v25, %v3357_v54  ;;  %v5984_v52 = vsub.f32 %v5752_v53, %v5899_v24  ;;  %v3364_v39 = vmul.f32 %v5972_v14, %v5972_v14  ;;  %v5990_v40 = vsub.f32 %v5754_v0, %v5899_v24 }
 0x32a   :  { %v3365_v46 = vmul.f32 %v5978_v9, %v5978_v9  ;;  %v5996_v19 = vsub.f32 %v5756_v63, %v5899_v24  ;;  %v6002_v25 = vsub.f32 %v5758_v6, %v5899_v24 }
 0x32b   :  { %v3422_v32 = vadd.f32 %v3421_v34, %v3359_v49  ;;  %v3366_v53 = vmul.f32 %v5984_v52, %v5984_v52  ;;  %v3367_v0 = vmul.f32 %v5990_v40, %v5990_v40  ;;  %v6008_v34 = vsub.f32 %v5760_v11, %v5899_v24 }
 0x32c   :  { %v3368_v63 = vmul.f32 %v5996_v19, %v5996_v19  ;;  %v3369_v6 = vmul.f32 %v6002_v25, %v6002_v25 }
 0x32d   :  { %v3423_v5 = vadd.f32 %v3422_v32, %v3360_v15  ;;  %v6014_v32 = vsub.f32 %v5762_v17, %v5899_v24  ;;  %v3370_v11 = vmul.f32 %v6008_v34, %v6008_v34 }
 0x32f   :  { %v3424_v60 = vadd.f32 %v3423_v5, %v3361_v13  ;;  %v6020_v5 = vsub.f32 %v5764_v23, %v5899_v24  ;;  %v3371_v17 = vmul.f32 %v6014_v32, %v6014_v32 }
 0x331   :  { %v3425_v38 = vadd.f32 %v3424_v60, %v3362_v21  ;;  %v6026_v60 = vsub.f32 %v5769_v30, %v5899_v24  ;;  %v3372_v23 = vmul.f32 %v6020_v5, %v6020_v5 }
 0x333   :  { %v3426_v27 = vadd.f32 %v3425_v38, %v3363_v31  ;;  %v6032_v38 = vsub.f32 %v5772_v37, %v5899_v24  ;;  %v3373_v30 = vmul.f32 %v6026_v60, %v6026_v60 }
 0x335   :  { %v3427_v29 = vadd.f32 %v3426_v27, %v3364_v39  ;;  %v6038_v27 = vsub.f32 %v5776_v47, %v5899_v24  ;;  %v3374_v37 = vmul.f32 %v6032_v38, %v6032_v38 }
 0x337   :  { %v3428_v54 = vadd.f32 %v3427_v29, %v3365_v46  ;;  %v6044_v29 = vsub.f32 %v5779_v55, %v5899_v24  ;;  %v3375_v47 = vmul.f32 %v6038_v27, %v6038_v27 }
 0x339   :  { %v3429_v49 = vadd.f32 %v3428_v54, %v3366_v53  ;;  %v6050_v54 = vsub.f32 %v5783_v1, %v5899_v24  ;;  %v3376_v55 = vmul.f32 %v6044_v29, %v6044_v29 }
 0x33b   :  { %v3430_v15 = vadd.f32 %v3429_v49, %v3367_v0  ;;  %v6056_v49 = vsub.f32 %v5785_v8, %v5899_v24  ;;  %v3377_v1 = vmul.f32 %v6050_v54, %v6050_v54 }
 0x33d   :  { %v3431_v13 = vadd.f32 %v3430_v15, %v3368_v63  ;;  %v6062_v15 = vsub.f32 %v5789_v18, %v5899_v24  ;;  %v3378_v8 = vmul.f32 %v6056_v49, %v6056_v49 }
 0x33f   :  { %v3432_v21 = vadd.f32 %v3431_v13, %v3369_v6  ;;  %v6068_v13 = vsub.f32 %v5792_v26, %v5899_v24  ;;  %v3379_v18 = vmul.f32 %v6062_v15, %v6062_v15 }
 0x341   :  { %v3433_v31 = vadd.f32 %v3432_v21, %v3370_v11  ;;  %v6074_v21 = vsub.f32 %v5796_v35, %v5899_v24  ;;  %v3380_v26 = vmul.f32 %v6068_v13, %v6068_v13 }
 0x343   :  { %v3434_v39 = vadd.f32 %v3433_v31, %v3371_v17  ;;  %v6080_v31 = vsub.f32 %v5799_v44, %v5899_v24  ;;  %v3381_v35 = vmul.f32 %v6074_v21, %v6074_v21 }
 0x345   :  { %v3435_v46 = vadd.f32 %v3434_v39, %v3372_v23  ;;  %v6086_v39 = vsub.f32 %v5803_v56, %v5899_v24  ;;  %v3382_v44 = vmul.f32 %v6080_v31, %v6080_v31 }
 0x347   :  { %v3436_v53 = vadd.f32 %v3435_v46, %v3373_v30  ;;  %v6092_v46 = vsub.f32 %v5805_v62, %v5899_v24  ;;  %v3383_v56 = vmul.f32 %v6086_v39, %v6086_v39 }
 0x349   :  { %v3437_v0 = vadd.f32 %v3436_v53, %v3374_v37  ;;  %v6098_v53 = vsub.f32 %v5809_v12, %v5899_v24  ;;  %v3384_v62 = vmul.f32 %v6092_v46, %v6092_v46 }
 0x34b   :  { %v3438_v63 = vadd.f32 %v3437_v0, %v3375_v47  ;;  %v6104_v0 = vsub.f32 %v5812_v22, %v5899_v24  ;;  %v3385_v12 = vmul.f32 %v6098_v53, %v6098_v53 }
 0x34d   :  { %v3439_v6 = vadd.f32 %v3438_v63, %v3376_v55  ;;  %v6110_v63 = vsub.f32 %v5816_v33, %v5899_v24  ;;  %v3386_v22 = vmul.f32 %v6104_v0, %v6104_v0 }
 0x34f   :  { %v3440_v11 = vadd.f32 %v3439_v6, %v3377_v1  ;;  %v6116_v6 = vsub.f32 %v5819_v43, %v5899_v24  ;;  %v3387_v33 = vmul.f32 %v6110_v63, %v6110_v63 }
 0x351   :  { %v3441_v17 = vadd.f32 %v3440_v11, %v3378_v8  ;;  %v6122_v11 = vsub.f32 %v5823_v57, %v5899_v24  ;;  %v3388_v43 = vmul.f32 %v6116_v6, %v6116_v6 }
 0x353   :  { %v3442_v23 = vadd.f32 %v3441_v17, %v3379_v18  ;;  %v6128_v17 = vsub.f32 %v5825_v4, %v5899_v24  ;;  %v3389_v57 = vmul.f32 %v6122_v11, %v6122_v11 }
 0x355   :  { %v3443_v30 = vadd.f32 %v3442_v23, %v3380_v26  ;;  %v7803_v23 = vld [vmem:[#allocation2_spill] sm:$0xff]  ;;  %v3390_v4 = vmul.f32 %v6128_v17, %v6128_v17 }
 0x357   :  { %v3444_v37 = vadd.f32 %v3443_v30, %v3381_v35  ;;  %v6134_v35 = vsub.f32 %v7803_v23, %v5899_v24 }
 0x359   :  { %v3445_v47 = vadd.f32 %v3444_v37, %v3382_v44  ;;  %v7804_v44 = vld [vmem:[#allocation3_spill] sm:$0xff] }
 0x35a   :  { %v6140_v37 = vsub.f32 %v7804_v44, %v5899_v24 }
 0x35b   :  { %v3446_v55 = vadd.f32 %v3445_v47, %v3383_v56  ;;  %v7805_v47 = vld [vmem:[#allocation4_spill] sm:$0xff] }
 0x35d   :  { %v3447_v1 = vadd.f32 %v3446_v55, %v3384_v62  ;;  %v6146_v62 = vsub.f32 %v7805_v47, %v5899_v24  ;;  %v3391_v55 = vmul.f32 %v6134_v35, %v6134_v35 }
 0x35f   :  { %v3448_v8 = vadd.f32 %v3447_v1, %v3385_v12  ;;  %v7806_v1 = vld [vmem:[#allocation5_spill] sm:$0xff] }
 0x361   :  { %v3449_v18 = vadd.f32 %v3448_v8, %v3386_v22  ;;  %v6152_v22 = vsub.f32 %v7806_v1, %v5899_v24  ;;  %v3392_v8 = vmul.f32 %v6140_v37, %v6140_v37  ;;  %v7814_v1 = vld [vmem:[#allocation9_spill] sm:$0xff] }
 0x363   :  { %v3450_v26 = vadd.f32 %v3449_v18, %v3387_v33  ;;  %7807 = vst [vmem:[#allocation2_spill] sm:$0xff] %v6152_v22  ;;  %v7808_v18 = vld [vmem:[#allocation6_spill] sm:$0xff]  ;;  %v3394_v44 = vmul.f32 %v6152_v22, %v6152_v22 }
 0x365   :  { %v3451_v30 = vadd.f32 %v3450_v26, %v3388_v43  ;;  %v6158_v43 = vsub.f32 %v7808_v18, %v5899_v24  ;;  %v3393_v26 = vmul.f32 %v6146_v62, %v6146_v62  ;;  %v6176_v18 = vsub.f32 %v7814_v1, %v5899_v24  ;;  %v7820_v1 = vld [vmem:[#allocation12_spill] sm:$0xff] }
 0x367   :  { %v3452_v56 = vadd.f32 %v3451_v30, %v3389_v57  ;;  %7809 = vst [vmem:[#allocation3_spill] sm:$0xff] %v6158_v43  ;;  %v7810_v57 = vld [vmem:[#allocation7_spill] sm:$0xff]  ;;  %7815 = vst [vmem:[#allocation6_spill] sm:$0xff] %v6176_v18 }
 0x368   :  { %v6164_v30 = vsub.f32 %v7810_v57, %v5899_v24  ;;  %v7816_v57 = vld [vmem:[#allocation10_spill] sm:$0xff] }
 0x369   :  { %v3453_v12 = vadd.f32 %v3452_v56, %v3390_v4  ;;  %v7812_v56 = vld [vmem:[#allocation8_spill] sm:$0xff]  ;;  %v6182_v22 = vsub.f32 %v7816_v57, %v5899_v24  ;;  %v7822_v57 = vld [vmem:[#allocation13_spill] sm:$0xff] }
 0x36a   :  { %7811 = vst [vmem:[#allocation4_spill] sm:$0xff] %v6164_v30  ;;  %v6170_v47 = vsub.f32 %v7812_v56, %v5899_v24  ;;  %v7818_v56 = vld [vmem:[#allocation11_spill] sm:$0xff] }
 0x36b   :  { %v3454_v33 = vadd.f32 %v3453_v12, %v3391_v55  ;;  %v3395_v55 = vmul.f32 %v6158_v43, %v6158_v43  ;;  %7817 = vst [vmem:[#allocation7_spill] sm:$0xff] %v6182_v22  ;;  %v6188_v43 = vsub.f32 %v7818_v56, %v5899_v24  ;;  %v7824_v56 = vld [vmem:[#allocation14_spill] sm:$0xff] }
 0x36c   :  { %7813 = vst [vmem:[#allocation5_spill] sm:$0xff] %v6170_v47 }
 0x36d   :  { %v3455_v23 = vadd.f32 %v3454_v33, %v3392_v8  ;;  %v3396_v8 = vmul.f32 %v6164_v30, %v6164_v30  ;;  %7819 = vst [vmem:[#allocation8_spill] sm:$0xff] %v6188_v43  ;;  %v6194_v30 = vsub.f32 %v7820_v1, %v5899_v24  ;;  %v7826_v1 = vld [vmem:[#allocation15_spill] sm:$0xff] }
 0x36f   :  { %v3456_v4 = vadd.f32 %v3455_v23, %v3393_v26  ;;  %v3397_v26 = vmul.f32 %v6170_v47, %v6170_v47  ;;  %7821 = vst [vmem:[#allocation9_spill] sm:$0xff] %v6194_v30  ;;  %v6200_v47 = vsub.f32 %v7822_v57, %v5899_v24  ;;  %v7828_v57 = vld [vmem:[#allocation16_spill] sm:$0xff] }
 0x371   :  { %v3457_v12 = vadd.f32 %v3456_v4, %v3394_v44  ;;  %v3398_v44 = vmul.f32 %v6176_v18, %v6176_v18  ;;  %7823 = vst [vmem:[#allocation10_spill] sm:$0xff] %v6200_v47  ;;  %v6206_v18 = vsub.f32 %v7824_v56, %v5899_v24  ;;  %v7830_v56 = vld [vmem:[#allocation17_spill] sm:$0xff] }
 0x373   :  { %v3458_v33 = vadd.f32 %v3457_v12, %v3395_v55  ;;  %v3399_v55 = vmul.f32 %v6182_v22, %v6182_v22  ;;  %7825 = vst [vmem:[#allocation11_spill] sm:$0xff] %v6206_v18  ;;  %v6212_v22 = vsub.f32 %v7826_v1, %v5899_v24  ;;  %v7831_v1 = vld [vmem:[#allocation18_spill] sm:$0xff] }
 0x375   :  { %v3459_v23 = vadd.f32 %v3458_v33, %v3396_v8  ;;  %v3400_v8 = vmul.f32 %v6188_v43, %v6188_v43  ;;  %7827 = vst [vmem:[#allocation12_spill] sm:$0xff] %v6212_v22  ;;  %v6218_v43 = vsub.f32 %v7828_v57, %v5899_v24  ;;  %v7833_v57 = vld [vmem:[#allocation19_spill] sm:$0xff] }
 0x377   :  { %v3460_v4 = vadd.f32 %v3459_v23, %v3397_v26  ;;  %v3401_v26 = vmul.f32 %v6194_v30, %v6194_v30  ;;  %7829 = vst [vmem:[#allocation13_spill] sm:$0xff] %v6218_v43  ;;  %v6224_v30 = vsub.f32 %v7830_v56, %v5899_v24  ;;  %v7834_v56 = vld [vmem:[#allocation20_spill] sm:$0xff] }
 0x379   :  { %v3461_v12 = vadd.f32 %v3460_v4, %v3398_v44  ;;  %v3402_v44 = vmul.f32 %v6200_v47, %v6200_v47  ;;  %v6230_v47 = vsub.f32 %v7831_v1, %v5899_v24  ;;  %v7835_v1 = vld [vmem:[#allocation21_spill] sm:$0xff] }
 0x37b   :  { %v3462_v33 = vadd.f32 %v3461_v12, %v3399_v55  ;;  %v3403_v55 = vmul.f32 %v6206_v18, %v6206_v18  ;;  %7832 = vst [vmem:[#allocation14_spill] sm:$0xff] %v6230_v47  ;;  %v6236_v18 = vsub.f32 %v7833_v57, %v5899_v24 }
 0x37d   :  { %v3463_v23 = vadd.f32 %v3462_v33, %v3400_v8  ;;  %v3404_v8 = vmul.f32 %v6212_v22, %v6212_v22  ;;  %v6242_v22 = vsub.f32 %v7834_v56, %v5899_v24 }
 0x37f   :  { %v3464_v4 = vadd.f32 %v3463_v23, %v3401_v26  ;;  %v3405_v26 = vmul.f32 %v6218_v43, %v6218_v43  ;;  %v6248_v43 = vsub.f32 %v7835_v1, %v5899_v24  ;;  %v3409_v57 = vmul.f32 %v6242_v22, %v6242_v22 }
 0x380   :  { %v3412_v24 = vmul.f32 %v5906_v59, %v5906_v59  ;;  %v3413_v1 = vmul.f32 %v5909_v48, %v5909_v48 }
 0x381   :  { %v3465_v12 = vadd.f32 %v3464_v4, %v3402_v44  ;;  %v3406_v44 = vmul.f32 %v6224_v30, %v6224_v30 }
 0x383   :  { %v3466_v33 = vadd.f32 %v3465_v12, %v3403_v55  ;;  %v3407_v55 = vmul.f32 %v6230_v47, %v6230_v47  ;;  %v3411_v47 = vmul.f32 %v5903_v42, %v5903_v42 }
 0x385   :  { %v3467_v23 = vadd.f32 %v3466_v33, %v3404_v8  ;;  %v3408_v8 = vmul.f32 %v6236_v18, %v6236_v18 }
 0x387   :  { %v3468_v4 = vadd.f32 %v3467_v23, %v3405_v26  ;;  %v3410_v23 = vmul.f32 %v6248_v43, %v6248_v43 }
 0x389   :  { %v3469_v12 = vadd.f32 %v3468_v4, %v3406_v44 }
 0x38b   :  { %v3470_v33 = vadd.f32 %v3469_v12, %v3407_v55  ;;  %v3414_v12 = vmul.f32 %v5912_v51, %v5912_v51 }
 0x38d   :  { %v3471_v26 = vadd.f32 %v3470_v33, %v3408_v8  ;;  %v3415_v33 = vmul.f32 %v5915_v2, %v5915_v2 }
 0x38f   :  { %v3472_v56 = vadd.f32 %v3471_v26, %v3409_v57  ;;  %v3416_v26 = vmul.f32 %v5918_v16, %v5918_v16 }
 0x391   :  { %v3473_v44 = vadd.f32 %v3472_v56, %v3410_v23  ;;  %v3417_v56 = vmul.f32 %v5921_v61, %v5921_v61 }
 0x393   :  { %v3474_v4 = vadd.f32 %v3473_v44, %v3411_v47  ;;  %v3418_v44 = vmul.f32 %v5924_v45, %v5924_v45 }
 0x395   :  { %v3475_v55 = vadd.f32 %v3474_v4, %v3412_v24  ;;  %v3419_v4 = vmul.f32 %v5927_v7, %v5927_v7 }
 0x397   :  { %v3476_v8 = vadd.f32 %v3475_v55, %v3413_v1  ;;  %v3420_v55 = vmul.f32 %v5930_v50, %v5930_v50 }
 0x399   :  { %v3477_v57 = vadd.f32 %v3476_v8, %v3414_v12 }
 0x39b   :  { %v3478_v23 = vadd.f32 %v3477_v57, %v3415_v33 }
 0x39d   :  { %v3479_v47 = vadd.f32 %v3478_v23, %v3416_v26 }
 0x39f   :  { %v3480_v24 = vadd.f32 %v3479_v47, %v3417_v56 }
 0x3a1   :  { %v3481_v1 = vadd.f32 %v3480_v24, %v3418_v44 }
 0x3a3   :  { %v3482_v12 = vadd.f32 %v3481_v1, %v3419_v4  ;;  %v7841_v4 = vld [vmem:[#allocation4_spill] sm:$0xff]  ;;  %v7842_v1 = vld [vmem:[#allocation5_spill] sm:$0xff] }
 0x3a5   :  { %v3483_v8 = vadd.f32 %v3482_v12, %v3420_v55  ;;  %v7843_v55 = vld [vmem:[#allocation6_spill] sm:$0xff]  ;;  %v7844_v12 = vld [vmem:[#allocation7_spill] sm:$0xff] }
 0x3a7   :  { %v3484_v2 = vrot.slane %v3483_v8, 4 }
 0x3a9   :  { %v3485_v16 = vadd.f32 %v3484_v2, %v3483_v8  ;;  %v7845_v8 = vld [vmem:[#allocation8_spill] sm:$0xff] }
 0x3ab   :  { %v3486_v33 = vrot.slane %v3485_v16, 2 }
 0x3ad   :  { %v3487_v57 = vadd.f32 %v3486_v33, %v3485_v16 }
 0x3af   :  { %v3488_v51 = vrot.slane %v3487_v57, 1 }
 0x3b1   :  { %v3489_v61 = vadd.f32 %v3488_v51, %v3487_v57  ;;  %v7846_v57 = vld [vmem:[#allocation9_spill] sm:$0xff] }
 0x3b3   :  { %v3490_v26 = vmul.f32 0.001953125, %v3489_v61 }
 0x3b5   :  { %v3491_v23 = vadd.f32 1e-05, %v3490_v26 }
 0x3b7   :  { %4666 = vrsqrt.f32 %v3491_v23  ;;  %v7847_v23 = vld [vmem:[#allocation10_spill] sm:$0xff] }
 0x3c1   :  { %v6276_v48 = vpop.eup %4666 }
 0x3c2   :  { %v6280_v56 = vmul.f32 %v6276_v48, %v5934_v10  ;;  %v6284_v47 = vmul.f32 %v6276_v48, %v5938_v20  ;;  %v6288_v2 = vmul.f32 %v6276_v48, %v5942_v36  ;;  %v6292_v51 = vmul.f32 %v6276_v48, %v5950_v28 }
 0x3c3   :  { %v6296_v16 = vmul.f32 %v6276_v48, %v5924_v45  ;;  %v6300_v61 = vmul.f32 %v6276_v48, %v5927_v7  ;;  %v6304_v10 = vmul.f32 %v6276_v48, %v5930_v50  ;;  %v6308_v20 = vmul.f32 %v6276_v48, %v5954_v41 }
 0x3c4   :  { %v6312_v36 = vmul.f32 %v6276_v48, %v5960_v58  ;;  %v6316_v45 = vmul.f32 %v6276_v48, %v5966_v3  ;;  %v6320_v7 = vmul.f32 %v6276_v48, %v5972_v14  ;;  %v6324_v50 = vmul.f32 %v6276_v48, %v5978_v9 }
 0x3c5   :  { %7836 = vst [vmem:[#allocation15_spill] sm:$0xff] %v6296_v16  ;;  %7837 = vst [vmem:[#allocation16_spill] sm:$0xff] %v6300_v61  ;;  %v6328_v28 = vmul.f32 %v6276_v48, %v5984_v52  ;;  %v6332_v41 = vmul.f32 %v6276_v48, %v5990_v40  ;;  %v6336_v58 = vmul.f32 %v6276_v48, %v5996_v19 }
 0x3c6   :  { %7838 = vst [vmem:[#allocation17_spill] sm:$0xff] %v6304_v10  ;;  %v6340_v3 = vmul.f32 %v6276_v48, %v6002_v25  ;;  %v6344_v14 = vmul.f32 %v6276_v48, %v6008_v34  ;;  %v6348_v9 = vmul.f32 %v6276_v48, %v6014_v32  ;;  %v6352_v52 = vmul.f32 %v6276_v48, %v6020_v5  ;;  %v7853_v10 = vld [vmem:[#allocation14_spill] sm:$0xff] }
 0x3c7   :  { %v6356_v40 = vmul.f32 %v6276_v48, %v6026_v60  ;;  %v6360_v19 = vmul.f32 %v6276_v48, %v6032_v38  ;;  %v6364_v25 = vmul.f32 %v6276_v48, %v6038_v27  ;;  %v6368_v34 = vmul.f32 %v6276_v48, %v6044_v29 }
 0x3c8   :  { %v6372_v32 = vmul.f32 %v6276_v48, %v6050_v54  ;;  %v6376_v5 = vmul.f32 %v6276_v48, %v6056_v49  ;;  %v6380_v60 = vmul.f32 %v6276_v48, %v6062_v15  ;;  %v6384_v38 = vmul.f32 %v6276_v48, %v6068_v13 }
 0x3c9   :  { %v6388_v27 = vmul.f32 %v6276_v48, %v6074_v21  ;;  %v6392_v29 = vmul.f32 %v6276_v48, %v6080_v31  ;;  %v6396_v54 = vmul.f32 %v6276_v48, %v6086_v39  ;;  %v6400_v49 = vmul.f32 %v6276_v48, %v6092_v46 }
 0x3ca   :  { %v6404_v15 = vmul.f32 %v6276_v48, %v6098_v53  ;;  %v6408_v13 = vmul.f32 %v6276_v48, %v6104_v0  ;;  %v6412_v21 = vmul.f32 %v6276_v48, %v6110_v63  ;;  %v6416_v31 = vmul.f32 %v6276_v48, %v6116_v6  ;;  %v7839_v6 = vld [vmem:[#allocation2_spill] sm:$0xff] }
 0x3cb   :  { %v6420_v39 = vmul.f32 %v6276_v48, %v6122_v11  ;;  %v6424_v46 = vmul.f32 %v6276_v48, %v6128_v17  ;;  %v6428_v53 = vmul.f32 %v6276_v48, %v6134_v35  ;;  %v6432_v0 = vmul.f32 %v6276_v48, %v6140_v37  ;;  %v7840_v11 = vld [vmem:[#allocation3_spill] sm:$0xff] }
 0x3cc   :  { %v3529_v63 = vmul.f32 %v6276_v48, %v6146_v62  ;;  %v3530_v44 = vmul.f32 %v6276_v48, %v7839_v6  ;;  %v3531_v24 = vmul.f32 %v6276_v48, %v7840_v11  ;;  %v6442_v17 = vmul.f32 %v6276_v48, %v7841_v4  ;;  %v7848_v11 = vld [vmem:[#allocation11_spill] sm:$0xff] }
 0x3cd   :  { %v6446_v35 = vmul.f32 %v6276_v48, %v7842_v1  ;;  %v6450_v37 = vmul.f32 %v6276_v48, %v7843_v55  ;;  %v6454_v62 = vmul.f32 %v6276_v48, %v7844_v12  ;;  %v6458_v33 = vmul.f32 %v6276_v48, %v7845_v8  ;;  %v7849_v1 = vld [vmem:[#allocation12_spill] sm:$0xff]  ;;  %v7850_v12 = vld [vmem:[#allocation13_spill] sm:$0xff] }
 0x3ce   :  { %v6462_v26 = vmul.f32 %v6276_v48, %v7846_v57  ;;  %v6466_v6 = vmul.f32 %v6276_v48, %v7847_v23  ;;  %v6470_v4 = vmul.f32 %v6276_v48, %v7848_v11  ;;  %v6474_v55 = vmul.f32 %v6276_v48, %v7849_v1  ;;  %v6495_v1 = vld [vmem:[%s7714_s2] ss:$0 sm:$0xff] }
 0x3cf   :  { %v6478_v8 = vmul.f32 %v6276_v48, %v7850_v12  ;;  %v6482_v57 = vmul.f32 %v6276_v48, %v6224_v30  ;;  %v6486_v23 = vmul.f32 %v6276_v48, %v7853_v10  ;;  %v6490_v11 = vmul.f32 %v6276_v48, %v6236_v18  ;;  %v7856_v18 = vld [vmem:[#allocation22_spill] sm:$0xff] }
 0x3d0   :  { %v3545_v12 = vmul.f32 %v6276_v48, %v6242_v22  ;;  %v3546_v30 = vmul.f32 %v6276_v48, %v6248_v43  ;;  %v3547_v61 = vmul.f32 %v6276_v48, %v5903_v42  ;;  %v6505_v10 = vmul.f32 %v6276_v48, %v5906_v59  ;;  %v7859_v43 = vld [vmem:[#allocation25_spill] sm:$0xff]  ;;  %v7860_v42 = vld [vmem:[#allocation26_spill] sm:$0xff] }
 0x3d1   :  { %7851 = vst [vmem:[#allocation18_spill] sm:$0xff] %v6478_v8  ;;  %7852 = vst [vmem:[#allocation19_spill] sm:$0xff] %v6482_v57  ;;  %v6509_v16 = vmul.f32 %v6276_v48, %v7856_v18  ;;  %v7858_v57 = vld [vmem:[#allocation24_spill] sm:$0xff]  ;;  %v6521_v8 = vmul.f32 %v6276_v48, %v7859_v43  ;;  %v6525_v59 = vmul.f32 %v6276_v48, %v7860_v42 }
 0x3d2   :  { %7854 = vst [vmem:[#allocation20_spill] sm:$0xff] %v6486_v23  ;;  %7855 = vst [vmem:[#allocation21_spill] sm:$0xff] %v6490_v11  ;;  %v7857_v11 = vld [vmem:[#allocation23_spill] sm:$0xff]  ;;  %v6517_v22 = vmul.f32 %v6276_v48, %v7858_v57  ;;  %v6529_v18 = vmul.f32 %v6495_v1, %v6280_v56  ;;  %v6537_v57 = vmul.f32 %v6495_v1, %v6288_v2 }
 0x3d3   :  { %v6513_v23 = vmul.f32 %v6276_v48, %v7857_v11  ;;  %v6533_v11 = vmul.f32 %v6495_v1, %v6284_v47  ;;  %v6541_v43 = vmul.f32 %v6495_v1, %v6292_v51  ;;  %v6545_v48 = vmul.f32 %v6495_v1, %v6308_v20 }
 0x3d4   :  { %v6549_v56 = vmul.f32 %v6495_v1, %v6312_v36  ;;  %v6553_v47 = vmul.f32 %v6495_v1, %v6316_v45  ;;  %v6557_v2 = vmul.f32 %v6495_v1, %v6320_v7  ;;  %v6561_v51 = vmul.f32 %v6495_v1, %v6324_v50 }
 0x3d5   :  { %v6565_v20 = vmul.f32 %v6495_v1, %v6328_v28  ;;  %v6569_v36 = vmul.f32 %v6495_v1, %v6332_v41  ;;  %v6573_v45 = vmul.f32 %v6495_v1, %v6336_v58  ;;  %v6577_v7 = vmul.f32 %v6495_v1, %v6340_v3 }
 0x3d6   :  { %v6581_v50 = vmul.f32 %v6495_v1, %v6344_v14  ;;  %v6585_v28 = vmul.f32 %v6495_v1, %v6348_v9  ;;  %v6589_v41 = vmul.f32 %v6495_v1, %v6352_v52  ;;  %v6593_v58 = vmul.f32 %v6495_v1, %v6356_v40 }
 0x3d7   :  { %v6597_v3 = vmul.f32 %v6495_v1, %v6360_v19  ;;  %v6601_v14 = vmul.f32 %v6495_v1, %v6364_v25  ;;  %v6605_v9 = vmul.f32 %v6495_v1, %v6368_v34  ;;  %v6609_v52 = vmul.f32 %v6495_v1, %v6372_v32 }
 0x3d8   :  { %v6613_v40 = vmul.f32 %v6495_v1, %v6376_v5  ;;  %v6617_v19 = vmul.f32 %v6495_v1, %v6380_v60  ;;  %v6621_v25 = vmul.f32 %v6495_v1, %v6384_v38  ;;  %v6625_v34 = vmul.f32 %v6495_v1, %v6388_v27 }
 0x3d9   :  { %v6629_v32 = vmul.f32 %v6495_v1, %v6392_v29  ;;  %v6633_v5 = vmul.f32 %v6495_v1, %v6396_v54  ;;  %v6637_v60 = vmul.f32 %v6495_v1, %v6400_v49  ;;  %v6641_v38 = vmul.f32 %v6495_v1, %v6404_v15 }
 0x3da   :  { %v6645_v27 = vmul.f32 %v6495_v1, %v6408_v13  ;;  %v6649_v29 = vmul.f32 %v6495_v1, %v6412_v21  ;;  %v6653_v54 = vmul.f32 %v6495_v1, %v6416_v31  ;;  %v6657_v49 = vmul.f32 %v6495_v1, %v6420_v39 }
 0x3db   :  { %v6661_v15 = vmul.f32 %v6495_v1, %v6424_v46  ;;  %v6665_v13 = vmul.f32 %v6495_v1, %v6428_v53  ;;  %v6669_v21 = vmul.f32 %v6495_v1, %v6432_v0  ;;  %v6672_v42 = vmul.f32 %v6495_v1, %v3529_v63 }
 0x3dc   :  { %v6675_v31 = vmul.f32 %v6495_v1, %v3530_v44  ;;  %v6678_v39 = vmul.f32 %v6495_v1, %v3531_v24  ;;  %v6682_v46 = vmul.f32 %v6495_v1, %v6442_v17  ;;  %v6686_v53 = vmul.f32 %v6495_v1, %v6446_v35 }
 0x3dd   :  { %v6690_v0 = vmul.f32 %v6495_v1, %v6450_v37  ;;  %v6694_v63 = vmul.f32 %v6495_v1, %v6454_v62  ;;  %v6698_v44 = vmul.f32 %v6495_v1, %v6458_v33  ;;  %v6702_v24 = vmul.f32 %v6495_v1, %v6462_v26  ;;  %v7865_v62 = vld [vmem:[#allocation18_spill] sm:$0xff] }
 0x3de   :  { %v6706_v17 = vmul.f32 %v6495_v1, %v6466_v6  ;;  %v6710_v35 = vmul.f32 %v6495_v1, %v6470_v4  ;;  %v6714_v37 = vmul.f32 %v6495_v1, %v6474_v55  ;;  %v6718_v33 = vmul.f32 %v6495_v1, %v7865_v62 }
 0x3df   :  { %7861 = vst [vmem:[#allocation2_spill] sm:$0xff] %v6698_v44  ;;  %7862 = vst [vmem:[#allocation3_spill] sm:$0xff] %v6702_v24  ;;  %v7866_v44 = vld [vmem:[#allocation19_spill] sm:$0xff]  ;;  %v7867_v24 = vld [vmem:[#allocation20_spill] sm:$0xff]  ;;  %v6736_v55 = vmul.f32 %v6495_v1, %v3546_v30  ;;  %v6739_v62 = vmul.f32 %v6495_v1, %v3547_v61  ;;  %v6760_v61 = vmul.f32 %v6495_v1, %v6517_v22 }
 0x3e0   :  { %7863 = vst [vmem:[#allocation4_spill] sm:$0xff] %v6706_v17  ;;  %7864 = vst [vmem:[#allocation5_spill] sm:$0xff] %v6710_v35  ;;  %v6722_v26 = vmul.f32 %v6495_v1, %v7866_v44  ;;  %v6726_v6 = vmul.f32 %v6495_v1, %v7867_v24  ;;  %v7868_v17 = vld [vmem:[#allocation21_spill] sm:$0xff]  ;;  %v6733_v35 = vmul.f32 %v6495_v1, %v3545_v12  ;;  %v6744_v44 = vld [vmem:[%s7715_s3] ss:$0 sm:$0xff] }
 0x3e1   :  { %v6730_v4 = vmul.f32 %v6495_v1, %v7868_v17  ;;  %v6748_v24 = vmul.f32 %v6495_v1, %v6505_v10  ;;  %v6752_v17 = vmul.f32 %v6495_v1, %v6509_v16  ;;  %v6756_v12 = vmul.f32 %v6495_v1, %v6513_v23 }
 0x3e2   :  { %v6764_v30 = vmul.f32 %v6495_v1, %v6521_v8  ;;  %v6768_v10 = vmul.f32 %v6495_v1, %v6525_v59  ;;  %v6784_v8 = vadd.f32 %v6744_v44, %v6529_v18  ;;  %v6788_v59 = vadd.f32 %v6744_v44, %v6533_v11 }
 0x3e3   :  { %7869 = vst [vmem:[#allocation6_spill] sm:$0xff] %v6748_v24  ;;  %7870 = vst [vmem:[#allocation7_spill] sm:$0xff] %v6752_v17  ;;  %v7872_v24 = vld [vmem:[#allocation15_spill] sm:$0xff]  ;;  %v7873_v17 = vld [vmem:[#allocation16_spill] sm:$0xff]  ;;  %v6804_v18 = vadd.f32 %v6744_v44, %v6549_v56  ;;  %v6808_v11 = vadd.f32 %v6744_v44, %v6553_v47  ;;  %v6824_v56 = vadd.f32 %v6744_v44, %v6569_v36 }
 0x3e4   :  { %7871 = vst [vmem:[#allocation8_spill] sm:$0xff] %v6756_v12  ;;  %v6772_v16 = vmul.f32 %v6495_v1, %v7872_v24  ;;  %v6776_v23 = vmul.f32 %v6495_v1, %v7873_v17  ;;  %v7874_v12 = vld [vmem:[#allocation17_spill] sm:$0xff]  ;;  %v6792_v24 = vadd.f32 %v6744_v44, %v6537_v57  ;;  %v6796_v17 = vadd.f32 %v6744_v44, %v6541_v43 }
 0x3e5   :  { %v6780_v22 = vmul.f32 %v6495_v1, %v7874_v12  ;;  %v6800_v1 = vadd.f32 %v6744_v44, %v6545_v48  ;;  %v6812_v57 = vadd.f32 %v6744_v44, %v6557_v2  ;;  %v6816_v43 = vadd.f32 %v6744_v44, %v6561_v51 }
 0x3e6   :  { %v6820_v48 = vadd.f32 %v6744_v44, %v6565_v20  ;;  %v6828_v47 = vadd.f32 %v6744_v44, %v6573_v45  ;;  %v6832_v2 = vadd.f32 %v6744_v44, %v6577_v7  ;;  %v6836_v51 = vadd.f32 %v6744_v44, %v6581_v50  ;;  %v7878_v12 = vld [vmem:[#allocation2_spill] sm:$0xff] }
 0x3e7   :  { %v6840_v20 = vadd.f32 %v6744_v44, %v6585_v28  ;;  %v6844_v36 = vadd.f32 %v6744_v44, %v6589_v41  ;;  %v6848_v45 = vadd.f32 %v6744_v44, %v6593_v58  ;;  %v6852_v7 = vadd.f32 %v6744_v44, %v6597_v3 }
 0x3e8   :  { %v6856_v50 = vadd.f32 %v6744_v44, %v6601_v14  ;;  %v6860_v28 = vadd.f32 %v6744_v44, %v6605_v9  ;;  %v6864_v41 = vadd.f32 %v6744_v44, %v6609_v52  ;;  %v6868_v58 = vadd.f32 %v6744_v44, %v6613_v40 }
 0x3e9   :  { %v6872_v3 = vadd.f32 %v6744_v44, %v6617_v19  ;;  %v6876_v14 = vadd.f32 %v6744_v44, %v6621_v25  ;;  %v6880_v9 = vadd.f32 %v6744_v44, %v6625_v34  ;;  %v6884_v52 = vadd.f32 %v6744_v44, %v6629_v32 }
 0x3ea   :  { %v6888_v40 = vadd.f32 %v6744_v44, %v6633_v5  ;;  %v6892_v19 = vadd.f32 %v6744_v44, %v6637_v60  ;;  %v6896_v25 = vadd.f32 %v6744_v44, %v6641_v38  ;;  %v6900_v34 = vadd.f32 %v6744_v44, %v6645_v27 }
 0x3eb   :  { %v6904_v32 = vadd.f32 %v6744_v44, %v6649_v29  ;;  %v6908_v5 = vadd.f32 %v6744_v44, %v6653_v54  ;;  %v6912_v60 = vadd.f32 %v6744_v44, %v6657_v49  ;;  %v6916_v38 = vadd.f32 %v6744_v44, %v6661_v15 }
 0x3ec   :  { %v6920_v27 = vadd.f32 %v6744_v44, %v6665_v13  ;;  %v6924_v29 = vadd.f32 %v6744_v44, %v6669_v21  ;;  %v6928_v54 = vadd.f32 %v6744_v44, %v6672_v42  ;;  %v6932_v49 = vadd.f32 %v6744_v44, %v6675_v31 }
 0x3ed   :  { %v6936_v15 = vadd.f32 %v6744_v44, %v6678_v39  ;;  %v6940_v13 = vadd.f32 %v6744_v44, %v6682_v46  ;;  %v6944_v21 = vadd.f32 %v6744_v44, %v6686_v53  ;;  %v6948_v42 = vadd.f32 %v6744_v44, %v6690_v0 }
 0x3ee   :  { %v6952_v31 = vadd.f32 %v6744_v44, %v6694_v63  ;;  %v6956_v39 = vadd.f32 %v6744_v44, %v7878_v12  ;;  %v6972_v63 = vadd.f32 %v6744_v44, %v6714_v37  ;;  %v6976_v12 = vadd.f32 %v6744_v44, %v6718_v33 }
 0x3ef   :  { %7875 = vst [vmem:[#allocation9_spill] sm:$0xff] %v6936_v15  ;;  %7876 = vst [vmem:[#allocation10_spill] sm:$0xff] %v6940_v13  ;;  %v7879_v15 = vld [vmem:[#allocation3_spill] sm:$0xff]  ;;  %v7880_v13 = vld [vmem:[#allocation4_spill] sm:$0xff]  ;;  %v6992_v37 = vadd.f32 %v6744_v44, %v6733_v35  ;;  %v6996_v33 = vadd.f32 %v6744_v44, %v6736_v55  ;;  %v7016_v55 = vadd.f32 %v6744_v44, %v6760_v61  ;;  %vm3699_vm0 = vcmp.ge.f32.partialorder %v6784_v8, 0.0 }
 0x3f0   :  { %7877 = vst [vmem:[#allocation11_spill] sm:$0xff] %v6944_v21  ;;  %v6960_v46 = vadd.f32 %v6744_v44, %v7879_v15  ;;  %v6964_v53 = vadd.f32 %v6744_v44, %v7880_v13  ;;  %v7881_v21 = vld [vmem:[#allocation5_spill] sm:$0xff]  ;;  %v6980_v15 = vadd.f32 %v6744_v44, %v6722_v26  ;;  %v6984_v13 = vadd.f32 %v6744_v44, %v6726_v6 }
 0x3f1   :  { %v6968_v0 = vadd.f32 %v6744_v44, %v7881_v21  ;;  %v6988_v21 = vadd.f32 %v6744_v44, %v6730_v4  ;;  %7885 = vst [vmem:[#allocation22_spill] sm:$0xff] %v6996_v33  ;;  %v7000_v26 = vadd.f32 %v6744_v44, %v6739_v62  ;;  %7893 = vst [vmem:[#allocation18_spill] sm:$0xff] %v7016_v55  ;;  %vm3700_vm1 = vcmp.ge.f32.partialorder %v6788_v59, 0.0 }
 0x3f2   :  { %7882 = vst [vmem:[#allocation12_spill] sm:$0xff] %v6980_v15  ;;  %7883 = vst [vmem:[#allocation13_spill] sm:$0xff] %v6984_v13  ;;  %v7887_v15 = vld [vmem:[#allocation6_spill] sm:$0xff]  ;;  %v7889_v13 = vld [vmem:[#allocation7_spill] sm:$0xff]  ;;  %v7020_v62 = vadd.f32 %v6744_v44, %v6764_v30  ;;  %vm3701_vm2 = vcmp.ge.f32.partialorder %v6792_v24, 0.0  ;;  %vm3702_vm3 = vcmp.ge.f32.partialorder %v6796_v17, 0.0  ;;  %v7041_v61 = vadd.f32 %v6744_v44, %v6776_v23 }
 0x3f3   :  { %7884 = vst [vmem:[#allocation14_spill] sm:$0xff] %v6988_v21  ;;  %7886 = vst [vmem:[#allocation23_spill] sm:$0xff] %v7000_v26  ;;  %v7004_v6 = vadd.f32 %v6744_v44, %v7887_v15  ;;  %v7008_v4 = vadd.f32 %v6744_v44, %v7889_v13  ;;  %v7891_v21 = vld [vmem:[#allocation8_spill] sm:$0xff]  ;;  %v7024_v15 = vadd.f32 %v6744_v44, %v6768_v10  ;;  %vm3703_vm4 = vcmp.ge.f32.partialorder %v6800_v1, 0.0 }
 0x3f4   :  { %v7012_v35 = vadd.f32 %v6744_v44, %v7891_v21  ;;  %7894 = vst [vmem:[#allocation19_spill] sm:$0xff] %v7020_v62  ;;  %v7028_v13 = vadd.f32 %v6744_v44, %v6772_v16  ;;  %vm3704_vm5 = vcmp.ge.f32.partialorder %v6804_v18, 0.0  ;;  %vm3705_vm6 = vcmp.ge.f32.partialorder %v6808_v11, 0.0  ;;  %7897 = vst [vmem:[#allocation15_spill] sm:$0xff] %v7041_v61 }
 0x3f5   :  { %7888 = vst [vmem:[#allocation24_spill] sm:$0xff] %v7004_v6  ;;  %7890 = vst [vmem:[#allocation25_spill] sm:$0xff] %v7008_v4  ;;  %vm3706_vm7 = vcmp.ge.f32.partialorder %v6812_v57, 0.0  ;;  %vm3707_vm8 = vcmp.ge.f32.partialorder %v6816_v43, 0.0  ;;  %vm3708_vm9 = vcmp.ge.f32.partialorder %v6820_v48, 0.0  ;;  %v7049_v21 = vadd.f32 %v6744_v44, %v6780_v22 }
 0x3f6   :  { %7892 = vst [vmem:[#allocation26_spill] sm:$0xff] %v7012_v35  ;;  %7895 = vst [vmem:[#allocation20_spill] sm:$0xff] %v7024_v15  ;;  %v3763_v30 = vmul.f32 0.2, %v6784_v8  ;;  %v3764_v10 = vmul.f32 0.2, %v6788_v59 }
 0x3f7   :  { %7896 = vst [vmem:[#allocation21_spill] sm:$0xff] %v7028_v13  ;;  %v3765_v16 = vmul.f32 0.2, %v6792_v24  ;;  %7898 = vst [vmem:[#allocation16_spill] sm:$0xff] %v7049_v21  ;;  %vm3709_vm10 = vcmp.ge.f32.partialorder %v6824_v56, 0.0  ;;  %vm3710_vm11 = vcmp.ge.f32.partialorder %v6828_v47, 0.0 }
 0x3f8   :  { %v3766_v13 = vmul.f32 0.2, %v6796_v17  ;;  %v3767_v15 = vmul.f32 0.2, %v6800_v1  ;;  %v3768_v23 = vmul.f32 0.2, %v6804_v18  ;;  %v3827_v44 = vsel %vm3699_vm0, %v6784_v8, %v3763_v30 }
 0x3f9   :  { %v3769_v61 = vmul.f32 0.2, %v6808_v11  ;;  %v3770_v62 = vmul.f32 0.2, %v6812_v57  ;;  %v3771_v55 = vmul.f32 0.2, %v6816_v43  ;;  %v3828_v4 = vsel %vm3700_vm1, %v6788_v59, %v3764_v10  ;;  %3891 = vst [vmem:[%s7716_s4] sm:$0xff] %v3827_v44 }
 0x3fa   :  { %vm3711_vm12 = vcmp.ge.f32.partialorder %v6832_v2, 0.0  ;;  %v3772_v22 = vmul.f32 0.2, %v6820_v48  ;;  %v7065_v21 = vmul.f32 0.2, %v6824_v56  ;;  %vm3712_vm13 = vcmp.ge.f32.partialorder %v6836_v51, 0.0 }
 0x3fb   :  { %v7068_v35 = vmul.f32 0.2, %v6828_v47  ;;  %v7078_v8 = vmul.f32 0.2, %v6832_v2  ;;  %v7081_v30 = vmul.f32 0.2, %v6836_v51  ;;  %v3829_v26 = vsel %vm3701_vm2, %v6792_v24, %v3765_v16 }
 0x3fc   :  { %v7084_v6 = vmul.f32 0.2, %v6840_v20  ;;  %3892 = vst [vmem:[%s7716_s4 + $0x8] sm:$0xff] %v3828_v4  ;;  %vm3713_vm14 = vcmp.ge.f32.partialorder %v6840_v20, 0.0  ;;  %v7094_v59 = vmul.f32 0.2, %v6844_v36  ;;  %v3830_v33 = vsel %vm3702_vm3, %v6796_v17, %v3766_v13 }
 0x3fd   :  { %v7097_v10 = vmul.f32 0.2, %v6848_v45  ;;  %v7100_v44 = vmul.f32 0.2, %v6852_v7  ;;  %3893 = vst [vmem:[%s7716_s4 + $0x10] sm:$0xff] %v3829_v26  ;;  %vm3714_vm15 = vcmp.ge.f32.partialorder %v6844_v36, 0.0 }
 0x3fe   :  { %v7110_v24 = vmul.f32 0.2, %v6856_v50  ;;  %v7113_v4 = vmul.f32 0.2, %v6860_v28  ;;  %v7116_v16 = vmul.f32 0.2, %v6864_v41 }
 0x3ff   :  { %7899 = vst [vmem:[#allocation17_spill] sm:$0xff] %v7100_v44  ;;  %v3831_v44 = vsel %vm3703_vm4, %v6800_v1, %v3767_v15  ;;  %3894 = vst [vmem:[%s7716_s4 + $0x18] sm:$0xff] %v3830_v33  ;;  %vm3715_vm0 = vcmp.ge.f32.partialorder %v6848_v45, 0.0  ;;  %v7126_v17 = vmul.f32 0.2, %v6868_v58  ;;  %vm3716_vm1 = vcmp.ge.f32.partialorder %v6852_v7, 0.0 }
 0x400   :  { %7900 = vst [vmem:[#allocation2_spill] sm:$0xff] %v7116_v16  ;;  %v7129_v26 = vmul.f32 0.2, %v6872_v3  ;;  %v7132_v13 = vmul.f32 0.2, %v6876_v14  ;;  %v3832_v16 = vsel %vm3704_vm5, %v6804_v18, %v3768_v23  ;;  %3895 = vst [vmem:[%s7716_s4 + $0x20] sm:$0xff] %v3831_v44 }
 0x401   :  { %v7142_v1 = vmul.f32 0.2, %v6880_v9  ;;  %v7145_v33 = vmul.f32 0.2, %v6884_v52  ;;  %v7148_v15 = vmul.f32 0.2, %v6888_v40 }
 0x402   :  { %7901 = vst [vmem:[#allocation3_spill] sm:$0xff] %v7132_v13  ;;  %v3833_v13 = vsel %vm3705_vm6, %v6808_v11, %v3769_v61  ;;  %3896 = vst [vmem:[%s7716_s4 + $0x28] sm:$0xff] %v3832_v16  ;;  %vm3717_vm2 = vcmp.ge.f32.partialorder %v6856_v50, 0.0  ;;  %v7158_v18 = vmul.f32 0.2, %v6892_v19  ;;  %vm3718_vm3 = vcmp.ge.f32.partialorder %v6860_v28, 0.0 }
 0x403   :  { %7902 = vst [vmem:[#allocation4_spill] sm:$0xff] %v7148_v15  ;;  %v7161_v23 = vmul.f32 0.2, %v6896_v25  ;;  %v7164_v44 = vmul.f32 0.2, %v6900_v34  ;;  %v3834_v15 = vsel %vm3706_vm7, %v6812_v57, %v3770_v62  ;;  %3897 = vst [vmem:[%s7716_s4 + $0x30] sm:$0xff] %v3833_v13  ;;  %v3835_v57 = vsel %vm3707_vm8, %v6816_v43, %v3771_v55 }
 0x404   :  { %v7176_v11 = vmul.f32 0.2, %v6904_v32  ;;  %v7179_v61 = vmul.f32 0.2, %v6908_v5  ;;  %v7182_v16 = vmul.f32 0.2, %v6912_v60  ;;  %v3836_v55 = vsel %vm3708_vm9, %v6820_v48, %v3772_v22 }
 0x405   :  { %3898 = vst [vmem:[%s7716_s4 + $0x38] sm:$0xff] %v3834_v15  ;;  %vm3721_vm6 = vcmp.ge.f32.partialorder %v6872_v3, 0.0  ;;  %v7195_v62 = vmul.f32 0.2, %v6916_v38  ;;  %v7198_v13 = vmul.f32 0.2, %v6920_v27  ;;  %v3837_v22 = vsel %vm3709_vm10, %v6824_v56, %v7065_v21 }
 0x406   :  { %v7201_v43 = vmul.f32 0.2, %v6924_v29  ;;  %3899 = vst [vmem:[%s7716_s4 + $0x40] sm:$0xff] %v3835_v57  ;;  %vm3725_vm8 = vcmp.ge.f32.partialorder %v6888_v40, 0.0  ;;  %v7214_v15 = vmul.f32 0.2, %v6928_v54  ;;  %v3838_v21 = vsel %vm3710_vm11, %v6828_v47, %v7068_v35 }
 0x407   :  { %7903 = vst [vmem:[#allocation5_spill] sm:$0xff] %v7198_v13  ;;  %v7907_v13 = vld [vmem:[#allocation9_spill] sm:$0xff]  ;;  %3900 = vst [vmem:[%s7716_s4 + $0x48] sm:$0xff] %v3836_v55  ;;  %vm3729_vm9 = vcmp.ge.f32.partialorder %v6904_v32, 0.0  ;;  %v7909_v57 = vld [vmem:[#allocation10_spill] sm:$0xff]  ;;  %vm3733_vm10 = vcmp.ge.f32.partialorder %v6920_v27, 0.0  ;;  %v3839_v35 = vsel %vm3711_vm12, %v6832_v2, %v7078_v8  ;;  %v3840_v8 = vsel %vm3712_vm13, %v6836_v51, %v7081_v30 }
 0x408   :  { %7904 = vst [vmem:[#allocation6_spill] sm:$0xff] %v7201_v43  ;;  %7905 = vst [vmem:[#allocation7_spill] sm:$0xff] %v7214_v15  ;;  %v7217_v43 = vmul.f32 0.2, %v6932_v49  ;;  %v7220_v48 = vmul.f32 0.2, %v7907_v13  ;;  %v3841_v30 = vsel %vm3713_vm14, %v6840_v20, %v7084_v6  ;;  %v3842_v6 = vsel %vm3714_vm15, %v6844_v36, %v7094_v59 }
 0x409   :  { %v7240_v56 = vmul.f32 0.2, %v6948_v42  ;;  %3901 = vst [vmem:[%s7716_s4 + $0x50] sm:$0xff] %v3837_v22  ;;  %v7254_v55 = vmul.f32 0.2, %v6952_v31  ;;  %3902 = vst [vmem:[%s7716_s4 + $0x58] sm:$0xff] %v3838_v21  ;;  %v3843_v59 = vsel %vm3715_vm0, %v6848_v45, %v7097_v10 }
 0x40a   :  { %7906 = vst [vmem:[#allocation8_spill] sm:$0xff] %v7217_v43  ;;  %7908 = vst [vmem:[#allocation9_spill] sm:$0xff] %v7220_v48  ;;  %v7234_v43 = vmul.f32 0.2, %v7909_v57  ;;  %v7910_v48 = vld [vmem:[#allocation11_spill] sm:$0xff]  ;;  %vm3737_vm11 = vcmp.ge.f32.partialorder %v7907_v13, 0.0 }
 0x40b   :  { %v7237_v15 = vmul.f32 0.2, %v7910_v48  ;;  %7911 = vst [vmem:[#allocation10_spill] sm:$0xff] %v7240_v56  ;;  %v7257_v56 = vmul.f32 0.2, %v6956_v39  ;;  %3903 = vst [vmem:[%s7716_s4 + $0x60] sm:$0xff] %v3839_v35 }
 0x40c   :  { %v7260_v47 = vmul.f32 0.2, %v6960_v46  ;;  %v7274_v22 = vmul.f32 0.2, %v6964_v53  ;;  %v7280_v2 = vmul.f32 0.2, %v6972_v63 }
 0x40d   :  { %vm3741_vm12 = vcmp.ge.f32.partialorder %v6952_v31, 0.0  ;;  %v7294_v21 = vmul.f32 0.2, %v6976_v12  ;;  %3904 = vst [vmem:[%s7716_s4 + $0x68] sm:$0xff] %v3840_v8  ;;  %vm3745_vm13 = vcmp.ge.f32.partialorder %v6968_v0, 0.0  ;;  %v7921_v35 = vld [vmem:[#allocation14_spill] sm:$0xff] }
 0x40e   :  { %7912 = vst [vmem:[#allocation11_spill] sm:$0xff] %v7260_v47  ;;  %7913 = vst [vmem:[#allocation27_spill] sm:$0xff] %v7274_v22  ;;  %v7277_v47 = vmul.f32 0.2, %v6968_v0  ;;  %v7919_v22 = vld [vmem:[#allocation13_spill] sm:$0xff]  ;;  %v7926_v8 = vld [vmem:[#allocation23_spill] sm:$0xff] }
 0x40f   :  { %7915 = vst [vmem:[#allocation29_spill] sm:$0xff] %v7280_v2  ;;  %7916 = vst [vmem:[#allocation30_spill] sm:$0xff] %v7294_v21  ;;  %v7917_v2 = vld [vmem:[#allocation12_spill] sm:$0xff]  ;;  %v7300_v51 = vmul.f32 0.2, %v7919_v22  ;;  %v7924_v21 = vld [vmem:[#allocation22_spill] sm:$0xff] }
 0x410   :  { %7914 = vst [vmem:[#allocation28_spill] sm:$0xff] %v7277_v47  ;;  %v7297_v47 = vmul.f32 0.2, %v7917_v2  ;;  %v7320_v20 = vmul.f32 0.2, %v7924_v21  ;;  %3905 = vst [vmem:[%s7716_s4 + $0x70] sm:$0xff] %v3841_v30 }
 0x411   :  { %7920 = vst [vmem:[#allocation13_spill] sm:$0xff] %v7300_v51  ;;  %v7317_v51 = vmul.f32 0.2, %v6992_v37  ;;  %vm3749_vm14 = vcmp.ge.f32.partialorder %v7919_v22, 0.0  ;;  %v7930_v2 = vld [vmem:[#allocation25_spill] sm:$0xff]  ;;  %3906 = vst [vmem:[%s7716_s4 + $0x78] sm:$0xff] %v3842_v6 }
 0x412   :  { %7918 = vst [vmem:[#allocation31_spill] sm:$0xff] %v7297_v47  ;;  %v7314_v47 = vmul.f32 0.2, %v7921_v35  ;;  %7925 = vst [vmem:[#allocation33_spill] sm:$0xff] %v7320_v20  ;;  %v7928_v20 = vld [vmem:[#allocation24_spill] sm:$0xff]  ;;  %vm3753_vm15 = vcmp.ge.f32.partialorder %v7926_v8, 0.0 }
 0x413   :  { %7923 = vst [vmem:[#allocation32_spill] sm:$0xff] %v7317_v51  ;;  %v7334_v51 = vmul.f32 0.2, %v7926_v8  ;;  %v7340_v36 = vmul.f32 0.2, %v7930_v2  ;;  %v7932_v30 = vld [vmem:[#allocation26_spill] sm:$0xff] }
 0x414   :  { %7922 = vst [vmem:[#allocation14_spill] sm:$0xff] %v7314_v47  ;;  %v7337_v47 = vmul.f32 0.2, %v7928_v20  ;;  %v7936_v21 = vld [vmem:[#allocation19_spill] sm:$0xff]  ;;  %v7938_v10 = vld [vmem:[#allocation17_spill] sm:$0xff]  ;;  %3907 = vst [vmem:[%s7716_s4 + $0x80] sm:$0xff] %v3843_v59  ;;  %v3845_v59 = vsel %vm3717_vm2, %v6856_v50, %v7110_v24 }
 0x415   :  { %7927 = vst [vmem:[#allocation23_spill] sm:$0xff] %v7334_v51  ;;  %7931 = vst [vmem:[#allocation34_spill] sm:$0xff] %v7340_v36  ;;  %v7934_v36 = vld [vmem:[#allocation18_spill] sm:$0xff]  ;;  %v7360_v45 = vmul.f32 0.2, %v7936_v21  ;;  %v3844_v6 = vsel %vm3716_vm1, %v6852_v7, %v7938_v10  ;;  %vm3758_vm4 = vcmp.ge.f32.partialorder %v7936_v21, 0.0 }
 0x416   :  { %7929 = vst [vmem:[#allocation24_spill] sm:$0xff] %v7337_v47  ;;  %v7354_v47 = vmul.f32 0.2, %v7932_v30  ;;  %v7357_v51 = vmul.f32 0.2, %v7934_v36  ;;  %vm3757_vm0 = vcmp.ge.f32.partialorder %v7934_v36, 0.0 }
 0x417   :  { %7937 = vst [vmem:[#allocation19_spill] sm:$0xff] %v7360_v45  ;;  %v7939_v30 = vld [vmem:[#allocation20_spill] sm:$0xff]  ;;  %v7941_v2 = vld [vmem:[#allocation15_spill] sm:$0xff]  ;;  %3908 = vst [vmem:[%s7716_s4 + $0x88] sm:$0xff] %v3844_v6  ;;  %vm7945_vm2 = vcmp.ge.f32.partialorder %v6864_v41, 0.0  ;;  %vm7946_vm5 = vcmp.ge.f32.partialorder %v6868_v58, 0.0  ;;  %v3849_v6 = vsel %vm3721_vm6, %v6872_v3, %v7129_v26 }
 0x418   :  { %7933 = vst [vmem:[#allocation35_spill] sm:$0xff] %v7354_v47  ;;  %7935 = vst [vmem:[#allocation18_spill] sm:$0xff] %v7357_v51  ;;  %v7940_v47 = vld [vmem:[#allocation21_spill] sm:$0xff]  ;;  %v7374_v51 = vmul.f32 0.2, %v7939_v30  ;;  %vm3761_vm1 = vcmp.ge.f32.partialorder %v7941_v2, 0.0  ;;  %v3848_v24 = vsel %vm7946_vm5, %v6868_v58, %v7126_v17 }
 0x419   :  { %v7377_v45 = vmul.f32 0.2, %v7940_v47  ;;  %v7380_v7 = vmul.f32 0.2, %v7941_v2  ;;  %v7943_v10 = vld [vmem:[#allocation16_spill] sm:$0xff]  ;;  %v7944_v47 = vld [vmem:[#allocation2_spill] sm:$0xff] }
 0x41a   :  { %vm3762_vm7 = vcmp.ge.f32.partialorder %v7943_v10, 0.0  ;;  %v7392_v30 = vmul.f32 0.2, %v7943_v10  ;;  %v3847_v50 = vsel %vm7945_vm2, %v6864_v41, %v7944_v47  ;;  %3909 = vst [vmem:[%s7716_s4 + $0x90] sm:$0xff] %v3845_v59  ;;  %vm7949_vm2 = vcmp.ge.f32.partialorder %v6880_v9, 0.0  ;;  %3912 = vst [vmem:[%s7716_s4 + $0xa8] sm:$0xff] %v3848_v24 }
 0x41b   :  { %7942 = vst [vmem:[#allocation17_spill] sm:$0xff] %v7380_v7  ;;  %v3846_v7 = vsel %vm3718_vm3, %v6860_v28, %v7113_v4  ;;  %v7947_v28 = vld [vmem:[#allocation3_spill] sm:$0xff]  ;;  %vm7948_vm3 = vcmp.ge.f32.partialorder %v6876_v14, 0.0  ;;  %v3851_v41 = vsel %vm7949_vm2, %v6880_v9, %v7142_v1  ;;  %vm7950_vm5 = vcmp.ge.f32.partialorder %v6884_v52, 0.0  ;;  %3911 = vst [vmem:[%s7716_s4 + $0xa0] sm:$0xff] %v3847_v50  ;;  %v7951_v3 = vld [vmem:[#allocation4_spill] sm:$0xff] }
 0x41c   :  { %v3850_v4 = vsel %vm7948_vm3, %v6876_v14, %v7947_v28  ;;  %v3852_v58 = vsel %vm7950_vm5, %v6884_v52, %v7145_v33  ;;  %3910 = vst [vmem:[%s7716_s4 + $0x98] sm:$0xff] %v3846_v7  ;;  %v3853_v14 = vsel %vm3725_vm8, %v6888_v40, %v7951_v3  ;;  %vm7952_vm6 = vcmp.ge.f32.partialorder %v6892_v19, 0.0  ;;  %3913 = vst [vmem:[%s7716_s4 + $0xb0] sm:$0xff] %v3849_v6  ;;  %v7961_v26 = vld [vmem:[#allocation7_spill] sm:$0xff]  ;;  %v7963_v33 = vld [vmem:[#allocation8_spill] sm:$0xff] }
 0x41d   :  { %v3854_v9 = vsel %vm7952_vm6, %v6892_v19, %v7158_v18  ;;  %vm7953_vm3 = vcmp.ge.f32.partialorder %v6896_v25, 0.0  ;;  %vm7954_vm2 = vcmp.ge.f32.partialorder %v6900_v34, 0.0  ;;  %3914 = vst [vmem:[%s7716_s4 + $0xb8] sm:$0xff] %v3850_v4  ;;  %3915 = vst [vmem:[%s7716_s4 + $0xc0] sm:$0xff] %v3851_v41  ;;  %v3857_v40 = vsel %vm3729_vm9, %v6904_v32, %v7176_v11  ;;  %v7958_v32 = vld [vmem:[#allocation5_spill] sm:$0xff]  ;;  %v7986_v47 = vld [vmem:[#allocation32_spill] sm:$0xff] }
 0x41e   :  { %v3855_v52 = vsel %vm7953_vm3, %v6896_v25, %v7161_v23  ;;  %v3856_v17 = vsel %vm7954_vm2, %v6900_v34, %v7164_v44  ;;  %3916 = vst [vmem:[%s7716_s4 + $0xc8] sm:$0xff] %v3852_v58  ;;  %vm7955_vm8 = vcmp.ge.f32.partialorder %v6908_v5, 0.0  ;;  %vm7956_vm5 = vcmp.ge.f32.partialorder %v6912_v60, 0.0  ;;  %3917 = vst [vmem:[%s7716_s4 + $0xd0] sm:$0xff] %v3853_v14  ;;  %v7968_v23 = vld [vmem:[#allocation10_spill] sm:$0xff]  ;;  %v7988_v59 = vld [vmem:[#allocation33_spill] sm:$0xff] }
 0x41f   :  { %v3858_v19 = vsel %vm7955_vm8, %v6908_v5, %v7179_v61  ;;  %v3859_v25 = vsel %vm7956_vm5, %v6912_v60, %v7182_v16  ;;  %vm7957_vm6 = vcmp.ge.f32.partialorder %v6916_v38, 0.0  ;;  %3918 = vst [vmem:[%s7716_s4 + $0xd8] sm:$0xff] %v3854_v9  ;;  %3919 = vst [vmem:[%s7716_s4 + $0xe0] sm:$0xff] %v3855_v52  ;;  %v3861_v5 = vsel %vm3733_vm10, %v6920_v27, %v7958_v32  ;;  %v7959_v60 = vld [vmem:[#allocation6_spill] sm:$0xff]  ;;  %v7965_v27 = vld [vmem:[#allocation9_spill] sm:$0xff] }
 0x420   :  { %v3860_v34 = vsel %vm7957_vm6, %v6916_v38, %v7195_v62  ;;  %3920 = vst [vmem:[%s7716_s4 + $0xe8] sm:$0xff] %v3856_v17  ;;  %vm7960_vm9 = vcmp.ge.f32.partialorder %v6924_v29, 0.0  ;;  %vm7962_vm3 = vcmp.ge.f32.partialorder %v6928_v54, 0.0  ;;  %vm7964_vm2 = vcmp.ge.f32.partialorder %v6932_v49, 0.0  ;;  %3921 = vst [vmem:[%s7716_s4 + $0xf0] sm:$0xff] %v3857_v40  ;;  %v7971_v61 = vld [vmem:[#allocation11_spill] sm:$0xff] }
 0x421   :  { %v3862_v38 = vsel %vm7960_vm9, %v6924_v29, %v7959_v60  ;;  %v3863_v1 = vsel %vm7962_vm3, %v6928_v54, %v7961_v26  ;;  %v3864_v18 = vsel %vm7964_vm2, %v6932_v49, %v7963_v33  ;;  %3922 = vst [vmem:[%s7716_s4 + $0xf8] sm:$0xff] %v3858_v19  ;;  %3923 = vst [vmem:[%s7716_s4 + $0x100] sm:$0xff] %v3859_v25  ;;  %vm7966_vm10 = vcmp.ge.f32.partialorder %v7909_v57, 0.0  ;;  %v7973_v62 = vld [vmem:[#allocation27_spill] sm:$0xff]  ;;  %v7989_v50 = vld [vmem:[#allocation22_spill] sm:$0xff] }
 0x422   :  { %3924 = vst [vmem:[%s7716_s4 + $0x108] sm:$0xff] %v3860_v34  ;;  %v3865_v29 = vsel %vm3737_vm11, %v7907_v13, %v7965_v27  ;;  %v3866_v54 = vsel %vm7966_vm10, %v7909_v57, %v7234_v43  ;;  %vm7967_vm8 = vcmp.ge.f32.partialorder %v7910_v48, 0.0  ;;  %vm7969_vm5 = vcmp.ge.f32.partialorder %v6948_v42, 0.0  ;;  %3925 = vst [vmem:[%s7716_s4 + $0x110] sm:$0xff] %v3861_v5  ;;  %v7978_v43 = vld [vmem:[#allocation30_spill] sm:$0xff]  ;;  %v7981_v57 = vld [vmem:[#allocation12_spill] sm:$0xff] }
 0x423   :  { %v3867_v49 = vsel %vm7967_vm8, %v7910_v48, %v7237_v15  ;;  %v3868_v44 = vsel %vm7969_vm5, %v6948_v42, %v7968_v23  ;;  %3926 = vst [vmem:[%s7716_s4 + $0x118] sm:$0xff] %v3862_v38  ;;  %3927 = vst [vmem:[%s7716_s4 + $0x120] sm:$0xff] %v3863_v1  ;;  %v3869_v42 = vsel %vm3741_vm12, %v6952_v31, %v7254_v55  ;;  %vm7970_vm11 = vcmp.ge.f32.partialorder %v6956_v39, 0.0  ;;  %v7975_v31 = vld [vmem:[#allocation28_spill] sm:$0xff]  ;;  %v7980_v48 = vld [vmem:[#allocation31_spill] sm:$0xff] }
 0x424   :  { %3928 = vst [vmem:[%s7716_s4 + $0x128] sm:$0xff] %v3864_v18  ;;  %v3870_v11 = vsel %vm7970_vm11, %v6956_v39, %v7257_v56  ;;  %vm7972_vm6 = vcmp.ge.f32.partialorder %v6960_v46, 0.0  ;;  %vm7974_vm9 = vcmp.ge.f32.partialorder %v6964_v53, 0.0  ;;  %3929 = vst [vmem:[%s7716_s4 + $0x130] sm:$0xff] %v3865_v29  ;;  %v3873_v39 = vsel %vm3745_vm13, %v6968_v0, %v7975_v31  ;;  %v7983_v0 = vld [vmem:[#allocation13_spill] sm:$0xff]  ;;  %v7994_v28 = vld [vmem:[#allocation34_spill] sm:$0xff] }
 0x425   :  { %v3871_v16 = vsel %vm7972_vm6, %v6960_v46, %v7971_v61  ;;  %v3872_v13 = vsel %vm7974_vm9, %v6964_v53, %v7973_v62  ;;  %3930 = vst [vmem:[%s7716_s4 + $0x138] sm:$0xff] %v3866_v54  ;;  %3931 = vst [vmem:[%s7716_s4 + $0x140] sm:$0xff] %v3867_v49  ;;  %v7976_v46 = vld [vmem:[#allocation29_spill] sm:$0xff]  ;;  %vm7977_vm12 = vcmp.ge.f32.partialorder %v6972_v63, 0.0  ;;  %vm7979_vm3 = vcmp.ge.f32.partialorder %v6976_v12, 0.0  ;;  %v7997_v58 = vld [vmem:[#allocation35_spill] sm:$0xff] }
 0x426   :  { %3932 = vst [vmem:[%s7716_s4 + $0x148] sm:$0xff] %v3868_v44  ;;  %v3874_v53 = vsel %vm7977_vm12, %v6972_v63, %v7976_v46  ;;  %v3875_v15 = vsel %vm7979_vm3, %v6976_v12, %v7978_v43  ;;  %vm7982_vm2 = vcmp.ge.f32.partialorder %v7981_v57, 0.0  ;;  %3933 = vst [vmem:[%s7716_s4 + $0x150] sm:$0xff] %v3869_v42  ;;  %v3877_v63 = vsel %vm3749_vm14, %v7919_v22, %v7983_v0  ;;  %v7984_v12 = vld [vmem:[#allocation14_spill] sm:$0xff]  ;;  %v7995_v4 = vld [vmem:[#allocation25_spill] sm:$0xff] }
 0x427   :  { %v3876_v56 = vsel %vm7982_vm2, %v7981_v57, %v7980_v48  ;;  %3934 = vst [vmem:[%s7716_s4 + $0x158] sm:$0xff] %v3870_v11  ;;  %3935 = vst [vmem:[%s7716_s4 + $0x160] sm:$0xff] %v3871_v16  ;;  %vm7985_vm13 = vcmp.ge.f32.partialorder %v7921_v35, 0.0  ;;  %vm7987_vm10 = vcmp.ge.f32.partialorder %v6992_v37, 0.0  ;;  %vm7990_vm8 = vcmp.ge.f32.partialorder %v7989_v50, 0.0  ;;  %v7998_v3 = vld [vmem:[#allocation26_spill] sm:$0xff] }
 0x428   :  { %3936 = vst [vmem:[%s7716_s4 + $0x168] sm:$0xff] %v3872_v13  ;;  %v3878_v55 = vsel %vm7985_vm13, %v7921_v35, %v7984_v12  ;;  %v3879_v7 = vsel %vm7987_vm10, %v6992_v37, %v7986_v47  ;;  %v3880_v24 = vsel %vm7990_vm8, %v7989_v50, %v7988_v59  ;;  %3937 = vst [vmem:[%s7716_s4 + $0x170] sm:$0xff] %v3873_v39  ;;  %v7991_v37 = vld [vmem:[#allocation23_spill] sm:$0xff]  ;;  %v7992_v35 = vld [vmem:[#allocation24_spill] sm:$0xff]  ;;  %vm7993_vm14 = vcmp.ge.f32.partialorder %v7928_v20, 0.0 }
 0x429   :  { %3938 = vst [vmem:[%s7716_s4 + $0x178] sm:$0xff] %v3874_v53  ;;  %3939 = vst [vmem:[%s7716_s4 + $0x180] sm:$0xff] %v3875_v15  ;;  %v3881_v22 = vsel %vm3753_vm15, %v7926_v8, %v7991_v37  ;;  %v3882_v6 = vsel %vm7993_vm14, %v7928_v20, %v7992_v35  ;;  %vm7996_vm5 = vcmp.ge.f32.partialorder %v7995_v4, 0.0  ;;  %vm7999_vm11 = vcmp.ge.f32.partialorder %v7998_v3, 0.0  ;;  %v8000_v20 = vld [vmem:[#allocation18_spill] sm:$0xff]  ;;  %v8001_v9 = vld [vmem:[#allocation19_spill] sm:$0xff] }
 0x42a   :  { %3940 = vst [vmem:[%s7716_s4 + $0x188] sm:$0xff] %v3876_v56  ;;  %v3883_v41 = vsel %vm7996_vm5, %v7995_v4, %v7994_v28  ;;  %v3884_v14 = vsel %vm7999_vm11, %v7998_v3, %v7997_v58  ;;  %3941 = vst [vmem:[%s7716_s4 + $0x190] sm:$0xff] %v3877_v63  ;;  %v3885_v8 = vsel %vm3757_vm0, %v7934_v36, %v8000_v20  ;;  %v8002_v17 = vld [vmem:[#allocation20_spill] sm:$0xff]  ;;  %v8004_v19 = vld [vmem:[#allocation21_spill] sm:$0xff] }
 0x42b   :  { %3942 = vst [vmem:[%s7716_s4 + $0x198] sm:$0xff] %v3878_v55  ;;  %3943 = vst [vmem:[%s7716_s4 + $0x1a0] sm:$0xff] %v3879_v7  ;;  %v3886_v52 = vsel %vm3758_vm4, %v7936_v21, %v8001_v9  ;;  %vm8003_vm15 = vcmp.ge.f32.partialorder %v8002_v17, 0.0  ;;  %vm8005_vm6 = vcmp.ge.f32.partialorder %v8004_v19, 0.0  ;;  %v8006_v21 = vld [vmem:[#allocation17_spill] sm:$0xff]  ;;  %v3890_v36 = vsel %vm3762_vm7, %v7943_v10, %v7392_v30 }
 0x42c   :  { %3944 = vst [vmem:[%s7716_s4 + $0x1a8] sm:$0xff] %v3880_v24  ;;  %v3887_v40 = vsel %vm8003_vm15, %v8002_v17, %v7374_v51  ;;  %v3888_v25 = vsel %vm8005_vm6, %v8004_v19, %v7377_v45  ;;  %3945 = vst [vmem:[%s7716_s4 + $0x1b0] sm:$0xff] %v3881_v22  ;;  %v3889_v51 = vsel %vm3761_vm1, %v7941_v2, %v8006_v21 }
 0x42d   :  { %3946 = vst [vmem:[%s7716_s4 + $0x1b8] sm:$0xff] %v3882_v6  ;;  %3947 = vst [vmem:[%s7716_s4 + $0x1c0] sm:$0xff] %v3883_v41 }
 0x42e   :  { %3948 = vst [vmem:[%s7716_s4 + $0x1c8] sm:$0xff] %v3884_v14  ;;  %3949 = vst [vmem:[%s7716_s4 + $0x1d0] sm:$0xff] %v3885_v8 }
 0x42f   :  { %3950 = vst [vmem:[%s7716_s4 + $0x1d8] sm:$0xff] %v3886_v52  ;;  %3951 = vst [vmem:[%s7716_s4 + $0x1e0] sm:$0xff] %v3887_v40 }
 0x430   :  { %3952 = vst [vmem:[%s7716_s4 + $0x1e8] sm:$0xff] %v3888_v25  ;;  %3953 = vst [vmem:[%s7716_s4 + $0x1f0] sm:$0xff] %v3889_v51 }
 0x431   :  { %3954 = vst [vmem:[%s7716_s4 + $0x1f8] sm:$0xff] %v3890_v36 }

// kernel: discriminator_forward.6
= control target key start
LH: loop header
LB: loop body
LE: loop exit
PB: predicated region body
PF: predicated region fallthrough
CT: control target
= control target key end

     0   :  { %s6263_s1 = inlined_call_operand.vmem [shape: bf16[2048,256], index: 1, kind: input, shape index: {}]   ;;  %s6264_s0 = inlined_call_operand.vmem [shape: bf16[128,2048], index: 0, kind: input, shape index: {}]   ;;  %s6265_s2 = inlined_call_operand.vmem [shape: f32[1,256], index: 2, kind: input, shape index: {}]   ;;  %s6266_s3 = inlined_call_operand.vmem [shape: f32[1,256], index: 3, kind: input, shape index: {}]   ;;  %s6267_s4 = inlined_call_operand.vmem [shape: f32[128,256], index: 4, kind: output, shape index: {}]  }
   0x1   :  { %v4242_v0 = vld [vmem:[%s6263_s1 + $0x4] ss:$8 sps:$4 sm:$0xff]   ;;  %v4246_v2 = vld [vmem:[%s6263_s1] ss:$8 sps:$4 sm:$0xff]   ;;  %v4248_v4 = vld [vmem:[%s6263_s1 + $0x14] ss:$8 sps:$4 sm:$0xff]  }
   0x2   :  { %v4244_v1 = vld [vmem:[%s6263_s1 + $0x404] ss:$8 sps:$4 sm:$0xff]   ;;  %2321 = vmatprep.subr.bf16.mxu1 %v4242_v0  ;;  %v4247_v3 = vld [vmem:[%s6263_s1 + $0x400] ss:$8 sps:$4 sm:$0xff]   ;;  %v4250_v5 = vld [vmem:[%s6263_s1 + $0x414] ss:$8 sps:$4 sm:$0xff]  }
   0x3   :  { %2773 = vmatprep.subr.bf16.mxu0 %v4244_v1  ;;  %2322 = vmatpush1.bf16.msra.mxu1 %v4246_v2  ;;  %v4252_v6 = vld [vmem:[%s6263_s1 + $0x10] ss:$8 sps:$4 sm:$0xff]   ;;  %v4254_v8 = vld [vmem:[%s6263_s1 + $0x24] ss:$8 sps:$4 sm:$0xff]   ;;  %v4258_v10 = vld [vmem:[%s6263_s1 + $0x20] ss:$8 sps:$4 sm:$0xff]  }
   0x4   :  { %2774 = vmatpush1.bf16.msra.mxu0 %v4247_v3  ;;  %2323 = vmatprep.subr.bf16.mxu1 %v4248_v4  ;;  %v4253_v7 = vld [vmem:[%s6263_s1 + $0x410] ss:$8 sps:$4 sm:$0xff]   ;;  %v4256_v9 = vld [vmem:[%s6263_s1 + $0x424] ss:$8 sps:$4 sm:$0xff]   ;;  %v4259_v11 = vld [vmem:[%s6263_s1 + $0x420] ss:$8 sps:$4 sm:$0xff]  }
   0x5   :  { %2775 = vmatprep.subr.bf16.mxu0 %v4250_v5  ;;  %v4260_v12 = vld [vmem:[%s6263_s1 + $0x34] ss:$8 sps:$4 sm:$0xff]   ;;  %v4264_v14 = vld [vmem:[%s6263_s1 + $0x30] ss:$8 sps:$4 sm:$0xff]   ;;  %v4266_v16 = vld [vmem:[%s6263_s1 + $0x44] ss:$8 sps:$4 sm:$0xff]  }
   0x6   :  { %v4262_v13 = vld [vmem:[%s6263_s1 + $0x434] ss:$8 sps:$4 sm:$0xff]   ;;  %v4265_v15 = vld [vmem:[%s6263_s1 + $0x430] ss:$8 sps:$4 sm:$0xff]   ;;  %v4268_v17 = vld [vmem:[%s6263_s1 + $0x444] ss:$8 sps:$4 sm:$0xff]  }
   0x7   :  { %2324 = vmatpush1.bf16.msra.mxu1 %v4252_v6  ;;  %v4270_v18 = vld [vmem:[%s6263_s1 + $0x40] ss:$8 sps:$4 sm:$0xff]   ;;  %v4272_v20 = vld [vmem:[%s6263_s1 + $0x54] ss:$8 sps:$4 sm:$0xff]   ;;  %v4276_v22 = vld [vmem:[%s6263_s1 + $0x50] ss:$8 sps:$4 sm:$0xff]  }
   0x8   :  { %2776 = vmatpush1.bf16.msra.mxu0 %v4253_v7  ;;  %2325 = vmatprep.subr.bf16.mxu1 %v4254_v8  ;;  %v4271_v19 = vld [vmem:[%s6263_s1 + $0x440] ss:$8 sps:$4 sm:$0xff]   ;;  %v4274_v21 = vld [vmem:[%s6263_s1 + $0x454] ss:$8 sps:$4 sm:$0xff]   ;;  %v4277_v23 = vld [vmem:[%s6263_s1 + $0x450] ss:$8 sps:$4 sm:$0xff]  }
   0x9   :  { %2777 = vmatprep.subr.bf16.mxu0 %v4256_v9  ;;  %v4278_v24 = vld [vmem:[%s6263_s1 + $0x64] ss:$8 sps:$4 sm:$0xff]   ;;  %v4282_v26 = vld [vmem:[%s6263_s1 + $0x60] ss:$8 sps:$4 sm:$0xff]   ;;  %v4284_v28 = vld [vmem:[%s6263_s1 + $0x74] ss:$8 sps:$4 sm:$0xff]  }
   0xa   :  { %v4280_v25 = vld [vmem:[%s6263_s1 + $0x464] ss:$8 sps:$4 sm:$0xff]   ;;  %v4283_v27 = vld [vmem:[%s6263_s1 + $0x460] ss:$8 sps:$4 sm:$0xff]   ;;  %v4286_v29 = vld [vmem:[%s6263_s1 + $0x474] ss:$8 sps:$4 sm:$0xff]  }
   0xb   :  { %2326 = vmatpush1.bf16.msra.mxu1 %v4258_v10  ;;  %v4288_v30 = vld [vmem:[%s6263_s1 + $0x70] ss:$8 sps:$4 sm:$0xff]   ;;  %v4290_v32 = vld [vmem:[%s6263_s1 + $0x84] ss:$8 sps:$4 sm:$0xff]   ;;  %v4294_v34 = vld [vmem:[%s6263_s1 + $0x80] ss:$8 sps:$4 sm:$0xff]  }
   0xc   :  { %2778 = vmatpush1.bf16.msra.mxu0 %v4259_v11  ;;  %2327 = vmatprep.subr.bf16.mxu1 %v4260_v12  ;;  %v4289_v31 = vld [vmem:[%s6263_s1 + $0x470] ss:$8 sps:$4 sm:$0xff]   ;;  %v4292_v33 = vld [vmem:[%s6263_s1 + $0x484] ss:$8 sps:$4 sm:$0xff]   ;;  %v4295_v35 = vld [vmem:[%s6263_s1 + $0x480] ss:$8 sps:$4 sm:$0xff]  }
   0xd   :  { %2779 = vmatprep.subr.bf16.mxu0 %v4262_v13  ;;  %v4296_v36 = vld [vmem:[%s6263_s1 + $0x94] ss:$8 sps:$4 sm:$0xff]   ;;  %v4300_v38 = vld [vmem:[%s6263_s1 + $0x90] ss:$8 sps:$4 sm:$0xff]   ;;  %v4302_v40 = vld [vmem:[%s6263_s1 + $0xa4] ss:$8 sps:$4 sm:$0xff]  }
   0xe   :  { %v4298_v37 = vld [vmem:[%s6263_s1 + $0x494] ss:$8 sps:$4 sm:$0xff]   ;;  %v4301_v39 = vld [vmem:[%s6263_s1 + $0x490] ss:$8 sps:$4 sm:$0xff]   ;;  %v4304_v41 = vld [vmem:[%s6263_s1 + $0x4a4] ss:$8 sps:$4 sm:$0xff]  }
   0xf   :  { %2328 = vmatpush1.bf16.msra.mxu1 %v4264_v14  ;;  %v4306_v42 = vld [vmem:[%s6263_s1 + $0xa0] ss:$8 sps:$4 sm:$0xff]   ;;  %v4308_v44 = vld [vmem:[%s6263_s1 + $0xb4] ss:$8 sps:$4 sm:$0xff]   ;;  %v4312_v46 = vld [vmem:[%s6263_s1 + $0xb0] ss:$8 sps:$4 sm:$0xff]  }
  0x10   :  { %2780 = vmatpush1.bf16.msra.mxu0 %v4265_v15  ;;  %2329 = vmatprep.subr.bf16.mxu1 %v4266_v16  ;;  %v4307_v43 = vld [vmem:[%s6263_s1 + $0x4a0] ss:$8 sps:$4 sm:$0xff]   ;;  %v4310_v45 = vld [vmem:[%s6263_s1 + $0x4b4] ss:$8 sps:$4 sm:$0xff]   ;;  %v4313_v47 = vld [vmem:[%s6263_s1 + $0x4b0] ss:$8 sps:$4 sm:$0xff]  }
  0x11   :  { %2781 = vmatprep.subr.bf16.mxu0 %v4268_v17  ;;  %v17_v48 = vld [vmem:[%s6264_s0] sm:$0xff]  ;;  %v4320_v58 = vld [vmem:[%s6263_s1 + $0xd4] ss:$8 sps:$4 sm:$0xff]   ;;  %v4324_v60 = vld [vmem:[%s6263_s1 + $0xd0] ss:$8 sps:$4 sm:$0xff]  }
  0x12   :  { %v25_v49 = vld [vmem:[%s6264_s0 + $0x40] sm:$0xff]  ;;  %v4322_v59 = vld [vmem:[%s6263_s1 + $0x4d4] ss:$8 sps:$4 sm:$0xff]   ;;  %v4325_v61 = vld [vmem:[%s6263_s1 + $0x4d0] ss:$8 sps:$4 sm:$0xff]  }
  0x13   :  { %2330 = vmatpush1.bf16.msra.mxu1 %v4270_v18  ;;  %v21_v50 = vld [vmem:[%s6264_s0 + $0x20] sm:$0xff]  ;;  %v3635_v53 = vcombine.high %v17_v48, %v25_v49  ;;  %v4332_v2 = vld [vmem:[%s6263_s1 + $0xf4] ss:$8 sps:$4 sm:$0xff]   ;;  %v4336_v4 = vld [vmem:[%s6263_s1 + $0xf0] ss:$8 sps:$4 sm:$0xff]   ;;  %v3634_v11 = vcombine.low %v17_v48, %v25_v49 }
  0x14   :  { %2782 = vmatpush1.bf16.msra.mxu0 %v4271_v19  ;;  %2331 = vmatprep.subr.bf16.mxu1 %v4272_v20  ;;  %v29_v51 = vld [vmem:[%s6264_s0 + $0x60] sm:$0xff]  ;;  %v4334_v3 = vld [vmem:[%s6263_s1 + $0x4f4] ss:$8 sps:$4 sm:$0xff]   ;;  %v4337_v5 = vld [vmem:[%s6263_s1 + $0x4f0] ss:$8 sps:$4 sm:$0xff]  }
  0x15   :  { %2783 = vmatprep.subr.bf16.mxu0 %v4274_v21  ;;  %v4314_v52 = vld [vmem:[%s6263_s1 + $0xc4] ss:$8 sps:$4 sm:$0xff]   ;;  %v3643_v55 = vcombine.high %v21_v50, %v29_v51  ;;  %2353 = vmatprep.mubr.bf16.mxu1 %v3635_v53  ;;  %v4318_v56 = vld [vmem:[%s6263_s1 + $0xc0] ss:$8 sps:$4 sm:$0xff]   ;;  %v3642_v12 = vcombine.low %v21_v50, %v29_v51  ;;  %v4346_v16 = vld [vmem:[%s6263_s1 + $0x114] ss:$8 sps:$4 sm:$0xff]  }
  0x16   :  { %v4316_v54 = vld [vmem:[%s6263_s1 + $0x4c4] ss:$8 sps:$4 sm:$0xff]   ;;  %v4319_v57 = vld [vmem:[%s6263_s1 + $0x4c0] ss:$8 sps:$4 sm:$0xff]   ;;  %v4349_v17 = vld [vmem:[%s6263_s1 + $0x514] ss:$8 sps:$4 sm:$0xff]  }
  0x17   :  { %2332 = vmatpush1.bf16.msra.mxu1 %v4276_v22  ;;  %2805 = vmatprep.mubr.bf16.mxu0 %v3643_v55  ;;  %v4326_v62 = vld [vmem:[%s6263_s1 + $0xe4] ss:$8 sps:$4 sm:$0xff]   ;;  %v4330_v0 = vld [vmem:[%s6263_s1 + $0xe0] ss:$8 sps:$4 sm:$0xff]   ;;  %v4344_v20 = vld [vmem:[%s6263_s1 + $0x110] ss:$8 sps:$4 sm:$0xff]  }
  0x18   :  { %2784 = vmatpush1.bf16.msra.mxu0 %v4277_v23  ;;  %2333 = vmatprep.subr.bf16.mxu1 %v4278_v24  ;;  %v4328_v63 = vld [vmem:[%s6263_s1 + $0x4e4] ss:$8 sps:$4 sm:$0xff]   ;;  %v4331_v1 = vld [vmem:[%s6263_s1 + $0x4e0] ss:$8 sps:$4 sm:$0xff]   ;;  %v4347_v21 = vld [vmem:[%s6263_s1 + $0x510] ss:$8 sps:$4 sm:$0xff]  }
  0x19   :  { %2785 = vmatprep.subr.bf16.mxu0 %v4280_v25  ;;  %v4340_v6 = vld [vmem:[%s6263_s1 + $0x104] ss:$8 sps:$4 sm:$0xff]   ;;  %v4338_v8 = vld [vmem:[%s6263_s1 + $0x100] ss:$8 sps:$4 sm:$0xff]   ;;  %v4370_v48 = vld [vmem:[%s6263_s1 + $0x154] ss:$8 sps:$4 sm:$0xff]  }
  0x1a   :  { %v4343_v7 = vld [vmem:[%s6263_s1 + $0x504] ss:$8 sps:$4 sm:$0xff]   ;;  %v4341_v9 = vld [vmem:[%s6263_s1 + $0x500] ss:$8 sps:$4 sm:$0xff]   ;;  %v4373_v49 = vld [vmem:[%s6263_s1 + $0x554] ss:$8 sps:$4 sm:$0xff]  }
  0x1b   :  { %2334 = vmatpush1.bf16.msra.mxu1 %v4282_v26  ;;  %v33_v10 = vld [vmem:[%s6264_s0 + $0x80] sm:$0xff]  ;;  %v4371_v53 = vld [vmem:[%s6263_s1 + $0x550] ss:$8 sps:$4 sm:$0xff]  }
  0x1c   :  { %2786 = vmatpush1.bf16.msra.mxu0 %v4283_v27  ;;  %2335 = vmatprep.subr.bf16.mxu1 %v4284_v28  ;;  %v41_v13 = vld [vmem:[%s6264_s0 + $0xc0] sm:$0xff] }
  0x1d   :  { %2787 = vmatprep.subr.bf16.mxu0 %v4286_v29  ;;  %v37_v14 = vld [vmem:[%s6264_s0 + $0xa0] sm:$0xff]  ;;  %v3651_v18 = vcombine.high %v33_v10, %v41_v13  ;;  %v3650_v28 = vcombine.low %v33_v10, %v41_v13 }
  0x1e   :  { %v45_v15 = vld [vmem:[%s6264_s0 + $0xe0] sm:$0xff] }
  0x1f   :  { %2336 = vmatpush1.bf16.msra.mxu1 %v4288_v30  ;;  %v3659_v19 = vcombine.high %v37_v14, %v45_v15  ;;  %v4352_v22 = vld [vmem:[%s6263_s1 + $0x124] ss:$8 sps:$4 sm:$0xff]   ;;  %v4350_v24 = vld [vmem:[%s6263_s1 + $0x120] ss:$8 sps:$4 sm:$0xff]   ;;  %v3658_v29 = vcombine.low %v37_v14, %v45_v15 }
  0x20   :  { %2788 = vmatpush1.bf16.msra.mxu0 %v4289_v31  ;;  %2337 = vmatprep.subr.bf16.mxu1 %v4290_v32  ;;  %v4355_v23 = vld [vmem:[%s6263_s1 + $0x524] ss:$8 sps:$4 sm:$0xff]   ;;  %v4353_v25 = vld [vmem:[%s6263_s1 + $0x520] ss:$8 sps:$4 sm:$0xff]   ;;  %v4358_v32 = vld [vmem:[%s6263_s1 + $0x134] ss:$8 sps:$4 sm:$0xff]  }
  0x21   :  { %2789 = vmatprep.subr.bf16.mxu0 %v4292_v33  ;;  %v49_v26 = vld [vmem:[%s6264_s0 + $0x100] sm:$0xff]  ;;  %v4361_v33 = vld [vmem:[%s6263_s1 + $0x534] ss:$8 sps:$4 sm:$0xff]  }
  0x22   :  { %v57_v27 = vld [vmem:[%s6264_s0 + $0x140] sm:$0xff] }
  0x23   :  { %2338 = vmatpush1.bf16.msra.mxu1 %v4294_v34  ;;  %v53_v30 = vld [vmem:[%s6264_s0 + $0x120] sm:$0xff]  ;;  %v3667_v34 = vcombine.high %v49_v26, %v57_v27 }
  0x24   :  { %2790 = vmatpush1.bf16.msra.mxu0 %v4295_v35  ;;  %2339 = vmatprep.subr.bf16.mxu1 %v4296_v36  ;;  %v61_v31 = vld [vmem:[%s6264_s0 + $0x160] sm:$0xff]  ;;  %v4356_v36 = vld [vmem:[%s6263_s1 + $0x130] ss:$8 sps:$4 sm:$0xff]  }
  0x25   :  { %2791 = vmatprep.subr.bf16.mxu0 %v4298_v37  ;;  %v3675_v35 = vcombine.high %v53_v30, %v61_v31  ;;  %v4359_v37 = vld [vmem:[%s6263_s1 + $0x530] ss:$8 sps:$4 sm:$0xff]   ;;  %v4379_v55 = vld [vmem:[%s6263_s1 + $0x564] ss:$8 sps:$4 sm:$0xff]   ;;  %v4386_v14 = vld [vmem:[%s6263_s1 + $0x180] ss:$8 sps:$4 sm:$0xff]  }
  0x26   :  { %v109_v13 = vld [vmem:[%s6264_s0 + $0x2e0] sm:$0xff] }
  0x27   :  { %2340 = vmatpush1.bf16.msra.mxu1 %v4300_v38  ;;  %v4364_v38 = vld [vmem:[%s6263_s1 + $0x144] ss:$8 sps:$4 sm:$0xff]   ;;  %v4389_v15 = vld [vmem:[%s6263_s1 + $0x580] ss:$8 sps:$4 sm:$0xff]  }
  0x28   :  { %2792 = vmatpush1.bf16.msra.mxu0 %v4301_v39  ;;  %2341 = vmatprep.subr.bf16.mxu1 %v4302_v40  ;;  %v4367_v39 = vld [vmem:[%s6263_s1 + $0x544] ss:$8 sps:$4 sm:$0xff]   ;;  %v4362_v40 = vld [vmem:[%s6263_s1 + $0x140] ss:$8 sps:$4 sm:$0xff]  }
  0x29   :  { %2793 = vmatprep.subr.bf16.mxu0 %v4304_v41  ;;  %v4365_v41 = vld [vmem:[%s6263_s1 + $0x540] ss:$8 sps:$4 sm:$0xff]  }
  0x2b   :  { %2342 = vmatpush1.bf16.msra.mxu1 %v4306_v42  ;;  %v65_v42 = vld [vmem:[%s6264_s0 + $0x180] sm:$0xff] }
  0x2c   :  { %2794 = vmatpush1.bf16.msra.mxu0 %v4307_v43  ;;  %2343 = vmatprep.subr.bf16.mxu1 %v4308_v44  ;;  %v73_v43 = vld [vmem:[%s6264_s0 + $0x1c0] sm:$0xff]  ;;  %v3666_v44 = vcombine.low %v49_v26, %v57_v27 }
  0x2d   :  { %2795 = vmatprep.subr.bf16.mxu0 %v4310_v45  ;;  %v3674_v45 = vcombine.low %v53_v30, %v61_v31  ;;  %v3683_v50 = vcombine.high %v65_v42, %v73_v43  ;;  %v113_v26 = vld [vmem:[%s6264_s0 + $0x300] sm:$0xff] }
  0x2e   :  { %v117_v30 = vld [vmem:[%s6264_s0 + $0x320] sm:$0xff] }
  0x2f   :  { %2344 = vmatpush1.bf16.msra.mxu1 %v4312_v46  ;;  %v69_v46 = vld [vmem:[%s6264_s0 + $0x1a0] sm:$0xff] }
  0x30   :  { %2796 = vmatpush1.bf16.msra.mxu0 %v4313_v47  ;;  %2345 = vmatprep.subr.bf16.mxu1 %v4314_v52  ;;  %v77_v47 = vld [vmem:[%s6264_s0 + $0x1e0] sm:$0xff]  ;;  %v4368_v52 = vld [vmem:[%s6263_s1 + $0x150] ss:$8 sps:$4 sm:$0xff]  }
  0x31   :  { %2797 = vmatprep.subr.bf16.mxu0 %v4316_v54  ;;  %v3691_v51 = vcombine.high %v69_v46, %v77_v47  ;;  %v4376_v54 = vld [vmem:[%s6263_s1 + $0x164] ss:$8 sps:$4 sm:$0xff]  }
  0x32   :  { %v125_v31 = vld [vmem:[%s6264_s0 + $0x360] sm:$0xff] }
  0x33   :  { %2346 = vmatpush1.bf16.msra.mxu1 %v4318_v56  ;;  %v4374_v56 = vld [vmem:[%s6263_s1 + $0x160] ss:$8 sps:$4 sm:$0xff]  }
  0x34   :  { %2798 = vmatpush1.bf16.msra.mxu0 %v4319_v57  ;;  %2347 = vmatprep.subr.bf16.mxu1 %v4320_v58  ;;  %v81_v57 = vld [vmem:[%s6264_s0 + $0x200] sm:$0xff] }
  0x35   :  { %2799 = vmatprep.subr.bf16.mxu0 %v4322_v59  ;;  %v89_v58 = vld [vmem:[%s6264_s0 + $0x240] sm:$0xff]  ;;  %v3682_v59 = vcombine.low %v65_v42, %v73_v43 }
  0x36   :  { %v3698_v10 = vcombine.low %v81_v57, %v89_v58  ;;  %v129_v42 = vld [vmem:[%s6264_s0 + $0x380] sm:$0xff] }
  0x37   :  { %2348 = vmatpush1.bf16.msra.mxu1 %v4324_v60  ;;  %v3690_v60 = vcombine.low %v69_v46, %v77_v47  ;;  %v137_v43 = vld [vmem:[%s6264_s0 + $0x3c0] sm:$0xff] }
  0x38   :  { %2800 = vmatpush1.bf16.msra.mxu0 %v4325_v61  ;;  %2349 = vmatprep.subr.bf16.mxu1 %v4326_v62  ;;  %v85_v61 = vld [vmem:[%s6264_s0 + $0x220] sm:$0xff] }
  0x39   :  { %2801 = vmatprep.subr.bf16.mxu0 %v4328_v63  ;;  %v93_v62 = vld [vmem:[%s6264_s0 + $0x260] sm:$0xff] }
  0x3a   :  { %v4377_v63 = vld [vmem:[%s6263_s1 + $0x560] ss:$8 sps:$4 sm:$0xff]  }
  0x3b   :  { %2350 = vmatpush1.bf16.msra.mxu1 %v4330_v0  ;;  %v4382_v0 = vld [vmem:[%s6263_s1 + $0x174] ss:$8 sps:$4 sm:$0xff]   ;;  %v133_v46 = vld [vmem:[%s6264_s0 + $0x3a0] sm:$0xff] }
  0x3c   :  { %2802 = vmatpush1.bf16.msra.mxu0 %v4331_v1  ;;  %2351 = vmatprep.subr.bf16.mxu1 %v4332_v2  ;;  %v4385_v1 = vld [vmem:[%s6263_s1 + $0x574] ss:$8 sps:$4 sm:$0xff]   ;;  %v3699_v2 = vcombine.high %v81_v57, %v89_v58  ;;  %v141_v47 = vld [vmem:[%s6264_s0 + $0x3e0] sm:$0xff]  ;;  %v18_v58 = vld [vmem:[%s6264_s0 + $0x8] sm:$0xff] }
  0x3d   :  { %2803 = vmatprep.subr.bf16.mxu0 %v4334_v3  ;;  %v3707_v3 = vcombine.high %v85_v61, %v93_v62  ;;  %v4425_v57 = vld [vmem:[%s6263_s1 + $0x5e0] ss:$8 sps:$4 sm:$0xff]  }
  0x3f   :  { %2352 = vmatpush1.bf16.msra.mxu1 %v4336_v4  ;;  %v4380_v4 = vld [vmem:[%s6263_s1 + $0x170] ss:$8 sps:$4 sm:$0xff]  }
  0x40   :  { %2804 = vmatpush1.bf16.msra.mxu0 %v4337_v5  ;;  %2434 = vmatprep.subr.bf16.mxu1 %v4340_v6  ;;  %v4383_v5 = vld [vmem:[%s6263_s1 + $0x570] ss:$8 sps:$4 sm:$0xff]   ;;  %v4388_v6 = vld [vmem:[%s6263_s1 + $0x184] ss:$8 sps:$4 sm:$0xff]  }
  0x41   :  { %2886 = vmatprep.subr.bf16.mxu0 %v4343_v7  ;;  %v4391_v7 = vld [vmem:[%s6263_s1 + $0x584] ss:$8 sps:$4 sm:$0xff]  }
  0x42   :  { %2354 = vmatmul.mubr.bf16.vlgmr.msra.gmra.mrb[0].mxu1 %v3634_v11  ;;  %v3706_v11 = vcombine.low %v85_v61, %v93_v62  ;;  %v3754_v61 = vcombine.low %v133_v46, %v141_v47  ;;  %v22_v62 = vld [vmem:[%s6264_s0 + $0x28] sm:$0xff] }
  0x43   :  { %2806 = vmatmul.mubr.bf16.vlgmr.msra.gmra.mrb[0].mxu0 %v3642_v12  ;;  %2435 = vmatpush1.bf16.msra.mxu1 %v4338_v8  ;;  %v97_v8 = vld [vmem:[%s6264_s0 + $0x280] sm:$0xff] }
  0x44   :  { %2887 = vmatpush1.bf16.msra.mxu0 %v4341_v9  ;;  %2436 = vmatprep.subr.bf16.mxu1 %v4346_v16  ;;  %v105_v9 = vld [vmem:[%s6264_s0 + $0x2c0] sm:$0xff]  ;;  %v4394_v16 = vld [vmem:[%s6263_s1 + $0x194] ss:$8 sps:$4 sm:$0xff]  }
  0x45   :  { %2888 = vmatprep.subr.bf16.mxu0 %v4349_v17  ;;  %2363 = vmatprep.mubr.bf16.mxu1 %v3651_v18  ;;  %v101_v12 = vld [vmem:[%s6264_s0 + $0x2a0] sm:$0xff]  ;;  %v4397_v17 = vld [vmem:[%s6263_s1 + $0x594] ss:$8 sps:$4 sm:$0xff]   ;;  %v3715_v18 = vcombine.high %v97_v8, %v105_v9  ;;  %v3714_v27 = vcombine.low %v97_v8, %v105_v9  ;;  %v34_v9 = vld [vmem:[%s6264_s0 + $0x88] sm:$0xff] }
  0x46   :  { %2815 = vmatprep.mubr.bf16.mxu0 %v3659_v19  ;;  %v3723_v19 = vcombine.high %v101_v12, %v109_v13  ;;  %v4434_v8 = vld [vmem:[%s6263_s1 + $0x200] ss:$8 sps:$4 sm:$0xff]  }
  0x47   :  { %2437 = vmatpush1.bf16.msra.mxu1 %v4344_v20  ;;  %v4392_v20 = vld [vmem:[%s6263_s1 + $0x190] ss:$8 sps:$4 sm:$0xff]  }
  0x48   :  { %2889 = vmatpush1.bf16.msra.mxu0 %v4347_v21  ;;  %2438 = vmatprep.subr.bf16.mxu1 %v4352_v22  ;;  %v4395_v21 = vld [vmem:[%s6263_s1 + $0x590] ss:$8 sps:$4 sm:$0xff]   ;;  %v4400_v22 = vld [vmem:[%s6263_s1 + $0x1a4] ss:$8 sps:$4 sm:$0xff]  }
  0x49   :  { %2890 = vmatprep.subr.bf16.mxu0 %v4355_v23  ;;  %v4403_v23 = vld [vmem:[%s6263_s1 + $0x5a4] ss:$8 sps:$4 sm:$0xff]  }
  0x4a   :  { %2364 = vmatmul.mubr.bf16.gmra.mrb[4].mxu1 %v3650_v28  ;;  %v3722_v28 = vcombine.low %v101_v12, %v109_v13  ;;  %v38_v13 = vld [vmem:[%s6264_s0 + $0xa8] sm:$0xff] }
  0x4b   :  { %2816 = vmatmul.mubr.bf16.gmra.mrb[4].mxu0 %v3658_v29  ;;  %2439 = vmatpush1.bf16.msra.mxu1 %v4350_v24  ;;  %v4398_v24 = vld [vmem:[%s6263_s1 + $0x1a0] ss:$8 sps:$4 sm:$0xff]  }
  0x4c   :  { %2891 = vmatpush1.bf16.msra.mxu0 %v4353_v25  ;;  %2440 = vmatprep.subr.bf16.mxu1 %v4358_v32  ;;  %v4401_v25 = vld [vmem:[%s6263_s1 + $0x5a0] ss:$8 sps:$4 sm:$0xff]   ;;  %v4406_v32 = vld [vmem:[%s6263_s1 + $0x1b4] ss:$8 sps:$4 sm:$0xff]  }
  0x4d   :  { %2892 = vmatprep.subr.bf16.mxu0 %v4361_v33  ;;  %2373 = vmatprep.mubr.bf16.mxu1 %v3667_v34  ;;  %v121_v29 = vld [vmem:[%s6264_s0 + $0x340] sm:$0xff]  ;;  %v4409_v33 = vld [vmem:[%s6263_s1 + $0x5b4] ss:$8 sps:$4 sm:$0xff]  }
  0x4e   :  { %2825 = vmatprep.mubr.bf16.mxu0 %v3675_v35  ;;  %v3731_v34 = vcombine.high %v113_v26, %v121_v29  ;;  %v3739_v35 = vcombine.high %v117_v30, %v125_v31 }
  0x4f   :  { %2441 = vmatpush1.bf16.msra.mxu1 %v4356_v36  ;;  %v4404_v36 = vld [vmem:[%s6263_s1 + $0x1b0] ss:$8 sps:$4 sm:$0xff]  }
  0x50   :  { %2893 = vmatpush1.bf16.msra.mxu0 %v4359_v37  ;;  %2442 = vmatprep.subr.bf16.mxu1 %v4364_v38  ;;  %v4407_v37 = vld [vmem:[%s6263_s1 + $0x5b0] ss:$8 sps:$4 sm:$0xff]   ;;  %v4412_v38 = vld [vmem:[%s6263_s1 + $0x1c4] ss:$8 sps:$4 sm:$0xff]  }
  0x51   :  { %2894 = vmatprep.subr.bf16.mxu0 %v4367_v39  ;;  %v4415_v39 = vld [vmem:[%s6263_s1 + $0x5c4] ss:$8 sps:$4 sm:$0xff]  }
  0x52   :  { %2374 = vmatmul.mubr.bf16.gmra.mrb[8].mxu1 %v3666_v44  ;;  %v3730_v44 = vcombine.low %v113_v26, %v121_v29  ;;  %v62_v29 = vld [vmem:[%s6264_s0 + $0x168] sm:$0xff] }
  0x53   :  { %2826 = vmatmul.mubr.bf16.gmra.mrb[8].mxu0 %v3674_v45  ;;  %2443 = vmatpush1.bf16.msra.mxu1 %v4362_v40  ;;  %v4410_v40 = vld [vmem:[%s6263_s1 + $0x1c0] ss:$8 sps:$4 sm:$0xff]   ;;  %v3738_v45 = vcombine.low %v117_v30, %v125_v31 }
  0x54   :  { %2895 = vmatpush1.bf16.msra.mxu0 %v4365_v41  ;;  %2444 = vmatprep.subr.bf16.mxu1 %v4370_v48  ;;  %v4413_v41 = vld [vmem:[%s6263_s1 + $0x5c0] ss:$8 sps:$4 sm:$0xff]   ;;  %v4418_v48 = vld [vmem:[%s6263_s1 + $0x1d4] ss:$8 sps:$4 sm:$0xff]  }
  0x55   :  { %2896 = vmatprep.subr.bf16.mxu0 %v4373_v49  ;;  %2383 = vmatprep.mubr.bf16.mxu1 %v3683_v50  ;;  %v4421_v49 = vld [vmem:[%s6263_s1 + $0x5d4] ss:$8 sps:$4 sm:$0xff]   ;;  %v3747_v50 = vcombine.high %v129_v42, %v137_v43  ;;  %v4446_v30 = vld [vmem:[%s6263_s1 + $0x220] ss:$8 sps:$4 sm:$0xff]  }
  0x56   :  { %2835 = vmatprep.mubr.bf16.mxu0 %v3691_v51  ;;  %v3755_v51 = vcombine.high %v133_v46, %v141_v47  ;;  %v4449_v31 = vld [vmem:[%s6263_s1 + $0x620] ss:$8 sps:$4 sm:$0xff]  }
  0x57   :  { %2445 = vmatpush1.bf16.msra.mxu1 %v4368_v52  ;;  %v4416_v52 = vld [vmem:[%s6263_s1 + $0x1d0] ss:$8 sps:$4 sm:$0xff]   ;;  %v70_v46 = vld [vmem:[%s6264_s0 + $0x1a8] sm:$0xff] }
  0x58   :  { %2897 = vmatpush1.bf16.msra.mxu0 %v4371_v53  ;;  %2446 = vmatprep.subr.bf16.mxu1 %v4376_v54  ;;  %v4419_v53 = vld [vmem:[%s6263_s1 + $0x5d0] ss:$8 sps:$4 sm:$0xff]   ;;  %v4424_v54 = vld [vmem:[%s6263_s1 + $0x1e4] ss:$8 sps:$4 sm:$0xff]  }
  0x59   :  { %2898 = vmatprep.subr.bf16.mxu0 %v4379_v55  ;;  %v4427_v55 = vld [vmem:[%s6263_s1 + $0x5e4] ss:$8 sps:$4 sm:$0xff]  }
  0x5a   :  { %2384 = vmatmul.mubr.bf16.gmra.mrb[12].mxu1 %v3682_v59  ;;  %v26_v59 = vld [vmem:[%s6264_s0 + $0x48] sm:$0xff] }
  0x5b   :  { %2836 = vmatmul.mubr.bf16.gmra.mrb[12].mxu0 %v3690_v60  ;;  %2447 = vmatpush1.bf16.msra.mxu1 %v4374_v56  ;;  %v4422_v56 = vld [vmem:[%s6263_s1 + $0x1e0] ss:$8 sps:$4 sm:$0xff]   ;;  %v3746_v60 = vcombine.low %v129_v42, %v137_v43 }
  0x5c   :  { %2899 = vmatpush1.bf16.msra.mxu0 %v4377_v63  ;;  %2448 = vmatprep.subr.bf16.mxu1 %v4382_v0  ;;  %v30_v63 = vld [vmem:[%s6264_s0 + $0x68] sm:$0xff]  ;;  %v4430_v0 = vld [vmem:[%s6263_s1 + $0x1f4] ss:$8 sps:$4 sm:$0xff]  }
  0x5d   :  { %2900 = vmatprep.subr.bf16.mxu0 %v4385_v1  ;;  %2393 = vmatprep.mubr.bf16.mxu1 %v3699_v2  ;;  %v4433_v1 = vld [vmem:[%s6263_s1 + $0x5f4] ss:$8 sps:$4 sm:$0xff]   ;;  %v3637_v2 = vcombine.high %v18_v58, %v26_v59  ;;  %v3644_v12 = vcombine.low %v22_v62, %v30_v63  ;;  %v66_v42 = vld [vmem:[%s6264_s0 + $0x188] sm:$0xff] }
  0x5e   :  { %2845 = vmatprep.mubr.bf16.mxu0 %v3707_v3  ;;  %v3645_v3 = vcombine.high %v22_v62, %v30_v63  ;;  %v78_v47 = vld [vmem:[%s6264_s0 + $0x1e8] sm:$0xff] }
  0x5f   :  { %2449 = vmatpush1.bf16.msra.mxu1 %v4380_v4  ;;  %v4428_v4 = vld [vmem:[%s6263_s1 + $0x1f0] ss:$8 sps:$4 sm:$0xff]   ;;  %v86_v62 = vld [vmem:[%s6264_s0 + $0x228] sm:$0xff] }
  0x60   :  { %2901 = vmatpush1.bf16.msra.mxu0 %v4383_v5  ;;  %2450 = vmatprep.subr.bf16.mxu1 %v4388_v6  ;;  %v4431_v5 = vld [vmem:[%s6263_s1 + $0x5f0] ss:$8 sps:$4 sm:$0xff]   ;;  %v4436_v6 = vld [vmem:[%s6263_s1 + $0x204] ss:$8 sps:$4 sm:$0xff]  }
  0x61   :  { %2902 = vmatprep.subr.bf16.mxu0 %v4391_v7  ;;  %v4439_v7 = vld [vmem:[%s6263_s1 + $0x604] ss:$8 sps:$4 sm:$0xff]  }
  0x62   :  { %2394 = vmatmul.mubr.bf16.gmra.mrb[16].mxu1 %v3698_v10  ;;  %v42_v10 = vld [vmem:[%s6264_s0 + $0xc8] sm:$0xff] }
  0x63   :  { %2846 = vmatmul.mubr.bf16.gmra.mrb[16].mxu0 %v3706_v11  ;;  %2451 = vmatpush1.bf16.msra.mxu1 %v4386_v14  ;;  %v3636_v11 = vcombine.low %v18_v58, %v26_v59  ;;  %v46_v14 = vld [vmem:[%s6264_s0 + $0xe8] sm:$0xff]  ;;  %v3652_v26 = vcombine.low %v34_v9, %v42_v10 }
  0x64   :  { %2903 = vmatpush1.bf16.msra.mxu0 %v4389_v15  ;;  %2452 = vmatprep.subr.bf16.mxu1 %v4394_v16  ;;  %v4437_v15 = vld [vmem:[%s6263_s1 + $0x600] ss:$8 sps:$4 sm:$0xff]   ;;  %v4442_v16 = vld [vmem:[%s6263_s1 + $0x214] ss:$8 sps:$4 sm:$0xff]  }
  0x65   :  { %2904 = vmatprep.subr.bf16.mxu0 %v4397_v17  ;;  %2403 = vmatprep.mubr.bf16.mxu1 %v3715_v18  ;;  %v4445_v17 = vld [vmem:[%s6263_s1 + $0x614] ss:$8 sps:$4 sm:$0xff]   ;;  %v3653_v18 = vcombine.high %v34_v9, %v42_v10  ;;  %v82_v58 = vld [vmem:[%s6264_s0 + $0x208] sm:$0xff] }
  0x66   :  { %2855 = vmatprep.mubr.bf16.mxu0 %v3723_v19  ;;  %v3661_v19 = vcombine.high %v38_v13, %v46_v14  ;;  %v90_v59 = vld [vmem:[%s6264_s0 + $0x248] sm:$0xff] }
  0x67   :  { %2453 = vmatpush1.bf16.msra.mxu1 %v4392_v20  ;;  %v4440_v20 = vld [vmem:[%s6263_s1 + $0x210] ss:$8 sps:$4 sm:$0xff]   ;;  %v94_v63 = vld [vmem:[%s6264_s0 + $0x268] sm:$0xff] }
  0x68   :  { %2905 = vmatpush1.bf16.msra.mxu0 %v4395_v21  ;;  %2454 = vmatprep.subr.bf16.mxu1 %v4400_v22  ;;  %v4443_v21 = vld [vmem:[%s6263_s1 + $0x610] ss:$8 sps:$4 sm:$0xff]   ;;  %v4448_v22 = vld [vmem:[%s6263_s1 + $0x224] ss:$8 sps:$4 sm:$0xff]   ;;  %v4485_v9 = vld [vmem:[%s6263_s1 + $0x680] ss:$8 sps:$4 sm:$0xff]  }
  0x69   :  { %2906 = vmatprep.subr.bf16.mxu0 %v4403_v23  ;;  %v4451_v23 = vld [vmem:[%s6263_s1 + $0x624] ss:$8 sps:$4 sm:$0xff]  }
  0x6a   :  { %2404 = vmatmul.mubr.bf16.gmra.mrb[20].mxu1 %v3714_v27  ;;  %v3660_v27 = vcombine.low %v38_v13, %v46_v14  ;;  %v98_v10 = vld [vmem:[%s6264_s0 + $0x288] sm:$0xff]  ;;  %v3708_v13 = vcombine.low %v86_v62, %v94_v63 }
  0x6b   :  { %2856 = vmatmul.mubr.bf16.gmra.mrb[20].mxu0 %v3722_v28  ;;  %2455 = vmatpush1.bf16.msra.mxu1 %v4398_v24  ;;  %v50_v24 = vld [vmem:[%s6264_s0 + $0x108] sm:$0xff] }
  0x6c   :  { %2907 = vmatpush1.bf16.msra.mxu0 %v4401_v25  ;;  %2456 = vmatprep.subr.bf16.mxu1 %v4406_v32  ;;  %v58_v25 = vld [vmem:[%s6264_s0 + $0x148] sm:$0xff]  ;;  %v4454_v32 = vld [vmem:[%s6263_s1 + $0x234] ss:$8 sps:$4 sm:$0xff]  }
  0x6d   :  { %2908 = vmatprep.subr.bf16.mxu0 %v4409_v33  ;;  %2413 = vmatprep.mubr.bf16.mxu1 %v3731_v34  ;;  %v54_v28 = vld [vmem:[%s6264_s0 + $0x128] sm:$0xff]  ;;  %v4457_v33 = vld [vmem:[%s6263_s1 + $0x634] ss:$8 sps:$4 sm:$0xff]   ;;  %v3669_v34 = vcombine.high %v50_v24, %v58_v25  ;;  %v3668_v43 = vcombine.low %v50_v24, %v58_v25 }
  0x6e   :  { %2865 = vmatprep.mubr.bf16.mxu0 %v3739_v35  ;;  %v3677_v35 = vcombine.high %v54_v28, %v62_v29  ;;  %v102_v14 = vld [vmem:[%s6264_s0 + $0x2a8] sm:$0xff] }
  0x6f   :  { %2457 = vmatpush1.bf16.msra.mxu1 %v4404_v36  ;;  %v4452_v36 = vld [vmem:[%s6263_s1 + $0x230] ss:$8 sps:$4 sm:$0xff]   ;;  %v4494_v24 = vld [vmem:[%s6263_s1 + $0x2a0] ss:$8 sps:$4 sm:$0xff]  }
  0x70   :  { %2909 = vmatpush1.bf16.msra.mxu0 %v4407_v37  ;;  %2458 = vmatprep.subr.bf16.mxu1 %v4412_v38  ;;  %v4455_v37 = vld [vmem:[%s6263_s1 + $0x630] ss:$8 sps:$4 sm:$0xff]   ;;  %v4460_v38 = vld [vmem:[%s6263_s1 + $0x244] ss:$8 sps:$4 sm:$0xff]  }
  0x71   :  { %2910 = vmatprep.subr.bf16.mxu0 %v4415_v39  ;;  %v4463_v39 = vld [vmem:[%s6263_s1 + $0x644] ss:$8 sps:$4 sm:$0xff]  }
  0x72   :  { %2414 = vmatmul.mubr.bf16.gmra.mrb[24].mxu1 %v3730_v44  ;;  %v3676_v44 = vcombine.low %v54_v28, %v62_v29  ;;  %v114_v25 = vld [vmem:[%s6264_s0 + $0x308] sm:$0xff] }
  0x73   :  { %2866 = vmatmul.mubr.bf16.gmra.mrb[24].mxu0 %v3738_v45  ;;  %2459 = vmatpush1.bf16.msra.mxu1 %v4410_v40  ;;  %v4458_v40 = vld [vmem:[%s6263_s1 + $0x240] ss:$8 sps:$4 sm:$0xff]  }
  0x74   :  { %2911 = vmatpush1.bf16.msra.mxu0 %v4413_v41  ;;  %2460 = vmatprep.subr.bf16.mxu1 %v4418_v48  ;;  %v4461_v41 = vld [vmem:[%s6263_s1 + $0x640] ss:$8 sps:$4 sm:$0xff]   ;;  %v4466_v48 = vld [vmem:[%s6263_s1 + $0x254] ss:$8 sps:$4 sm:$0xff]  }
  0x75   :  { %2912 = vmatprep.subr.bf16.mxu0 %v4421_v49  ;;  %2423 = vmatprep.mubr.bf16.mxu1 %v3747_v50  ;;  %v74_v45 = vld [vmem:[%s6264_s0 + $0x1c8] sm:$0xff]  ;;  %v4469_v49 = vld [vmem:[%s6263_s1 + $0x654] ss:$8 sps:$4 sm:$0xff]  }
  0x76   :  { %2875 = vmatprep.mubr.bf16.mxu0 %v3755_v51  ;;  %v3685_v50 = vcombine.high %v66_v42, %v74_v45  ;;  %v3693_v51 = vcombine.high %v70_v46, %v78_v47  ;;  %v118_v29 = vld [vmem:[%s6264_s0 + $0x328] sm:$0xff] }
  0x77   :  { %2461 = vmatpush1.bf16.msra.mxu1 %v4416_v52  ;;  %v4464_v52 = vld [vmem:[%s6263_s1 + $0x250] ss:$8 sps:$4 sm:$0xff]  }
  0x78   :  { %2913 = vmatpush1.bf16.msra.mxu0 %v4419_v53  ;;  %2462 = vmatprep.subr.bf16.mxu1 %v4424_v54  ;;  %v4467_v53 = vld [vmem:[%s6263_s1 + $0x650] ss:$8 sps:$4 sm:$0xff]   ;;  %v4472_v54 = vld [vmem:[%s6263_s1 + $0x264] ss:$8 sps:$4 sm:$0xff]  }
  0x79   :  { %2914 = vmatprep.subr.bf16.mxu0 %v4427_v55  ;;  %v4475_v55 = vld [vmem:[%s6263_s1 + $0x664] ss:$8 sps:$4 sm:$0xff]  }
  0x7a   :  { %2424 = vmatmul.mubr.bf16.gmra.mrb[28].mxu1 %v3746_v60  ;;  %v3684_v60 = vcombine.low %v66_v42, %v74_v45  ;;  %v142_v45 = vld [vmem:[%s6264_s0 + $0x3e8] sm:$0xff] }
  0x7b   :  { %2876 = vmatmul.mubr.bf16.gmra.mrb[28].mxu0 %v3754_v61  ;;  %2463 = vmatpush1.bf16.msra.mxu1 %v4422_v56  ;;  %v4470_v56 = vld [vmem:[%s6263_s1 + $0x260] ss:$8 sps:$4 sm:$0xff]   ;;  %v3692_v61 = vcombine.low %v70_v46, %v78_v47 }
  0x7c   :  { %2915 = vmatpush1.bf16.msra.mxu0 %v4425_v57  ;;  %2464 = vmatprep.subr.bf16.mxu1 %v4430_v0  ;;  %v4473_v57 = vld [vmem:[%s6263_s1 + $0x660] ss:$8 sps:$4 sm:$0xff]   ;;  %v4478_v0 = vld [vmem:[%s6263_s1 + $0x274] ss:$8 sps:$4 sm:$0xff]  }
  0x7d   :  { %2916 = vmatprep.subr.bf16.mxu0 %v4433_v1  ;;  %2466 = vmatprep.mubr.bf16.mxu1 %v3637_v2  ;;  %v4481_v1 = vld [vmem:[%s6263_s1 + $0x674] ss:$8 sps:$4 sm:$0xff]   ;;  %v3701_v2 = vcombine.high %v82_v58, %v90_v59  ;;  %v4506_v46 = vld [vmem:[%s6263_s1 + $0x2c0] ss:$8 sps:$4 sm:$0xff]  }
  0x7e   :  { %2918 = vmatprep.mubr.bf16.mxu0 %v3645_v3  ;;  %v3709_v3 = vcombine.high %v86_v62, %v94_v63  ;;  %v4509_v47 = vld [vmem:[%s6263_s1 + $0x6c0] ss:$8 sps:$4 sm:$0xff]   ;;  %v23_v62 = vld [vmem:[%s6264_s0 + $0x30] sm:$0xff] }
  0x7f   :  { %2465 = vmatpush1.bf16.msra.mxu1 %v4428_v4  ;;  %v4476_v4 = vld [vmem:[%s6263_s1 + $0x270] ss:$8 sps:$4 sm:$0xff]  }
  0x80   :  { %2917 = vmatpush1.bf16.msra.mxu0 %v4431_v5  ;;  %2547 = vmatprep.subr.bf16.mxu1 %v4436_v6  ;;  %v4479_v5 = vld [vmem:[%s6263_s1 + $0x670] ss:$8 sps:$4 sm:$0xff]   ;;  %v4484_v6 = vld [vmem:[%s6263_s1 + $0x284] ss:$8 sps:$4 sm:$0xff]  }
  0x81   :  { %2999 = vmatprep.subr.bf16.mxu0 %v4439_v7  ;;  %v4487_v7 = vld [vmem:[%s6263_s1 + $0x684] ss:$8 sps:$4 sm:$0xff]   ;;  %v31_v63 = vld [vmem:[%s6264_s0 + $0x70] sm:$0xff] }
  0x82   :  { %2467 = vmatmul.mubr.bf16.vlgmr.msra.gmra.mrb[0].mxu1 %v3636_v11  ;;  %v106_v11 = vld [vmem:[%s6264_s0 + $0x2c8] sm:$0xff] }
  0x83   :  { %2919 = vmatmul.mubr.bf16.vlgmr.msra.gmra.mrb[0].mxu0 %v3644_v12  ;;  %2548 = vmatpush1.bf16.msra.mxu1 %v4434_v8  ;;  %v4482_v8 = vld [vmem:[%s6263_s1 + $0x280] ss:$8 sps:$4 sm:$0xff]   ;;  %v3700_v12 = vcombine.low %v82_v58, %v90_v59  ;;  %v19_v58 = vld [vmem:[%s6264_s0 + $0x10] sm:$0xff] }
  0x84   :  { %3000 = vmatpush1.bf16.msra.mxu0 %v4437_v15  ;;  %2549 = vmatprep.subr.bf16.mxu1 %v4442_v16  ;;  %v110_v15 = vld [vmem:[%s6264_s0 + $0x2e8] sm:$0xff]  ;;  %v4490_v16 = vld [vmem:[%s6263_s1 + $0x294] ss:$8 sps:$4 sm:$0xff]  }
  0x85   :  { %3001 = vmatprep.subr.bf16.mxu0 %v4445_v17  ;;  %2476 = vmatprep.mubr.bf16.mxu1 %v3653_v18  ;;  %v4493_v17 = vld [vmem:[%s6263_s1 + $0x694] ss:$8 sps:$4 sm:$0xff]   ;;  %v3717_v18 = vcombine.high %v98_v10, %v106_v11  ;;  %v3724_v28 = vcombine.low %v102_v14, %v110_v15 }
  0x86   :  { %2928 = vmatprep.mubr.bf16.mxu0 %v3661_v19  ;;  %v3725_v19 = vcombine.high %v102_v14, %v110_v15  ;;  %v39_v14 = vld [vmem:[%s6264_s0 + $0xb0] sm:$0xff] }
  0x87   :  { %2550 = vmatpush1.bf16.msra.mxu1 %v4440_v20  ;;  %v4488_v20 = vld [vmem:[%s6263_s1 + $0x290] ss:$8 sps:$4 sm:$0xff]  }
  0x88   :  { %3002 = vmatpush1.bf16.msra.mxu0 %v4443_v21  ;;  %2551 = vmatprep.subr.bf16.mxu1 %v4448_v22  ;;  %v4491_v21 = vld [vmem:[%s6263_s1 + $0x690] ss:$8 sps:$4 sm:$0xff]   ;;  %v4496_v22 = vld [vmem:[%s6263_s1 + $0x2a4] ss:$8 sps:$4 sm:$0xff]  }
  0x89   :  { %3003 = vmatprep.subr.bf16.mxu0 %v4451_v23  ;;  %v4499_v23 = vld [vmem:[%s6263_s1 + $0x6a4] ss:$8 sps:$4 sm:$0xff]   ;;  %v47_v15 = vld [vmem:[%s6264_s0 + $0xf0] sm:$0xff] }
  0x8a   :  { %2477 = vmatmul.mubr.bf16.gmra.mrb[4].mxu1 %v3652_v26  ;;  %v122_v26 = vld [vmem:[%s6264_s0 + $0x348] sm:$0xff] }
  0x8b   :  { %2929 = vmatmul.mubr.bf16.gmra.mrb[4].mxu0 %v3660_v27  ;;  %2552 = vmatpush1.bf16.msra.mxu1 %v4446_v30  ;;  %v3716_v27 = vcombine.low %v98_v10, %v106_v11  ;;  %v126_v30 = vld [vmem:[%s6264_s0 + $0x368] sm:$0xff]  ;;  %v3732_v42 = vcombine.low %v114_v25, %v122_v26  ;;  %v35_v10 = vld [vmem:[%s6264_s0 + $0x90] sm:$0xff] }
  0x8c   :  { %3004 = vmatpush1.bf16.msra.mxu0 %v4449_v31  ;;  %2553 = vmatprep.subr.bf16.mxu1 %v4454_v32  ;;  %v4497_v31 = vld [vmem:[%s6263_s1 + $0x6a0] ss:$8 sps:$4 sm:$0xff]   ;;  %v4502_v32 = vld [vmem:[%s6263_s1 + $0x2b4] ss:$8 sps:$4 sm:$0xff]  }
  0x8d   :  { %3005 = vmatprep.subr.bf16.mxu0 %v4457_v33  ;;  %2486 = vmatprep.mubr.bf16.mxu1 %v3669_v34  ;;  %v4505_v33 = vld [vmem:[%s6263_s1 + $0x6b4] ss:$8 sps:$4 sm:$0xff]   ;;  %v3733_v34 = vcombine.high %v114_v25, %v122_v26  ;;  %v4545_v25 = vld [vmem:[%s6263_s1 + $0x720] ss:$8 sps:$4 sm:$0xff]  }
  0x8e   :  { %2938 = vmatprep.mubr.bf16.mxu0 %v3677_v35  ;;  %v3741_v35 = vcombine.high %v118_v29, %v126_v30  ;;  %v43_v11 = vld [vmem:[%s6264_s0 + $0xd0] sm:$0xff] }
  0x8f   :  { %2554 = vmatpush1.bf16.msra.mxu1 %v4452_v36  ;;  %v4500_v36 = vld [vmem:[%s6263_s1 + $0x2b0] ss:$8 sps:$4 sm:$0xff]  }
  0x90   :  { %3006 = vmatpush1.bf16.msra.mxu0 %v4455_v37  ;;  %2555 = vmatprep.subr.bf16.mxu1 %v4460_v38  ;;  %v4503_v37 = vld [vmem:[%s6263_s1 + $0x6b0] ss:$8 sps:$4 sm:$0xff]   ;;  %v4508_v38 = vld [vmem:[%s6263_s1 + $0x2c4] ss:$8 sps:$4 sm:$0xff]  }
  0x91   :  { %3007 = vmatprep.subr.bf16.mxu0 %v4463_v39  ;;  %v4511_v39 = vld [vmem:[%s6263_s1 + $0x6c4] ss:$8 sps:$4 sm:$0xff]   ;;  %v51_v26 = vld [vmem:[%s6264_s0 + $0x110] sm:$0xff] }
  0x92   :  { %2487 = vmatmul.mubr.bf16.gmra.mrb[8].mxu1 %v3668_v43  ;;  %v3740_v43 = vcombine.low %v118_v29, %v126_v30  ;;  %v3662_v29 = vcombine.low %v39_v14, %v47_v15  ;;  %v55_v30 = vld [vmem:[%s6264_s0 + $0x130] sm:$0xff] }
  0x93   :  { %2939 = vmatmul.mubr.bf16.gmra.mrb[8].mxu0 %v3676_v44  ;;  %2556 = vmatpush1.bf16.msra.mxu1 %v4458_v40  ;;  %v130_v40 = vld [vmem:[%s6264_s0 + $0x388] sm:$0xff] }
  0x94   :  { %3008 = vmatpush1.bf16.msra.mxu0 %v4461_v41  ;;  %2557 = vmatprep.subr.bf16.mxu1 %v4466_v48  ;;  %v138_v41 = vld [vmem:[%s6264_s0 + $0x3c8] sm:$0xff]  ;;  %v4514_v48 = vld [vmem:[%s6263_s1 + $0x2d4] ss:$8 sps:$4 sm:$0xff]  }
  0x95   :  { %3009 = vmatprep.subr.bf16.mxu0 %v4469_v49  ;;  %2496 = vmatprep.mubr.bf16.mxu1 %v3685_v50  ;;  %v134_v44 = vld [vmem:[%s6264_s0 + $0x3a8] sm:$0xff]  ;;  %v4517_v49 = vld [vmem:[%s6263_s1 + $0x6d4] ss:$8 sps:$4 sm:$0xff]   ;;  %v3749_v50 = vcombine.high %v130_v40, %v138_v41  ;;  %v3748_v59 = vcombine.low %v130_v40, %v138_v41 }
  0x96   :  { %2948 = vmatprep.mubr.bf16.mxu0 %v3693_v51  ;;  %v3757_v51 = vcombine.high %v134_v44, %v142_v45  ;;  %v67_v40 = vld [vmem:[%s6264_s0 + $0x190] sm:$0xff] }
  0x97   :  { %2558 = vmatpush1.bf16.msra.mxu1 %v4464_v52  ;;  %v4512_v52 = vld [vmem:[%s6263_s1 + $0x2d0] ss:$8 sps:$4 sm:$0xff]  }
  0x98   :  { %3010 = vmatpush1.bf16.msra.mxu0 %v4467_v53  ;;  %2559 = vmatprep.subr.bf16.mxu1 %v4472_v54  ;;  %v4515_v53 = vld [vmem:[%s6263_s1 + $0x6d0] ss:$8 sps:$4 sm:$0xff]   ;;  %v4520_v54 = vld [vmem:[%s6263_s1 + $0x2e4] ss:$8 sps:$4 sm:$0xff]  }
  0x99   :  { %3011 = vmatprep.subr.bf16.mxu0 %v4475_v55  ;;  %v4523_v55 = vld [vmem:[%s6263_s1 + $0x6e4] ss:$8 sps:$4 sm:$0xff]  }
  0x9a   :  { %2497 = vmatmul.mubr.bf16.gmra.mrb[12].mxu1 %v3684_v60  ;;  %v3756_v60 = vcombine.low %v134_v44, %v142_v45  ;;  %v71_v44 = vld [vmem:[%s6264_s0 + $0x1b0] sm:$0xff] }
  0x9b   :  { %2949 = vmatmul.mubr.bf16.gmra.mrb[12].mxu0 %v3692_v61  ;;  %2560 = vmatpush1.bf16.msra.mxu1 %v4470_v56  ;;  %v4518_v56 = vld [vmem:[%s6263_s1 + $0x2e0] ss:$8 sps:$4 sm:$0xff]   ;;  %v27_v61 = vld [vmem:[%s6264_s0 + $0x50] sm:$0xff] }
  0x9c   :  { %3012 = vmatpush1.bf16.msra.mxu0 %v4473_v57  ;;  %2561 = vmatprep.subr.bf16.mxu1 %v4478_v0  ;;  %v4521_v57 = vld [vmem:[%s6263_s1 + $0x6e0] ss:$8 sps:$4 sm:$0xff]   ;;  %v4526_v0 = vld [vmem:[%s6263_s1 + $0x2f4] ss:$8 sps:$4 sm:$0xff]  }
  0x9d   :  { %3013 = vmatprep.subr.bf16.mxu0 %v4481_v1  ;;  %2506 = vmatprep.mubr.bf16.mxu1 %v3701_v2  ;;  %v4529_v1 = vld [vmem:[%s6263_s1 + $0x6f4] ss:$8 sps:$4 sm:$0xff]   ;;  %v3639_v2 = vcombine.high %v19_v58, %v27_v61 }
  0x9e   :  { %2958 = vmatprep.mubr.bf16.mxu0 %v3709_v3  ;;  %v3647_v3 = vcombine.high %v23_v62, %v31_v63  ;;  %v79_v45 = vld [vmem:[%s6264_s0 + $0x1f0] sm:$0xff] }
  0x9f   :  { %2562 = vmatpush1.bf16.msra.mxu1 %v4476_v4  ;;  %v4524_v4 = vld [vmem:[%s6263_s1 + $0x2f0] ss:$8 sps:$4 sm:$0xff]  }
  0xa0   :  { %3014 = vmatpush1.bf16.msra.mxu0 %v4479_v5  ;;  %2563 = vmatprep.subr.bf16.mxu1 %v4484_v6  ;;  %v4527_v5 = vld [vmem:[%s6263_s1 + $0x6f0] ss:$8 sps:$4 sm:$0xff]   ;;  %v4532_v6 = vld [vmem:[%s6263_s1 + $0x304] ss:$8 sps:$4 sm:$0xff]  }
  0xa1   :  { %3015 = vmatprep.subr.bf16.mxu0 %v4487_v7  ;;  %v4535_v7 = vld [vmem:[%s6263_s1 + $0x704] ss:$8 sps:$4 sm:$0xff]  }
  0xa2   :  { %2507 = vmatmul.mubr.bf16.gmra.mrb[16].mxu1 %v3700_v12  ;;  %v3638_v12 = vcombine.low %v19_v58, %v27_v61  ;;  %v3694_v58 = vcombine.low %v71_v44, %v79_v45  ;;  %v95_v61 = vld [vmem:[%s6264_s0 + $0x270] sm:$0xff] }
  0xa3   :  { %2959 = vmatmul.mubr.bf16.gmra.mrb[16].mxu0 %v3708_v13  ;;  %2564 = vmatpush1.bf16.msra.mxu1 %v4482_v8  ;;  %v4530_v8 = vld [vmem:[%s6263_s1 + $0x300] ss:$8 sps:$4 sm:$0xff]   ;;  %v3646_v13 = vcombine.low %v23_v62, %v31_v63 }
  0xa4   :  { %3016 = vmatpush1.bf16.msra.mxu0 %v4485_v9  ;;  %2565 = vmatprep.subr.bf16.mxu1 %v4490_v16  ;;  %v4533_v9 = vld [vmem:[%s6263_s1 + $0x700] ss:$8 sps:$4 sm:$0xff]   ;;  %v4538_v16 = vld [vmem:[%s6263_s1 + $0x314] ss:$8 sps:$4 sm:$0xff]  }
  0xa5   :  { %3017 = vmatprep.subr.bf16.mxu0 %v4493_v17  ;;  %2516 = vmatprep.mubr.bf16.mxu1 %v3717_v18  ;;  %v4541_v17 = vld [vmem:[%s6263_s1 + $0x714] ss:$8 sps:$4 sm:$0xff]   ;;  %v3655_v18 = vcombine.high %v35_v10, %v43_v11  ;;  %v4566_v62 = vld [vmem:[%s6263_s1 + $0x360] ss:$8 sps:$4 sm:$0xff]  }
  0xa6   :  { %2968 = vmatprep.mubr.bf16.mxu0 %v3725_v19  ;;  %v3663_v19 = vcombine.high %v39_v14, %v47_v15  ;;  %v4569_v63 = vld [vmem:[%s6263_s1 + $0x760] ss:$8 sps:$4 sm:$0xff]  }
  0xa7   :  { %2566 = vmatpush1.bf16.msra.mxu1 %v4488_v20  ;;  %v4536_v20 = vld [vmem:[%s6263_s1 + $0x310] ss:$8 sps:$4 sm:$0xff]   ;;  %v4578_v14 = vld [vmem:[%s6263_s1 + $0x380] ss:$8 sps:$4 sm:$0xff]  }
  0xa8   :  { %3018 = vmatpush1.bf16.msra.mxu0 %v4491_v21  ;;  %2567 = vmatprep.subr.bf16.mxu1 %v4496_v22  ;;  %v4539_v21 = vld [vmem:[%s6263_s1 + $0x710] ss:$8 sps:$4 sm:$0xff]   ;;  %v4544_v22 = vld [vmem:[%s6263_s1 + $0x324] ss:$8 sps:$4 sm:$0xff]   ;;  %v4581_v15 = vld [vmem:[%s6263_s1 + $0x780] ss:$8 sps:$4 sm:$0xff]  }
  0xa9   :  { %3019 = vmatprep.subr.bf16.mxu0 %v4499_v23  ;;  %v4547_v23 = vld [vmem:[%s6263_s1 + $0x724] ss:$8 sps:$4 sm:$0xff]  }
  0xaa   :  { %2517 = vmatmul.mubr.bf16.gmra.mrb[20].mxu1 %v3716_v27  ;;  %v59_v27 = vld [vmem:[%s6264_s0 + $0x150] sm:$0xff] }
  0xab   :  { %2969 = vmatmul.mubr.bf16.gmra.mrb[20].mxu0 %v3724_v28  ;;  %2568 = vmatpush1.bf16.msra.mxu1 %v4494_v24  ;;  %v4542_v24 = vld [vmem:[%s6263_s1 + $0x320] ss:$8 sps:$4 sm:$0xff]   ;;  %v3654_v28 = vcombine.low %v35_v10, %v43_v11  ;;  %v3670_v41 = vcombine.low %v51_v26, %v59_v27  ;;  %v107_v11 = vld [vmem:[%s6264_s0 + $0x2d0] sm:$0xff] }
  0xac   :  { %3020 = vmatpush1.bf16.msra.mxu0 %v4497_v31  ;;  %2569 = vmatprep.subr.bf16.mxu1 %v4502_v32  ;;  %v63_v31 = vld [vmem:[%s6264_s0 + $0x170] sm:$0xff] }
  0xad   :  { %3021 = vmatprep.subr.bf16.mxu0 %v4505_v33  ;;  %2526 = vmatprep.mubr.bf16.mxu1 %v3733_v34  ;;  %v4550_v32 = vld [vmem:[%s6263_s1 + $0x334] ss:$8 sps:$4 sm:$0xff]   ;;  %v3671_v34 = vcombine.high %v51_v26, %v59_v27 }
  0xae   :  { %2978 = vmatprep.mubr.bf16.mxu0 %v3741_v35  ;;  %v4553_v33 = vld [vmem:[%s6263_s1 + $0x734] ss:$8 sps:$4 sm:$0xff]   ;;  %v3679_v35 = vcombine.high %v55_v30, %v63_v31 }
  0xaf   :  { %2570 = vmatpush1.bf16.msra.mxu1 %v4500_v36  ;;  %v4548_v36 = vld [vmem:[%s6263_s1 + $0x330] ss:$8 sps:$4 sm:$0xff]  }
  0xb0   :  { %3022 = vmatpush1.bf16.msra.mxu0 %v4503_v37  ;;  %2571 = vmatprep.subr.bf16.mxu1 %v4508_v38  ;;  %v4551_v37 = vld [vmem:[%s6263_s1 + $0x730] ss:$8 sps:$4 sm:$0xff]   ;;  %v4556_v38 = vld [vmem:[%s6263_s1 + $0x344] ss:$8 sps:$4 sm:$0xff]  }
  0xb1   :  { %3023 = vmatprep.subr.bf16.mxu0 %v4511_v39  ;;  %v4559_v39 = vld [vmem:[%s6263_s1 + $0x744] ss:$8 sps:$4 sm:$0xff]   ;;  %v123_v27 = vld [vmem:[%s6264_s0 + $0x350] sm:$0xff] }
  0xb2   :  { %2527 = vmatmul.mubr.bf16.gmra.mrb[24].mxu1 %v3732_v42  ;;  %v3678_v42 = vcombine.low %v55_v30, %v63_v31  ;;  %v4590_v30 = vld [vmem:[%s6263_s1 + $0x3a0] ss:$8 sps:$4 sm:$0xff]  }
  0xb3   :  { %2979 = vmatmul.mubr.bf16.gmra.mrb[24].mxu0 %v3740_v43  ;;  %2572 = vmatpush1.bf16.msra.mxu1 %v4506_v46  ;;  %v75_v43 = vld [vmem:[%s6264_s0 + $0x1d0] sm:$0xff]  ;;  %v4554_v46 = vld [vmem:[%s6263_s1 + $0x340] ss:$8 sps:$4 sm:$0xff]  }
  0xb4   :  { %3024 = vmatpush1.bf16.msra.mxu0 %v4509_v47  ;;  %2573 = vmatprep.subr.bf16.mxu1 %v4514_v48  ;;  %v4557_v47 = vld [vmem:[%s6263_s1 + $0x740] ss:$8 sps:$4 sm:$0xff]   ;;  %v4562_v48 = vld [vmem:[%s6263_s1 + $0x354] ss:$8 sps:$4 sm:$0xff]  }
  0xb5   :  { %3025 = vmatprep.subr.bf16.mxu0 %v4517_v49  ;;  %2536 = vmatprep.mubr.bf16.mxu1 %v3749_v50  ;;  %v4565_v49 = vld [vmem:[%s6263_s1 + $0x754] ss:$8 sps:$4 sm:$0xff]   ;;  %v3687_v50 = vcombine.high %v67_v40, %v75_v43  ;;  %v4593_v31 = vld [vmem:[%s6263_s1 + $0x7a0] ss:$8 sps:$4 sm:$0xff]  }
  0xb6   :  { %2988 = vmatprep.mubr.bf16.mxu0 %v3757_v51  ;;  %v3695_v51 = vcombine.high %v71_v44, %v79_v45  ;;  %v135_v44 = vld [vmem:[%s6264_s0 + $0x3b0] sm:$0xff] }
  0xb7   :  { %2574 = vmatpush1.bf16.msra.mxu1 %v4512_v52  ;;  %v4560_v52 = vld [vmem:[%s6263_s1 + $0x350] ss:$8 sps:$4 sm:$0xff]  }
  0xb8   :  { %3026 = vmatpush1.bf16.msra.mxu0 %v4515_v53  ;;  %2575 = vmatprep.subr.bf16.mxu1 %v4520_v54  ;;  %v4563_v53 = vld [vmem:[%s6263_s1 + $0x750] ss:$8 sps:$4 sm:$0xff]   ;;  %v4568_v54 = vld [vmem:[%s6263_s1 + $0x364] ss:$8 sps:$4 sm:$0xff]  }
  0xb9   :  { %3027 = vmatprep.subr.bf16.mxu0 %v4523_v55  ;;  %v4571_v55 = vld [vmem:[%s6263_s1 + $0x764] ss:$8 sps:$4 sm:$0xff]   ;;  %v143_v45 = vld [vmem:[%s6264_s0 + $0x3f0] sm:$0xff] }
  0xba   :  { %2537 = vmatmul.mubr.bf16.gmra.mrb[28].mxu1 %v3748_v59  ;;  %v91_v59 = vld [vmem:[%s6264_s0 + $0x250] sm:$0xff] }
  0xbb   :  { %2989 = vmatmul.mubr.bf16.gmra.mrb[28].mxu0 %v3756_v60  ;;  %2576 = vmatpush1.bf16.msra.mxu1 %v4518_v56  ;;  %v83_v56 = vld [vmem:[%s6264_s0 + $0x210] sm:$0xff] }
  0xbc   :  { %3028 = vmatpush1.bf16.msra.mxu0 %v4521_v57  ;;  %2577 = vmatprep.subr.bf16.mxu1 %v4526_v0  ;;  %v3686_v57 = vcombine.low %v67_v40, %v75_v43  ;;  %v87_v60 = vld [vmem:[%s6264_s0 + $0x230] sm:$0xff] }
  0xbd   :  { %3029 = vmatprep.subr.bf16.mxu0 %v4529_v1  ;;  %2579 = vmatprep.mubr.bf16.mxu1 %v3639_v2  ;;  %v4574_v0 = vld [vmem:[%s6263_s1 + $0x374] ss:$8 sps:$4 sm:$0xff]   ;;  %v3703_v2 = vcombine.high %v83_v56, %v91_v59  ;;  %v3710_v10 = vcombine.low %v87_v60, %v95_v61 }
  0xbe   :  { %3031 = vmatprep.mubr.bf16.mxu0 %v3647_v3  ;;  %v4577_v1 = vld [vmem:[%s6263_s1 + $0x774] ss:$8 sps:$4 sm:$0xff]   ;;  %v3711_v3 = vcombine.high %v87_v60, %v95_v61 }
  0xbf   :  { %2578 = vmatpush1.bf16.msra.mxu1 %v4524_v4  ;;  %v4572_v4 = vld [vmem:[%s6263_s1 + $0x370] ss:$8 sps:$4 sm:$0xff]  }
  0xc0   :  { %3030 = vmatpush1.bf16.msra.mxu0 %v4527_v5  ;;  %2660 = vmatprep.subr.bf16.mxu1 %v4532_v6  ;;  %v4575_v5 = vld [vmem:[%s6263_s1 + $0x770] ss:$8 sps:$4 sm:$0xff]   ;;  %v4580_v6 = vld [vmem:[%s6263_s1 + $0x384] ss:$8 sps:$4 sm:$0xff]  }
  0xc1   :  { %3112 = vmatprep.subr.bf16.mxu0 %v4535_v7  ;;  %v4583_v7 = vld [vmem:[%s6263_s1 + $0x784] ss:$8 sps:$4 sm:$0xff]   ;;  %v131_v40 = vld [vmem:[%s6264_s0 + $0x390] sm:$0xff]  ;;  %v24_v60 = vld [vmem:[%s6264_s0 + $0x38] sm:$0xff] }
  0xc2   :  { %2580 = vmatmul.mubr.bf16.vlgmr.msra.gmra.mrb[0].mxu1 %v3638_v12  ;;  %v103_v12 = vld [vmem:[%s6264_s0 + $0x2b0] sm:$0xff]  ;;  %v32_v61 = vld [vmem:[%s6264_s0 + $0x78] sm:$0xff] }
  0xc3   :  { %3032 = vmatmul.mubr.bf16.vlgmr.msra.gmra.mrb[0].mxu0 %v3646_v13  ;;  %2661 = vmatpush1.bf16.msra.mxu1 %v4530_v8  ;;  %v99_v8 = vld [vmem:[%s6264_s0 + $0x290] sm:$0xff] }
  0xc4   :  { %3113 = vmatpush1.bf16.msra.mxu0 %v4533_v9  ;;  %2662 = vmatprep.subr.bf16.mxu1 %v4538_v16  ;;  %v3702_v9 = vcombine.low %v83_v56, %v91_v59  ;;  %v111_v13 = vld [vmem:[%s6264_s0 + $0x2f0] sm:$0xff]  ;;  %v20_v56 = vld [vmem:[%s6264_s0 + $0x18] sm:$0xff] }
  0xc5   :  { %3114 = vmatprep.subr.bf16.mxu0 %v4541_v17  ;;  %2589 = vmatprep.mubr.bf16.mxu1 %v3655_v18  ;;  %v4586_v16 = vld [vmem:[%s6263_s1 + $0x394] ss:$8 sps:$4 sm:$0xff]   ;;  %v3719_v18 = vcombine.high %v99_v8, %v107_v11  ;;  %v3726_v26 = vcombine.low %v103_v12, %v111_v13 }
  0xc6   :  { %3041 = vmatprep.mubr.bf16.mxu0 %v3663_v19  ;;  %v4589_v17 = vld [vmem:[%s6263_s1 + $0x794] ss:$8 sps:$4 sm:$0xff]   ;;  %v3727_v19 = vcombine.high %v103_v12, %v111_v13 }
  0xc7   :  { %2663 = vmatpush1.bf16.msra.mxu1 %v4536_v20  ;;  %v4584_v20 = vld [vmem:[%s6263_s1 + $0x390] ss:$8 sps:$4 sm:$0xff]  }
  0xc8   :  { %3115 = vmatpush1.bf16.msra.mxu0 %v4539_v21  ;;  %2664 = vmatprep.subr.bf16.mxu1 %v4544_v22  ;;  %v4587_v21 = vld [vmem:[%s6263_s1 + $0x790] ss:$8 sps:$4 sm:$0xff]   ;;  %v4592_v22 = vld [vmem:[%s6263_s1 + $0x3a4] ss:$8 sps:$4 sm:$0xff]  }
  0xc9   :  { %3116 = vmatprep.subr.bf16.mxu0 %v4547_v23  ;;  %v4595_v23 = vld [vmem:[%s6263_s1 + $0x7a4] ss:$8 sps:$4 sm:$0xff]   ;;  %v139_v43 = vld [vmem:[%s6264_s0 + $0x3d0] sm:$0xff]  ;;  %v28_v59 = vld [vmem:[%s6264_s0 + $0x58] sm:$0xff] }
  0xca   :  { %2590 = vmatmul.mubr.bf16.gmra.mrb[4].mxu1 %v3654_v28  ;;  %v119_v28 = vld [vmem:[%s6264_s0 + $0x330] sm:$0xff] }
  0xcb   :  { %3042 = vmatmul.mubr.bf16.gmra.mrb[4].mxu0 %v3662_v29  ;;  %2665 = vmatpush1.bf16.msra.mxu1 %v4542_v24  ;;  %v115_v24 = vld [vmem:[%s6264_s0 + $0x310] sm:$0xff] }
  0xcc   :  { %3117 = vmatpush1.bf16.msra.mxu0 %v4545_v25  ;;  %2666 = vmatprep.subr.bf16.mxu1 %v4550_v32  ;;  %v3718_v25 = vcombine.low %v99_v8, %v107_v11  ;;  %v127_v29 = vld [vmem:[%s6264_s0 + $0x370] sm:$0xff]  ;;  %v40_v8 = vld [vmem:[%s6264_s0 + $0xb8] sm:$0xff]  ;;  %v3648_v11 = vcombine.low %v24_v60, %v32_v61 }
  0xcd   :  { %3118 = vmatprep.subr.bf16.mxu0 %v4553_v33  ;;  %2599 = vmatprep.mubr.bf16.mxu1 %v3671_v34  ;;  %v4598_v32 = vld [vmem:[%s6263_s1 + $0x3b4] ss:$8 sps:$4 sm:$0xff]   ;;  %v3735_v34 = vcombine.high %v115_v24, %v123_v27 }
  0xce   :  { %3051 = vmatprep.mubr.bf16.mxu0 %v3679_v35  ;;  %v4601_v33 = vld [vmem:[%s6263_s1 + $0x7b4] ss:$8 sps:$4 sm:$0xff]   ;;  %v3743_v35 = vcombine.high %v119_v28, %v127_v29 }
  0xcf   :  { %2667 = vmatpush1.bf16.msra.mxu1 %v4548_v36  ;;  %v4596_v36 = vld [vmem:[%s6263_s1 + $0x3b0] ss:$8 sps:$4 sm:$0xff]  }
  0xd0   :  { %3119 = vmatpush1.bf16.msra.mxu0 %v4551_v37  ;;  %2668 = vmatprep.subr.bf16.mxu1 %v4556_v38  ;;  %v4599_v37 = vld [vmem:[%s6263_s1 + $0x7b0] ss:$8 sps:$4 sm:$0xff]   ;;  %v4604_v38 = vld [vmem:[%s6263_s1 + $0x3c4] ss:$8 sps:$4 sm:$0xff]  }
  0xd1   :  { %3120 = vmatprep.subr.bf16.mxu0 %v4559_v39  ;;  %v4607_v39 = vld [vmem:[%s6263_s1 + $0x7c4] ss:$8 sps:$4 sm:$0xff]  }
  0xd2   :  { %2600 = vmatmul.mubr.bf16.gmra.mrb[8].mxu1 %v3670_v41  ;;  %v3734_v41 = vcombine.low %v115_v24, %v123_v27  ;;  %v72_v24 = vld [vmem:[%s6264_s0 + $0x1b8] sm:$0xff] }
  0xd3   :  { %3052 = vmatmul.mubr.bf16.gmra.mrb[8].mxu0 %v3678_v42  ;;  %2669 = vmatpush1.bf16.msra.mxu1 %v4554_v46  ;;  %v3742_v42 = vcombine.low %v119_v28, %v127_v29  ;;  %v4602_v46 = vld [vmem:[%s6263_s1 + $0x3c0] ss:$8 sps:$4 sm:$0xff]  }
  0xd4   :  { %3121 = vmatpush1.bf16.msra.mxu0 %v4557_v47  ;;  %2670 = vmatprep.subr.bf16.mxu1 %v4562_v48  ;;  %v4605_v47 = vld [vmem:[%s6263_s1 + $0x7c0] ss:$8 sps:$4 sm:$0xff]   ;;  %v4610_v48 = vld [vmem:[%s6263_s1 + $0x3d4] ss:$8 sps:$4 sm:$0xff]  }
  0xd5   :  { %3122 = vmatprep.subr.bf16.mxu0 %v4565_v49  ;;  %2609 = vmatprep.mubr.bf16.mxu1 %v3687_v50  ;;  %v4613_v49 = vld [vmem:[%s6263_s1 + $0x7d4] ss:$8 sps:$4 sm:$0xff]   ;;  %v3751_v50 = vcombine.high %v131_v40, %v139_v43 }
  0xd6   :  { %3061 = vmatprep.mubr.bf16.mxu0 %v3695_v51  ;;  %v3759_v51 = vcombine.high %v135_v44, %v143_v45 }
  0xd7   :  { %2671 = vmatpush1.bf16.msra.mxu1 %v4560_v52  ;;  %v4608_v52 = vld [vmem:[%s6263_s1 + $0x3d0] ss:$8 sps:$4 sm:$0xff]  }
  0xd8   :  { %3123 = vmatpush1.bf16.msra.mxu0 %v4563_v53  ;;  %2672 = vmatprep.subr.bf16.mxu1 %v4568_v54  ;;  %v4611_v53 = vld [vmem:[%s6263_s1 + $0x7d0] ss:$8 sps:$4 sm:$0xff]   ;;  %v4616_v54 = vld [vmem:[%s6263_s1 + $0x3e4] ss:$8 sps:$4 sm:$0xff]  }
  0xd9   :  { %3124 = vmatprep.subr.bf16.mxu0 %v4571_v55  ;;  %v4619_v55 = vld [vmem:[%s6263_s1 + $0x7e4] ss:$8 sps:$4 sm:$0xff]  }
  0xda   :  { %2610 = vmatmul.mubr.bf16.gmra.mrb[12].mxu1 %v3686_v57  ;;  %v3750_v57 = vcombine.low %v131_v40, %v139_v43  ;;  %v104_v40 = vld [vmem:[%s6264_s0 + $0x2b8] sm:$0xff] }
  0xdb   :  { %3062 = vmatmul.mubr.bf16.gmra.mrb[12].mxu0 %v3694_v58  ;;  %2673 = vmatpush1.bf16.msra.mxu1 %v4566_v62  ;;  %v3758_v58 = vcombine.low %v135_v44, %v143_v45  ;;  %v4614_v62 = vld [vmem:[%s6263_s1 + $0x3e0] ss:$8 sps:$4 sm:$0xff]  }
  0xdc   :  { %3125 = vmatpush1.bf16.msra.mxu0 %v4569_v63  ;;  %2674 = vmatprep.subr.bf16.mxu1 %v4574_v0  ;;  %v4617_v63 = vld [vmem:[%s6263_s1 + $0x7e0] ss:$8 sps:$4 sm:$0xff]   ;;  %v4622_v0 = vld [vmem:[%s6263_s1 + $0x3f4] ss:$8 sps:$4 sm:$0xff]  }
  0xdd   :  { %3126 = vmatprep.subr.bf16.mxu0 %v4577_v1  ;;  %2619 = vmatprep.mubr.bf16.mxu1 %v3703_v2  ;;  %v4625_v1 = vld [vmem:[%s6263_s1 + $0x7f4] ss:$8 sps:$4 sm:$0xff]   ;;  %v3641_v2 = vcombine.high %v20_v56, %v28_v59 }
  0xde   :  { %3071 = vmatprep.mubr.bf16.mxu0 %v3711_v3  ;;  %v3649_v3 = vcombine.high %v24_v60, %v32_v61 }
  0xdf   :  { %2675 = vmatpush1.bf16.msra.mxu1 %v4572_v4  ;;  %v4620_v4 = vld [vmem:[%s6263_s1 + $0x3f0] ss:$8 sps:$4 sm:$0xff]  }
  0xe0   :  { %3127 = vmatpush1.bf16.msra.mxu0 %v4575_v5  ;;  %2676 = vmatprep.subr.bf16.mxu1 %v4580_v6  ;;  %v4623_v5 = vld [vmem:[%s6263_s1 + $0x7f0] ss:$8 sps:$4 sm:$0xff]  }
  0xe1   :  { %3128 = vmatprep.subr.bf16.mxu0 %v4583_v7  ;;  %v36_v6 = vld [vmem:[%s6264_s0 + $0x98] sm:$0xff] }
  0xe2   :  { %2620 = vmatmul.mubr.bf16.gmra.mrb[16].mxu1 %v3702_v9  ;;  %v44_v7 = vld [vmem:[%s6264_s0 + $0xd8] sm:$0xff] }
  0xe3   :  { %3072 = vmatmul.mubr.bf16.gmra.mrb[16].mxu0 %v3710_v10  ;;  %2677 = vmatpush1.bf16.msra.mxu1 %v4578_v14  ;;  %v48_v9 = vld [vmem:[%s6264_s0 + $0xf8] sm:$0xff]  ;;  %v3640_v10 = vcombine.low %v20_v56, %v28_v59  ;;  %v3657_v12 = vcombine.high %v36_v6, %v44_v7 }
  0xe4   :  { %3129 = vmatpush1.bf16.msra.mxu0 %v4581_v15  ;;  %2678 = vmatprep.subr.bf16.mxu1 %v4586_v16  ;;  %v3665_v13 = vcombine.high %v40_v8, %v48_v9  ;;  %v52_v14 = vld [vmem:[%s6264_s0 + $0x118] sm:$0xff] }
  0xe5   :  { %3130 = vmatprep.subr.bf16.mxu0 %v4589_v17  ;;  %2629 = vmatprep.mubr.bf16.mxu1 %v3719_v18  ;;  %v60_v15 = vld [vmem:[%s6264_s0 + $0x158] sm:$0xff]  ;;  %v3656_v18 = vcombine.low %v36_v6, %v44_v7 }
  0xe6   :  { %3081 = vmatprep.mubr.bf16.mxu0 %v3727_v19  ;;  %v56_v16 = vld [vmem:[%s6264_s0 + $0x138] sm:$0xff]  ;;  %v3664_v19 = vcombine.low %v40_v8, %v48_v9 }
  0xe7   :  { %2679 = vmatpush1.bf16.msra.mxu1 %v4584_v20  ;;  %v64_v17 = vld [vmem:[%s6264_s0 + $0x178] sm:$0xff]  ;;  %v3673_v20 = vcombine.high %v52_v14, %v60_v15 }
  0xe8   :  { %3131 = vmatpush1.bf16.msra.mxu0 %v4587_v21  ;;  %2680 = vmatprep.subr.bf16.mxu1 %v4592_v22  ;;  %v3681_v21 = vcombine.high %v56_v16, %v64_v17  ;;  %v68_v22 = vld [vmem:[%s6264_s0 + $0x198] sm:$0xff]  ;;  %v3680_v27 = vcombine.low %v56_v16, %v64_v17 }
  0xe9   :  { %3132 = vmatprep.subr.bf16.mxu0 %v4595_v23  ;;  %v76_v23 = vld [vmem:[%s6264_s0 + $0x1d8] sm:$0xff] }
  0xea   :  { %2630 = vmatmul.mubr.bf16.gmra.mrb[20].mxu1 %v3718_v25  ;;  %v80_v25 = vld [vmem:[%s6264_s0 + $0x1f8] sm:$0xff]  ;;  %v3689_v28 = vcombine.high %v68_v22, %v76_v23 }
  0xeb   :  { %3082 = vmatmul.mubr.bf16.gmra.mrb[20].mxu0 %v3726_v26  ;;  %2681 = vmatpush1.bf16.msra.mxu1 %v4590_v30  ;;  %v3672_v26 = vcombine.low %v52_v14, %v60_v15  ;;  %v3697_v29 = vcombine.high %v72_v24, %v80_v25  ;;  %v84_v30 = vld [vmem:[%s6264_s0 + $0x218] sm:$0xff] }
  0xec   :  { %3133 = vmatpush1.bf16.msra.mxu0 %v4593_v31  ;;  %2682 = vmatprep.subr.bf16.mxu1 %v4598_v32  ;;  %v92_v31 = vld [vmem:[%s6264_s0 + $0x258] sm:$0xff] }
  0xed   :  { %3134 = vmatprep.subr.bf16.mxu0 %v4601_v33  ;;  %2639 = vmatprep.mubr.bf16.mxu1 %v3735_v34  ;;  %v88_v32 = vld [vmem:[%s6264_s0 + $0x238] sm:$0xff]  ;;  %v3688_v34 = vcombine.low %v68_v22, %v76_v23 }
  0xee   :  { %3091 = vmatprep.mubr.bf16.mxu0 %v3743_v35  ;;  %v96_v33 = vld [vmem:[%s6264_s0 + $0x278] sm:$0xff]  ;;  %v3696_v35 = vcombine.low %v72_v24, %v80_v25 }
  0xef   :  { %2683 = vmatpush1.bf16.msra.mxu1 %v4596_v36  ;;  %v3705_v36 = vcombine.high %v84_v30, %v92_v31  ;;  %v3712_v43 = vcombine.low %v88_v32, %v96_v33  ;;  %v136_v56 = vld [vmem:[%s6264_s0 + $0x3b8] sm:$0xff] }
  0xf0   :  { %3135 = vmatpush1.bf16.msra.mxu0 %v4599_v37  ;;  %2684 = vmatprep.subr.bf16.mxu1 %v4604_v38  ;;  %v3713_v37 = vcombine.high %v88_v32, %v96_v33  ;;  %v100_v38 = vld [vmem:[%s6264_s0 + $0x298] sm:$0xff] }
  0xf1   :  { %3136 = vmatprep.subr.bf16.mxu0 %v4607_v39  ;;  %v108_v39 = vld [vmem:[%s6264_s0 + $0x2d8] sm:$0xff] }
  0xf2   :  { %2640 = vmatmul.mubr.bf16.gmra.mrb[24].mxu1 %v3734_v41  ;;  %v112_v41 = vld [vmem:[%s6264_s0 + $0x2f8] sm:$0xff]  ;;  %v3721_v44 = vcombine.high %v100_v38, %v108_v39 }
  0xf3   :  { %3092 = vmatmul.mubr.bf16.gmra.mrb[24].mxu0 %v3742_v42  ;;  %2685 = vmatpush1.bf16.msra.mxu1 %v4602_v46  ;;  %v3704_v42 = vcombine.low %v84_v30, %v92_v31  ;;  %v3729_v45 = vcombine.high %v104_v40, %v112_v41  ;;  %v116_v46 = vld [vmem:[%s6264_s0 + $0x318] sm:$0xff] }
  0xf4   :  { %3137 = vmatpush1.bf16.msra.mxu0 %v4605_v47  ;;  %2686 = vmatprep.subr.bf16.mxu1 %v4610_v48  ;;  %v124_v47 = vld [vmem:[%s6264_s0 + $0x358] sm:$0xff] }
  0xf5   :  { %3138 = vmatprep.subr.bf16.mxu0 %v4613_v49  ;;  %2649 = vmatprep.mubr.bf16.mxu1 %v3751_v50  ;;  %v120_v48 = vld [vmem:[%s6264_s0 + $0x338] sm:$0xff]  ;;  %v3720_v50 = vcombine.low %v100_v38, %v108_v39 }
  0xf6   :  { %3101 = vmatprep.mubr.bf16.mxu0 %v3759_v51  ;;  %v128_v49 = vld [vmem:[%s6264_s0 + $0x378] sm:$0xff]  ;;  %v3728_v51 = vcombine.low %v104_v40, %v112_v41 }
  0xf7   :  { %2687 = vmatpush1.bf16.msra.mxu1 %v4608_v52  ;;  %v3737_v52 = vcombine.high %v116_v46, %v124_v47  ;;  %v3744_v59 = vcombine.low %v120_v48, %v128_v49 }
  0xf8   :  { %3139 = vmatpush1.bf16.msra.mxu0 %v4611_v53  ;;  %2688 = vmatprep.subr.bf16.mxu1 %v4616_v54  ;;  %v3745_v53 = vcombine.high %v120_v48, %v128_v49  ;;  %v132_v54 = vld [vmem:[%s6264_s0 + $0x398] sm:$0xff] }
  0xf9   :  { %3140 = vmatprep.subr.bf16.mxu0 %v4619_v55  ;;  %v140_v55 = vld [vmem:[%s6264_s0 + $0x3d8] sm:$0xff] }
  0xfa   :  { %2650 = vmatmul.mubr.bf16.gmra.mrb[28].mxu1 %v3750_v57  ;;  %v144_v57 = vld [vmem:[%s6264_s0 + $0x3f8] sm:$0xff]  ;;  %v3753_v60 = vcombine.high %v132_v54, %v140_v55 }
  0xfb   :  { %3102 = vmatmul.mubr.bf16.gmra.mrb[28].mxu0 %v3758_v58  ;;  %2689 = vmatpush1.bf16.msra.mxu1 %v4614_v62  ;;  %v3736_v58 = vcombine.low %v116_v46, %v124_v47  ;;  %v3761_v61 = vcombine.high %v136_v56, %v144_v57  ;;  %v3752_v62 = vcombine.low %v132_v54, %v140_v55 }
  0xfc   :  { %3141 = vmatpush1.bf16.msra.mxu0 %v4617_v63  ;;  %2690 = vmatprep.subr.bf16.mxu1 %v4622_v0  ;;  %v3760_v63 = vcombine.low %v136_v56, %v144_v57 }
  0xfd   :  { %3142 = vmatprep.subr.bf16.mxu0 %v4625_v1  ;;  %2692 = vmatprep.mubr.bf16.mxu1 %v3641_v2 }
  0xfe   :  { %3144 = vmatprep.mubr.bf16.mxu0 %v3649_v3 }
  0xff   :  { %2691 = vmatpush1.bf16.msra.mxu1 %v4620_v4 }
 0x100   :  { %3143 = vmatpush1.bf16.msra.mxu0 %v4623_v5 }
 0x102   :  { %2693 = vmatmul.mubr.bf16.vlgmr.msra.gmra.mrb[0].mxu1 %v3640_v10 }
 0x103   :  { %3145 = vmatmul.mubr.bf16.vlgmr.msra.gmra.mrb[0].mxu0 %v3648_v11  ;;  %2702 = vmatprep.mubr.bf16.mxu1 %v3657_v12 }
 0x104   :  { %3154 = vmatprep.mubr.bf16.mxu0 %v3665_v13 }
 0x10a   :  { %2703 = vmatmul.mubr.bf16.gmra.mrb[4].mxu1 %v3656_v18 }
 0x10b   :  { %3155 = vmatmul.mubr.bf16.gmra.mrb[4].mxu0 %v3664_v19  ;;  %2712 = vmatprep.mubr.bf16.mxu1 %v3673_v20 }
 0x10c   :  { %3164 = vmatprep.mubr.bf16.mxu0 %v3681_v21 }
 0x112   :  { %2713 = vmatmul.mubr.bf16.gmra.mrb[8].mxu1 %v3672_v26 }
 0x113   :  { %3165 = vmatmul.mubr.bf16.gmra.mrb[8].mxu0 %v3680_v27  ;;  %2722 = vmatprep.mubr.bf16.mxu1 %v3689_v28 }
 0x114   :  { %3174 = vmatprep.mubr.bf16.mxu0 %v3697_v29 }
 0x11a   :  { %2723 = vmatmul.mubr.bf16.gmra.mrb[12].mxu1 %v3688_v34 }
 0x11b   :  { %3175 = vmatmul.mubr.bf16.gmra.mrb[12].mxu0 %v3696_v35  ;;  %2732 = vmatprep.mubr.bf16.mxu1 %v3705_v36 }
 0x11c   :  { %3184 = vmatprep.mubr.bf16.mxu0 %v3713_v37 }
 0x122   :  { %2733 = vmatmul.mubr.bf16.gmra.mrb[16].mxu1 %v3704_v42 }
 0x123   :  { %3185 = vmatmul.mubr.bf16.gmra.mrb[16].mxu0 %v3712_v43  ;;  %2742 = vmatprep.mubr.bf16.mxu1 %v3721_v44 }
 0x124   :  { %3194 = vmatprep.mubr.bf16.mxu0 %v3729_v45 }
 0x12a   :  { %2743 = vmatmul.mubr.bf16.gmra.mrb[20].mxu1 %v3720_v50 }
 0x12b   :  { %3195 = vmatmul.mubr.bf16.gmra.mrb[20].mxu0 %v3728_v51  ;;  %2752 = vmatprep.mubr.bf16.mxu1 %v3737_v52 }
 0x12c   :  { %3204 = vmatprep.mubr.bf16.mxu0 %v3745_v53 }
 0x132   :  { %2753 = vmatmul.mubr.bf16.gmra.mrb[24].mxu1 %v3736_v58 }
 0x133   :  { %3205 = vmatmul.mubr.bf16.gmra.mrb[24].mxu0 %v3744_v59  ;;  %2762 = vmatprep.mubr.bf16.mxu1 %v3753_v60 }
 0x134   :  { %3214 = vmatprep.mubr.bf16.mxu0 %v3761_v61 }
 0x13a   :  { %2763 = vmatmul.mubr.bf16.gmra.mrb[28].mxu1 %v3752_v62 }
 0x13b   :  { %3215 = vmatmul.mubr.bf16.gmra.mrb[28].mxu0 %v3760_v63 }
 0x1d5   :  { %v2694_v0 = vpop.f32.mrb[0].mxu1 }
 0x1d6   :  { %v3146_v1 = vpop.f32.mrb[0].mxu0  ;;  %v2696_v3 = vpop.f32.mrb[1].mxu1 }
 0x1d7   :  { %v5807_v2 = vadd.f32 %v3146_v1, %v2694_v0  ;;  %v3148_v4 = vpop.f32.mrb[1].mxu0  ;;  %v2698_v6 = vpop.f32.mrb[2].mxu1 }
 0x1d8   :  { %v5809_v5 = vadd.f32 %v3148_v4, %v2696_v3  ;;  %v3150_v7 = vpop.f32.mrb[2].mxu0  ;;  %v2700_v9 = vpop.f32.mrb[3].mxu1 }
 0x1d9   :  { %v5811_v8 = vadd.f32 %v3150_v7, %v2698_v6  ;;  %v3152_v10 = vpop.f32.mrb[3].mxu0 }
 0x1da   :  { %v5813_v11 = vadd.f32 %v3152_v10, %v2700_v9 }
 0x1db   :  { %v3225_v12 = vadd.f32 %v5811_v8, %v5807_v2 }
 0x1dc   :  { %v3246_v13 = vadd.f32 %v5813_v11, %v5809_v5 }
 0x1dd   :  { %v2704_v14 = vpop.f32.mrb[4].mxu1 }
 0x1de   :  { %v3156_v15 = vpop.f32.mrb[4].mxu0  ;;  %v2706_v17 = vpop.f32.mrb[5].mxu1 }
 0x1df   :  { %v5819_v16 = vadd.f32 %v3156_v15, %v2704_v14  ;;  %v3158_v18 = vpop.f32.mrb[5].mxu0  ;;  %v2708_v20 = vpop.f32.mrb[6].mxu1 }
 0x1e0   :  { %v5821_v19 = vadd.f32 %v3158_v18, %v2706_v17  ;;  %v3160_v21 = vpop.f32.mrb[6].mxu0  ;;  %v2710_v24 = vpop.f32.mrb[7].mxu1 }
 0x1e1   :  { %v3226_v22 = vadd.f32 %v5819_v16, %v3225_v12  ;;  %v5824_v23 = vadd.f32 %v3160_v21, %v2708_v20  ;;  %v3162_v25 = vpop.f32.mrb[7].mxu0 }
 0x1e2   :  { %v3247_v26 = vadd.f32 %v5821_v19, %v3246_v13  ;;  %v5827_v27 = vadd.f32 %v3162_v25, %v2710_v24 }
 0x1e3   :  { %v3227_v28 = vadd.f32 %v5824_v23, %v3226_v22 }
 0x1e4   :  { %v3248_v29 = vadd.f32 %v5827_v27, %v3247_v26 }
 0x1e5   :  { %v2714_v30 = vpop.f32.mrb[8].mxu1 }
 0x1e6   :  { %v3166_v31 = vpop.f32.mrb[8].mxu0  ;;  %v2716_v33 = vpop.f32.mrb[9].mxu1 }
 0x1e7   :  { %v5831_v32 = vadd.f32 %v3166_v31, %v2714_v30  ;;  %v3168_v34 = vpop.f32.mrb[9].mxu0  ;;  %v2718_v36 = vpop.f32.mrb[10].mxu1 }
 0x1e8   :  { %v5833_v35 = vadd.f32 %v3168_v34, %v2716_v33  ;;  %v3170_v37 = vpop.f32.mrb[10].mxu0  ;;  %v2720_v40 = vpop.f32.mrb[11].mxu1 }
 0x1e9   :  { %v3228_v38 = vadd.f32 %v5831_v32, %v3227_v28  ;;  %v5836_v39 = vadd.f32 %v3170_v37, %v2718_v36  ;;  %v3172_v41 = vpop.f32.mrb[11].mxu0 }
 0x1ea   :  { %v3249_v42 = vadd.f32 %v5833_v35, %v3248_v29  ;;  %v5839_v43 = vadd.f32 %v3172_v41, %v2720_v40 }
 0x1eb   :  { %v3229_v44 = vadd.f32 %v5836_v39, %v3228_v38 }
 0x1ec   :  { %v3250_v45 = vadd.f32 %v5839_v43, %v3249_v42 }
 0x1ed   :  { %v2724_v46 = vpop.f32.mrb[12].mxu1 }
 0x1ee   :  { %v3176_v47 = vpop.f32.mrb[12].mxu0  ;;  %v2726_v49 = vpop.f32.mrb[13].mxu1 }
 0x1ef   :  { %v5843_v48 = vadd.f32 %v3176_v47, %v2724_v46  ;;  %v3178_v50 = vpop.f32.mrb[13].mxu0  ;;  %v2728_v52 = vpop.f32.mrb[14].mxu1 }
 0x1f0   :  { %v5845_v51 = vadd.f32 %v3178_v50, %v2726_v49  ;;  %v3180_v53 = vpop.f32.mrb[14].mxu0  ;;  %v2730_v56 = vpop.f32.mrb[15].mxu1 }
 0x1f1   :  { %v3230_v54 = vadd.f32 %v5843_v48, %v3229_v44  ;;  %v5848_v55 = vadd.f32 %v3180_v53, %v2728_v52  ;;  %v3182_v57 = vpop.f32.mrb[15].mxu0 }
 0x1f2   :  { %v3251_v58 = vadd.f32 %v5845_v51, %v3250_v45  ;;  %v5851_v59 = vadd.f32 %v3182_v57, %v2730_v56 }
 0x1f3   :  { %v3231_v60 = vadd.f32 %v5848_v55, %v3230_v54 }
 0x1f4   :  { %v3252_v61 = vadd.f32 %v5851_v59, %v3251_v58 }
 0x1f5   :  { %v2734_v62 = vpop.f32.mrb[16].mxu1 }
 0x1f6   :  { %v3186_v63 = vpop.f32.mrb[16].mxu0  ;;  %v2736_v1 = vpop.f32.mrb[17].mxu1 }
 0x1f7   :  { %v5855_v0 = vadd.f32 %v3186_v63, %v2734_v62  ;;  %v3188_v3 = vpop.f32.mrb[17].mxu0  ;;  %v2738_v6 = vpop.f32.mrb[18].mxu1 }
 0x1f8   :  { %v5857_v4 = vadd.f32 %v3188_v3, %v2736_v1  ;;  %v3190_v7 = vpop.f32.mrb[18].mxu0  ;;  %v2740_v12 = vpop.f32.mrb[19].mxu1 }
 0x1f9   :  { %v3232_v9 = vadd.f32 %v5855_v0, %v3231_v60  ;;  %v5860_v10 = vadd.f32 %v3190_v7, %v2738_v6  ;;  %v3192_v13 = vpop.f32.mrb[19].mxu0 }
 0x1fa   :  { %v3253_v14 = vadd.f32 %v5857_v4, %v3252_v61  ;;  %v5863_v15 = vadd.f32 %v3192_v13, %v2740_v12 }
 0x1fb   :  { %v3233_v17 = vadd.f32 %v5860_v10, %v3232_v9 }
 0x1fc   :  { %v3254_v18 = vadd.f32 %v5863_v15, %v3253_v14 }
 0x1fd   :  { %v2744_v20 = vpop.f32.mrb[20].mxu1 }
 0x1fe   :  { %v3196_v21 = vpop.f32.mrb[20].mxu0  ;;  %v2746_v24 = vpop.f32.mrb[21].mxu1 }
 0x1ff   :  { %v5867_v22 = vadd.f32 %v3196_v21, %v2744_v20  ;;  %v3198_v25 = vpop.f32.mrb[21].mxu0  ;;  %v2748_v28 = vpop.f32.mrb[22].mxu1 }
 0x200   :  { %v5869_v26 = vadd.f32 %v3198_v25, %v2746_v24  ;;  %v3200_v29 = vpop.f32.mrb[22].mxu0  ;;  %v2750_v33 = vpop.f32.mrb[23].mxu1 }
 0x201   :  { %v3234_v30 = vadd.f32 %v5867_v22, %v3233_v17  ;;  %v5872_v31 = vadd.f32 %v3200_v29, %v2748_v28  ;;  %v3202_v34 = vpop.f32.mrb[23].mxu0 }
 0x202   :  { %v3255_v36 = vadd.f32 %v5869_v26, %v3254_v18  ;;  %v5875_v37 = vadd.f32 %v3202_v34, %v2750_v33 }
 0x203   :  { %v3235_v38 = vadd.f32 %v5872_v31, %v3234_v30 }
 0x204   :  { %v3256_v40 = vadd.f32 %v5875_v37, %v3255_v36 }
 0x205   :  { %v2754_v41 = vpop.f32.mrb[24].mxu1 }
 0x206   :  { %v3206_v42 = vpop.f32.mrb[24].mxu0  ;;  %v2756_v45 = vpop.f32.mrb[25].mxu1 }
 0x207   :  { %v4042_v44 = vadd.f32 %v3206_v42, %v2754_v41  ;;  %v3208_v46 = vpop.f32.mrb[25].mxu0  ;;  %v2758_v49 = vpop.f32.mrb[26].mxu1 }
 0x208   :  { %v5879_v47 = vadd.f32 %v3208_v46, %v2756_v45  ;;  %v3210_v50 = vpop.f32.mrb[26].mxu0  ;;  %v2760_v54 = vpop.f32.mrb[27].mxu1 }
 0x209   :  { %v3236_v52 = vadd.f32 %v4042_v44, %v3235_v38  ;;  %v4044_v53 = vadd.f32 %v3210_v50, %v2758_v49  ;;  %v3212_v56 = vpop.f32.mrb[27].mxu0 }
 0x20a   :  { %v3257_v57 = vadd.f32 %v5879_v47, %v3256_v40  ;;  %v5882_v58 = vadd.f32 %v3212_v56, %v2760_v54 }
 0x20b   :  { %v3237_v60 = vadd.f32 %v4044_v53, %v3236_v52 }
 0x20c   :  { %v3258_v61 = vadd.f32 %v5882_v58, %v3257_v57 }
 0x20d   :  { %v2764_v62 = vpop.f32.mrb[28].mxu1 }
 0x20e   :  { %v3216_v63 = vpop.f32.mrb[28].mxu0  ;;  %v2766_v3 = vpop.f32.mrb[29].mxu1 }
 0x20f   :  { %v4046_v1 = vadd.f32 %v3216_v63, %v2764_v62  ;;  %v3218_v6 = vpop.f32.mrb[29].mxu0  ;;  %v2768_v9 = vpop.f32.mrb[30].mxu1 }
 0x210   :  { %v5885_v7 = vadd.f32 %v3218_v6, %v2766_v3  ;;  %v3220_v12 = vpop.f32.mrb[30].mxu0  ;;  %v2770_v17 = vpop.f32.mrb[31].mxu1 }
 0x211   :  { %v3238_v13 = vadd.f32 %v4046_v1, %v3237_v60  ;;  %v4048_v14 = vadd.f32 %v3220_v12, %v2768_v9  ;;  %v3222_v18 = vpop.f32.mrb[31].mxu0 }
 0x212   :  { %v3259_v20 = vadd.f32 %v5885_v7, %v3258_v61  ;;  %v4049_v21 = vadd.f32 %v3222_v18, %v2770_v17 }
 0x213   :  { %v3239_v24 = vadd.f32 %v4048_v14, %v3238_v13 }
 0x214   :  { %v3260_v25 = vadd.f32 %v4049_v21, %v3259_v20 }
 0x215   :  { %v3240_v28 = vrot.slane %v3239_v24, 4 }
 0x216   :  { %v3261_v29 = vrot.slane %v3260_v25, 4 }
 0x217   :  { %v3241_v30 = vadd.f32 %v3240_v28, %v3239_v24 }
 0x218   :  { %v3262_v33 = vadd.f32 %v3261_v29, %v3260_v25 }
 0x219   :  { %v3242_v34 = vrot.slane %v3241_v30, 2 }
 0x21a   :  { %v3263_v36 = vrot.slane %v3262_v33, 2 }
 0x21b   :  { %v3243_v38 = vadd.f32 %v3242_v34, %v3241_v30 }
 0x21c   :  { %v3264_v40 = vadd.f32 %v3263_v36, %v3262_v33 }
 0x21d   :  { %v3244_v41 = vrot.slane %v3243_v38, 1 }
 0x21e   :  { %v3265_v42 = vrot.slane %v3264_v40, 1 }
 0x21f   :  { %v3245_v45 = vadd.f32 %v3244_v41, %v3243_v38 }
 0x220   :  { %v3266_v49 = vadd.f32 %v3265_v42, %v3264_v40 }
 0x221   :  { %v3268_v46 = vmul.f32 0.0078125, %v3245_v45 }
 0x222   :  { %v3269_v63 = vmul.f32 0.0078125, %v3266_v49 }
 0x223   :  { %v5889_v50 = vsub.f32 %v5807_v2, %v3268_v46  ;;  %v5892_v52 = vsub.f32 %v5811_v8, %v3268_v46  ;;  %v5895_v54 = vsub.f32 %v5819_v16, %v3268_v46  ;;  %v5898_v56 = vsub.f32 %v5824_v23, %v3268_v46 }
 0x224   :  { %v5901_v57 = vsub.f32 %v5831_v32, %v3268_v46  ;;  %v5904_v60 = vsub.f32 %v5836_v39, %v3268_v46  ;;  %v5907_v61 = vsub.f32 %v5843_v48, %v3268_v46  ;;  %v5910_v2 = vsub.f32 %v5848_v55, %v3268_v46 }
 0x225   :  { %v5913_v8 = vsub.f32 %v5855_v0, %v3268_v46  ;;  %v5916_v16 = vsub.f32 %v5860_v10, %v3268_v46  ;;  %v5919_v23 = vsub.f32 %v5867_v22, %v3268_v46  ;;  %v5922_v32 = vsub.f32 %v5872_v31, %v3268_v46 }
 0x226   :  { %v5924_v39 = vsub.f32 %v4042_v44, %v3268_v46  ;;  %v5926_v62 = vsub.f32 %v4044_v53, %v3268_v46  ;;  %v5928_v48 = vsub.f32 %v4046_v1, %v3268_v46  ;;  %v5930_v55 = vsub.f32 %v4048_v14, %v3268_v46 }
 0x227   :  { %v3302_v0 = vmul.f32 %v5889_v50, %v5889_v50  ;;  %v3304_v10 = vmul.f32 %v5892_v52, %v5892_v52  ;;  %v3306_v22 = vmul.f32 %v5895_v54, %v5895_v54  ;;  %v3308_v31 = vmul.f32 %v5898_v56, %v5898_v56 }
 0x228   :  { %v5941_v53 = vsub.f32 %v5809_v5, %v3269_v63  ;;  %v5944_v1 = vsub.f32 %v5813_v11, %v3269_v63  ;;  %v5947_v3 = vsub.f32 %v5821_v19, %v3269_v63  ;;  %v5950_v6 = vsub.f32 %v5827_v27, %v3269_v63 }
 0x229   :  { %v3334_v44 = vadd.f32 %v3304_v10, %v3302_v0  ;;  %v5953_v9 = vsub.f32 %v5833_v35, %v3269_v63  ;;  %v5956_v12 = vsub.f32 %v5839_v43, %v3269_v63  ;;  %v5959_v13 = vsub.f32 %v5845_v51, %v3269_v63 }
 0x22a   :  { %v5962_v14 = vsub.f32 %v5851_v59, %v3269_v63  ;;  %v5965_v11 = vsub.f32 %v5857_v4, %v3269_v63  ;;  %v5968_v19 = vsub.f32 %v5863_v15, %v3269_v63  ;;  %v5971_v27 = vsub.f32 %v5869_v26, %v3269_v63 }
 0x22b   :  { %v3335_v5 = vadd.f32 %v3334_v44, %v3306_v22  ;;  %v5974_v35 = vsub.f32 %v5875_v37, %v3269_v63  ;;  %v5977_v43 = vsub.f32 %v5879_v47, %v3269_v63  ;;  %v5980_v51 = vsub.f32 %v5882_v58, %v3269_v63 }
 0x22c   :  { %v3310_v59 = vmul.f32 %v5901_v57, %v5901_v57  ;;  %v5985_v17 = vsub.f32 %v5885_v7, %v3269_v63  ;;  %v5987_v15 = vsub.f32 %v4049_v21, %v3269_v63  ;;  %v3303_v26 = vmul.f32 %v5941_v53, %v5941_v53 }
 0x22d   :  { %v3336_v4 = vadd.f32 %v3335_v5, %v3308_v31  ;;  %v3305_v37 = vmul.f32 %v5944_v1, %v5944_v1  ;;  %v3312_v47 = vmul.f32 %v5904_v60, %v5904_v60  ;;  %v3314_v18 = vmul.f32 %v5907_v61, %v5907_v61 }
 0x22e   :  { %v3307_v7 = vmul.f32 %v5947_v3, %v5947_v3  ;;  %v3316_v21 = vmul.f32 %v5910_v2, %v5910_v2  ;;  %v3309_v28 = vmul.f32 %v5950_v6, %v5950_v6  ;;  %v3318_v30 = vmul.f32 %v5913_v8, %v5913_v8 }
 0x22f   :  { %v3337_v58 = vadd.f32 %v3336_v4, %v3310_v59  ;;  %v3355_v24 = vadd.f32 %v3305_v37, %v3303_v26  ;;  %v3311_v34 = vmul.f32 %v5953_v9, %v5953_v9  ;;  %v3320_v38 = vmul.f32 %v5916_v16, %v5916_v16 }
 0x230   :  { %v3313_v41 = vmul.f32 %v5956_v12, %v5956_v12  ;;  %v3322_v45 = vmul.f32 %v5919_v23, %v5919_v23  ;;  %v3315_v49 = vmul.f32 %v5959_v13, %v5959_v13  ;;  %v3324_v10 = vmul.f32 %v5922_v32, %v5922_v32 }
 0x231   :  { %v3338_v20 = vadd.f32 %v3337_v58, %v3312_v47  ;;  %v3356_v29 = vadd.f32 %v3355_v24, %v3307_v7  ;;  %v3317_v22 = vmul.f32 %v5962_v14, %v5962_v14  ;;  %v3326_v44 = vmul.f32 %v5924_v39, %v5924_v39 }
 0x232   :  { %v3319_v59 = vmul.f32 %v5965_v11, %v5965_v11  ;;  %v3328_v26 = vmul.f32 %v5926_v62, %v5926_v62  ;;  %v3321_v47 = vmul.f32 %v5968_v19, %v5968_v19  ;;  %v3323_v7 = vmul.f32 %v5971_v27, %v5971_v27 }
 0x233   :  { %v3339_v25 = vadd.f32 %v3338_v20, %v3314_v18  ;;  %v3357_v36 = vadd.f32 %v3356_v29, %v3309_v28  ;;  %v3330_v18 = vmul.f32 %v5928_v48, %v5928_v48  ;;  %v3325_v28 = vmul.f32 %v5974_v35, %v5974_v35 }
 0x235   :  { %v3340_v33 = vadd.f32 %v3339_v25, %v3316_v21  ;;  %v3358_v42 = vadd.f32 %v3357_v36, %v3311_v34  ;;  %v3332_v21 = vmul.f32 %v5930_v55, %v5930_v55 }
 0x237   :  { %v3341_v40 = vadd.f32 %v3340_v33, %v3318_v30  ;;  %v3359_v0 = vadd.f32 %v3358_v42, %v3313_v41  ;;  %v3327_v33 = vmul.f32 %v5977_v43, %v5977_v43  ;;  %v3331_v42 = vmul.f32 %v5985_v17, %v5985_v17 }
 0x239   :  { %v3342_v46 = vadd.f32 %v3341_v40, %v3320_v38  ;;  %v3360_v31 = vadd.f32 %v3359_v0, %v3315_v49  ;;  %v3329_v38 = vmul.f32 %v5980_v51, %v5980_v51  ;;  %v3333_v49 = vmul.f32 %v5987_v15, %v5987_v15 }
 0x23b   :  { %v3343_v63 = vadd.f32 %v3342_v46, %v3322_v45  ;;  %v3361_v4 = vadd.f32 %v3360_v31, %v3317_v22 }
 0x23d   :  { %v3344_v5 = vadd.f32 %v3343_v63, %v3324_v10  ;;  %v3362_v58 = vadd.f32 %v3361_v4, %v3319_v59  ;;  %v3416_v4 = vlaneseq }
 0x23f   :  { %v3345_v37 = vadd.f32 %v3344_v5, %v3326_v44  ;;  %v3363_v24 = vadd.f32 %v3362_v58, %v3321_v47  ;;  %v3417_v58 = vshrl.u32 %v3416_v4, 7 }
 0x241   :  { %v3346_v20 = vadd.f32 %v3345_v37, %v3328_v26  ;;  %v3364_v29 = vadd.f32 %v3363_v24, %v3323_v7  ;;  %v3418_v7 = vsub.s32 0, %v3417_v58 }
 0x243   :  { %v3347_v25 = vadd.f32 %v3346_v20, %v3330_v18  ;;  %v3365_v34 = vadd.f32 %v3364_v29, %v3325_v28  ;;  %v3458_v28 = vld [vmem:[%s6266_s3] sm:$0x3] }
 0x245   :  { %v3348_v30 = vadd.f32 %v3347_v25, %v3332_v21  ;;  %v3366_v40 = vadd.f32 %v3365_v34, %v3327_v33  ;;  %v3414_v21 = vld [vmem:[%s6265_s2] sm:$0x3]  ;;  %v3422_v25 = vsub.s32 1, %v3417_v58  ;;  %v3463_v34 = vrot.slane %v3458_v28, %v3418_v7 }
 0x247   :  { %v3349_v36 = vrot.slane %v3348_v30, 4  ;;  %v3367_v45 = vadd.f32 %v3366_v40, %v3329_v38  ;;  %v6051_v38 = vrot.slane %v3458_v28, %v3422_v25 }
 0x249   :  { %v3350_v41 = vadd.f32 %v3349_v36, %v3348_v30  ;;  %v3368_v0 = vadd.f32 %v3367_v45, %v3331_v42  ;;  %v3419_v30 = vrot.slane %v3414_v21, %v3418_v7  ;;  %v6049_v36 = vrot.slane %v3414_v21, %v3422_v25 }
 0x24b   :  { %v3351_v46 = vrot.slane %v3350_v41, 2  ;;  %v3369_v63 = vadd.f32 %v3368_v0, %v3333_v49 }
 0x24d   :  { %v3352_v10 = vadd.f32 %v3351_v46, %v3350_v41  ;;  %v3370_v31 = vrot.slane %v3369_v63, 4 }
 0x24f   :  { %v3353_v22 = vrot.slane %v3352_v10, 1  ;;  %v3371_v5 = vadd.f32 %v3370_v31, %v3369_v63 }
 0x251   :  { %v3354_v44 = vadd.f32 %v3353_v22, %v3352_v10  ;;  %v3372_v26 = vrot.slane %v3371_v5, 2 }
 0x253   :  { %v3376_v59 = vmul.f32 0.0078125, %v3354_v44  ;;  %v3373_v47 = vadd.f32 %v3372_v26, %v3371_v5 }
 0x255   :  { %v3378_v37 = vadd.f32 1e-05, %v3376_v59  ;;  %v3374_v18 = vrot.slane %v3373_v47, 1 }
 0x257   :  { %4626 = vrsqrt.f32 %v3378_v37  ;;  %v3375_v20 = vadd.f32 %v3374_v18, %v3373_v47 }
 0x259   :  { %v3377_v24 = vmul.f32 0.0078125, %v3375_v20 }
 0x25b   :  { %v3379_v29 = vadd.f32 1e-05, %v3377_v24 }
 0x25d   :  { %4628 = vrsqrt.f32 %v3379_v29 }
 0x261   :  { %v4627_v33 = vpop.eup %4626 }
 0x262   :  { %v3382_v40 = vmul.f32 %v4627_v33, %v5889_v50  ;;  %v3384_v41 = vmul.f32 %v4627_v33, %v5892_v52  ;;  %v3386_v42 = vmul.f32 %v4627_v33, %v5895_v54  ;;  %v3388_v45 = vmul.f32 %v4627_v33, %v5898_v56 }
 0x263   :  { %v3390_v46 = vmul.f32 %v4627_v33, %v5901_v57  ;;  %v3392_v49 = vmul.f32 %v4627_v33, %v5904_v60  ;;  %v3394_v0 = vmul.f32 %v4627_v33, %v5907_v61  ;;  %v3396_v10 = vmul.f32 %v4627_v33, %v5910_v2 }
 0x264   :  { %v3398_v63 = vmul.f32 %v4627_v33, %v5913_v8  ;;  %v3400_v22 = vmul.f32 %v4627_v33, %v5916_v16  ;;  %v3402_v50 = vmul.f32 %v4627_v33, %v5919_v23  ;;  %v3404_v52 = vmul.f32 %v4627_v33, %v5922_v32 }
 0x265   :  { %v3406_v54 = vmul.f32 %v4627_v33, %v5924_v39  ;;  %v3408_v56 = vmul.f32 %v4627_v33, %v5926_v62  ;;  %v3410_v57 = vmul.f32 %v4627_v33, %v5928_v48  ;;  %v3412_v60 = vmul.f32 %v4627_v33, %v5930_v55 }
 0x266   :  { %v3426_v31 = vmul.f32 %v3419_v30, %v3382_v40  ;;  %v3428_v61 = vmul.f32 %v3419_v30, %v3384_v41  ;;  %v3430_v44 = vmul.f32 %v3419_v30, %v3386_v42  ;;  %v3432_v2 = vmul.f32 %v3419_v30, %v3388_v45 }
 0x267   :  { %v3434_v5 = vmul.f32 %v3419_v30, %v3390_v46  ;;  %v3436_v8 = vmul.f32 %v3419_v30, %v3392_v49  ;;  %v3438_v59 = vmul.f32 %v3419_v30, %v3394_v0  ;;  %v3440_v16 = vmul.f32 %v3419_v30, %v3396_v10  ;;  %v6069_v20 = vpop.eup %4628 }
 0x268   :  { %v3442_v4 = vmul.f32 %v3419_v30, %v3398_v63  ;;  %v3444_v23 = vmul.f32 %v3419_v30, %v3400_v22  ;;  %v3446_v26 = vmul.f32 %v3419_v30, %v3402_v50  ;;  %v3448_v32 = vmul.f32 %v3419_v30, %v3404_v52 }
 0x269   :  { %v3450_v37 = vmul.f32 %v3419_v30, %v3406_v54  ;;  %v3452_v39 = vmul.f32 %v3419_v30, %v3408_v56  ;;  %v3454_v47 = vmul.f32 %v3419_v30, %v3410_v57  ;;  %v3456_v62 = vmul.f32 %v3419_v30, %v3412_v60 }
 0x26a   :  { %v3470_v58 = vadd.f32 %v3463_v34, %v3426_v31  ;;  %v3472_v48 = vadd.f32 %v3463_v34, %v3428_v61  ;;  %v3474_v18 = vadd.f32 %v3463_v34, %v3430_v44  ;;  %v3476_v55 = vadd.f32 %v3463_v34, %v3432_v2 }
 0x26b   :  { %v3478_v7 = vadd.f32 %v3463_v34, %v3434_v5  ;;  %v3480_v24 = vadd.f32 %v3463_v34, %v3436_v8  ;;  %v3482_v21 = vadd.f32 %v3463_v34, %v3438_v59  ;;  %v3484_v25 = vadd.f32 %v3463_v34, %v3440_v16 }
 0x26c   :  { %v3486_v28 = vadd.f32 %v3463_v34, %v3442_v4  ;;  %v3488_v29 = vadd.f32 %v3463_v34, %v3444_v23  ;;  %v3490_v33 = vadd.f32 %v3463_v34, %v3446_v26  ;;  %v3492_v40 = vadd.f32 %v3463_v34, %v3448_v32 }
 0x26d   :  { %v3494_v41 = vadd.f32 %v3463_v34, %v3450_v37  ;;  %v3496_v42 = vadd.f32 %v3463_v34, %v3452_v39  ;;  %v3498_v45 = vadd.f32 %v3463_v34, %v3454_v47  ;;  %v3500_v46 = vadd.f32 %v3463_v34, %v3456_v62 }
 0x26e   :  { %vm3502_vm0 = vcmp.ge.f32.partialorder %v3470_v58, 0.0  ;;  %vm3504_vm1 = vcmp.ge.f32.partialorder %v3472_v48, 0.0  ;;  %vm3506_vm2 = vcmp.ge.f32.partialorder %v3474_v18, 0.0  ;;  %vm3508_vm3 = vcmp.ge.f32.partialorder %v3476_v55, 0.0 }
 0x26f   :  { %vm3510_vm4 = vcmp.ge.f32.partialorder %v3478_v7, 0.0  ;;  %vm3512_vm5 = vcmp.ge.f32.partialorder %v3480_v24, 0.0  ;;  %vm3514_vm6 = vcmp.ge.f32.partialorder %v3482_v21, 0.0  ;;  %vm3516_vm7 = vcmp.ge.f32.partialorder %v3484_v25, 0.0 }
 0x270   :  { %vm3518_vm8 = vcmp.ge.f32.partialorder %v3486_v28, 0.0  ;;  %vm3520_vm9 = vcmp.ge.f32.partialorder %v3488_v29, 0.0  ;;  %vm3522_vm10 = vcmp.ge.f32.partialorder %v3490_v33, 0.0  ;;  %vm3524_vm11 = vcmp.ge.f32.partialorder %v3492_v40, 0.0 }
 0x271   :  { %vm3526_vm12 = vcmp.ge.f32.partialorder %v3494_v41, 0.0  ;;  %vm3528_vm13 = vcmp.ge.f32.partialorder %v3496_v42, 0.0  ;;  %vm3530_vm14 = vcmp.ge.f32.partialorder %v3498_v45, 0.0  ;;  %vm3532_vm15 = vcmp.ge.f32.partialorder %v3500_v46, 0.0 }
 0x272   :  { %v3534_v30 = vmul.f32 0.2, %v3470_v58  ;;  %v3536_v49 = vmul.f32 0.2, %v3472_v48  ;;  %v3538_v0 = vmul.f32 0.2, %v3474_v18  ;;  %v3383_v34 = vmul.f32 %v6069_v20, %v5941_v53 }
 0x273   :  { %v3540_v10 = vmul.f32 0.2, %v3476_v55  ;;  %v3542_v63 = vmul.f32 0.2, %v3478_v7  ;;  %v3544_v22 = vmul.f32 0.2, %v3480_v24  ;;  %v3385_v50 = vmul.f32 %v6069_v20, %v5944_v1 }
 0x274   :  { %v3546_v52 = vmul.f32 0.2, %v3482_v21  ;;  %v3548_v54 = vmul.f32 0.2, %v3484_v25  ;;  %v3550_v56 = vmul.f32 0.2, %v3486_v28  ;;  %v3566_v57 = vsel %vm3502_vm0, %v3470_v58, %v3534_v30 }
 0x275   :  { %v3552_v60 = vmul.f32 0.2, %v3488_v29  ;;  %v3554_v31 = vmul.f32 0.2, %v3490_v33  ;;  %v3556_v61 = vmul.f32 0.2, %v3492_v40  ;;  %v3568_v44 = vsel %vm3504_vm1, %v3472_v48, %v3536_v49  ;;  %3598 = vst [vmem:[%s6267_s4] sm:$0xff] %v3566_v57 }
 0x276   :  { %v3558_v53 = vmul.f32 0.2, %v3494_v41  ;;  %v3560_v2 = vmul.f32 0.2, %v3496_v42  ;;  %v3562_v5 = vmul.f32 0.2, %v3498_v45  ;;  %v3570_v8 = vsel %vm3506_vm2, %v3474_v18, %v3538_v0 }
 0x277   :  { %3600 = vst [vmem:[%s6267_s4 + $0x10] sm:$0xff] %v3568_v44  ;;  %v3564_v1 = vmul.f32 0.2, %v3500_v46  ;;  %v3572_v59 = vsel %vm3508_vm3, %v3476_v55, %v3540_v10  ;;  %v3574_v16 = vsel %vm3510_vm4, %v3478_v7, %v3542_v63  ;;  %v3576_v4 = vsel %vm3512_vm5, %v3480_v24, %v3544_v22  ;;  %3602 = vst [vmem:[%s6267_s4 + $0x20] sm:$0xff] %v3570_v8 }
 0x278   :  { %v3578_v23 = vsel %vm3514_vm6, %v3482_v21, %v3546_v52  ;;  %v3580_v26 = vsel %vm3516_vm7, %v3484_v25, %v3548_v54  ;;  %v3582_v32 = vsel %vm3518_vm8, %v3486_v28, %v3550_v56  ;;  %v3584_v37 = vsel %vm3520_vm9, %v3488_v29, %v3552_v60  ;;  %3604 = vst [vmem:[%s6267_s4 + $0x30] sm:$0xff] %v3572_v59 }
 0x279   :  { %3606 = vst [vmem:[%s6267_s4 + $0x40] sm:$0xff] %v3574_v16  ;;  %3608 = vst [vmem:[%s6267_s4 + $0x50] sm:$0xff] %v3576_v4  ;;  %v3586_v39 = vsel %vm3522_vm10, %v3490_v33, %v3554_v31  ;;  %v3588_v47 = vsel %vm3524_vm11, %v3492_v40, %v3556_v61  ;;  %v3590_v62 = vsel %vm3526_vm12, %v3494_v41, %v3558_v53 }
 0x27a   :  { %v3592_v58 = vsel %vm3528_vm13, %v3496_v42, %v3560_v2  ;;  %3610 = vst [vmem:[%s6267_s4 + $0x60] sm:$0xff] %v3578_v23  ;;  %3612 = vst [vmem:[%s6267_s4 + $0x70] sm:$0xff] %v3580_v26  ;;  %v3594_v48 = vsel %vm3530_vm14, %v3498_v45, %v3562_v5  ;;  %v3596_v18 = vsel %vm3532_vm15, %v3500_v46, %v3564_v1 }
 0x27b   :  { %3614 = vst [vmem:[%s6267_s4 + $0x80] sm:$0xff] %v3582_v32  ;;  %3616 = vst [vmem:[%s6267_s4 + $0x90] sm:$0xff] %v3584_v37  ;;  %v3387_v55 = vmul.f32 %v6069_v20, %v5947_v3  ;;  %v3389_v7 = vmul.f32 %v6069_v20, %v5950_v6  ;;  %v3391_v24 = vmul.f32 %v6069_v20, %v5953_v9 }
 0x27c   :  { %3618 = vst [vmem:[%s6267_s4 + $0xa0] sm:$0xff] %v3586_v39  ;;  %3620 = vst [vmem:[%s6267_s4 + $0xb0] sm:$0xff] %v3588_v47  ;;  %v3393_v21 = vmul.f32 %v6069_v20, %v5956_v12  ;;  %v3395_v3 = vmul.f32 %v6069_v20, %v5959_v13  ;;  %v3397_v6 = vmul.f32 %v6069_v20, %v5962_v14 }
 0x27d   :  { %3622 = vst [vmem:[%s6267_s4 + $0xc0] sm:$0xff] %v3590_v62  ;;  %3624 = vst [vmem:[%s6267_s4 + $0xd0] sm:$0xff] %v3592_v58  ;;  %v3399_v25 = vmul.f32 %v6069_v20, %v5965_v11  ;;  %v3401_v28 = vmul.f32 %v6069_v20, %v5968_v19  ;;  %v3403_v29 = vmul.f32 %v6069_v20, %v5971_v27 }
 0x27e   :  { %3626 = vst [vmem:[%s6267_s4 + $0xe0] sm:$0xff] %v3594_v48  ;;  %3628 = vst [vmem:[%s6267_s4 + $0xf0] sm:$0xff] %v3596_v18  ;;  %v3405_v9 = vmul.f32 %v6069_v20, %v5974_v35  ;;  %v3407_v12 = vmul.f32 %v6069_v20, %v5977_v43  ;;  %v3409_v13 = vmul.f32 %v6069_v20, %v5980_v51 }
 0x27f   :  { %v3411_v14 = vmul.f32 %v6069_v20, %v5985_v17  ;;  %v3413_v11 = vmul.f32 %v6069_v20, %v5987_v15  ;;  %v3427_v19 = vmul.f32 %v6049_v36, %v3383_v34  ;;  %v3429_v33 = vmul.f32 %v6049_v36, %v3385_v50 }
 0x280   :  { %v3431_v27 = vmul.f32 %v6049_v36, %v3387_v55  ;;  %v3433_v35 = vmul.f32 %v6049_v36, %v3389_v7  ;;  %v3435_v40 = vmul.f32 %v6049_v36, %v3391_v24  ;;  %v3437_v43 = vmul.f32 %v6049_v36, %v3393_v21 }
 0x281   :  { %v3439_v51 = vmul.f32 %v6049_v36, %v3395_v3  ;;  %v3441_v41 = vmul.f32 %v6049_v36, %v3397_v6  ;;  %v3443_v17 = vmul.f32 %v6049_v36, %v3399_v25  ;;  %v3445_v15 = vmul.f32 %v6049_v36, %v3401_v28 }
 0x282   :  { %v3447_v20 = vmul.f32 %v6049_v36, %v3403_v29  ;;  %v3449_v42 = vmul.f32 %v6049_v36, %v3405_v9  ;;  %v3451_v45 = vmul.f32 %v6049_v36, %v3407_v12  ;;  %v3453_v46 = vmul.f32 %v6049_v36, %v3409_v13 }
 0x283   :  { %v3455_v30 = vmul.f32 %v6049_v36, %v3411_v14  ;;  %v3457_v49 = vmul.f32 %v6049_v36, %v3413_v11  ;;  %v3471_v0 = vadd.f32 %v6051_v38, %v3427_v19  ;;  %v3473_v34 = vadd.f32 %v6051_v38, %v3429_v33 }
 0x284   :  { %v3475_v10 = vadd.f32 %v6051_v38, %v3431_v27  ;;  %v3477_v63 = vadd.f32 %v6051_v38, %v3433_v35  ;;  %v3479_v22 = vadd.f32 %v6051_v38, %v3435_v40  ;;  %v3481_v50 = vadd.f32 %v6051_v38, %v3437_v43 }
 0x285   :  { %v3483_v52 = vadd.f32 %v6051_v38, %v3439_v51  ;;  %v3485_v54 = vadd.f32 %v6051_v38, %v3441_v41  ;;  %v3487_v56 = vadd.f32 %v6051_v38, %v3443_v17  ;;  %v3489_v36 = vadd.f32 %v6051_v38, %v3445_v15 }
 0x286   :  { %v3491_v57 = vadd.f32 %v6051_v38, %v3447_v20  ;;  %v3493_v60 = vadd.f32 %v6051_v38, %v3449_v42  ;;  %v3495_v31 = vadd.f32 %v6051_v38, %v3451_v45  ;;  %v3497_v61 = vadd.f32 %v6051_v38, %v3453_v46 }
 0x287   :  { %v3499_v44 = vadd.f32 %v6051_v38, %v3455_v30  ;;  %v3501_v53 = vadd.f32 %v6051_v38, %v3457_v49  ;;  %vm3503_vm0 = vcmp.ge.f32.partialorder %v3471_v0, 0.0  ;;  %vm3505_vm1 = vcmp.ge.f32.partialorder %v3473_v34, 0.0 }
 0x288   :  { %vm3507_vm2 = vcmp.ge.f32.partialorder %v3475_v10, 0.0  ;;  %vm3509_vm3 = vcmp.ge.f32.partialorder %v3477_v63, 0.0  ;;  %vm3511_vm4 = vcmp.ge.f32.partialorder %v3479_v22, 0.0  ;;  %vm3513_vm5 = vcmp.ge.f32.partialorder %v3481_v50, 0.0 }
 0x289   :  { %vm3515_vm6 = vcmp.ge.f32.partialorder %v3483_v52, 0.0  ;;  %vm3517_vm7 = vcmp.ge.f32.partialorder %v3485_v54, 0.0  ;;  %vm3519_vm8 = vcmp.ge.f32.partialorder %v3487_v56, 0.0  ;;  %vm3521_vm9 = vcmp.ge.f32.partialorder %v3489_v36, 0.0 }
 0x28a   :  { %vm3523_vm10 = vcmp.ge.f32.partialorder %v3491_v57, 0.0  ;;  %vm3525_vm11 = vcmp.ge.f32.partialorder %v3493_v60, 0.0  ;;  %vm3527_vm12 = vcmp.ge.f32.partialorder %v3495_v31, 0.0  ;;  %vm3529_vm13 = vcmp.ge.f32.partialorder %v3497_v61, 0.0 }
 0x28b   :  { %vm3531_vm14 = vcmp.ge.f32.partialorder %v3499_v44, 0.0  ;;  %vm3533_vm15 = vcmp.ge.f32.partialorder %v3501_v53, 0.0  ;;  %v3535_v2 = vmul.f32 0.2, %v3471_v0  ;;  %v3537_v5 = vmul.f32 0.2, %v3473_v34 }
 0x28c   :  { %v3539_v8 = vmul.f32 0.2, %v3475_v10  ;;  %v3541_v38 = vmul.f32 0.2, %v3477_v63  ;;  %v3543_v1 = vmul.f32 0.2, %v3479_v22 }
 0x28d   :  { %v3545_v59 = vmul.f32 0.2, %v3481_v50  ;;  %v3547_v16 = vmul.f32 0.2, %v3483_v52  ;;  %v3549_v4 = vmul.f32 0.2, %v3485_v54  ;;  %v3567_v26 = vsel %vm3503_vm0, %v3471_v0, %v3535_v2 }
 0x28e   :  { %v3551_v23 = vmul.f32 0.2, %v3487_v56  ;;  %v3553_v32 = vmul.f32 0.2, %v3489_v36  ;;  %v3555_v37 = vmul.f32 0.2, %v3491_v57  ;;  %v3569_v47 = vsel %vm3505_vm1, %v3473_v34, %v3537_v5 }
 0x28f   :  { %v3557_v39 = vmul.f32 0.2, %v3493_v60  ;;  %3599 = vst [vmem:[%s6267_s4 + $0x8] sm:$0xff] %v3567_v26  ;;  %v3559_v62 = vmul.f32 0.2, %v3495_v31  ;;  %v3571_v18 = vsel %vm3507_vm2, %v3475_v10, %v3539_v8  ;;  %3601 = vst [vmem:[%s6267_s4 + $0x18] sm:$0xff] %v3569_v47  ;;  %v3573_v7 = vsel %vm3509_vm3, %v3477_v63, %v3541_v38 }
 0x290   :  { %v3561_v58 = vmul.f32 0.2, %v3497_v61  ;;  %v3563_v48 = vmul.f32 0.2, %v3499_v44  ;;  %v3565_v55 = vmul.f32 0.2, %v3501_v53  ;;  %v3575_v24 = vsel %vm3511_vm4, %v3479_v22, %v3543_v1 }
 0x291   :  { %v3577_v21 = vsel %vm3513_vm5, %v3481_v50, %v3545_v59  ;;  %3603 = vst [vmem:[%s6267_s4 + $0x28] sm:$0xff] %v3571_v18  ;;  %v3579_v3 = vsel %vm3515_vm6, %v3483_v52, %v3547_v16  ;;  %v3581_v6 = vsel %vm3517_vm7, %v3485_v54, %v3549_v4  ;;  %v3583_v25 = vsel %vm3519_vm8, %v3487_v56, %v3551_v23 }
 0x292   :  { %v3585_v28 = vsel %vm3521_vm9, %v3489_v36, %v3553_v32  ;;  %3605 = vst [vmem:[%s6267_s4 + $0x38] sm:$0xff] %v3573_v7  ;;  %3607 = vst [vmem:[%s6267_s4 + $0x48] sm:$0xff] %v3575_v24  ;;  %v3587_v29 = vsel %vm3523_vm10, %v3491_v57, %v3555_v37  ;;  %v3589_v9 = vsel %vm3525_vm11, %v3493_v60, %v3557_v39 }
 0x293   :  { %3609 = vst [vmem:[%s6267_s4 + $0x58] sm:$0xff] %v3577_v21  ;;  %v3591_v12 = vsel %vm3527_vm12, %v3495_v31, %v3559_v62  ;;  %v3593_v13 = vsel %vm3529_vm13, %v3497_v61, %v3561_v58  ;;  %3611 = vst [vmem:[%s6267_s4 + $0x68] sm:$0xff] %v3579_v3  ;;  %v3595_v14 = vsel %vm3531_vm14, %v3499_v44, %v3563_v48 }
 0x294   :  { %3613 = vst [vmem:[%s6267_s4 + $0x78] sm:$0xff] %v3581_v6  ;;  %3615 = vst [vmem:[%s6267_s4 + $0x88] sm:$0xff] %v3583_v25  ;;  %v3597_v11 = vsel %vm3533_vm15, %v3501_v53, %v3565_v55 }
 0x295   :  { %3617 = vst [vmem:[%s6267_s4 + $0x98] sm:$0xff] %v3585_v28  ;;  %3619 = vst [vmem:[%s6267_s4 + $0xa8] sm:$0xff] %v3587_v29 }
 0x296   :  { %3621 = vst [vmem:[%s6267_s4 + $0xb8] sm:$0xff] %v3589_v9  ;;  %3623 = vst [vmem:[%s6267_s4 + $0xc8] sm:$0xff] %v3591_v12 }
 0x297   :  { %3625 = vst [vmem:[%s6267_s4 + $0xd8] sm:$0xff] %v3593_v13  ;;  %3627 = vst [vmem:[%s6267_s4 + $0xe8] sm:$0xff] %v3595_v14 }
 0x298   :  { %3629 = vst [vmem:[%s6267_s4 + $0xf8] sm:$0xff] %v3597_v11 }

// kernel: discriminator_forward.7
= control target key start
LH: loop header
LB: loop body
LE: loop exit
PB: predicated region body
PF: predicated region fallthrough
CT: control target
= control target key end

     0   :  { %s15282_s1 = inlined_call_operand.vmem [shape: bf16[4096,512], index: 1, kind: input, shape index: {}]   ;;  %s15283_s0 = inlined_call_operand.vmem [shape: bf16[32,4096], index: 0, kind: input, shape index: {}]   ;;  %s15284_s2 = inlined_call_operand.vmem [shape: f32[1,512], index: 2, kind: input, shape index: {}]   ;;  %s15285_s3 = inlined_call_operand.vmem [shape: f32[1,512], index: 3, kind: input, shape index: {}]   ;;  %s15286_s4 = inlined_call_operand.vmem [shape: f32[32,512], index: 4, kind: input, shape index: {}]   ;;  %s15287_s5 = inlined_call_operand.vmem [shape: f32[2,32], index: 5, kind: input, shape index: {}]   ;;  %s15288_s6 = inlined_call_operand.<no memory space> [shape: f32[1], index: 6, kind: input, shape index: {}]   ;;  %s15289_s7 = inlined_call_operand.vmem [shape: f32[2,1], index: 7, kind: output, shape index: {}]  }
   0x1   :  { %v10064_v0 = vld [vmem:[%s15282_s1 + $0x4] ss:$16 sps:$4 sm:$0xff]   ;;  %v10066_v1 = vld [vmem:[%s15282_s1 + $0xc] ss:$16 sps:$4 sm:$0xff]   ;;  %v10068_v2 = vld [vmem:[%s15282_s1] ss:$16 sps:$4 sm:$0xff]  }
   0x2   :  { %6555 = vmatprep.subr.bf16.mxu0 %v10064_v0  ;;  %v10069_v3 = vld [vmem:[%s15282_s1 + $0x8] ss:$16 sps:$4 sm:$0xff]   ;;  %7403 = vmatprep.subr.bf16.mxu1 %v10066_v1  ;;  %v10070_v4 = vld [vmem:[%s15282_s1 + $0x24] ss:$16 sps:$4 sm:$0xff]   ;;  %v10072_v5 = vld [vmem:[%s15282_s1 + $0x2c] ss:$16 sps:$4 sm:$0xff]  }
   0x3   :  { %6556 = vmatpush1.bf16.msra.mxu0 %v10068_v2  ;;  %7404 = vmatpush1.bf16.msra.mxu1 %v10069_v3  ;;  %v10074_v6 = vld [vmem:[%s15282_s1 + $0x20] ss:$16 sps:$4 sm:$0xff]   ;;  %v10075_v7 = vld [vmem:[%s15282_s1 + $0x28] ss:$16 sps:$4 sm:$0xff]   ;;  %v10076_v8 = vld [vmem:[%s15282_s1 + $0x44] ss:$16 sps:$4 sm:$0xff]  }
   0x4   :  { %6557 = vmatprep.subr.bf16.mxu0 %v10070_v4  ;;  %7405 = vmatprep.subr.bf16.mxu1 %v10072_v5  ;;  %v10078_v9 = vld [vmem:[%s15282_s1 + $0x4c] ss:$16 sps:$4 sm:$0xff]   ;;  %v10080_v10 = vld [vmem:[%s15282_s1 + $0x40] ss:$16 sps:$4 sm:$0xff]   ;;  %v10081_v11 = vld [vmem:[%s15282_s1 + $0x48] ss:$16 sps:$4 sm:$0xff]  }
   0x5   :  { %v10082_v12 = vld [vmem:[%s15282_s1 + $0x64] ss:$16 sps:$4 sm:$0xff]   ;;  %v10084_v13 = vld [vmem:[%s15282_s1 + $0x6c] ss:$16 sps:$4 sm:$0xff]   ;;  %v10086_v14 = vld [vmem:[%s15282_s1 + $0x60] ss:$16 sps:$4 sm:$0xff]  }
   0x6   :  { %v10087_v15 = vld [vmem:[%s15282_s1 + $0x68] ss:$16 sps:$4 sm:$0xff]   ;;  %v10088_v16 = vld [vmem:[%s15282_s1 + $0x84] ss:$16 sps:$4 sm:$0xff]   ;;  %v10090_v17 = vld [vmem:[%s15282_s1 + $0x8c] ss:$16 sps:$4 sm:$0xff]  }
   0x7   :  { %6558 = vmatpush1.bf16.msra.mxu0 %v10074_v6  ;;  %7406 = vmatpush1.bf16.msra.mxu1 %v10075_v7  ;;  %v10092_v18 = vld [vmem:[%s15282_s1 + $0x80] ss:$16 sps:$4 sm:$0xff]   ;;  %v10093_v19 = vld [vmem:[%s15282_s1 + $0x88] ss:$16 sps:$4 sm:$0xff]   ;;  %v10094_v20 = vld [vmem:[%s15282_s1 + $0xa4] ss:$16 sps:$4 sm:$0xff]  }
   0x8   :  { %6559 = vmatprep.subr.bf16.mxu0 %v10076_v8  ;;  %7407 = vmatprep.subr.bf16.mxu1 %v10078_v9  ;;  %v10096_v21 = vld [vmem:[%s15282_s1 + $0xac] ss:$16 sps:$4 sm:$0xff]   ;;  %v10098_v22 = vld [vmem:[%s15282_s1 + $0xa0] ss:$16 sps:$4 sm:$0xff]   ;;  %v10099_v23 = vld [vmem:[%s15282_s1 + $0xa8] ss:$16 sps:$4 sm:$0xff]  }
   0x9   :  { %v10100_v24 = vld [vmem:[%s15282_s1 + $0xc4] ss:$16 sps:$4 sm:$0xff]   ;;  %v10102_v25 = vld [vmem:[%s15282_s1 + $0xcc] ss:$16 sps:$4 sm:$0xff]   ;;  %v10104_v26 = vld [vmem:[%s15282_s1 + $0xc0] ss:$16 sps:$4 sm:$0xff]  }
   0xa   :  { %v10105_v27 = vld [vmem:[%s15282_s1 + $0xc8] ss:$16 sps:$4 sm:$0xff]   ;;  %v10106_v28 = vld [vmem:[%s15282_s1 + $0xe4] ss:$16 sps:$4 sm:$0xff]   ;;  %v10108_v29 = vld [vmem:[%s15282_s1 + $0xec] ss:$16 sps:$4 sm:$0xff]  }
   0xb   :  { %6560 = vmatpush1.bf16.msra.mxu0 %v10080_v10  ;;  %7408 = vmatpush1.bf16.msra.mxu1 %v10081_v11  ;;  %v10110_v30 = vld [vmem:[%s15282_s1 + $0xe0] ss:$16 sps:$4 sm:$0xff]   ;;  %v10111_v31 = vld [vmem:[%s15282_s1 + $0xe8] ss:$16 sps:$4 sm:$0xff]   ;;  %v10112_v32 = vld [vmem:[%s15282_s1 + $0x104] ss:$16 sps:$4 sm:$0xff]  }
   0xc   :  { %6561 = vmatprep.subr.bf16.mxu0 %v10082_v12  ;;  %7409 = vmatprep.subr.bf16.mxu1 %v10084_v13  ;;  %v10114_v33 = vld [vmem:[%s15282_s1 + $0x10c] ss:$16 sps:$4 sm:$0xff]   ;;  %v10116_v34 = vld [vmem:[%s15282_s1 + $0x100] ss:$16 sps:$4 sm:$0xff]   ;;  %v10117_v35 = vld [vmem:[%s15282_s1 + $0x108] ss:$16 sps:$4 sm:$0xff]  }
   0xd   :  { %v10118_v36 = vld [vmem:[%s15282_s1 + $0x124] ss:$16 sps:$4 sm:$0xff]   ;;  %v10120_v37 = vld [vmem:[%s15282_s1 + $0x12c] ss:$16 sps:$4 sm:$0xff]   ;;  %v10122_v38 = vld [vmem:[%s15282_s1 + $0x120] ss:$16 sps:$4 sm:$0xff]  }
   0xe   :  { %v10123_v39 = vld [vmem:[%s15282_s1 + $0x128] ss:$16 sps:$4 sm:$0xff]   ;;  %v10124_v40 = vld [vmem:[%s15282_s1 + $0x144] ss:$16 sps:$4 sm:$0xff]   ;;  %v10126_v41 = vld [vmem:[%s15282_s1 + $0x14c] ss:$16 sps:$4 sm:$0xff]  }
   0xf   :  { %6562 = vmatpush1.bf16.msra.mxu0 %v10086_v14  ;;  %7410 = vmatpush1.bf16.msra.mxu1 %v10087_v15  ;;  %v10128_v42 = vld [vmem:[%s15282_s1 + $0x140] ss:$16 sps:$4 sm:$0xff]   ;;  %v10129_v43 = vld [vmem:[%s15282_s1 + $0x148] ss:$16 sps:$4 sm:$0xff]   ;;  %v10130_v44 = vld [vmem:[%s15282_s1 + $0x164] ss:$16 sps:$4 sm:$0xff]  }
  0x10   :  { %6563 = vmatprep.subr.bf16.mxu0 %v10088_v16  ;;  %7411 = vmatprep.subr.bf16.mxu1 %v10090_v17  ;;  %v10132_v45 = vld [vmem:[%s15282_s1 + $0x16c] ss:$16 sps:$4 sm:$0xff]   ;;  %v27_v46 = vld [vmem:[%s15283_s0] sm:$0xff]  ;;  %v10135_v49 = vld [vmem:[%s15282_s1 + $0x168] ss:$16 sps:$4 sm:$0xff]  }
  0x11   :  { %v43_v47 = vld [vmem:[%s15283_s0 + $0x80] sm:$0xff]  ;;  %v10138_v52 = vld [vmem:[%s15282_s1 + $0x18c] ss:$16 sps:$4 sm:$0xff]   ;;  %v10141_v54 = vld [vmem:[%s15282_s1 + $0x188] ss:$16 sps:$4 sm:$0xff]  }
  0x12   :  { %v10134_v48 = vld [vmem:[%s15282_s1 + $0x160] ss:$16 sps:$4 sm:$0xff]   ;;  %v8717_v50 = vcombine.high %v27_v46, %v43_v47  ;;  %v10136_v51 = vld [vmem:[%s15282_s1 + $0x184] ss:$16 sps:$4 sm:$0xff]   ;;  %v10144_v56 = vld [vmem:[%s15282_s1 + $0x1ac] ss:$16 sps:$4 sm:$0xff]   ;;  %v8716_v5 = vcombine.low %v27_v46, %v43_v47 }
  0x13   :  { %6564 = vmatpush1.bf16.msra.mxu0 %v10092_v18  ;;  %7412 = vmatpush1.bf16.msra.mxu1 %v10093_v19  ;;  %v10140_v53 = vld [vmem:[%s15282_s1 + $0x180] ss:$16 sps:$4 sm:$0xff]   ;;  %v10142_v55 = vld [vmem:[%s15282_s1 + $0x1a4] ss:$16 sps:$4 sm:$0xff]   ;;  %v10147_v58 = vld [vmem:[%s15282_s1 + $0x1a8] ss:$16 sps:$4 sm:$0xff]  }
  0x14   :  { %6565 = vmatprep.subr.bf16.mxu0 %v10094_v20  ;;  %7413 = vmatprep.subr.bf16.mxu1 %v10096_v21  ;;  %v10146_v57 = vld [vmem:[%s15282_s1 + $0x1a0] ss:$16 sps:$4 sm:$0xff]   ;;  %v10148_v59 = vld [vmem:[%s15282_s1 + $0x1c4] ss:$16 sps:$4 sm:$0xff]   ;;  %v10150_v60 = vld [vmem:[%s15282_s1 + $0x1cc] ss:$16 sps:$4 sm:$0xff]  }
  0x15   :  { %6587 = vmatprep.mubr.bf16.mxu0 %v8717_v50  ;;  %7435 = vmatprep.mubr.bf16.mxu1 %v8717_v50  ;;  %v10152_v61 = vld [vmem:[%s15282_s1 + $0x1c0] ss:$16 sps:$4 sm:$0xff]   ;;  %v10153_v62 = vld [vmem:[%s15282_s1 + $0x1c8] ss:$16 sps:$4 sm:$0xff]   ;;  %v10154_v63 = vld [vmem:[%s15282_s1 + $0x1e4] ss:$16 sps:$4 sm:$0xff]  }
  0x16   :  { %v10156_v0 = vld [vmem:[%s15282_s1 + $0x1ec] ss:$16 sps:$4 sm:$0xff]   ;;  %v10158_v1 = vld [vmem:[%s15282_s1 + $0x1e0] ss:$16 sps:$4 sm:$0xff]   ;;  %v10159_v2 = vld [vmem:[%s15282_s1 + $0x1e8] ss:$16 sps:$4 sm:$0xff]  }
  0x17   :  { %6566 = vmatpush1.bf16.msra.mxu0 %v10098_v22  ;;  %7414 = vmatpush1.bf16.msra.mxu1 %v10099_v23  ;;  %v10162_v3 = vld [vmem:[%s15282_s1 + $0x204] ss:$16 sps:$4 sm:$0xff]   ;;  %v10165_v4 = vld [vmem:[%s15282_s1 + $0x20c] ss:$16 sps:$4 sm:$0xff]   ;;  %v10160_v6 = vld [vmem:[%s15282_s1 + $0x200] ss:$16 sps:$4 sm:$0xff]  }
  0x18   :  { %6567 = vmatprep.subr.bf16.mxu0 %v10100_v24  ;;  %7415 = vmatprep.subr.bf16.mxu1 %v10102_v25  ;;  %v10163_v7 = vld [vmem:[%s15282_s1 + $0x208] ss:$16 sps:$4 sm:$0xff]   ;;  %v10168_v8 = vld [vmem:[%s15282_s1 + $0x224] ss:$16 sps:$4 sm:$0xff]   ;;  %v10171_v9 = vld [vmem:[%s15282_s1 + $0x22c] ss:$16 sps:$4 sm:$0xff]  }
  0x19   :  { %v10166_v10 = vld [vmem:[%s15282_s1 + $0x220] ss:$16 sps:$4 sm:$0xff]   ;;  %v10169_v11 = vld [vmem:[%s15282_s1 + $0x228] ss:$16 sps:$4 sm:$0xff]   ;;  %v10174_v12 = vld [vmem:[%s15282_s1 + $0x244] ss:$16 sps:$4 sm:$0xff]  }
  0x1a   :  { %v10177_v13 = vld [vmem:[%s15282_s1 + $0x24c] ss:$16 sps:$4 sm:$0xff]   ;;  %v10172_v14 = vld [vmem:[%s15282_s1 + $0x240] ss:$16 sps:$4 sm:$0xff]   ;;  %v10175_v15 = vld [vmem:[%s15282_s1 + $0x248] ss:$16 sps:$4 sm:$0xff]  }
  0x1b   :  { %6568 = vmatpush1.bf16.msra.mxu0 %v10104_v26  ;;  %7416 = vmatpush1.bf16.msra.mxu1 %v10105_v27  ;;  %v10180_v16 = vld [vmem:[%s15282_s1 + $0x264] ss:$16 sps:$4 sm:$0xff]   ;;  %v10183_v17 = vld [vmem:[%s15282_s1 + $0x26c] ss:$16 sps:$4 sm:$0xff]   ;;  %v10178_v18 = vld [vmem:[%s15282_s1 + $0x260] ss:$16 sps:$4 sm:$0xff]  }
  0x1c   :  { %6569 = vmatprep.subr.bf16.mxu0 %v10106_v28  ;;  %7417 = vmatprep.subr.bf16.mxu1 %v10108_v29  ;;  %v10181_v19 = vld [vmem:[%s15282_s1 + $0x268] ss:$16 sps:$4 sm:$0xff]   ;;  %v10186_v20 = vld [vmem:[%s15282_s1 + $0x284] ss:$16 sps:$4 sm:$0xff]   ;;  %v10189_v21 = vld [vmem:[%s15282_s1 + $0x28c] ss:$16 sps:$4 sm:$0xff]  }
  0x1d   :  { %v10184_v22 = vld [vmem:[%s15282_s1 + $0x280] ss:$16 sps:$4 sm:$0xff]   ;;  %v10187_v23 = vld [vmem:[%s15282_s1 + $0x288] ss:$16 sps:$4 sm:$0xff]   ;;  %v10192_v24 = vld [vmem:[%s15282_s1 + $0x2a4] ss:$16 sps:$4 sm:$0xff]  }
  0x1e   :  { %v10195_v25 = vld [vmem:[%s15282_s1 + $0x2ac] ss:$16 sps:$4 sm:$0xff]   ;;  %v59_v26 = vld [vmem:[%s15283_s0 + $0x100] sm:$0xff]  ;;  %v10211_v46 = vld [vmem:[%s15282_s1 + $0x308] ss:$16 sps:$4 sm:$0xff]  }
  0x1f   :  { %6570 = vmatpush1.bf16.msra.mxu0 %v10110_v30  ;;  %7418 = vmatpush1.bf16.msra.mxu1 %v10111_v31  ;;  %v75_v27 = vld [vmem:[%s15283_s0 + $0x180] sm:$0xff]  ;;  %v10193_v30 = vld [vmem:[%s15282_s1 + $0x2a8] ss:$16 sps:$4 sm:$0xff]  }
  0x20   :  { %6571 = vmatprep.subr.bf16.mxu0 %v10112_v32  ;;  %7419 = vmatprep.subr.bf16.mxu1 %v10114_v33  ;;  %v8749_v28 = vcombine.high %v59_v26, %v75_v27  ;;  %v10190_v29 = vld [vmem:[%s15282_s1 + $0x2a0] ss:$16 sps:$4 sm:$0xff]   ;;  %v8748_v31 = vcombine.low %v59_v26, %v75_v27  ;;  %v10198_v32 = vld [vmem:[%s15282_s1 + $0x2c4] ss:$16 sps:$4 sm:$0xff]   ;;  %v10201_v33 = vld [vmem:[%s15282_s1 + $0x2cc] ss:$16 sps:$4 sm:$0xff]  }
  0x21   :  { %v10216_v47 = vld [vmem:[%s15282_s1 + $0x324] ss:$16 sps:$4 sm:$0xff]   ;;  %v10217_v50 = vld [vmem:[%s15282_s1 + $0x328] ss:$16 sps:$4 sm:$0xff]  }
  0x22   :  { %v12107_v27 = vld [vmem:[%s15283_s0 + $0x90] sm:$0xff] }
  0x23   :  { %6572 = vmatpush1.bf16.msra.mxu0 %v10116_v34  ;;  %7420 = vmatpush1.bf16.msra.mxu1 %v10117_v35  ;;  %v11938_v34 = vld [vmem:[%s15283_s0 + $0x8] sm:$0xff] }
  0x24   :  { %6573 = vmatprep.subr.bf16.mxu0 %v10118_v36  ;;  %7421 = vmatprep.subr.bf16.mxu1 %v10120_v37  ;;  %v11943_v35 = vld [vmem:[%s15283_s0 + $0x88] sm:$0xff]  ;;  %v10196_v36 = vld [vmem:[%s15282_s1 + $0x2c0] ss:$16 sps:$4 sm:$0xff]  }
  0x25   :  { %v10199_v37 = vld [vmem:[%s15282_s1 + $0x2c8] ss:$16 sps:$4 sm:$0xff]  }
  0x27   :  { %6574 = vmatpush1.bf16.msra.mxu0 %v10122_v38  ;;  %7422 = vmatpush1.bf16.msra.mxu1 %v10123_v39  ;;  %v8719_v38 = vcombine.high %v11938_v34, %v11943_v35  ;;  %v10204_v39 = vld [vmem:[%s15282_s1 + $0x2e4] ss:$16 sps:$4 sm:$0xff]  }
  0x28   :  { %6575 = vmatprep.subr.bf16.mxu0 %v10124_v40  ;;  %7423 = vmatprep.subr.bf16.mxu1 %v10126_v41  ;;  %v10207_v40 = vld [vmem:[%s15282_s1 + $0x2ec] ss:$16 sps:$4 sm:$0xff]   ;;  %v10202_v41 = vld [vmem:[%s15282_s1 + $0x2e0] ss:$16 sps:$4 sm:$0xff]  }
  0x2b   :  { %6576 = vmatpush1.bf16.msra.mxu0 %v10128_v42  ;;  %7424 = vmatpush1.bf16.msra.mxu1 %v10129_v43  ;;  %v10205_v42 = vld [vmem:[%s15282_s1 + $0x2e8] ss:$16 sps:$4 sm:$0xff]   ;;  %v10210_v43 = vld [vmem:[%s15282_s1 + $0x304] ss:$16 sps:$4 sm:$0xff]  }
  0x2c   :  { %6577 = vmatprep.subr.bf16.mxu0 %v10130_v44  ;;  %7425 = vmatprep.subr.bf16.mxu1 %v10132_v45  ;;  %v10213_v44 = vld [vmem:[%s15282_s1 + $0x30c] ss:$16 sps:$4 sm:$0xff]   ;;  %v10208_v45 = vld [vmem:[%s15282_s1 + $0x300] ss:$16 sps:$4 sm:$0xff]  }
  0x2f   :  { %6578 = vmatpush1.bf16.msra.mxu0 %v10134_v48  ;;  %7426 = vmatpush1.bf16.msra.mxu1 %v10135_v49  ;;  %v10219_v48 = vld [vmem:[%s15282_s1 + $0x32c] ss:$16 sps:$4 sm:$0xff]   ;;  %v10214_v49 = vld [vmem:[%s15282_s1 + $0x320] ss:$16 sps:$4 sm:$0xff]  }
  0x30   :  { %6579 = vmatprep.subr.bf16.mxu0 %v10136_v51  ;;  %7427 = vmatprep.subr.bf16.mxu1 %v10138_v52  ;;  %v10222_v51 = vld [vmem:[%s15282_s1 + $0x344] ss:$16 sps:$4 sm:$0xff]   ;;  %v10225_v52 = vld [vmem:[%s15282_s1 + $0x34c] ss:$16 sps:$4 sm:$0xff]  }
  0x33   :  { %6580 = vmatpush1.bf16.msra.mxu0 %v10140_v53  ;;  %7428 = vmatpush1.bf16.msra.mxu1 %v10141_v54  ;;  %v10220_v53 = vld [vmem:[%s15282_s1 + $0x340] ss:$16 sps:$4 sm:$0xff]   ;;  %v10223_v54 = vld [vmem:[%s15282_s1 + $0x348] ss:$16 sps:$4 sm:$0xff]  }
  0x34   :  { %6581 = vmatprep.subr.bf16.mxu0 %v10142_v55  ;;  %7429 = vmatprep.subr.bf16.mxu1 %v10144_v56  ;;  %v10228_v55 = vld [vmem:[%s15282_s1 + $0x364] ss:$16 sps:$4 sm:$0xff]   ;;  %v10231_v56 = vld [vmem:[%s15282_s1 + $0x36c] ss:$16 sps:$4 sm:$0xff]  }
  0x37   :  { %6582 = vmatpush1.bf16.msra.mxu0 %v10146_v57  ;;  %7430 = vmatpush1.bf16.msra.mxu1 %v10147_v58  ;;  %v10226_v57 = vld [vmem:[%s15282_s1 + $0x360] ss:$16 sps:$4 sm:$0xff]   ;;  %v10229_v58 = vld [vmem:[%s15282_s1 + $0x368] ss:$16 sps:$4 sm:$0xff]  }
  0x38   :  { %6583 = vmatprep.subr.bf16.mxu0 %v10148_v59  ;;  %7431 = vmatprep.subr.bf16.mxu1 %v10150_v60  ;;  %v10234_v59 = vld [vmem:[%s15282_s1 + $0x384] ss:$16 sps:$4 sm:$0xff]   ;;  %v10237_v60 = vld [vmem:[%s15282_s1 + $0x38c] ss:$16 sps:$4 sm:$0xff]  }
  0x3b   :  { %6584 = vmatpush1.bf16.msra.mxu0 %v10152_v61  ;;  %7432 = vmatpush1.bf16.msra.mxu1 %v10153_v62  ;;  %v10232_v61 = vld [vmem:[%s15282_s1 + $0x380] ss:$16 sps:$4 sm:$0xff]   ;;  %v10235_v62 = vld [vmem:[%s15282_s1 + $0x388] ss:$16 sps:$4 sm:$0xff]  }
  0x3c   :  { %6585 = vmatprep.subr.bf16.mxu0 %v10154_v63  ;;  %7433 = vmatprep.subr.bf16.mxu1 %v10156_v0  ;;  %v10240_v63 = vld [vmem:[%s15282_s1 + $0x3a4] ss:$16 sps:$4 sm:$0xff]   ;;  %v10243_v0 = vld [vmem:[%s15282_s1 + $0x3ac] ss:$16 sps:$4 sm:$0xff]  }
  0x3f   :  { %6586 = vmatpush1.bf16.msra.mxu0 %v10158_v1  ;;  %7434 = vmatpush1.bf16.msra.mxu1 %v10159_v2  ;;  %v10238_v1 = vld [vmem:[%s15282_s1 + $0x3a0] ss:$16 sps:$4 sm:$0xff]   ;;  %v10241_v2 = vld [vmem:[%s15282_s1 + $0x3a8] ss:$16 sps:$4 sm:$0xff]  }
  0x40   :  { %6608 = vmatprep.subr.bf16.mxu0 %v10162_v3  ;;  %7456 = vmatprep.subr.bf16.mxu1 %v10165_v4  ;;  %v10246_v3 = vld [vmem:[%s15282_s1 + $0x3c4] ss:$16 sps:$4 sm:$0xff]   ;;  %v10249_v4 = vld [vmem:[%s15282_s1 + $0x3cc] ss:$16 sps:$4 sm:$0xff]  }
  0x42   :  { %6588 = vmatmul.mubr.bf16.vlgmr.msra.gmra.mrb[0].mxu0 %v8716_v5  ;;  %7436 = vmatmul.mubr.bf16.vlgmr.msra.gmra.mrb[0].mxu1 %v8716_v5  ;;  %v10244_v5 = vld [vmem:[%s15282_s1 + $0x3c0] ss:$16 sps:$4 sm:$0xff]  }
  0x43   :  { %6609 = vmatpush1.bf16.msra.mxu0 %v10160_v6  ;;  %7457 = vmatpush1.bf16.msra.mxu1 %v10163_v7  ;;  %v10247_v6 = vld [vmem:[%s15282_s1 + $0x3c8] ss:$16 sps:$4 sm:$0xff]   ;;  %v10252_v7 = vld [vmem:[%s15282_s1 + $0x3e4] ss:$16 sps:$4 sm:$0xff]  }
  0x44   :  { %6610 = vmatprep.subr.bf16.mxu0 %v10168_v8  ;;  %7458 = vmatprep.subr.bf16.mxu1 %v10171_v9  ;;  %v10255_v8 = vld [vmem:[%s15282_s1 + $0x3ec] ss:$16 sps:$4 sm:$0xff]   ;;  %v10250_v9 = vld [vmem:[%s15282_s1 + $0x3e0] ss:$16 sps:$4 sm:$0xff]  }
  0x45   :  { %6597 = vmatprep.mubr.bf16.mxu0 %v8749_v28  ;;  %7445 = vmatprep.mubr.bf16.mxu1 %v8749_v28  ;;  %v10268_v28 = vld [vmem:[%s15282_s1 + $0x440] ss:$16 sps:$4 sm:$0xff]  }
  0x47   :  { %6611 = vmatpush1.bf16.msra.mxu0 %v10166_v10  ;;  %7459 = vmatpush1.bf16.msra.mxu1 %v10169_v11  ;;  %v10253_v10 = vld [vmem:[%s15282_s1 + $0x3e8] ss:$16 sps:$4 sm:$0xff]   ;;  %v10258_v11 = vld [vmem:[%s15282_s1 + $0x404] ss:$16 sps:$4 sm:$0xff]  }
  0x48   :  { %6612 = vmatprep.subr.bf16.mxu0 %v10174_v12  ;;  %7460 = vmatprep.subr.bf16.mxu1 %v10177_v13  ;;  %v10261_v12 = vld [vmem:[%s15282_s1 + $0x40c] ss:$16 sps:$4 sm:$0xff]   ;;  %v10256_v13 = vld [vmem:[%s15282_s1 + $0x400] ss:$16 sps:$4 sm:$0xff]  }
  0x4a   :  { %6598 = vmatmul.mubr.bf16.gmra.mrb[4].mxu0 %v8748_v31  ;;  %7446 = vmatmul.mubr.bf16.gmra.mrb[4].mxu1 %v8748_v31  ;;  %v10279_v31 = vld [vmem:[%s15282_s1 + $0x46c] ss:$16 sps:$4 sm:$0xff]  }
  0x4b   :  { %6613 = vmatpush1.bf16.msra.mxu0 %v10172_v14  ;;  %7461 = vmatpush1.bf16.msra.mxu1 %v10175_v15  ;;  %v10259_v14 = vld [vmem:[%s15282_s1 + $0x408] ss:$16 sps:$4 sm:$0xff]   ;;  %v8718_v15 = vcombine.low %v11938_v34, %v11943_v35  ;;  %v10282_v35 = vld [vmem:[%s15282_s1 + $0x484] ss:$16 sps:$4 sm:$0xff]  }
  0x4c   :  { %6614 = vmatprep.subr.bf16.mxu0 %v10180_v16  ;;  %7462 = vmatprep.subr.bf16.mxu1 %v10183_v17  ;;  %v60_v16 = vld [vmem:[%s15283_s0 + $0x108] sm:$0xff] }
  0x4d   :  { %6640 = vmatprep.mubr.bf16.mxu0 %v8719_v38  ;;  %7488 = vmatprep.mubr.bf16.mxu1 %v8719_v38  ;;  %v76_v17 = vld [vmem:[%s15283_s0 + $0x188] sm:$0xff] }
  0x4e   :  { %v8750_v26 = vcombine.low %v60_v16, %v76_v17  ;;  %v10277_v34 = vld [vmem:[%s15282_s1 + $0x468] ss:$16 sps:$4 sm:$0xff]  }
  0x4f   :  { %6615 = vmatpush1.bf16.msra.mxu0 %v10178_v18  ;;  %7463 = vmatpush1.bf16.msra.mxu1 %v10181_v19  ;;  %v10264_v18 = vld [vmem:[%s15282_s1 + $0x424] ss:$16 sps:$4 sm:$0xff]   ;;  %v10267_v19 = vld [vmem:[%s15282_s1 + $0x42c] ss:$16 sps:$4 sm:$0xff]   ;;  %v10283_v38 = vld [vmem:[%s15282_s1 + $0x488] ss:$16 sps:$4 sm:$0xff]  }
  0x50   :  { %6616 = vmatprep.subr.bf16.mxu0 %v10186_v20  ;;  %7464 = vmatprep.subr.bf16.mxu1 %v10189_v21  ;;  %v8751_v20 = vcombine.high %v60_v16, %v76_v17  ;;  %v10262_v21 = vld [vmem:[%s15282_s1 + $0x420] ss:$16 sps:$4 sm:$0xff]   ;;  %v10351_v16 = vld [vmem:[%s15282_s1 + $0x5ec] ss:$16 sps:$4 sm:$0xff]  }
  0x51   :  { %v10346_v17 = vld [vmem:[%s15282_s1 + $0x5e0] ss:$16 sps:$4 sm:$0xff]  }
  0x53   :  { %6617 = vmatpush1.bf16.msra.mxu0 %v10184_v22  ;;  %7465 = vmatpush1.bf16.msra.mxu1 %v10187_v23  ;;  %v10265_v22 = vld [vmem:[%s15282_s1 + $0x428] ss:$16 sps:$4 sm:$0xff]   ;;  %v10270_v23 = vld [vmem:[%s15282_s1 + $0x444] ss:$16 sps:$4 sm:$0xff]  }
  0x54   :  { %6618 = vmatprep.subr.bf16.mxu0 %v10192_v24  ;;  %7466 = vmatprep.subr.bf16.mxu1 %v10195_v25  ;;  %v10273_v24 = vld [vmem:[%s15282_s1 + $0x44c] ss:$16 sps:$4 sm:$0xff]   ;;  %v12102_v25 = vld [vmem:[%s15283_s0 + $0x10] sm:$0xff] }
  0x57   :  { %6619 = vmatpush1.bf16.msra.mxu0 %v10190_v29  ;;  %7467 = vmatpush1.bf16.msra.mxu1 %v10193_v30  ;;  %v10271_v29 = vld [vmem:[%s15282_s1 + $0x448] ss:$16 sps:$4 sm:$0xff]   ;;  %v10276_v30 = vld [vmem:[%s15282_s1 + $0x464] ss:$16 sps:$4 sm:$0xff]  }
  0x58   :  { %6620 = vmatprep.subr.bf16.mxu0 %v10198_v32  ;;  %7468 = vmatprep.subr.bf16.mxu1 %v10201_v33  ;;  %v8721_v32 = vcombine.high %v12102_v25, %v12107_v27  ;;  %v10274_v33 = vld [vmem:[%s15282_s1 + $0x460] ss:$16 sps:$4 sm:$0xff]  }
  0x5b   :  { %6621 = vmatpush1.bf16.msra.mxu0 %v10196_v36  ;;  %7469 = vmatpush1.bf16.msra.mxu1 %v10199_v37  ;;  %v10285_v36 = vld [vmem:[%s15282_s1 + $0x48c] ss:$16 sps:$4 sm:$0xff]   ;;  %v10280_v37 = vld [vmem:[%s15282_s1 + $0x480] ss:$16 sps:$4 sm:$0xff]  }
  0x5c   :  { %6622 = vmatprep.subr.bf16.mxu0 %v10204_v39  ;;  %7470 = vmatprep.subr.bf16.mxu1 %v10207_v40  ;;  %v10288_v39 = vld [vmem:[%s15282_s1 + $0x4a4] ss:$16 sps:$4 sm:$0xff]   ;;  %v10291_v40 = vld [vmem:[%s15282_s1 + $0x4ac] ss:$16 sps:$4 sm:$0xff]  }
  0x5f   :  { %6623 = vmatpush1.bf16.msra.mxu0 %v10202_v41  ;;  %7471 = vmatpush1.bf16.msra.mxu1 %v10205_v42  ;;  %v10286_v41 = vld [vmem:[%s15282_s1 + $0x4a0] ss:$16 sps:$4 sm:$0xff]   ;;  %v10289_v42 = vld [vmem:[%s15282_s1 + $0x4a8] ss:$16 sps:$4 sm:$0xff]  }
  0x60   :  { %6624 = vmatprep.subr.bf16.mxu0 %v10210_v43  ;;  %7472 = vmatprep.subr.bf16.mxu1 %v10213_v44  ;;  %v10294_v43 = vld [vmem:[%s15282_s1 + $0x4c4] ss:$16 sps:$4 sm:$0xff]   ;;  %v10297_v44 = vld [vmem:[%s15282_s1 + $0x4cc] ss:$16 sps:$4 sm:$0xff]  }
  0x63   :  { %6625 = vmatpush1.bf16.msra.mxu0 %v10208_v45  ;;  %7473 = vmatpush1.bf16.msra.mxu1 %v10211_v46  ;;  %v10292_v45 = vld [vmem:[%s15282_s1 + $0x4c0] ss:$16 sps:$4 sm:$0xff]   ;;  %v10295_v46 = vld [vmem:[%s15282_s1 + $0x4c8] ss:$16 sps:$4 sm:$0xff]  }
  0x64   :  { %6626 = vmatprep.subr.bf16.mxu0 %v10216_v47  ;;  %7474 = vmatprep.subr.bf16.mxu1 %v10219_v48  ;;  %v10300_v47 = vld [vmem:[%s15282_s1 + $0x4e4] ss:$16 sps:$4 sm:$0xff]   ;;  %v10303_v48 = vld [vmem:[%s15282_s1 + $0x4ec] ss:$16 sps:$4 sm:$0xff]  }
  0x67   :  { %6627 = vmatpush1.bf16.msra.mxu0 %v10214_v49  ;;  %7475 = vmatpush1.bf16.msra.mxu1 %v10217_v50  ;;  %v10298_v49 = vld [vmem:[%s15282_s1 + $0x4e0] ss:$16 sps:$4 sm:$0xff]   ;;  %v10301_v50 = vld [vmem:[%s15282_s1 + $0x4e8] ss:$16 sps:$4 sm:$0xff]  }
  0x68   :  { %6628 = vmatprep.subr.bf16.mxu0 %v10222_v51  ;;  %7476 = vmatprep.subr.bf16.mxu1 %v10225_v52  ;;  %v10306_v51 = vld [vmem:[%s15282_s1 + $0x504] ss:$16 sps:$4 sm:$0xff]   ;;  %v10309_v52 = vld [vmem:[%s15282_s1 + $0x50c] ss:$16 sps:$4 sm:$0xff]  }
  0x6b   :  { %6629 = vmatpush1.bf16.msra.mxu0 %v10220_v53  ;;  %7477 = vmatpush1.bf16.msra.mxu1 %v10223_v54  ;;  %v10304_v53 = vld [vmem:[%s15282_s1 + $0x500] ss:$16 sps:$4 sm:$0xff]   ;;  %v10307_v54 = vld [vmem:[%s15282_s1 + $0x508] ss:$16 sps:$4 sm:$0xff]  }
  0x6c   :  { %6630 = vmatprep.subr.bf16.mxu0 %v10228_v55  ;;  %7478 = vmatprep.subr.bf16.mxu1 %v10231_v56  ;;  %v10312_v55 = vld [vmem:[%s15282_s1 + $0x524] ss:$16 sps:$4 sm:$0xff]   ;;  %v10315_v56 = vld [vmem:[%s15282_s1 + $0x52c] ss:$16 sps:$4 sm:$0xff]  }
  0x6f   :  { %6631 = vmatpush1.bf16.msra.mxu0 %v10226_v57  ;;  %7479 = vmatpush1.bf16.msra.mxu1 %v10229_v58  ;;  %v10310_v57 = vld [vmem:[%s15282_s1 + $0x520] ss:$16 sps:$4 sm:$0xff]   ;;  %v10313_v58 = vld [vmem:[%s15282_s1 + $0x528] ss:$16 sps:$4 sm:$0xff]  }
  0x70   :  { %6632 = vmatprep.subr.bf16.mxu0 %v10234_v59  ;;  %7480 = vmatprep.subr.bf16.mxu1 %v10237_v60  ;;  %v10318_v59 = vld [vmem:[%s15282_s1 + $0x544] ss:$16 sps:$4 sm:$0xff]   ;;  %v10321_v60 = vld [vmem:[%s15282_s1 + $0x54c] ss:$16 sps:$4 sm:$0xff]  }
  0x73   :  { %6633 = vmatpush1.bf16.msra.mxu0 %v10232_v61  ;;  %7481 = vmatpush1.bf16.msra.mxu1 %v10235_v62  ;;  %v10316_v61 = vld [vmem:[%s15282_s1 + $0x540] ss:$16 sps:$4 sm:$0xff]   ;;  %v10319_v62 = vld [vmem:[%s15282_s1 + $0x548] ss:$16 sps:$4 sm:$0xff]  }
  0x74   :  { %6634 = vmatprep.subr.bf16.mxu0 %v10240_v63  ;;  %7482 = vmatprep.subr.bf16.mxu1 %v10243_v0  ;;  %v10324_v63 = vld [vmem:[%s15282_s1 + $0x564] ss:$16 sps:$4 sm:$0xff]   ;;  %v10327_v0 = vld [vmem:[%s15282_s1 + $0x56c] ss:$16 sps:$4 sm:$0xff]  }
  0x77   :  { %6635 = vmatpush1.bf16.msra.mxu0 %v10238_v1  ;;  %7483 = vmatpush1.bf16.msra.mxu1 %v10241_v2  ;;  %v10322_v1 = vld [vmem:[%s15282_s1 + $0x560] ss:$16 sps:$4 sm:$0xff]   ;;  %v10325_v2 = vld [vmem:[%s15282_s1 + $0x568] ss:$16 sps:$4 sm:$0xff]  }
  0x78   :  { %6636 = vmatprep.subr.bf16.mxu0 %v10246_v3  ;;  %7484 = vmatprep.subr.bf16.mxu1 %v10249_v4  ;;  %v10330_v3 = vld [vmem:[%s15282_s1 + $0x584] ss:$16 sps:$4 sm:$0xff]   ;;  %v10333_v4 = vld [vmem:[%s15282_s1 + $0x58c] ss:$16 sps:$4 sm:$0xff]  }
  0x7b   :  { %6637 = vmatpush1.bf16.msra.mxu0 %v10244_v5  ;;  %7485 = vmatpush1.bf16.msra.mxu1 %v10247_v6  ;;  %v10328_v5 = vld [vmem:[%s15282_s1 + $0x580] ss:$16 sps:$4 sm:$0xff]   ;;  %v10331_v6 = vld [vmem:[%s15282_s1 + $0x588] ss:$16 sps:$4 sm:$0xff]  }
  0x7c   :  { %6638 = vmatprep.subr.bf16.mxu0 %v10252_v7  ;;  %7486 = vmatprep.subr.bf16.mxu1 %v10255_v8  ;;  %v10336_v7 = vld [vmem:[%s15282_s1 + $0x5a4] ss:$16 sps:$4 sm:$0xff]   ;;  %v10339_v8 = vld [vmem:[%s15282_s1 + $0x5ac] ss:$16 sps:$4 sm:$0xff]  }
  0x7f   :  { %6639 = vmatpush1.bf16.msra.mxu0 %v10250_v9  ;;  %7487 = vmatpush1.bf16.msra.mxu1 %v10253_v10  ;;  %v10334_v9 = vld [vmem:[%s15282_s1 + $0x5a0] ss:$16 sps:$4 sm:$0xff]   ;;  %v10337_v10 = vld [vmem:[%s15282_s1 + $0x5a8] ss:$16 sps:$4 sm:$0xff]  }
  0x80   :  { %6661 = vmatprep.subr.bf16.mxu0 %v10258_v11  ;;  %7509 = vmatprep.subr.bf16.mxu1 %v10261_v12  ;;  %v10342_v11 = vld [vmem:[%s15282_s1 + $0x5c4] ss:$16 sps:$4 sm:$0xff]   ;;  %v10345_v12 = vld [vmem:[%s15282_s1 + $0x5cc] ss:$16 sps:$4 sm:$0xff]  }
  0x82   :  { %6641 = vmatmul.mubr.bf16.vlgmr.msra.gmra.mrb[0].mxu0 %v8718_v15  ;;  %7489 = vmatmul.mubr.bf16.vlgmr.msra.gmra.mrb[0].mxu1 %v8718_v15  ;;  %v10348_v15 = vld [vmem:[%s15282_s1 + $0x5e4] ss:$16 sps:$4 sm:$0xff]  }
  0x83   :  { %6662 = vmatpush1.bf16.msra.mxu0 %v10256_v13  ;;  %7510 = vmatpush1.bf16.msra.mxu1 %v10259_v14  ;;  %v10340_v13 = vld [vmem:[%s15282_s1 + $0x5c0] ss:$16 sps:$4 sm:$0xff]   ;;  %v10343_v14 = vld [vmem:[%s15282_s1 + $0x5c8] ss:$16 sps:$4 sm:$0xff]  }
  0x84   :  { %6663 = vmatprep.subr.bf16.mxu0 %v10264_v18  ;;  %7511 = vmatprep.subr.bf16.mxu1 %v10267_v19  ;;  %v10349_v18 = vld [vmem:[%s15282_s1 + $0x5e8] ss:$16 sps:$4 sm:$0xff]   ;;  %v10354_v19 = vld [vmem:[%s15282_s1 + $0x604] ss:$16 sps:$4 sm:$0xff]  }
  0x85   :  { %6650 = vmatprep.mubr.bf16.mxu0 %v8751_v20  ;;  %7498 = vmatprep.mubr.bf16.mxu1 %v8751_v20  ;;  %v10357_v20 = vld [vmem:[%s15282_s1 + $0x60c] ss:$16 sps:$4 sm:$0xff]  }
  0x87   :  { %6664 = vmatpush1.bf16.msra.mxu0 %v10262_v21  ;;  %7512 = vmatpush1.bf16.msra.mxu1 %v10265_v22  ;;  %v61_v21 = vld [vmem:[%s15283_s0 + $0x110] sm:$0xff]  ;;  %v8720_v22 = vcombine.low %v12102_v25, %v12107_v27  ;;  %v10363_v27 = vld [vmem:[%s15282_s1 + $0x62c] ss:$16 sps:$4 sm:$0xff]  }
  0x88   :  { %6665 = vmatprep.subr.bf16.mxu0 %v10270_v23  ;;  %7513 = vmatprep.subr.bf16.mxu1 %v10273_v24  ;;  %v77_v23 = vld [vmem:[%s15283_s0 + $0x190] sm:$0xff] }
  0x89   :  { %v10352_v24 = vld [vmem:[%s15282_s1 + $0x600] ss:$16 sps:$4 sm:$0xff]   ;;  %v10360_v25 = vld [vmem:[%s15282_s1 + $0x624] ss:$16 sps:$4 sm:$0xff]  }
  0x8a   :  { %6651 = vmatmul.mubr.bf16.gmra.mrb[4].mxu0 %v8750_v26  ;;  %7499 = vmatmul.mubr.bf16.gmra.mrb[4].mxu1 %v8750_v26  ;;  %v10355_v26 = vld [vmem:[%s15282_s1 + $0x608] ss:$16 sps:$4 sm:$0xff]  }
  0x8b   :  { %6666 = vmatpush1.bf16.msra.mxu0 %v10268_v28  ;;  %7514 = vmatpush1.bf16.msra.mxu1 %v10271_v29  ;;  %v8753_v28 = vcombine.high %v61_v21, %v77_v23  ;;  %v10358_v29 = vld [vmem:[%s15282_s1 + $0x620] ss:$16 sps:$4 sm:$0xff]  }
  0x8c   :  { %6667 = vmatprep.subr.bf16.mxu0 %v10276_v30  ;;  %7515 = vmatprep.subr.bf16.mxu1 %v10279_v31  ;;  %v10361_v30 = vld [vmem:[%s15282_s1 + $0x628] ss:$16 sps:$4 sm:$0xff]   ;;  %v10366_v31 = vld [vmem:[%s15282_s1 + $0x644] ss:$16 sps:$4 sm:$0xff]  }
  0x8d   :  { %6693 = vmatprep.mubr.bf16.mxu0 %v8721_v32  ;;  %7541 = vmatprep.mubr.bf16.mxu1 %v8721_v32  ;;  %v10369_v32 = vld [vmem:[%s15282_s1 + $0x64c] ss:$16 sps:$4 sm:$0xff]  }
  0x8f   :  { %6668 = vmatpush1.bf16.msra.mxu0 %v10274_v33  ;;  %7516 = vmatpush1.bf16.msra.mxu1 %v10277_v34  ;;  %v12314_v33 = vld [vmem:[%s15283_s0 + $0x18] sm:$0xff]  ;;  %v8752_v34 = vcombine.low %v61_v21, %v77_v23  ;;  %v10436_v21 = vld [vmem:[%s15282_s1 + $0x7c0] ss:$16 sps:$4 sm:$0xff]   ;;  %v10444_v23 = vld [vmem:[%s15282_s1 + $0x7e4] ss:$16 sps:$4 sm:$0xff]  }
  0x90   :  { %6669 = vmatprep.subr.bf16.mxu0 %v10282_v35  ;;  %7517 = vmatprep.subr.bf16.mxu1 %v10285_v36  ;;  %v12319_v35 = vld [vmem:[%s15283_s0 + $0x98] sm:$0xff]  ;;  %v10364_v36 = vld [vmem:[%s15282_s1 + $0x640] ss:$16 sps:$4 sm:$0xff]  }
  0x93   :  { %6670 = vmatpush1.bf16.msra.mxu0 %v10280_v37  ;;  %7518 = vmatpush1.bf16.msra.mxu1 %v10283_v38  ;;  %v10367_v37 = vld [vmem:[%s15282_s1 + $0x648] ss:$16 sps:$4 sm:$0xff]   ;;  %v10372_v38 = vld [vmem:[%s15282_s1 + $0x664] ss:$16 sps:$4 sm:$0xff]  }
  0x94   :  { %6671 = vmatprep.subr.bf16.mxu0 %v10288_v39  ;;  %7519 = vmatprep.subr.bf16.mxu1 %v10291_v40  ;;  %v10375_v39 = vld [vmem:[%s15282_s1 + $0x66c] ss:$16 sps:$4 sm:$0xff]   ;;  %v8723_v40 = vcombine.high %v12314_v33, %v12319_v35 }
  0x97   :  { %6672 = vmatpush1.bf16.msra.mxu0 %v10286_v41  ;;  %7520 = vmatpush1.bf16.msra.mxu1 %v10289_v42  ;;  %v10370_v41 = vld [vmem:[%s15282_s1 + $0x660] ss:$16 sps:$4 sm:$0xff]   ;;  %v10373_v42 = vld [vmem:[%s15282_s1 + $0x668] ss:$16 sps:$4 sm:$0xff]  }
  0x98   :  { %6673 = vmatprep.subr.bf16.mxu0 %v10294_v43  ;;  %7521 = vmatprep.subr.bf16.mxu1 %v10297_v44  ;;  %v10378_v43 = vld [vmem:[%s15282_s1 + $0x684] ss:$16 sps:$4 sm:$0xff]   ;;  %v10381_v44 = vld [vmem:[%s15282_s1 + $0x68c] ss:$16 sps:$4 sm:$0xff]  }
  0x9b   :  { %6674 = vmatpush1.bf16.msra.mxu0 %v10292_v45  ;;  %7522 = vmatpush1.bf16.msra.mxu1 %v10295_v46  ;;  %v10376_v45 = vld [vmem:[%s15282_s1 + $0x680] ss:$16 sps:$4 sm:$0xff]   ;;  %v10379_v46 = vld [vmem:[%s15282_s1 + $0x688] ss:$16 sps:$4 sm:$0xff]  }
  0x9c   :  { %6675 = vmatprep.subr.bf16.mxu0 %v10300_v47  ;;  %7523 = vmatprep.subr.bf16.mxu1 %v10303_v48  ;;  %v10384_v47 = vld [vmem:[%s15282_s1 + $0x6a4] ss:$16 sps:$4 sm:$0xff]   ;;  %v10387_v48 = vld [vmem:[%s15282_s1 + $0x6ac] ss:$16 sps:$4 sm:$0xff]  }
  0x9f   :  { %6676 = vmatpush1.bf16.msra.mxu0 %v10298_v49  ;;  %7524 = vmatpush1.bf16.msra.mxu1 %v10301_v50  ;;  %v10382_v49 = vld [vmem:[%s15282_s1 + $0x6a0] ss:$16 sps:$4 sm:$0xff]   ;;  %v10385_v50 = vld [vmem:[%s15282_s1 + $0x6a8] ss:$16 sps:$4 sm:$0xff]  }
  0xa0   :  { %6677 = vmatprep.subr.bf16.mxu0 %v10306_v51  ;;  %7525 = vmatprep.subr.bf16.mxu1 %v10309_v52  ;;  %v10390_v51 = vld [vmem:[%s15282_s1 + $0x6c4] ss:$16 sps:$4 sm:$0xff]   ;;  %v10393_v52 = vld [vmem:[%s15282_s1 + $0x6cc] ss:$16 sps:$4 sm:$0xff]  }
  0xa3   :  { %6678 = vmatpush1.bf16.msra.mxu0 %v10304_v53  ;;  %7526 = vmatpush1.bf16.msra.mxu1 %v10307_v54  ;;  %v10388_v53 = vld [vmem:[%s15282_s1 + $0x6c0] ss:$16 sps:$4 sm:$0xff]   ;;  %v10391_v54 = vld [vmem:[%s15282_s1 + $0x6c8] ss:$16 sps:$4 sm:$0xff]  }
  0xa4   :  { %6679 = vmatprep.subr.bf16.mxu0 %v10312_v55  ;;  %7527 = vmatprep.subr.bf16.mxu1 %v10315_v56  ;;  %v10396_v55 = vld [vmem:[%s15282_s1 + $0x6e4] ss:$16 sps:$4 sm:$0xff]   ;;  %v10399_v56 = vld [vmem:[%s15282_s1 + $0x6ec] ss:$16 sps:$4 sm:$0xff]  }
  0xa7   :  { %6680 = vmatpush1.bf16.msra.mxu0 %v10310_v57  ;;  %7528 = vmatpush1.bf16.msra.mxu1 %v10313_v58  ;;  %v10394_v57 = vld [vmem:[%s15282_s1 + $0x6e0] ss:$16 sps:$4 sm:$0xff]   ;;  %v10397_v58 = vld [vmem:[%s15282_s1 + $0x6e8] ss:$16 sps:$4 sm:$0xff]  }
  0xa8   :  { %6681 = vmatprep.subr.bf16.mxu0 %v10318_v59  ;;  %7529 = vmatprep.subr.bf16.mxu1 %v10321_v60  ;;  %v10402_v59 = vld [vmem:[%s15282_s1 + $0x704] ss:$16 sps:$4 sm:$0xff]   ;;  %v10405_v60 = vld [vmem:[%s15282_s1 + $0x70c] ss:$16 sps:$4 sm:$0xff]  }
  0xab   :  { %6682 = vmatpush1.bf16.msra.mxu0 %v10316_v61  ;;  %7530 = vmatpush1.bf16.msra.mxu1 %v10319_v62  ;;  %v10400_v61 = vld [vmem:[%s15282_s1 + $0x700] ss:$16 sps:$4 sm:$0xff]   ;;  %v10403_v62 = vld [vmem:[%s15282_s1 + $0x708] ss:$16 sps:$4 sm:$0xff]  }
  0xac   :  { %6683 = vmatprep.subr.bf16.mxu0 %v10324_v63  ;;  %7531 = vmatprep.subr.bf16.mxu1 %v10327_v0  ;;  %v10408_v63 = vld [vmem:[%s15282_s1 + $0x724] ss:$16 sps:$4 sm:$0xff]   ;;  %v10411_v0 = vld [vmem:[%s15282_s1 + $0x72c] ss:$16 sps:$4 sm:$0xff]  }
  0xaf   :  { %6684 = vmatpush1.bf16.msra.mxu0 %v10322_v1  ;;  %7532 = vmatpush1.bf16.msra.mxu1 %v10325_v2  ;;  %v10406_v1 = vld [vmem:[%s15282_s1 + $0x720] ss:$16 sps:$4 sm:$0xff]   ;;  %v10409_v2 = vld [vmem:[%s15282_s1 + $0x728] ss:$16 sps:$4 sm:$0xff]  }
  0xb0   :  { %6685 = vmatprep.subr.bf16.mxu0 %v10330_v3  ;;  %7533 = vmatprep.subr.bf16.mxu1 %v10333_v4  ;;  %v10414_v3 = vld [vmem:[%s15282_s1 + $0x744] ss:$16 sps:$4 sm:$0xff]   ;;  %v10417_v4 = vld [vmem:[%s15282_s1 + $0x74c] ss:$16 sps:$4 sm:$0xff]  }
  0xb3   :  { %6686 = vmatpush1.bf16.msra.mxu0 %v10328_v5  ;;  %7534 = vmatpush1.bf16.msra.mxu1 %v10331_v6  ;;  %v10412_v5 = vld [vmem:[%s15282_s1 + $0x740] ss:$16 sps:$4 sm:$0xff]   ;;  %v10415_v6 = vld [vmem:[%s15282_s1 + $0x748] ss:$16 sps:$4 sm:$0xff]  }
  0xb4   :  { %6687 = vmatprep.subr.bf16.mxu0 %v10336_v7  ;;  %7535 = vmatprep.subr.bf16.mxu1 %v10339_v8  ;;  %v10420_v7 = vld [vmem:[%s15282_s1 + $0x764] ss:$16 sps:$4 sm:$0xff]   ;;  %v10423_v8 = vld [vmem:[%s15282_s1 + $0x76c] ss:$16 sps:$4 sm:$0xff]  }
  0xb7   :  { %6688 = vmatpush1.bf16.msra.mxu0 %v10334_v9  ;;  %7536 = vmatpush1.bf16.msra.mxu1 %v10337_v10  ;;  %v10418_v9 = vld [vmem:[%s15282_s1 + $0x760] ss:$16 sps:$4 sm:$0xff]   ;;  %v10421_v10 = vld [vmem:[%s15282_s1 + $0x768] ss:$16 sps:$4 sm:$0xff]  }
  0xb8   :  { %6689 = vmatprep.subr.bf16.mxu0 %v10342_v11  ;;  %7537 = vmatprep.subr.bf16.mxu1 %v10345_v12  ;;  %v10426_v11 = vld [vmem:[%s15282_s1 + $0x784] ss:$16 sps:$4 sm:$0xff]   ;;  %v10429_v12 = vld [vmem:[%s15282_s1 + $0x78c] ss:$16 sps:$4 sm:$0xff]  }
  0xbb   :  { %6690 = vmatpush1.bf16.msra.mxu0 %v10340_v13  ;;  %7538 = vmatpush1.bf16.msra.mxu1 %v10343_v14  ;;  %v10424_v13 = vld [vmem:[%s15282_s1 + $0x780] ss:$16 sps:$4 sm:$0xff]   ;;  %v10427_v14 = vld [vmem:[%s15282_s1 + $0x788] ss:$16 sps:$4 sm:$0xff]  }
  0xbc   :  { %6691 = vmatprep.subr.bf16.mxu0 %v10348_v15  ;;  %7539 = vmatprep.subr.bf16.mxu1 %v10351_v16  ;;  %v10432_v15 = vld [vmem:[%s15282_s1 + $0x7a4] ss:$16 sps:$4 sm:$0xff]   ;;  %v10435_v16 = vld [vmem:[%s15282_s1 + $0x7ac] ss:$16 sps:$4 sm:$0xff]  }
  0xbf   :  { %6692 = vmatpush1.bf16.msra.mxu0 %v10346_v17  ;;  %7540 = vmatpush1.bf16.msra.mxu1 %v10349_v18  ;;  %v10430_v17 = vld [vmem:[%s15282_s1 + $0x7a0] ss:$16 sps:$4 sm:$0xff]   ;;  %v10433_v18 = vld [vmem:[%s15282_s1 + $0x7a8] ss:$16 sps:$4 sm:$0xff]  }
  0xc0   :  { %6714 = vmatprep.subr.bf16.mxu0 %v10354_v19  ;;  %7562 = vmatprep.subr.bf16.mxu1 %v10357_v20  ;;  %v10438_v19 = vld [vmem:[%s15282_s1 + $0x7c4] ss:$16 sps:$4 sm:$0xff]   ;;  %v10441_v20 = vld [vmem:[%s15282_s1 + $0x7cc] ss:$16 sps:$4 sm:$0xff]  }
  0xc2   :  { %6694 = vmatmul.mubr.bf16.vlgmr.msra.gmra.mrb[0].mxu0 %v8720_v22  ;;  %7542 = vmatmul.mubr.bf16.vlgmr.msra.gmra.mrb[0].mxu1 %v8720_v22  ;;  %v10439_v22 = vld [vmem:[%s15282_s1 + $0x7c8] ss:$16 sps:$4 sm:$0xff]  }
  0xc3   :  { %6715 = vmatpush1.bf16.msra.mxu0 %v10352_v24  ;;  %7563 = vmatpush1.bf16.msra.mxu1 %v10355_v26  ;;  %v10447_v24 = vld [vmem:[%s15282_s1 + $0x7ec] ss:$16 sps:$4 sm:$0xff]   ;;  %v10442_v26 = vld [vmem:[%s15282_s1 + $0x7e0] ss:$16 sps:$4 sm:$0xff]  }
  0xc4   :  { %6716 = vmatprep.subr.bf16.mxu0 %v10360_v25  ;;  %7564 = vmatprep.subr.bf16.mxu1 %v10363_v27  ;;  %v10445_v25 = vld [vmem:[%s15282_s1 + $0x7e8] ss:$16 sps:$4 sm:$0xff]   ;;  %v10450_v27 = vld [vmem:[%s15282_s1 + $0x804] ss:$16 sps:$4 sm:$0xff]  }
  0xc5   :  { %6703 = vmatprep.mubr.bf16.mxu0 %v8753_v28  ;;  %7551 = vmatprep.mubr.bf16.mxu1 %v8753_v28  ;;  %v10453_v28 = vld [vmem:[%s15282_s1 + $0x80c] ss:$16 sps:$4 sm:$0xff]  }
  0xc7   :  { %6717 = vmatpush1.bf16.msra.mxu0 %v10358_v29  ;;  %7565 = vmatpush1.bf16.msra.mxu1 %v10361_v30  ;;  %v62_v29 = vld [vmem:[%s15283_s0 + $0x118] sm:$0xff]  ;;  %v8722_v30 = vcombine.low %v12314_v33, %v12319_v35 }
  0xc8   :  { %6718 = vmatprep.subr.bf16.mxu0 %v10366_v31  ;;  %7566 = vmatprep.subr.bf16.mxu1 %v10369_v32  ;;  %v78_v31 = vld [vmem:[%s15283_s0 + $0x198] sm:$0xff]  ;;  %v10448_v32 = vld [vmem:[%s15282_s1 + $0x800] ss:$16 sps:$4 sm:$0xff]  }
  0xc9   :  { %v10459_v33 = vld [vmem:[%s15282_s1 + $0x82c] ss:$16 sps:$4 sm:$0xff]   ;;  %v8755_v35 = vcombine.high %v62_v29, %v78_v31 }
  0xca   :  { %6704 = vmatmul.mubr.bf16.gmra.mrb[4].mxu0 %v8752_v34  ;;  %7552 = vmatmul.mubr.bf16.gmra.mrb[4].mxu1 %v8752_v34  ;;  %v10451_v34 = vld [vmem:[%s15282_s1 + $0x808] ss:$16 sps:$4 sm:$0xff]  }
  0xcb   :  { %6719 = vmatpush1.bf16.msra.mxu0 %v10364_v36  ;;  %7567 = vmatpush1.bf16.msra.mxu1 %v10367_v37  ;;  %v10456_v36 = vld [vmem:[%s15282_s1 + $0x824] ss:$16 sps:$4 sm:$0xff]   ;;  %v10454_v37 = vld [vmem:[%s15282_s1 + $0x820] ss:$16 sps:$4 sm:$0xff]  }
  0xcc   :  { %6720 = vmatprep.subr.bf16.mxu0 %v10372_v38  ;;  %7568 = vmatprep.subr.bf16.mxu1 %v10375_v39  ;;  %v10457_v38 = vld [vmem:[%s15282_s1 + $0x828] ss:$16 sps:$4 sm:$0xff]   ;;  %v10462_v39 = vld [vmem:[%s15282_s1 + $0x844] ss:$16 sps:$4 sm:$0xff]  }
  0xcd   :  { %6746 = vmatprep.mubr.bf16.mxu0 %v8723_v40  ;;  %7594 = vmatprep.mubr.bf16.mxu1 %v8723_v40  ;;  %v10465_v40 = vld [vmem:[%s15282_s1 + $0x84c] ss:$16 sps:$4 sm:$0xff]  }
  0xcf   :  { %6721 = vmatpush1.bf16.msra.mxu0 %v10370_v41  ;;  %7569 = vmatpush1.bf16.msra.mxu1 %v10373_v42  ;;  %v12526_v41 = vld [vmem:[%s15283_s0 + $0x20] sm:$0xff]  ;;  %v8754_v42 = vcombine.low %v62_v29, %v78_v31 }
  0xd0   :  { %6722 = vmatprep.subr.bf16.mxu0 %v10378_v43  ;;  %7570 = vmatprep.subr.bf16.mxu1 %v10381_v44  ;;  %v12531_v43 = vld [vmem:[%s15283_s0 + $0xa0] sm:$0xff] }
  0xd1   :  { %v10460_v44 = vld [vmem:[%s15282_s1 + $0x840] ss:$16 sps:$4 sm:$0xff]   ;;  %v10540_v31 = vld [vmem:[%s15282_s1 + $0x9e4] ss:$16 sps:$4 sm:$0xff]  }
  0xd2   :  { %v10532_v29 = vld [vmem:[%s15282_s1 + $0x9c0] ss:$16 sps:$4 sm:$0xff]  }
  0xd3   :  { %6723 = vmatpush1.bf16.msra.mxu0 %v10376_v45  ;;  %7571 = vmatpush1.bf16.msra.mxu1 %v10379_v46  ;;  %v10463_v45 = vld [vmem:[%s15282_s1 + $0x848] ss:$16 sps:$4 sm:$0xff]   ;;  %v10468_v46 = vld [vmem:[%s15282_s1 + $0x864] ss:$16 sps:$4 sm:$0xff]  }
  0xd4   :  { %6724 = vmatprep.subr.bf16.mxu0 %v10384_v47  ;;  %7572 = vmatprep.subr.bf16.mxu1 %v10387_v48  ;;  %v10471_v47 = vld [vmem:[%s15282_s1 + $0x86c] ss:$16 sps:$4 sm:$0xff]   ;;  %v8725_v48 = vcombine.high %v12526_v41, %v12531_v43 }
  0xd7   :  { %6725 = vmatpush1.bf16.msra.mxu0 %v10382_v49  ;;  %7573 = vmatpush1.bf16.msra.mxu1 %v10385_v50  ;;  %v10466_v49 = vld [vmem:[%s15282_s1 + $0x860] ss:$16 sps:$4 sm:$0xff]   ;;  %v10469_v50 = vld [vmem:[%s15282_s1 + $0x868] ss:$16 sps:$4 sm:$0xff]  }
  0xd8   :  { %6726 = vmatprep.subr.bf16.mxu0 %v10390_v51  ;;  %7574 = vmatprep.subr.bf16.mxu1 %v10393_v52  ;;  %v10474_v51 = vld [vmem:[%s15282_s1 + $0x884] ss:$16 sps:$4 sm:$0xff]   ;;  %v10477_v52 = vld [vmem:[%s15282_s1 + $0x88c] ss:$16 sps:$4 sm:$0xff]  }
  0xdb   :  { %6727 = vmatpush1.bf16.msra.mxu0 %v10388_v53  ;;  %7575 = vmatpush1.bf16.msra.mxu1 %v10391_v54  ;;  %v10472_v53 = vld [vmem:[%s15282_s1 + $0x880] ss:$16 sps:$4 sm:$0xff]   ;;  %v10475_v54 = vld [vmem:[%s15282_s1 + $0x888] ss:$16 sps:$4 sm:$0xff]  }
  0xdc   :  { %6728 = vmatprep.subr.bf16.mxu0 %v10396_v55  ;;  %7576 = vmatprep.subr.bf16.mxu1 %v10399_v56  ;;  %v10480_v55 = vld [vmem:[%s15282_s1 + $0x8a4] ss:$16 sps:$4 sm:$0xff]   ;;  %v10483_v56 = vld [vmem:[%s15282_s1 + $0x8ac] ss:$16 sps:$4 sm:$0xff]  }
  0xdf   :  { %6729 = vmatpush1.bf16.msra.mxu0 %v10394_v57  ;;  %7577 = vmatpush1.bf16.msra.mxu1 %v10397_v58  ;;  %v10478_v57 = vld [vmem:[%s15282_s1 + $0x8a0] ss:$16 sps:$4 sm:$0xff]   ;;  %v10481_v58 = vld [vmem:[%s15282_s1 + $0x8a8] ss:$16 sps:$4 sm:$0xff]  }
  0xe0   :  { %6730 = vmatprep.subr.bf16.mxu0 %v10402_v59  ;;  %7578 = vmatprep.subr.bf16.mxu1 %v10405_v60  ;;  %v10486_v59 = vld [vmem:[%s15282_s1 + $0x8c4] ss:$16 sps:$4 sm:$0xff]   ;;  %v10489_v60 = vld [vmem:[%s15282_s1 + $0x8cc] ss:$16 sps:$4 sm:$0xff]  }
  0xe3   :  { %6731 = vmatpush1.bf16.msra.mxu0 %v10400_v61  ;;  %7579 = vmatpush1.bf16.msra.mxu1 %v10403_v62  ;;  %v10484_v61 = vld [vmem:[%s15282_s1 + $0x8c0] ss:$16 sps:$4 sm:$0xff]   ;;  %v10487_v62 = vld [vmem:[%s15282_s1 + $0x8c8] ss:$16 sps:$4 sm:$0xff]  }
  0xe4   :  { %6732 = vmatprep.subr.bf16.mxu0 %v10408_v63  ;;  %7580 = vmatprep.subr.bf16.mxu1 %v10411_v0  ;;  %v10492_v63 = vld [vmem:[%s15282_s1 + $0x8e4] ss:$16 sps:$4 sm:$0xff]   ;;  %v10495_v0 = vld [vmem:[%s15282_s1 + $0x8ec] ss:$16 sps:$4 sm:$0xff]  }
  0xe7   :  { %6733 = vmatpush1.bf16.msra.mxu0 %v10406_v1  ;;  %7581 = vmatpush1.bf16.msra.mxu1 %v10409_v2  ;;  %v10490_v1 = vld [vmem:[%s15282_s1 + $0x8e0] ss:$16 sps:$4 sm:$0xff]   ;;  %v10493_v2 = vld [vmem:[%s15282_s1 + $0x8e8] ss:$16 sps:$4 sm:$0xff]  }
  0xe8   :  { %6734 = vmatprep.subr.bf16.mxu0 %v10414_v3  ;;  %7582 = vmatprep.subr.bf16.mxu1 %v10417_v4  ;;  %v10498_v3 = vld [vmem:[%s15282_s1 + $0x904] ss:$16 sps:$4 sm:$0xff]   ;;  %v10501_v4 = vld [vmem:[%s15282_s1 + $0x90c] ss:$16 sps:$4 sm:$0xff]  }
  0xeb   :  { %6735 = vmatpush1.bf16.msra.mxu0 %v10412_v5  ;;  %7583 = vmatpush1.bf16.msra.mxu1 %v10415_v6  ;;  %v10496_v5 = vld [vmem:[%s15282_s1 + $0x900] ss:$16 sps:$4 sm:$0xff]   ;;  %v10499_v6 = vld [vmem:[%s15282_s1 + $0x908] ss:$16 sps:$4 sm:$0xff]  }
  0xec   :  { %6736 = vmatprep.subr.bf16.mxu0 %v10420_v7  ;;  %7584 = vmatprep.subr.bf16.mxu1 %v10423_v8  ;;  %v10504_v7 = vld [vmem:[%s15282_s1 + $0x924] ss:$16 sps:$4 sm:$0xff]   ;;  %v10507_v8 = vld [vmem:[%s15282_s1 + $0x92c] ss:$16 sps:$4 sm:$0xff]  }
  0xef   :  { %6737 = vmatpush1.bf16.msra.mxu0 %v10418_v9  ;;  %7585 = vmatpush1.bf16.msra.mxu1 %v10421_v10  ;;  %v10502_v9 = vld [vmem:[%s15282_s1 + $0x920] ss:$16 sps:$4 sm:$0xff]   ;;  %v10505_v10 = vld [vmem:[%s15282_s1 + $0x928] ss:$16 sps:$4 sm:$0xff]  }
  0xf0   :  { %6738 = vmatprep.subr.bf16.mxu0 %v10426_v11  ;;  %7586 = vmatprep.subr.bf16.mxu1 %v10429_v12  ;;  %v10510_v11 = vld [vmem:[%s15282_s1 + $0x944] ss:$16 sps:$4 sm:$0xff]   ;;  %v10513_v12 = vld [vmem:[%s15282_s1 + $0x94c] ss:$16 sps:$4 sm:$0xff]  }
  0xf3   :  { %6739 = vmatpush1.bf16.msra.mxu0 %v10424_v13  ;;  %7587 = vmatpush1.bf16.msra.mxu1 %v10427_v14  ;;  %v10508_v13 = vld [vmem:[%s15282_s1 + $0x940] ss:$16 sps:$4 sm:$0xff]   ;;  %v10511_v14 = vld [vmem:[%s15282_s1 + $0x948] ss:$16 sps:$4 sm:$0xff]  }
  0xf4   :  { %6740 = vmatprep.subr.bf16.mxu0 %v10432_v15  ;;  %7588 = vmatprep.subr.bf16.mxu1 %v10435_v16  ;;  %v10516_v15 = vld [vmem:[%s15282_s1 + $0x964] ss:$16 sps:$4 sm:$0xff]   ;;  %v10519_v16 = vld [vmem:[%s15282_s1 + $0x96c] ss:$16 sps:$4 sm:$0xff]  }
  0xf7   :  { %6741 = vmatpush1.bf16.msra.mxu0 %v10430_v17  ;;  %7589 = vmatpush1.bf16.msra.mxu1 %v10433_v18  ;;  %v10514_v17 = vld [vmem:[%s15282_s1 + $0x960] ss:$16 sps:$4 sm:$0xff]   ;;  %v10517_v18 = vld [vmem:[%s15282_s1 + $0x968] ss:$16 sps:$4 sm:$0xff]  }
  0xf8   :  { %6742 = vmatprep.subr.bf16.mxu0 %v10438_v19  ;;  %7590 = vmatprep.subr.bf16.mxu1 %v10441_v20  ;;  %v10522_v19 = vld [vmem:[%s15282_s1 + $0x984] ss:$16 sps:$4 sm:$0xff]   ;;  %v10525_v20 = vld [vmem:[%s15282_s1 + $0x98c] ss:$16 sps:$4 sm:$0xff]  }
  0xfb   :  { %6743 = vmatpush1.bf16.msra.mxu0 %v10436_v21  ;;  %7591 = vmatpush1.bf16.msra.mxu1 %v10439_v22  ;;  %v10520_v21 = vld [vmem:[%s15282_s1 + $0x980] ss:$16 sps:$4 sm:$0xff]   ;;  %v10523_v22 = vld [vmem:[%s15282_s1 + $0x988] ss:$16 sps:$4 sm:$0xff]  }
  0xfc   :  { %6744 = vmatprep.subr.bf16.mxu0 %v10444_v23  ;;  %7592 = vmatprep.subr.bf16.mxu1 %v10447_v24  ;;  %v10528_v23 = vld [vmem:[%s15282_s1 + $0x9a4] ss:$16 sps:$4 sm:$0xff]   ;;  %v10531_v24 = vld [vmem:[%s15282_s1 + $0x9ac] ss:$16 sps:$4 sm:$0xff]  }
  0xff   :  { %6745 = vmatpush1.bf16.msra.mxu0 %v10442_v26  ;;  %7593 = vmatpush1.bf16.msra.mxu1 %v10445_v25  ;;  %v10526_v26 = vld [vmem:[%s15282_s1 + $0x9a0] ss:$16 sps:$4 sm:$0xff]   ;;  %v10529_v25 = vld [vmem:[%s15282_s1 + $0x9a8] ss:$16 sps:$4 sm:$0xff]  }
 0x100   :  { %6767 = vmatprep.subr.bf16.mxu0 %v10450_v27  ;;  %7615 = vmatprep.subr.bf16.mxu1 %v10453_v28  ;;  %v10534_v27 = vld [vmem:[%s15282_s1 + $0x9c4] ss:$16 sps:$4 sm:$0xff]   ;;  %v10537_v28 = vld [vmem:[%s15282_s1 + $0x9cc] ss:$16 sps:$4 sm:$0xff]  }
 0x102   :  { %6747 = vmatmul.mubr.bf16.vlgmr.msra.gmra.mrb[0].mxu0 %v8722_v30  ;;  %7595 = vmatmul.mubr.bf16.vlgmr.msra.gmra.mrb[0].mxu1 %v8722_v30  ;;  %v10535_v30 = vld [vmem:[%s15282_s1 + $0x9c8] ss:$16 sps:$4 sm:$0xff]  }
 0x103   :  { %6768 = vmatpush1.bf16.msra.mxu0 %v10448_v32  ;;  %7616 = vmatpush1.bf16.msra.mxu1 %v10451_v34  ;;  %v10543_v32 = vld [vmem:[%s15282_s1 + $0x9ec] ss:$16 sps:$4 sm:$0xff]   ;;  %v10538_v34 = vld [vmem:[%s15282_s1 + $0x9e0] ss:$16 sps:$4 sm:$0xff]  }
 0x104   :  { %6769 = vmatprep.subr.bf16.mxu0 %v10456_v36  ;;  %7617 = vmatprep.subr.bf16.mxu1 %v10459_v33  ;;  %v10541_v36 = vld [vmem:[%s15282_s1 + $0x9e8] ss:$16 sps:$4 sm:$0xff]   ;;  %v10546_v33 = vld [vmem:[%s15282_s1 + $0xa04] ss:$16 sps:$4 sm:$0xff]  }
 0x105   :  { %6756 = vmatprep.mubr.bf16.mxu0 %v8755_v35  ;;  %7604 = vmatprep.mubr.bf16.mxu1 %v8755_v35  ;;  %v10549_v35 = vld [vmem:[%s15282_s1 + $0xa0c] ss:$16 sps:$4 sm:$0xff]  }
 0x107   :  { %6770 = vmatpush1.bf16.msra.mxu0 %v10454_v37  ;;  %7618 = vmatpush1.bf16.msra.mxu1 %v10457_v38  ;;  %v63_v37 = vld [vmem:[%s15283_s0 + $0x120] sm:$0xff] }
 0x108   :  { %6771 = vmatprep.subr.bf16.mxu0 %v10462_v39  ;;  %7619 = vmatprep.subr.bf16.mxu1 %v10465_v40  ;;  %v79_v38 = vld [vmem:[%s15283_s0 + $0x1a0] sm:$0xff]  ;;  %v8724_v39 = vcombine.low %v12526_v41, %v12531_v43  ;;  %v10555_v41 = vld [vmem:[%s15282_s1 + $0xa2c] ss:$16 sps:$4 sm:$0xff]  }
 0x109   :  { %v10544_v40 = vld [vmem:[%s15282_s1 + $0xa00] ss:$16 sps:$4 sm:$0xff]  }
 0x10a   :  { %6757 = vmatmul.mubr.bf16.gmra.mrb[4].mxu0 %v8754_v42  ;;  %7605 = vmatmul.mubr.bf16.gmra.mrb[4].mxu1 %v8754_v42  ;;  %v10547_v42 = vld [vmem:[%s15282_s1 + $0xa08] ss:$16 sps:$4 sm:$0xff]   ;;  %v10550_v43 = vld [vmem:[%s15282_s1 + $0xa20] ss:$16 sps:$4 sm:$0xff]  }
 0x10b   :  { %6772 = vmatpush1.bf16.msra.mxu0 %v10460_v44  ;;  %7620 = vmatpush1.bf16.msra.mxu1 %v10463_v45  ;;  %v10552_v44 = vld [vmem:[%s15282_s1 + $0xa24] ss:$16 sps:$4 sm:$0xff]   ;;  %v10553_v45 = vld [vmem:[%s15282_s1 + $0xa28] ss:$16 sps:$4 sm:$0xff]  }
 0x10c   :  { %6773 = vmatprep.subr.bf16.mxu0 %v10468_v46  ;;  %7621 = vmatprep.subr.bf16.mxu1 %v10471_v47  ;;  %v8757_v46 = vcombine.high %v63_v37, %v79_v38  ;;  %v10558_v47 = vld [vmem:[%s15282_s1 + $0xa44] ss:$16 sps:$4 sm:$0xff]  }
 0x10d   :  { %6799 = vmatprep.mubr.bf16.mxu0 %v8725_v48  ;;  %7647 = vmatprep.mubr.bf16.mxu1 %v8725_v48  ;;  %v10561_v48 = vld [vmem:[%s15282_s1 + $0xa4c] ss:$16 sps:$4 sm:$0xff]  }
 0x10f   :  { %6774 = vmatpush1.bf16.msra.mxu0 %v10466_v49  ;;  %7622 = vmatpush1.bf16.msra.mxu1 %v10469_v50  ;;  %v12738_v49 = vld [vmem:[%s15283_s0 + $0x28] sm:$0xff] }
 0x110   :  { %6775 = vmatprep.subr.bf16.mxu0 %v10474_v51  ;;  %7623 = vmatprep.subr.bf16.mxu1 %v10477_v52  ;;  %v12743_v50 = vld [vmem:[%s15283_s0 + $0xa8] sm:$0xff]  ;;  %v8756_v51 = vcombine.low %v63_v37, %v79_v38  ;;  %v10556_v52 = vld [vmem:[%s15282_s1 + $0xa40] ss:$16 sps:$4 sm:$0xff]  }
 0x111   :  { %v10628_v37 = vld [vmem:[%s15282_s1 + $0xbc0] ss:$16 sps:$4 sm:$0xff]   ;;  %v10631_v38 = vld [vmem:[%s15282_s1 + $0xbc8] ss:$16 sps:$4 sm:$0xff]  }
 0x113   :  { %6776 = vmatpush1.bf16.msra.mxu0 %v10472_v53  ;;  %7624 = vmatpush1.bf16.msra.mxu1 %v10475_v54  ;;  %v10559_v53 = vld [vmem:[%s15282_s1 + $0xa48] ss:$16 sps:$4 sm:$0xff]   ;;  %v10564_v54 = vld [vmem:[%s15282_s1 + $0xa64] ss:$16 sps:$4 sm:$0xff]  }
 0x114   :  { %6777 = vmatprep.subr.bf16.mxu0 %v10480_v55  ;;  %7625 = vmatprep.subr.bf16.mxu1 %v10483_v56  ;;  %v10567_v55 = vld [vmem:[%s15282_s1 + $0xa6c] ss:$16 sps:$4 sm:$0xff]   ;;  %v8727_v56 = vcombine.high %v12738_v49, %v12743_v50 }
 0x117   :  { %6778 = vmatpush1.bf16.msra.mxu0 %v10478_v57  ;;  %7626 = vmatpush1.bf16.msra.mxu1 %v10481_v58  ;;  %v10562_v57 = vld [vmem:[%s15282_s1 + $0xa60] ss:$16 sps:$4 sm:$0xff]   ;;  %v10565_v58 = vld [vmem:[%s15282_s1 + $0xa68] ss:$16 sps:$4 sm:$0xff]  }
 0x118   :  { %6779 = vmatprep.subr.bf16.mxu0 %v10486_v59  ;;  %7627 = vmatprep.subr.bf16.mxu1 %v10489_v60  ;;  %v10570_v59 = vld [vmem:[%s15282_s1 + $0xa84] ss:$16 sps:$4 sm:$0xff]   ;;  %v10573_v60 = vld [vmem:[%s15282_s1 + $0xa8c] ss:$16 sps:$4 sm:$0xff]  }
 0x11b   :  { %6780 = vmatpush1.bf16.msra.mxu0 %v10484_v61  ;;  %7628 = vmatpush1.bf16.msra.mxu1 %v10487_v62  ;;  %v10568_v61 = vld [vmem:[%s15282_s1 + $0xa80] ss:$16 sps:$4 sm:$0xff]   ;;  %v10571_v62 = vld [vmem:[%s15282_s1 + $0xa88] ss:$16 sps:$4 sm:$0xff]  }
 0x11c   :  { %6781 = vmatprep.subr.bf16.mxu0 %v10492_v63  ;;  %7629 = vmatprep.subr.bf16.mxu1 %v10495_v0  ;;  %v10576_v63 = vld [vmem:[%s15282_s1 + $0xaa4] ss:$16 sps:$4 sm:$0xff]   ;;  %v10579_v0 = vld [vmem:[%s15282_s1 + $0xaac] ss:$16 sps:$4 sm:$0xff]  }
 0x11f   :  { %6782 = vmatpush1.bf16.msra.mxu0 %v10490_v1  ;;  %7630 = vmatpush1.bf16.msra.mxu1 %v10493_v2  ;;  %v10574_v1 = vld [vmem:[%s15282_s1 + $0xaa0] ss:$16 sps:$4 sm:$0xff]   ;;  %v10577_v2 = vld [vmem:[%s15282_s1 + $0xaa8] ss:$16 sps:$4 sm:$0xff]  }
 0x120   :  { %6783 = vmatprep.subr.bf16.mxu0 %v10498_v3  ;;  %7631 = vmatprep.subr.bf16.mxu1 %v10501_v4  ;;  %v10582_v3 = vld [vmem:[%s15282_s1 + $0xac4] ss:$16 sps:$4 sm:$0xff]   ;;  %v10585_v4 = vld [vmem:[%s15282_s1 + $0xacc] ss:$16 sps:$4 sm:$0xff]  }
 0x123   :  { %6784 = vmatpush1.bf16.msra.mxu0 %v10496_v5  ;;  %7632 = vmatpush1.bf16.msra.mxu1 %v10499_v6  ;;  %v10580_v5 = vld [vmem:[%s15282_s1 + $0xac0] ss:$16 sps:$4 sm:$0xff]   ;;  %v10583_v6 = vld [vmem:[%s15282_s1 + $0xac8] ss:$16 sps:$4 sm:$0xff]  }
 0x124   :  { %6785 = vmatprep.subr.bf16.mxu0 %v10504_v7  ;;  %7633 = vmatprep.subr.bf16.mxu1 %v10507_v8  ;;  %v10588_v7 = vld [vmem:[%s15282_s1 + $0xae4] ss:$16 sps:$4 sm:$0xff]   ;;  %v10591_v8 = vld [vmem:[%s15282_s1 + $0xaec] ss:$16 sps:$4 sm:$0xff]  }
 0x127   :  { %6786 = vmatpush1.bf16.msra.mxu0 %v10502_v9  ;;  %7634 = vmatpush1.bf16.msra.mxu1 %v10505_v10  ;;  %v10586_v9 = vld [vmem:[%s15282_s1 + $0xae0] ss:$16 sps:$4 sm:$0xff]   ;;  %v10589_v10 = vld [vmem:[%s15282_s1 + $0xae8] ss:$16 sps:$4 sm:$0xff]  }
 0x128   :  { %6787 = vmatprep.subr.bf16.mxu0 %v10510_v11  ;;  %7635 = vmatprep.subr.bf16.mxu1 %v10513_v12  ;;  %v10594_v11 = vld [vmem:[%s15282_s1 + $0xb04] ss:$16 sps:$4 sm:$0xff]   ;;  %v10597_v12 = vld [vmem:[%s15282_s1 + $0xb0c] ss:$16 sps:$4 sm:$0xff]  }
 0x12b   :  { %6788 = vmatpush1.bf16.msra.mxu0 %v10508_v13  ;;  %7636 = vmatpush1.bf16.msra.mxu1 %v10511_v14  ;;  %v10592_v13 = vld [vmem:[%s15282_s1 + $0xb00] ss:$16 sps:$4 sm:$0xff]   ;;  %v10595_v14 = vld [vmem:[%s15282_s1 + $0xb08] ss:$16 sps:$4 sm:$0xff]  }
 0x12c   :  { %6789 = vmatprep.subr.bf16.mxu0 %v10516_v15  ;;  %7637 = vmatprep.subr.bf16.mxu1 %v10519_v16  ;;  %v10600_v15 = vld [vmem:[%s15282_s1 + $0xb24] ss:$16 sps:$4 sm:$0xff]   ;;  %v10603_v16 = vld [vmem:[%s15282_s1 + $0xb2c] ss:$16 sps:$4 sm:$0xff]  }
 0x12f   :  { %6790 = vmatpush1.bf16.msra.mxu0 %v10514_v17  ;;  %7638 = vmatpush1.bf16.msra.mxu1 %v10517_v18  ;;  %v10598_v17 = vld [vmem:[%s15282_s1 + $0xb20] ss:$16 sps:$4 sm:$0xff]   ;;  %v10601_v18 = vld [vmem:[%s15282_s1 + $0xb28] ss:$16 sps:$4 sm:$0xff]  }
 0x130   :  { %6791 = vmatprep.subr.bf16.mxu0 %v10522_v19  ;;  %7639 = vmatprep.subr.bf16.mxu1 %v10525_v20  ;;  %v10606_v19 = vld [vmem:[%s15282_s1 + $0xb44] ss:$16 sps:$4 sm:$0xff]   ;;  %v10609_v20 = vld [vmem:[%s15282_s1 + $0xb4c] ss:$16 sps:$4 sm:$0xff]  }
 0x133   :  { %6792 = vmatpush1.bf16.msra.mxu0 %v10520_v21  ;;  %7640 = vmatpush1.bf16.msra.mxu1 %v10523_v22  ;;  %v10604_v21 = vld [vmem:[%s15282_s1 + $0xb40] ss:$16 sps:$4 sm:$0xff]   ;;  %v10607_v22 = vld [vmem:[%s15282_s1 + $0xb48] ss:$16 sps:$4 sm:$0xff]  }
 0x134   :  { %6793 = vmatprep.subr.bf16.mxu0 %v10528_v23  ;;  %7641 = vmatprep.subr.bf16.mxu1 %v10531_v24  ;;  %v10612_v23 = vld [vmem:[%s15282_s1 + $0xb64] ss:$16 sps:$4 sm:$0xff]   ;;  %v10615_v24 = vld [vmem:[%s15282_s1 + $0xb6c] ss:$16 sps:$4 sm:$0xff]  }
 0x137   :  { %6794 = vmatpush1.bf16.msra.mxu0 %v10526_v26  ;;  %7642 = vmatpush1.bf16.msra.mxu1 %v10529_v25  ;;  %v10610_v26 = vld [vmem:[%s15282_s1 + $0xb60] ss:$16 sps:$4 sm:$0xff]   ;;  %v10613_v25 = vld [vmem:[%s15282_s1 + $0xb68] ss:$16 sps:$4 sm:$0xff]  }
 0x138   :  { %6795 = vmatprep.subr.bf16.mxu0 %v10534_v27  ;;  %7643 = vmatprep.subr.bf16.mxu1 %v10537_v28  ;;  %v10618_v27 = vld [vmem:[%s15282_s1 + $0xb84] ss:$16 sps:$4 sm:$0xff]   ;;  %v10621_v28 = vld [vmem:[%s15282_s1 + $0xb8c] ss:$16 sps:$4 sm:$0xff]  }
 0x13b   :  { %6796 = vmatpush1.bf16.msra.mxu0 %v10532_v29  ;;  %7644 = vmatpush1.bf16.msra.mxu1 %v10535_v30  ;;  %v10616_v29 = vld [vmem:[%s15282_s1 + $0xb80] ss:$16 sps:$4 sm:$0xff]   ;;  %v10619_v30 = vld [vmem:[%s15282_s1 + $0xb88] ss:$16 sps:$4 sm:$0xff]  }
 0x13c   :  { %6797 = vmatprep.subr.bf16.mxu0 %v10540_v31  ;;  %7645 = vmatprep.subr.bf16.mxu1 %v10543_v32  ;;  %v10624_v31 = vld [vmem:[%s15282_s1 + $0xba4] ss:$16 sps:$4 sm:$0xff]   ;;  %v10627_v32 = vld [vmem:[%s15282_s1 + $0xbac] ss:$16 sps:$4 sm:$0xff]  }
 0x13f   :  { %6798 = vmatpush1.bf16.msra.mxu0 %v10538_v34  ;;  %7646 = vmatpush1.bf16.msra.mxu1 %v10541_v36  ;;  %v10622_v34 = vld [vmem:[%s15282_s1 + $0xba0] ss:$16 sps:$4 sm:$0xff]   ;;  %v10625_v36 = vld [vmem:[%s15282_s1 + $0xba8] ss:$16 sps:$4 sm:$0xff]  }
 0x140   :  { %6820 = vmatprep.subr.bf16.mxu0 %v10546_v33  ;;  %7668 = vmatprep.subr.bf16.mxu1 %v10549_v35  ;;  %v10630_v33 = vld [vmem:[%s15282_s1 + $0xbc4] ss:$16 sps:$4 sm:$0xff]   ;;  %v10633_v35 = vld [vmem:[%s15282_s1 + $0xbcc] ss:$16 sps:$4 sm:$0xff]  }
 0x142   :  { %6800 = vmatmul.mubr.bf16.vlgmr.msra.gmra.mrb[0].mxu0 %v8724_v39  ;;  %7648 = vmatmul.mubr.bf16.vlgmr.msra.gmra.mrb[0].mxu1 %v8724_v39  ;;  %v10636_v39 = vld [vmem:[%s15282_s1 + $0xbe4] ss:$16 sps:$4 sm:$0xff]  }
 0x143   :  { %6821 = vmatpush1.bf16.msra.mxu0 %v10544_v40  ;;  %7669 = vmatpush1.bf16.msra.mxu1 %v10547_v42  ;;  %v10639_v40 = vld [vmem:[%s15282_s1 + $0xbec] ss:$16 sps:$4 sm:$0xff]   ;;  %v10634_v42 = vld [vmem:[%s15282_s1 + $0xbe0] ss:$16 sps:$4 sm:$0xff]  }
 0x144   :  { %6822 = vmatprep.subr.bf16.mxu0 %v10552_v44  ;;  %7670 = vmatprep.subr.bf16.mxu1 %v10555_v41  ;;  %v10637_v44 = vld [vmem:[%s15282_s1 + $0xbe8] ss:$16 sps:$4 sm:$0xff]   ;;  %v10642_v41 = vld [vmem:[%s15282_s1 + $0xc04] ss:$16 sps:$4 sm:$0xff]  }
 0x145   :  { %6809 = vmatprep.mubr.bf16.mxu0 %v8757_v46  ;;  %7657 = vmatprep.mubr.bf16.mxu1 %v8757_v46  ;;  %v80_v46 = vld [vmem:[%s15283_s0 + $0x1a8] sm:$0xff] }
 0x147   :  { %6823 = vmatpush1.bf16.msra.mxu0 %v10550_v43  ;;  %7671 = vmatpush1.bf16.msra.mxu1 %v10553_v45  ;;  %v10645_v43 = vld [vmem:[%s15282_s1 + $0xc0c] ss:$16 sps:$4 sm:$0xff]  }
 0x148   :  { %6824 = vmatprep.subr.bf16.mxu0 %v10558_v47  ;;  %7672 = vmatprep.subr.bf16.mxu1 %v10561_v48  ;;  %v64_v45 = vld [vmem:[%s15283_s0 + $0x128] sm:$0xff]  ;;  %v8726_v47 = vcombine.low %v12738_v49, %v12743_v50  ;;  %v10640_v48 = vld [vmem:[%s15282_s1 + $0xc00] ss:$16 sps:$4 sm:$0xff]  }
 0x149   :  { %v10651_v49 = vld [vmem:[%s15282_s1 + $0xc2c] ss:$16 sps:$4 sm:$0xff]   ;;  %v10646_v50 = vld [vmem:[%s15282_s1 + $0xc20] ss:$16 sps:$4 sm:$0xff]  }
 0x14a   :  { %6810 = vmatmul.mubr.bf16.gmra.mrb[4].mxu0 %v8756_v51  ;;  %7658 = vmatmul.mubr.bf16.gmra.mrb[4].mxu1 %v8756_v51  ;;  %v10643_v51 = vld [vmem:[%s15282_s1 + $0xc08] ss:$16 sps:$4 sm:$0xff]  }
 0x14b   :  { %6825 = vmatpush1.bf16.msra.mxu0 %v10556_v52  ;;  %7673 = vmatpush1.bf16.msra.mxu1 %v10559_v53  ;;  %v10648_v52 = vld [vmem:[%s15282_s1 + $0xc24] ss:$16 sps:$4 sm:$0xff]   ;;  %v10649_v53 = vld [vmem:[%s15282_s1 + $0xc28] ss:$16 sps:$4 sm:$0xff]  }
 0x14c   :  { %6826 = vmatprep.subr.bf16.mxu0 %v10564_v54  ;;  %7674 = vmatprep.subr.bf16.mxu1 %v10567_v55  ;;  %v8759_v54 = vcombine.high %v64_v45, %v80_v46  ;;  %v10654_v55 = vld [vmem:[%s15282_s1 + $0xc44] ss:$16 sps:$4 sm:$0xff]  }
 0x14d   :  { %6852 = vmatprep.mubr.bf16.mxu0 %v8727_v56  ;;  %7700 = vmatprep.mubr.bf16.mxu1 %v8727_v56  ;;  %v10657_v56 = vld [vmem:[%s15282_s1 + $0xc4c] ss:$16 sps:$4 sm:$0xff]  }
 0x14f   :  { %6827 = vmatpush1.bf16.msra.mxu0 %v10562_v57  ;;  %7675 = vmatpush1.bf16.msra.mxu1 %v10565_v58  ;;  %v12950_v57 = vld [vmem:[%s15283_s0 + $0x30] sm:$0xff] }
 0x150   :  { %6828 = vmatprep.subr.bf16.mxu0 %v10570_v59  ;;  %7676 = vmatprep.subr.bf16.mxu1 %v10573_v60  ;;  %v12955_v58 = vld [vmem:[%s15283_s0 + $0xb0] sm:$0xff]  ;;  %v8758_v59 = vcombine.low %v64_v45, %v80_v46  ;;  %v10727_v46 = vld [vmem:[%s15282_s1 + $0xdc8] ss:$16 sps:$4 sm:$0xff]  }
 0x151   :  { %v10652_v60 = vld [vmem:[%s15282_s1 + $0xc40] ss:$16 sps:$4 sm:$0xff]  }
 0x152   :  { %v10724_v45 = vld [vmem:[%s15282_s1 + $0xdc0] ss:$16 sps:$4 sm:$0xff]  }
 0x153   :  { %6829 = vmatpush1.bf16.msra.mxu0 %v10568_v61  ;;  %7677 = vmatpush1.bf16.msra.mxu1 %v10571_v62  ;;  %v10655_v61 = vld [vmem:[%s15282_s1 + $0xc48] ss:$16 sps:$4 sm:$0xff]   ;;  %v10660_v62 = vld [vmem:[%s15282_s1 + $0xc64] ss:$16 sps:$4 sm:$0xff]  }
 0x154   :  { %6830 = vmatprep.subr.bf16.mxu0 %v10576_v63  ;;  %7678 = vmatprep.subr.bf16.mxu1 %v10579_v0  ;;  %v10663_v63 = vld [vmem:[%s15282_s1 + $0xc6c] ss:$16 sps:$4 sm:$0xff]   ;;  %v8729_v0 = vcombine.high %v12950_v57, %v12955_v58 }
 0x157   :  { %6831 = vmatpush1.bf16.msra.mxu0 %v10574_v1  ;;  %7679 = vmatpush1.bf16.msra.mxu1 %v10577_v2  ;;  %v10658_v1 = vld [vmem:[%s15282_s1 + $0xc60] ss:$16 sps:$4 sm:$0xff]   ;;  %v10661_v2 = vld [vmem:[%s15282_s1 + $0xc68] ss:$16 sps:$4 sm:$0xff]  }
 0x158   :  { %6832 = vmatprep.subr.bf16.mxu0 %v10582_v3  ;;  %7680 = vmatprep.subr.bf16.mxu1 %v10585_v4  ;;  %v10666_v3 = vld [vmem:[%s15282_s1 + $0xc84] ss:$16 sps:$4 sm:$0xff]   ;;  %v10669_v4 = vld [vmem:[%s15282_s1 + $0xc8c] ss:$16 sps:$4 sm:$0xff]  }
 0x15b   :  { %6833 = vmatpush1.bf16.msra.mxu0 %v10580_v5  ;;  %7681 = vmatpush1.bf16.msra.mxu1 %v10583_v6  ;;  %v10664_v5 = vld [vmem:[%s15282_s1 + $0xc80] ss:$16 sps:$4 sm:$0xff]   ;;  %v10667_v6 = vld [vmem:[%s15282_s1 + $0xc88] ss:$16 sps:$4 sm:$0xff]  }
 0x15c   :  { %6834 = vmatprep.subr.bf16.mxu0 %v10588_v7  ;;  %7682 = vmatprep.subr.bf16.mxu1 %v10591_v8  ;;  %v10672_v7 = vld [vmem:[%s15282_s1 + $0xca4] ss:$16 sps:$4 sm:$0xff]   ;;  %v10675_v8 = vld [vmem:[%s15282_s1 + $0xcac] ss:$16 sps:$4 sm:$0xff]  }
 0x15f   :  { %6835 = vmatpush1.bf16.msra.mxu0 %v10586_v9  ;;  %7683 = vmatpush1.bf16.msra.mxu1 %v10589_v10  ;;  %v10670_v9 = vld [vmem:[%s15282_s1 + $0xca0] ss:$16 sps:$4 sm:$0xff]   ;;  %v10673_v10 = vld [vmem:[%s15282_s1 + $0xca8] ss:$16 sps:$4 sm:$0xff]  }
 0x160   :  { %6836 = vmatprep.subr.bf16.mxu0 %v10594_v11  ;;  %7684 = vmatprep.subr.bf16.mxu1 %v10597_v12  ;;  %v10678_v11 = vld [vmem:[%s15282_s1 + $0xcc4] ss:$16 sps:$4 sm:$0xff]   ;;  %v10681_v12 = vld [vmem:[%s15282_s1 + $0xccc] ss:$16 sps:$4 sm:$0xff]  }
 0x163   :  { %6837 = vmatpush1.bf16.msra.mxu0 %v10592_v13  ;;  %7685 = vmatpush1.bf16.msra.mxu1 %v10595_v14  ;;  %v10676_v13 = vld [vmem:[%s15282_s1 + $0xcc0] ss:$16 sps:$4 sm:$0xff]   ;;  %v10679_v14 = vld [vmem:[%s15282_s1 + $0xcc8] ss:$16 sps:$4 sm:$0xff]  }
 0x164   :  { %6838 = vmatprep.subr.bf16.mxu0 %v10600_v15  ;;  %7686 = vmatprep.subr.bf16.mxu1 %v10603_v16  ;;  %v10684_v15 = vld [vmem:[%s15282_s1 + $0xce4] ss:$16 sps:$4 sm:$0xff]   ;;  %v10687_v16 = vld [vmem:[%s15282_s1 + $0xcec] ss:$16 sps:$4 sm:$0xff]  }
 0x167   :  { %6839 = vmatpush1.bf16.msra.mxu0 %v10598_v17  ;;  %7687 = vmatpush1.bf16.msra.mxu1 %v10601_v18  ;;  %v10682_v17 = vld [vmem:[%s15282_s1 + $0xce0] ss:$16 sps:$4 sm:$0xff]   ;;  %v10685_v18 = vld [vmem:[%s15282_s1 + $0xce8] ss:$16 sps:$4 sm:$0xff]  }
 0x168   :  { %6840 = vmatprep.subr.bf16.mxu0 %v10606_v19  ;;  %7688 = vmatprep.subr.bf16.mxu1 %v10609_v20  ;;  %v10690_v19 = vld [vmem:[%s15282_s1 + $0xd04] ss:$16 sps:$4 sm:$0xff]   ;;  %v10693_v20 = vld [vmem:[%s15282_s1 + $0xd0c] ss:$16 sps:$4 sm:$0xff]  }
 0x16b   :  { %6841 = vmatpush1.bf16.msra.mxu0 %v10604_v21  ;;  %7689 = vmatpush1.bf16.msra.mxu1 %v10607_v22  ;;  %v10688_v21 = vld [vmem:[%s15282_s1 + $0xd00] ss:$16 sps:$4 sm:$0xff]   ;;  %v10691_v22 = vld [vmem:[%s15282_s1 + $0xd08] ss:$16 sps:$4 sm:$0xff]  }
 0x16c   :  { %6842 = vmatprep.subr.bf16.mxu0 %v10612_v23  ;;  %7690 = vmatprep.subr.bf16.mxu1 %v10615_v24  ;;  %v10696_v23 = vld [vmem:[%s15282_s1 + $0xd24] ss:$16 sps:$4 sm:$0xff]   ;;  %v10699_v24 = vld [vmem:[%s15282_s1 + $0xd2c] ss:$16 sps:$4 sm:$0xff]  }
 0x16f   :  { %6843 = vmatpush1.bf16.msra.mxu0 %v10610_v26  ;;  %7691 = vmatpush1.bf16.msra.mxu1 %v10613_v25  ;;  %v10694_v26 = vld [vmem:[%s15282_s1 + $0xd20] ss:$16 sps:$4 sm:$0xff]   ;;  %v10697_v25 = vld [vmem:[%s15282_s1 + $0xd28] ss:$16 sps:$4 sm:$0xff]  }
 0x170   :  { %6844 = vmatprep.subr.bf16.mxu0 %v10618_v27  ;;  %7692 = vmatprep.subr.bf16.mxu1 %v10621_v28  ;;  %v10702_v27 = vld [vmem:[%s15282_s1 + $0xd44] ss:$16 sps:$4 sm:$0xff]   ;;  %v10705_v28 = vld [vmem:[%s15282_s1 + $0xd4c] ss:$16 sps:$4 sm:$0xff]  }
 0x173   :  { %6845 = vmatpush1.bf16.msra.mxu0 %v10616_v29  ;;  %7693 = vmatpush1.bf16.msra.mxu1 %v10619_v30  ;;  %v10700_v29 = vld [vmem:[%s15282_s1 + $0xd40] ss:$16 sps:$4 sm:$0xff]   ;;  %v10703_v30 = vld [vmem:[%s15282_s1 + $0xd48] ss:$16 sps:$4 sm:$0xff]  }
 0x174   :  { %6846 = vmatprep.subr.bf16.mxu0 %v10624_v31  ;;  %7694 = vmatprep.subr.bf16.mxu1 %v10627_v32  ;;  %v10708_v31 = vld [vmem:[%s15282_s1 + $0xd64] ss:$16 sps:$4 sm:$0xff]   ;;  %v10711_v32 = vld [vmem:[%s15282_s1 + $0xd6c] ss:$16 sps:$4 sm:$0xff]  }
 0x177   :  { %6847 = vmatpush1.bf16.msra.mxu0 %v10622_v34  ;;  %7695 = vmatpush1.bf16.msra.mxu1 %v10625_v36  ;;  %v10706_v34 = vld [vmem:[%s15282_s1 + $0xd60] ss:$16 sps:$4 sm:$0xff]   ;;  %v10709_v36 = vld [vmem:[%s15282_s1 + $0xd68] ss:$16 sps:$4 sm:$0xff]  }
 0x178   :  { %6848 = vmatprep.subr.bf16.mxu0 %v10630_v33  ;;  %7696 = vmatprep.subr.bf16.mxu1 %v10633_v35  ;;  %v10714_v33 = vld [vmem:[%s15282_s1 + $0xd84] ss:$16 sps:$4 sm:$0xff]   ;;  %v10717_v35 = vld [vmem:[%s15282_s1 + $0xd8c] ss:$16 sps:$4 sm:$0xff]  }
 0x17b   :  { %6849 = vmatpush1.bf16.msra.mxu0 %v10628_v37  ;;  %7697 = vmatpush1.bf16.msra.mxu1 %v10631_v38  ;;  %v10712_v37 = vld [vmem:[%s15282_s1 + $0xd80] ss:$16 sps:$4 sm:$0xff]   ;;  %v10715_v38 = vld [vmem:[%s15282_s1 + $0xd88] ss:$16 sps:$4 sm:$0xff]  }
 0x17c   :  { %6850 = vmatprep.subr.bf16.mxu0 %v10636_v39  ;;  %7698 = vmatprep.subr.bf16.mxu1 %v10639_v40  ;;  %v10720_v39 = vld [vmem:[%s15282_s1 + $0xda4] ss:$16 sps:$4 sm:$0xff]   ;;  %v10723_v40 = vld [vmem:[%s15282_s1 + $0xdac] ss:$16 sps:$4 sm:$0xff]  }
 0x17f   :  { %6851 = vmatpush1.bf16.msra.mxu0 %v10634_v42  ;;  %7699 = vmatpush1.bf16.msra.mxu1 %v10637_v44  ;;  %v10718_v42 = vld [vmem:[%s15282_s1 + $0xda0] ss:$16 sps:$4 sm:$0xff]   ;;  %v10721_v44 = vld [vmem:[%s15282_s1 + $0xda8] ss:$16 sps:$4 sm:$0xff]  }
 0x180   :  { %6873 = vmatprep.subr.bf16.mxu0 %v10642_v41  ;;  %7721 = vmatprep.subr.bf16.mxu1 %v10645_v43  ;;  %v10726_v41 = vld [vmem:[%s15282_s1 + $0xdc4] ss:$16 sps:$4 sm:$0xff]   ;;  %v10729_v43 = vld [vmem:[%s15282_s1 + $0xdcc] ss:$16 sps:$4 sm:$0xff]  }
 0x182   :  { %6853 = vmatmul.mubr.bf16.vlgmr.msra.gmra.mrb[0].mxu0 %v8726_v47  ;;  %7701 = vmatmul.mubr.bf16.vlgmr.msra.gmra.mrb[0].mxu1 %v8726_v47  ;;  %v10732_v47 = vld [vmem:[%s15282_s1 + $0xde4] ss:$16 sps:$4 sm:$0xff]  }
 0x183   :  { %6874 = vmatpush1.bf16.msra.mxu0 %v10640_v48  ;;  %7722 = vmatpush1.bf16.msra.mxu1 %v10643_v51  ;;  %v10735_v48 = vld [vmem:[%s15282_s1 + $0xdec] ss:$16 sps:$4 sm:$0xff]   ;;  %v10730_v51 = vld [vmem:[%s15282_s1 + $0xde0] ss:$16 sps:$4 sm:$0xff]  }
 0x184   :  { %6875 = vmatprep.subr.bf16.mxu0 %v10648_v52  ;;  %7723 = vmatprep.subr.bf16.mxu1 %v10651_v49  ;;  %v10733_v52 = vld [vmem:[%s15282_s1 + $0xde8] ss:$16 sps:$4 sm:$0xff]   ;;  %v10738_v49 = vld [vmem:[%s15282_s1 + $0xe04] ss:$16 sps:$4 sm:$0xff]  }
 0x185   :  { %6862 = vmatprep.mubr.bf16.mxu0 %v8759_v54  ;;  %7710 = vmatprep.mubr.bf16.mxu1 %v8759_v54  ;;  %v81_v54 = vld [vmem:[%s15283_s0 + $0x1b0] sm:$0xff] }
 0x187   :  { %6876 = vmatpush1.bf16.msra.mxu0 %v10646_v50  ;;  %7724 = vmatpush1.bf16.msra.mxu1 %v10649_v53  ;;  %v10741_v50 = vld [vmem:[%s15282_s1 + $0xe0c] ss:$16 sps:$4 sm:$0xff]   ;;  %v65_v53 = vld [vmem:[%s15283_s0 + $0x130] sm:$0xff] }
 0x188   :  { %6877 = vmatprep.subr.bf16.mxu0 %v10654_v55  ;;  %7725 = vmatprep.subr.bf16.mxu1 %v10657_v56  ;;  %v8728_v55 = vcombine.low %v12950_v57, %v12955_v58  ;;  %v10736_v56 = vld [vmem:[%s15282_s1 + $0xe00] ss:$16 sps:$4 sm:$0xff]   ;;  %v10747_v57 = vld [vmem:[%s15282_s1 + $0xe2c] ss:$16 sps:$4 sm:$0xff]  }
 0x189   :  { %v10742_v58 = vld [vmem:[%s15282_s1 + $0xe20] ss:$16 sps:$4 sm:$0xff]  }
 0x18a   :  { %6863 = vmatmul.mubr.bf16.gmra.mrb[4].mxu0 %v8758_v59  ;;  %7711 = vmatmul.mubr.bf16.gmra.mrb[4].mxu1 %v8758_v59  ;;  %v10739_v59 = vld [vmem:[%s15282_s1 + $0xe08] ss:$16 sps:$4 sm:$0xff]  }
 0x18b   :  { %6878 = vmatpush1.bf16.msra.mxu0 %v10652_v60  ;;  %7726 = vmatpush1.bf16.msra.mxu1 %v10655_v61  ;;  %v10744_v60 = vld [vmem:[%s15282_s1 + $0xe24] ss:$16 sps:$4 sm:$0xff]   ;;  %v10745_v61 = vld [vmem:[%s15282_s1 + $0xe28] ss:$16 sps:$4 sm:$0xff]  }
 0x18c   :  { %6879 = vmatprep.subr.bf16.mxu0 %v10660_v62  ;;  %7727 = vmatprep.subr.bf16.mxu1 %v10663_v63  ;;  %v8761_v62 = vcombine.high %v65_v53, %v81_v54  ;;  %v10750_v63 = vld [vmem:[%s15282_s1 + $0xe44] ss:$16 sps:$4 sm:$0xff]  }
 0x18d   :  { %6905 = vmatprep.mubr.bf16.mxu0 %v8729_v0  ;;  %7753 = vmatprep.mubr.bf16.mxu1 %v8729_v0  ;;  %v10753_v0 = vld [vmem:[%s15282_s1 + $0xe4c] ss:$16 sps:$4 sm:$0xff]  }
 0x18f   :  { %6880 = vmatpush1.bf16.msra.mxu0 %v10658_v1  ;;  %7728 = vmatpush1.bf16.msra.mxu1 %v10661_v2  ;;  %v13162_v1 = vld [vmem:[%s15283_s0 + $0x38] sm:$0xff] }
 0x190   :  { %6881 = vmatprep.subr.bf16.mxu0 %v10666_v3  ;;  %7729 = vmatprep.subr.bf16.mxu1 %v10669_v4  ;;  %v13167_v2 = vld [vmem:[%s15283_s0 + $0xb8] sm:$0xff]  ;;  %v8760_v3 = vcombine.low %v65_v53, %v81_v54  ;;  %v10748_v4 = vld [vmem:[%s15282_s1 + $0xe40] ss:$16 sps:$4 sm:$0xff]  }
 0x191   :  { %v10820_v53 = vld [vmem:[%s15282_s1 + $0xfc0] ss:$16 sps:$4 sm:$0xff]   ;;  %v10823_v54 = vld [vmem:[%s15282_s1 + $0xfc8] ss:$16 sps:$4 sm:$0xff]  }
 0x193   :  { %6882 = vmatpush1.bf16.msra.mxu0 %v10664_v5  ;;  %7730 = vmatpush1.bf16.msra.mxu1 %v10667_v6  ;;  %v10751_v5 = vld [vmem:[%s15282_s1 + $0xe48] ss:$16 sps:$4 sm:$0xff]   ;;  %v10756_v6 = vld [vmem:[%s15282_s1 + $0xe64] ss:$16 sps:$4 sm:$0xff]  }
 0x194   :  { %6883 = vmatprep.subr.bf16.mxu0 %v10672_v7  ;;  %7731 = vmatprep.subr.bf16.mxu1 %v10675_v8  ;;  %v10759_v7 = vld [vmem:[%s15282_s1 + $0xe6c] ss:$16 sps:$4 sm:$0xff]   ;;  %v8731_v8 = vcombine.high %v13162_v1, %v13167_v2 }
 0x197   :  { %6884 = vmatpush1.bf16.msra.mxu0 %v10670_v9  ;;  %7732 = vmatpush1.bf16.msra.mxu1 %v10673_v10  ;;  %v10754_v9 = vld [vmem:[%s15282_s1 + $0xe60] ss:$16 sps:$4 sm:$0xff]   ;;  %v10757_v10 = vld [vmem:[%s15282_s1 + $0xe68] ss:$16 sps:$4 sm:$0xff]  }
 0x198   :  { %6885 = vmatprep.subr.bf16.mxu0 %v10678_v11  ;;  %7733 = vmatprep.subr.bf16.mxu1 %v10681_v12  ;;  %v10762_v11 = vld [vmem:[%s15282_s1 + $0xe84] ss:$16 sps:$4 sm:$0xff]   ;;  %v10765_v12 = vld [vmem:[%s15282_s1 + $0xe8c] ss:$16 sps:$4 sm:$0xff]  }
 0x19b   :  { %6886 = vmatpush1.bf16.msra.mxu0 %v10676_v13  ;;  %7734 = vmatpush1.bf16.msra.mxu1 %v10679_v14  ;;  %v10760_v13 = vld [vmem:[%s15282_s1 + $0xe80] ss:$16 sps:$4 sm:$0xff]   ;;  %v10763_v14 = vld [vmem:[%s15282_s1 + $0xe88] ss:$16 sps:$4 sm:$0xff]  }
 0x19c   :  { %6887 = vmatprep.subr.bf16.mxu0 %v10684_v15  ;;  %7735 = vmatprep.subr.bf16.mxu1 %v10687_v16  ;;  %v10768_v15 = vld [vmem:[%s15282_s1 + $0xea4] ss:$16 sps:$4 sm:$0xff]   ;;  %v10771_v16 = vld [vmem:[%s15282_s1 + $0xeac] ss:$16 sps:$4 sm:$0xff]  }
 0x19f   :  { %6888 = vmatpush1.bf16.msra.mxu0 %v10682_v17  ;;  %7736 = vmatpush1.bf16.msra.mxu1 %v10685_v18  ;;  %v10766_v17 = vld [vmem:[%s15282_s1 + $0xea0] ss:$16 sps:$4 sm:$0xff]   ;;  %v10769_v18 = vld [vmem:[%s15282_s1 + $0xea8] ss:$16 sps:$4 sm:$0xff]  }
 0x1a0   :  { %6889 = vmatprep.subr.bf16.mxu0 %v10690_v19  ;;  %7737 = vmatprep.subr.bf16.mxu1 %v10693_v20  ;;  %v10774_v19 = vld [vmem:[%s15282_s1 + $0xec4] ss:$16 sps:$4 sm:$0xff]   ;;  %v10777_v20 = vld [vmem:[%s15282_s1 + $0xecc] ss:$16 sps:$4 sm:$0xff]  }
 0x1a3   :  { %6890 = vmatpush1.bf16.msra.mxu0 %v10688_v21  ;;  %7738 = vmatpush1.bf16.msra.mxu1 %v10691_v22  ;;  %v10772_v21 = vld [vmem:[%s15282_s1 + $0xec0] ss:$16 sps:$4 sm:$0xff]   ;;  %v10775_v22 = vld [vmem:[%s15282_s1 + $0xec8] ss:$16 sps:$4 sm:$0xff]  }
 0x1a4   :  { %6891 = vmatprep.subr.bf16.mxu0 %v10696_v23  ;;  %7739 = vmatprep.subr.bf16.mxu1 %v10699_v24  ;;  %v10780_v23 = vld [vmem:[%s15282_s1 + $0xee4] ss:$16 sps:$4 sm:$0xff]   ;;  %v10783_v24 = vld [vmem:[%s15282_s1 + $0xeec] ss:$16 sps:$4 sm:$0xff]  }
 0x1a7   :  { %6892 = vmatpush1.bf16.msra.mxu0 %v10694_v26  ;;  %7740 = vmatpush1.bf16.msra.mxu1 %v10697_v25  ;;  %v10778_v26 = vld [vmem:[%s15282_s1 + $0xee0] ss:$16 sps:$4 sm:$0xff]   ;;  %v10781_v25 = vld [vmem:[%s15282_s1 + $0xee8] ss:$16 sps:$4 sm:$0xff]  }
 0x1a8   :  { %6893 = vmatprep.subr.bf16.mxu0 %v10702_v27  ;;  %7741 = vmatprep.subr.bf16.mxu1 %v10705_v28  ;;  %v10786_v27 = vld [vmem:[%s15282_s1 + $0xf04] ss:$16 sps:$4 sm:$0xff]   ;;  %v10789_v28 = vld [vmem:[%s15282_s1 + $0xf0c] ss:$16 sps:$4 sm:$0xff]  }
 0x1ab   :  { %6894 = vmatpush1.bf16.msra.mxu0 %v10700_v29  ;;  %7742 = vmatpush1.bf16.msra.mxu1 %v10703_v30  ;;  %v10784_v29 = vld [vmem:[%s15282_s1 + $0xf00] ss:$16 sps:$4 sm:$0xff]   ;;  %v10787_v30 = vld [vmem:[%s15282_s1 + $0xf08] ss:$16 sps:$4 sm:$0xff]  }
 0x1ac   :  { %6895 = vmatprep.subr.bf16.mxu0 %v10708_v31  ;;  %7743 = vmatprep.subr.bf16.mxu1 %v10711_v32  ;;  %v10792_v31 = vld [vmem:[%s15282_s1 + $0xf24] ss:$16 sps:$4 sm:$0xff]   ;;  %v10795_v32 = vld [vmem:[%s15282_s1 + $0xf2c] ss:$16 sps:$4 sm:$0xff]  }
 0x1af   :  { %6896 = vmatpush1.bf16.msra.mxu0 %v10706_v34  ;;  %7744 = vmatpush1.bf16.msra.mxu1 %v10709_v36  ;;  %v10790_v34 = vld [vmem:[%s15282_s1 + $0xf20] ss:$16 sps:$4 sm:$0xff]   ;;  %v10793_v36 = vld [vmem:[%s15282_s1 + $0xf28] ss:$16 sps:$4 sm:$0xff]  }
 0x1b0   :  { %6897 = vmatprep.subr.bf16.mxu0 %v10714_v33  ;;  %7745 = vmatprep.subr.bf16.mxu1 %v10717_v35  ;;  %v10798_v33 = vld [vmem:[%s15282_s1 + $0xf44] ss:$16 sps:$4 sm:$0xff]   ;;  %v10801_v35 = vld [vmem:[%s15282_s1 + $0xf4c] ss:$16 sps:$4 sm:$0xff]  }
 0x1b3   :  { %6898 = vmatpush1.bf16.msra.mxu0 %v10712_v37  ;;  %7746 = vmatpush1.bf16.msra.mxu1 %v10715_v38  ;;  %v10796_v37 = vld [vmem:[%s15282_s1 + $0xf40] ss:$16 sps:$4 sm:$0xff]   ;;  %v10799_v38 = vld [vmem:[%s15282_s1 + $0xf48] ss:$16 sps:$4 sm:$0xff]  }
 0x1b4   :  { %6899 = vmatprep.subr.bf16.mxu0 %v10720_v39  ;;  %7747 = vmatprep.subr.bf16.mxu1 %v10723_v40  ;;  %v10804_v39 = vld [vmem:[%s15282_s1 + $0xf64] ss:$16 sps:$4 sm:$0xff]   ;;  %v10807_v40 = vld [vmem:[%s15282_s1 + $0xf6c] ss:$16 sps:$4 sm:$0xff]  }
 0x1b7   :  { %6900 = vmatpush1.bf16.msra.mxu0 %v10718_v42  ;;  %7748 = vmatpush1.bf16.msra.mxu1 %v10721_v44  ;;  %v10802_v42 = vld [vmem:[%s15282_s1 + $0xf60] ss:$16 sps:$4 sm:$0xff]   ;;  %v10805_v44 = vld [vmem:[%s15282_s1 + $0xf68] ss:$16 sps:$4 sm:$0xff]  }
 0x1b8   :  { %6901 = vmatprep.subr.bf16.mxu0 %v10726_v41  ;;  %7749 = vmatprep.subr.bf16.mxu1 %v10729_v43  ;;  %v10810_v41 = vld [vmem:[%s15282_s1 + $0xf84] ss:$16 sps:$4 sm:$0xff]   ;;  %v10813_v43 = vld [vmem:[%s15282_s1 + $0xf8c] ss:$16 sps:$4 sm:$0xff]  }
 0x1bb   :  { %6902 = vmatpush1.bf16.msra.mxu0 %v10724_v45  ;;  %7750 = vmatpush1.bf16.msra.mxu1 %v10727_v46  ;;  %v10808_v45 = vld [vmem:[%s15282_s1 + $0xf80] ss:$16 sps:$4 sm:$0xff]   ;;  %v10811_v46 = vld [vmem:[%s15282_s1 + $0xf88] ss:$16 sps:$4 sm:$0xff]  }
 0x1bc   :  { %6903 = vmatprep.subr.bf16.mxu0 %v10732_v47  ;;  %7751 = vmatprep.subr.bf16.mxu1 %v10735_v48  ;;  %v10816_v47 = vld [vmem:[%s15282_s1 + $0xfa4] ss:$16 sps:$4 sm:$0xff]   ;;  %v10819_v48 = vld [vmem:[%s15282_s1 + $0xfac] ss:$16 sps:$4 sm:$0xff]  }
 0x1bf   :  { %6904 = vmatpush1.bf16.msra.mxu0 %v10730_v51  ;;  %7752 = vmatpush1.bf16.msra.mxu1 %v10733_v52  ;;  %v10814_v51 = vld [vmem:[%s15282_s1 + $0xfa0] ss:$16 sps:$4 sm:$0xff]   ;;  %v10817_v52 = vld [vmem:[%s15282_s1 + $0xfa8] ss:$16 sps:$4 sm:$0xff]  }
 0x1c0   :  { %6926 = vmatprep.subr.bf16.mxu0 %v10738_v49  ;;  %7774 = vmatprep.subr.bf16.mxu1 %v10741_v50  ;;  %v10822_v49 = vld [vmem:[%s15282_s1 + $0xfc4] ss:$16 sps:$4 sm:$0xff]   ;;  %v10825_v50 = vld [vmem:[%s15282_s1 + $0xfcc] ss:$16 sps:$4 sm:$0xff]  }
 0x1c2   :  { %6906 = vmatmul.mubr.bf16.vlgmr.msra.gmra.mrb[0].mxu0 %v8728_v55  ;;  %7754 = vmatmul.mubr.bf16.vlgmr.msra.gmra.mrb[0].mxu1 %v8728_v55  ;;  %v10828_v55 = vld [vmem:[%s15282_s1 + $0xfe4] ss:$16 sps:$4 sm:$0xff]  }
 0x1c3   :  { %6927 = vmatpush1.bf16.msra.mxu0 %v10736_v56  ;;  %7775 = vmatpush1.bf16.msra.mxu1 %v10739_v59  ;;  %v10831_v56 = vld [vmem:[%s15282_s1 + $0xfec] ss:$16 sps:$4 sm:$0xff]   ;;  %v10826_v59 = vld [vmem:[%s15282_s1 + $0xfe0] ss:$16 sps:$4 sm:$0xff]  }
 0x1c4   :  { %6928 = vmatprep.subr.bf16.mxu0 %v10744_v60  ;;  %7776 = vmatprep.subr.bf16.mxu1 %v10747_v57  ;;  %v10829_v60 = vld [vmem:[%s15282_s1 + $0xfe8] ss:$16 sps:$4 sm:$0xff]   ;;  %v10834_v57 = vld [vmem:[%s15282_s1 + $0x1004] ss:$16 sps:$4 sm:$0xff]  }
 0x1c5   :  { %6915 = vmatprep.mubr.bf16.mxu0 %v8761_v62  ;;  %7763 = vmatprep.mubr.bf16.mxu1 %v8761_v62  ;;  %v82_v62 = vld [vmem:[%s15283_s0 + $0x1b8] sm:$0xff] }
 0x1c7   :  { %6929 = vmatpush1.bf16.msra.mxu0 %v10742_v58  ;;  %7777 = vmatpush1.bf16.msra.mxu1 %v10745_v61  ;;  %v10837_v58 = vld [vmem:[%s15282_s1 + $0x100c] ss:$16 sps:$4 sm:$0xff]  }
 0x1c8   :  { %6930 = vmatprep.subr.bf16.mxu0 %v10750_v63  ;;  %7778 = vmatprep.subr.bf16.mxu1 %v10753_v0  ;;  %v66_v61 = vld [vmem:[%s15283_s0 + $0x138] sm:$0xff]  ;;  %v8730_v63 = vcombine.low %v13162_v1, %v13167_v2  ;;  %v10832_v0 = vld [vmem:[%s15282_s1 + $0x1000] ss:$16 sps:$4 sm:$0xff]  }
 0x1c9   :  { %v10843_v1 = vld [vmem:[%s15282_s1 + $0x102c] ss:$16 sps:$4 sm:$0xff]   ;;  %v10838_v2 = vld [vmem:[%s15282_s1 + $0x1020] ss:$16 sps:$4 sm:$0xff]  }
 0x1ca   :  { %6916 = vmatmul.mubr.bf16.gmra.mrb[4].mxu0 %v8760_v3  ;;  %7764 = vmatmul.mubr.bf16.gmra.mrb[4].mxu1 %v8760_v3  ;;  %v10835_v3 = vld [vmem:[%s15282_s1 + $0x1008] ss:$16 sps:$4 sm:$0xff]  }
 0x1cb   :  { %6931 = vmatpush1.bf16.msra.mxu0 %v10748_v4  ;;  %7779 = vmatpush1.bf16.msra.mxu1 %v10751_v5  ;;  %v10840_v4 = vld [vmem:[%s15282_s1 + $0x1024] ss:$16 sps:$4 sm:$0xff]   ;;  %v10841_v5 = vld [vmem:[%s15282_s1 + $0x1028] ss:$16 sps:$4 sm:$0xff]  }
 0x1cc   :  { %6932 = vmatprep.subr.bf16.mxu0 %v10756_v6  ;;  %7780 = vmatprep.subr.bf16.mxu1 %v10759_v7  ;;  %v8763_v6 = vcombine.high %v66_v61, %v82_v62  ;;  %v10846_v7 = vld [vmem:[%s15282_s1 + $0x1044] ss:$16 sps:$4 sm:$0xff]  }
 0x1cd   :  { %6958 = vmatprep.mubr.bf16.mxu0 %v8731_v8  ;;  %7806 = vmatprep.mubr.bf16.mxu1 %v8731_v8  ;;  %v10849_v8 = vld [vmem:[%s15282_s1 + $0x104c] ss:$16 sps:$4 sm:$0xff]  }
 0x1cf   :  { %6933 = vmatpush1.bf16.msra.mxu0 %v10754_v9  ;;  %7781 = vmatpush1.bf16.msra.mxu1 %v10757_v10  ;;  %v13374_v9 = vld [vmem:[%s15283_s0 + $0x40] sm:$0xff] }
 0x1d0   :  { %6934 = vmatprep.subr.bf16.mxu0 %v10762_v11  ;;  %7782 = vmatprep.subr.bf16.mxu1 %v10765_v12  ;;  %v13379_v10 = vld [vmem:[%s15283_s0 + $0xc0] sm:$0xff]  ;;  %v8762_v11 = vcombine.low %v66_v61, %v82_v62  ;;  %v10919_v62 = vld [vmem:[%s15282_s1 + $0x11c8] ss:$16 sps:$4 sm:$0xff]  }
 0x1d1   :  { %v10844_v12 = vld [vmem:[%s15282_s1 + $0x1040] ss:$16 sps:$4 sm:$0xff]  }
 0x1d2   :  { %v10916_v61 = vld [vmem:[%s15282_s1 + $0x11c0] ss:$16 sps:$4 sm:$0xff]  }
 0x1d3   :  { %6935 = vmatpush1.bf16.msra.mxu0 %v10760_v13  ;;  %7783 = vmatpush1.bf16.msra.mxu1 %v10763_v14  ;;  %v10847_v13 = vld [vmem:[%s15282_s1 + $0x1048] ss:$16 sps:$4 sm:$0xff]   ;;  %v10852_v14 = vld [vmem:[%s15282_s1 + $0x1064] ss:$16 sps:$4 sm:$0xff]  }
 0x1d4   :  { %6936 = vmatprep.subr.bf16.mxu0 %v10768_v15  ;;  %7784 = vmatprep.subr.bf16.mxu1 %v10771_v16  ;;  %v10855_v15 = vld [vmem:[%s15282_s1 + $0x106c] ss:$16 sps:$4 sm:$0xff]   ;;  %v8733_v16 = vcombine.high %v13374_v9, %v13379_v10 }
 0x1d7   :  { %6937 = vmatpush1.bf16.msra.mxu0 %v10766_v17  ;;  %7785 = vmatpush1.bf16.msra.mxu1 %v10769_v18  ;;  %v10850_v17 = vld [vmem:[%s15282_s1 + $0x1060] ss:$16 sps:$4 sm:$0xff]   ;;  %v10853_v18 = vld [vmem:[%s15282_s1 + $0x1068] ss:$16 sps:$4 sm:$0xff]  }
 0x1d8   :  { %6938 = vmatprep.subr.bf16.mxu0 %v10774_v19  ;;  %7786 = vmatprep.subr.bf16.mxu1 %v10777_v20  ;;  %v10858_v19 = vld [vmem:[%s15282_s1 + $0x1084] ss:$16 sps:$4 sm:$0xff]   ;;  %v10861_v20 = vld [vmem:[%s15282_s1 + $0x108c] ss:$16 sps:$4 sm:$0xff]  }
 0x1db   :  { %6939 = vmatpush1.bf16.msra.mxu0 %v10772_v21  ;;  %7787 = vmatpush1.bf16.msra.mxu1 %v10775_v22  ;;  %v10856_v21 = vld [vmem:[%s15282_s1 + $0x1080] ss:$16 sps:$4 sm:$0xff]   ;;  %v10859_v22 = vld [vmem:[%s15282_s1 + $0x1088] ss:$16 sps:$4 sm:$0xff]  }
 0x1dc   :  { %6940 = vmatprep.subr.bf16.mxu0 %v10780_v23  ;;  %7788 = vmatprep.subr.bf16.mxu1 %v10783_v24  ;;  %v10864_v23 = vld [vmem:[%s15282_s1 + $0x10a4] ss:$16 sps:$4 sm:$0xff]   ;;  %v10867_v24 = vld [vmem:[%s15282_s1 + $0x10ac] ss:$16 sps:$4 sm:$0xff]  }
 0x1df   :  { %6941 = vmatpush1.bf16.msra.mxu0 %v10778_v26  ;;  %7789 = vmatpush1.bf16.msra.mxu1 %v10781_v25  ;;  %v10862_v26 = vld [vmem:[%s15282_s1 + $0x10a0] ss:$16 sps:$4 sm:$0xff]   ;;  %v10865_v25 = vld [vmem:[%s15282_s1 + $0x10a8] ss:$16 sps:$4 sm:$0xff]  }
 0x1e0   :  { %6942 = vmatprep.subr.bf16.mxu0 %v10786_v27  ;;  %7790 = vmatprep.subr.bf16.mxu1 %v10789_v28  ;;  %v10870_v27 = vld [vmem:[%s15282_s1 + $0x10c4] ss:$16 sps:$4 sm:$0xff]   ;;  %v10873_v28 = vld [vmem:[%s15282_s1 + $0x10cc] ss:$16 sps:$4 sm:$0xff]  }
 0x1e3   :  { %6943 = vmatpush1.bf16.msra.mxu0 %v10784_v29  ;;  %7791 = vmatpush1.bf16.msra.mxu1 %v10787_v30  ;;  %v10868_v29 = vld [vmem:[%s15282_s1 + $0x10c0] ss:$16 sps:$4 sm:$0xff]   ;;  %v10871_v30 = vld [vmem:[%s15282_s1 + $0x10c8] ss:$16 sps:$4 sm:$0xff]  }
 0x1e4   :  { %6944 = vmatprep.subr.bf16.mxu0 %v10792_v31  ;;  %7792 = vmatprep.subr.bf16.mxu1 %v10795_v32  ;;  %v10876_v31 = vld [vmem:[%s15282_s1 + $0x10e4] ss:$16 sps:$4 sm:$0xff]   ;;  %v10879_v32 = vld [vmem:[%s15282_s1 + $0x10ec] ss:$16 sps:$4 sm:$0xff]  }
 0x1e7   :  { %6945 = vmatpush1.bf16.msra.mxu0 %v10790_v34  ;;  %7793 = vmatpush1.bf16.msra.mxu1 %v10793_v36  ;;  %v10874_v34 = vld [vmem:[%s15282_s1 + $0x10e0] ss:$16 sps:$4 sm:$0xff]   ;;  %v10877_v36 = vld [vmem:[%s15282_s1 + $0x10e8] ss:$16 sps:$4 sm:$0xff]  }
 0x1e8   :  { %6946 = vmatprep.subr.bf16.mxu0 %v10798_v33  ;;  %7794 = vmatprep.subr.bf16.mxu1 %v10801_v35  ;;  %v10882_v33 = vld [vmem:[%s15282_s1 + $0x1104] ss:$16 sps:$4 sm:$0xff]   ;;  %v10885_v35 = vld [vmem:[%s15282_s1 + $0x110c] ss:$16 sps:$4 sm:$0xff]  }
 0x1eb   :  { %6947 = vmatpush1.bf16.msra.mxu0 %v10796_v37  ;;  %7795 = vmatpush1.bf16.msra.mxu1 %v10799_v38  ;;  %v10880_v37 = vld [vmem:[%s15282_s1 + $0x1100] ss:$16 sps:$4 sm:$0xff]   ;;  %v10883_v38 = vld [vmem:[%s15282_s1 + $0x1108] ss:$16 sps:$4 sm:$0xff]  }
 0x1ec   :  { %6948 = vmatprep.subr.bf16.mxu0 %v10804_v39  ;;  %7796 = vmatprep.subr.bf16.mxu1 %v10807_v40  ;;  %v10888_v39 = vld [vmem:[%s15282_s1 + $0x1124] ss:$16 sps:$4 sm:$0xff]   ;;  %v10891_v40 = vld [vmem:[%s15282_s1 + $0x112c] ss:$16 sps:$4 sm:$0xff]  }
 0x1ef   :  { %6949 = vmatpush1.bf16.msra.mxu0 %v10802_v42  ;;  %7797 = vmatpush1.bf16.msra.mxu1 %v10805_v44  ;;  %v10886_v42 = vld [vmem:[%s15282_s1 + $0x1120] ss:$16 sps:$4 sm:$0xff]   ;;  %v10889_v44 = vld [vmem:[%s15282_s1 + $0x1128] ss:$16 sps:$4 sm:$0xff]  }
 0x1f0   :  { %6950 = vmatprep.subr.bf16.mxu0 %v10810_v41  ;;  %7798 = vmatprep.subr.bf16.mxu1 %v10813_v43  ;;  %v10894_v41 = vld [vmem:[%s15282_s1 + $0x1144] ss:$16 sps:$4 sm:$0xff]   ;;  %v10897_v43 = vld [vmem:[%s15282_s1 + $0x114c] ss:$16 sps:$4 sm:$0xff]  }
 0x1f3   :  { %6951 = vmatpush1.bf16.msra.mxu0 %v10808_v45  ;;  %7799 = vmatpush1.bf16.msra.mxu1 %v10811_v46  ;;  %v10892_v45 = vld [vmem:[%s15282_s1 + $0x1140] ss:$16 sps:$4 sm:$0xff]   ;;  %v10895_v46 = vld [vmem:[%s15282_s1 + $0x1148] ss:$16 sps:$4 sm:$0xff]  }
 0x1f4   :  { %6952 = vmatprep.subr.bf16.mxu0 %v10816_v47  ;;  %7800 = vmatprep.subr.bf16.mxu1 %v10819_v48  ;;  %v10900_v47 = vld [vmem:[%s15282_s1 + $0x1164] ss:$16 sps:$4 sm:$0xff]   ;;  %v10903_v48 = vld [vmem:[%s15282_s1 + $0x116c] ss:$16 sps:$4 sm:$0xff]  }
 0x1f7   :  { %6953 = vmatpush1.bf16.msra.mxu0 %v10814_v51  ;;  %7801 = vmatpush1.bf16.msra.mxu1 %v10817_v52  ;;  %v10898_v51 = vld [vmem:[%s15282_s1 + $0x1160] ss:$16 sps:$4 sm:$0xff]   ;;  %v10901_v52 = vld [vmem:[%s15282_s1 + $0x1168] ss:$16 sps:$4 sm:$0xff]  }
 0x1f8   :  { %6954 = vmatprep.subr.bf16.mxu0 %v10822_v49  ;;  %7802 = vmatprep.subr.bf16.mxu1 %v10825_v50  ;;  %v10906_v49 = vld [vmem:[%s15282_s1 + $0x1184] ss:$16 sps:$4 sm:$0xff]   ;;  %v10909_v50 = vld [vmem:[%s15282_s1 + $0x118c] ss:$16 sps:$4 sm:$0xff]  }
 0x1fb   :  { %6955 = vmatpush1.bf16.msra.mxu0 %v10820_v53  ;;  %7803 = vmatpush1.bf16.msra.mxu1 %v10823_v54  ;;  %v10904_v53 = vld [vmem:[%s15282_s1 + $0x1180] ss:$16 sps:$4 sm:$0xff]   ;;  %v10907_v54 = vld [vmem:[%s15282_s1 + $0x1188] ss:$16 sps:$4 sm:$0xff]  }
 0x1fc   :  { %6956 = vmatprep.subr.bf16.mxu0 %v10828_v55  ;;  %7804 = vmatprep.subr.bf16.mxu1 %v10831_v56  ;;  %v10912_v55 = vld [vmem:[%s15282_s1 + $0x11a4] ss:$16 sps:$4 sm:$0xff]   ;;  %v10915_v56 = vld [vmem:[%s15282_s1 + $0x11ac] ss:$16 sps:$4 sm:$0xff]  }
 0x1ff   :  { %6957 = vmatpush1.bf16.msra.mxu0 %v10826_v59  ;;  %7805 = vmatpush1.bf16.msra.mxu1 %v10829_v60  ;;  %v10910_v59 = vld [vmem:[%s15282_s1 + $0x11a0] ss:$16 sps:$4 sm:$0xff]   ;;  %v10913_v60 = vld [vmem:[%s15282_s1 + $0x11a8] ss:$16 sps:$4 sm:$0xff]  }
 0x200   :  { %6979 = vmatprep.subr.bf16.mxu0 %v10834_v57  ;;  %7827 = vmatprep.subr.bf16.mxu1 %v10837_v58  ;;  %v10918_v57 = vld [vmem:[%s15282_s1 + $0x11c4] ss:$16 sps:$4 sm:$0xff]   ;;  %v10921_v58 = vld [vmem:[%s15282_s1 + $0x11cc] ss:$16 sps:$4 sm:$0xff]  }
 0x202   :  { %6959 = vmatmul.mubr.bf16.vlgmr.msra.gmra.mrb[0].mxu0 %v8730_v63  ;;  %7807 = vmatmul.mubr.bf16.vlgmr.msra.gmra.mrb[0].mxu1 %v8730_v63  ;;  %v10924_v63 = vld [vmem:[%s15282_s1 + $0x11e4] ss:$16 sps:$4 sm:$0xff]  }
 0x203   :  { %6980 = vmatpush1.bf16.msra.mxu0 %v10832_v0  ;;  %7828 = vmatpush1.bf16.msra.mxu1 %v10835_v3  ;;  %v10927_v0 = vld [vmem:[%s15282_s1 + $0x11ec] ss:$16 sps:$4 sm:$0xff]   ;;  %v10922_v3 = vld [vmem:[%s15282_s1 + $0x11e0] ss:$16 sps:$4 sm:$0xff]  }
 0x204   :  { %6981 = vmatprep.subr.bf16.mxu0 %v10840_v4  ;;  %7829 = vmatprep.subr.bf16.mxu1 %v10843_v1  ;;  %v10925_v4 = vld [vmem:[%s15282_s1 + $0x11e8] ss:$16 sps:$4 sm:$0xff]   ;;  %v10930_v1 = vld [vmem:[%s15282_s1 + $0x1204] ss:$16 sps:$4 sm:$0xff]  }
 0x205   :  { %6968 = vmatprep.mubr.bf16.mxu0 %v8763_v6  ;;  %7816 = vmatprep.mubr.bf16.mxu1 %v8763_v6  ;;  %v83_v6 = vld [vmem:[%s15283_s0 + $0x1c0] sm:$0xff] }
 0x207   :  { %6982 = vmatpush1.bf16.msra.mxu0 %v10838_v2  ;;  %7830 = vmatpush1.bf16.msra.mxu1 %v10841_v5  ;;  %v10933_v2 = vld [vmem:[%s15282_s1 + $0x120c] ss:$16 sps:$4 sm:$0xff]   ;;  %v67_v5 = vld [vmem:[%s15283_s0 + $0x140] sm:$0xff] }
 0x208   :  { %6983 = vmatprep.subr.bf16.mxu0 %v10846_v7  ;;  %7831 = vmatprep.subr.bf16.mxu1 %v10849_v8  ;;  %v8732_v7 = vcombine.low %v13374_v9, %v13379_v10  ;;  %v10928_v8 = vld [vmem:[%s15282_s1 + $0x1200] ss:$16 sps:$4 sm:$0xff]   ;;  %v10939_v9 = vld [vmem:[%s15282_s1 + $0x122c] ss:$16 sps:$4 sm:$0xff]  }
 0x209   :  { %v10934_v10 = vld [vmem:[%s15282_s1 + $0x1220] ss:$16 sps:$4 sm:$0xff]  }
 0x20a   :  { %6969 = vmatmul.mubr.bf16.gmra.mrb[4].mxu0 %v8762_v11  ;;  %7817 = vmatmul.mubr.bf16.gmra.mrb[4].mxu1 %v8762_v11  ;;  %v10931_v11 = vld [vmem:[%s15282_s1 + $0x1208] ss:$16 sps:$4 sm:$0xff]  }
 0x20b   :  { %6984 = vmatpush1.bf16.msra.mxu0 %v10844_v12  ;;  %7832 = vmatpush1.bf16.msra.mxu1 %v10847_v13  ;;  %v10936_v12 = vld [vmem:[%s15282_s1 + $0x1224] ss:$16 sps:$4 sm:$0xff]   ;;  %v10937_v13 = vld [vmem:[%s15282_s1 + $0x1228] ss:$16 sps:$4 sm:$0xff]  }
 0x20c   :  { %6985 = vmatprep.subr.bf16.mxu0 %v10852_v14  ;;  %7833 = vmatprep.subr.bf16.mxu1 %v10855_v15  ;;  %v8765_v14 = vcombine.high %v67_v5, %v83_v6  ;;  %v10942_v15 = vld [vmem:[%s15282_s1 + $0x1244] ss:$16 sps:$4 sm:$0xff]  }
 0x20d   :  { %7011 = vmatprep.mubr.bf16.mxu0 %v8733_v16  ;;  %7859 = vmatprep.mubr.bf16.mxu1 %v8733_v16  ;;  %v10945_v16 = vld [vmem:[%s15282_s1 + $0x124c] ss:$16 sps:$4 sm:$0xff]  }
 0x20f   :  { %6986 = vmatpush1.bf16.msra.mxu0 %v10850_v17  ;;  %7834 = vmatpush1.bf16.msra.mxu1 %v10853_v18  ;;  %v13586_v17 = vld [vmem:[%s15283_s0 + $0x48] sm:$0xff] }
 0x210   :  { %6987 = vmatprep.subr.bf16.mxu0 %v10858_v19  ;;  %7835 = vmatprep.subr.bf16.mxu1 %v10861_v20  ;;  %v13591_v18 = vld [vmem:[%s15283_s0 + $0xc8] sm:$0xff]  ;;  %v8764_v19 = vcombine.low %v67_v5, %v83_v6  ;;  %v10940_v20 = vld [vmem:[%s15282_s1 + $0x1240] ss:$16 sps:$4 sm:$0xff]  }
 0x211   :  { %v11012_v5 = vld [vmem:[%s15282_s1 + $0x13c0] ss:$16 sps:$4 sm:$0xff]   ;;  %v11015_v6 = vld [vmem:[%s15282_s1 + $0x13c8] ss:$16 sps:$4 sm:$0xff]  }
 0x213   :  { %6988 = vmatpush1.bf16.msra.mxu0 %v10856_v21  ;;  %7836 = vmatpush1.bf16.msra.mxu1 %v10859_v22  ;;  %v10943_v21 = vld [vmem:[%s15282_s1 + $0x1248] ss:$16 sps:$4 sm:$0xff]   ;;  %v10948_v22 = vld [vmem:[%s15282_s1 + $0x1264] ss:$16 sps:$4 sm:$0xff]  }
 0x214   :  { %6989 = vmatprep.subr.bf16.mxu0 %v10864_v23  ;;  %7837 = vmatprep.subr.bf16.mxu1 %v10867_v24  ;;  %v10951_v23 = vld [vmem:[%s15282_s1 + $0x126c] ss:$16 sps:$4 sm:$0xff]   ;;  %v8735_v24 = vcombine.high %v13586_v17, %v13591_v18 }
 0x217   :  { %6990 = vmatpush1.bf16.msra.mxu0 %v10862_v26  ;;  %7838 = vmatpush1.bf16.msra.mxu1 %v10865_v25  ;;  %v10946_v26 = vld [vmem:[%s15282_s1 + $0x1260] ss:$16 sps:$4 sm:$0xff]   ;;  %v10949_v25 = vld [vmem:[%s15282_s1 + $0x1268] ss:$16 sps:$4 sm:$0xff]  }
 0x218   :  { %6991 = vmatprep.subr.bf16.mxu0 %v10870_v27  ;;  %7839 = vmatprep.subr.bf16.mxu1 %v10873_v28  ;;  %v10954_v27 = vld [vmem:[%s15282_s1 + $0x1284] ss:$16 sps:$4 sm:$0xff]   ;;  %v10957_v28 = vld [vmem:[%s15282_s1 + $0x128c] ss:$16 sps:$4 sm:$0xff]  }
 0x21b   :  { %6992 = vmatpush1.bf16.msra.mxu0 %v10868_v29  ;;  %7840 = vmatpush1.bf16.msra.mxu1 %v10871_v30  ;;  %v10952_v29 = vld [vmem:[%s15282_s1 + $0x1280] ss:$16 sps:$4 sm:$0xff]   ;;  %v10955_v30 = vld [vmem:[%s15282_s1 + $0x1288] ss:$16 sps:$4 sm:$0xff]  }
 0x21c   :  { %6993 = vmatprep.subr.bf16.mxu0 %v10876_v31  ;;  %7841 = vmatprep.subr.bf16.mxu1 %v10879_v32  ;;  %v10960_v31 = vld [vmem:[%s15282_s1 + $0x12a4] ss:$16 sps:$4 sm:$0xff]   ;;  %v10963_v32 = vld [vmem:[%s15282_s1 + $0x12ac] ss:$16 sps:$4 sm:$0xff]  }
 0x21f   :  { %6994 = vmatpush1.bf16.msra.mxu0 %v10874_v34  ;;  %7842 = vmatpush1.bf16.msra.mxu1 %v10877_v36  ;;  %v10958_v34 = vld [vmem:[%s15282_s1 + $0x12a0] ss:$16 sps:$4 sm:$0xff]   ;;  %v10961_v36 = vld [vmem:[%s15282_s1 + $0x12a8] ss:$16 sps:$4 sm:$0xff]  }
 0x220   :  { %6995 = vmatprep.subr.bf16.mxu0 %v10882_v33  ;;  %7843 = vmatprep.subr.bf16.mxu1 %v10885_v35  ;;  %v10966_v33 = vld [vmem:[%s15282_s1 + $0x12c4] ss:$16 sps:$4 sm:$0xff]   ;;  %v10969_v35 = vld [vmem:[%s15282_s1 + $0x12cc] ss:$16 sps:$4 sm:$0xff]  }
 0x223   :  { %6996 = vmatpush1.bf16.msra.mxu0 %v10880_v37  ;;  %7844 = vmatpush1.bf16.msra.mxu1 %v10883_v38  ;;  %v10964_v37 = vld [vmem:[%s15282_s1 + $0x12c0] ss:$16 sps:$4 sm:$0xff]   ;;  %v10967_v38 = vld [vmem:[%s15282_s1 + $0x12c8] ss:$16 sps:$4 sm:$0xff]  }
 0x224   :  { %6997 = vmatprep.subr.bf16.mxu0 %v10888_v39  ;;  %7845 = vmatprep.subr.bf16.mxu1 %v10891_v40  ;;  %v10972_v39 = vld [vmem:[%s15282_s1 + $0x12e4] ss:$16 sps:$4 sm:$0xff]   ;;  %v10975_v40 = vld [vmem:[%s15282_s1 + $0x12ec] ss:$16 sps:$4 sm:$0xff]  }
 0x227   :  { %6998 = vmatpush1.bf16.msra.mxu0 %v10886_v42  ;;  %7846 = vmatpush1.bf16.msra.mxu1 %v10889_v44  ;;  %v10970_v42 = vld [vmem:[%s15282_s1 + $0x12e0] ss:$16 sps:$4 sm:$0xff]   ;;  %v10973_v44 = vld [vmem:[%s15282_s1 + $0x12e8] ss:$16 sps:$4 sm:$0xff]  }
 0x228   :  { %6999 = vmatprep.subr.bf16.mxu0 %v10894_v41  ;;  %7847 = vmatprep.subr.bf16.mxu1 %v10897_v43  ;;  %v10978_v41 = vld [vmem:[%s15282_s1 + $0x1304] ss:$16 sps:$4 sm:$0xff]   ;;  %v10981_v43 = vld [vmem:[%s15282_s1 + $0x130c] ss:$16 sps:$4 sm:$0xff]  }
 0x22b   :  { %7000 = vmatpush1.bf16.msra.mxu0 %v10892_v45  ;;  %7848 = vmatpush1.bf16.msra.mxu1 %v10895_v46  ;;  %v10976_v45 = vld [vmem:[%s15282_s1 + $0x1300] ss:$16 sps:$4 sm:$0xff]   ;;  %v10979_v46 = vld [vmem:[%s15282_s1 + $0x1308] ss:$16 sps:$4 sm:$0xff]  }
 0x22c   :  { %7001 = vmatprep.subr.bf16.mxu0 %v10900_v47  ;;  %7849 = vmatprep.subr.bf16.mxu1 %v10903_v48  ;;  %v10984_v47 = vld [vmem:[%s15282_s1 + $0x1324] ss:$16 sps:$4 sm:$0xff]   ;;  %v10987_v48 = vld [vmem:[%s15282_s1 + $0x132c] ss:$16 sps:$4 sm:$0xff]  }
 0x22f   :  { %7002 = vmatpush1.bf16.msra.mxu0 %v10898_v51  ;;  %7850 = vmatpush1.bf16.msra.mxu1 %v10901_v52  ;;  %v10982_v51 = vld [vmem:[%s15282_s1 + $0x1320] ss:$16 sps:$4 sm:$0xff]   ;;  %v10985_v52 = vld [vmem:[%s15282_s1 + $0x1328] ss:$16 sps:$4 sm:$0xff]  }
 0x230   :  { %7003 = vmatprep.subr.bf16.mxu0 %v10906_v49  ;;  %7851 = vmatprep.subr.bf16.mxu1 %v10909_v50  ;;  %v10990_v49 = vld [vmem:[%s15282_s1 + $0x1344] ss:$16 sps:$4 sm:$0xff]   ;;  %v10993_v50 = vld [vmem:[%s15282_s1 + $0x134c] ss:$16 sps:$4 sm:$0xff]  }
 0x233   :  { %7004 = vmatpush1.bf16.msra.mxu0 %v10904_v53  ;;  %7852 = vmatpush1.bf16.msra.mxu1 %v10907_v54  ;;  %v10988_v53 = vld [vmem:[%s15282_s1 + $0x1340] ss:$16 sps:$4 sm:$0xff]   ;;  %v10991_v54 = vld [vmem:[%s15282_s1 + $0x1348] ss:$16 sps:$4 sm:$0xff]  }
 0x234   :  { %7005 = vmatprep.subr.bf16.mxu0 %v10912_v55  ;;  %7853 = vmatprep.subr.bf16.mxu1 %v10915_v56  ;;  %v10996_v55 = vld [vmem:[%s15282_s1 + $0x1364] ss:$16 sps:$4 sm:$0xff]   ;;  %v10999_v56 = vld [vmem:[%s15282_s1 + $0x136c] ss:$16 sps:$4 sm:$0xff]  }
 0x237   :  { %7006 = vmatpush1.bf16.msra.mxu0 %v10910_v59  ;;  %7854 = vmatpush1.bf16.msra.mxu1 %v10913_v60  ;;  %v10994_v59 = vld [vmem:[%s15282_s1 + $0x1360] ss:$16 sps:$4 sm:$0xff]   ;;  %v10997_v60 = vld [vmem:[%s15282_s1 + $0x1368] ss:$16 sps:$4 sm:$0xff]  }
 0x238   :  { %7007 = vmatprep.subr.bf16.mxu0 %v10918_v57  ;;  %7855 = vmatprep.subr.bf16.mxu1 %v10921_v58  ;;  %v11002_v57 = vld [vmem:[%s15282_s1 + $0x1384] ss:$16 sps:$4 sm:$0xff]   ;;  %v11005_v58 = vld [vmem:[%s15282_s1 + $0x138c] ss:$16 sps:$4 sm:$0xff]  }
 0x23b   :  { %7008 = vmatpush1.bf16.msra.mxu0 %v10916_v61  ;;  %7856 = vmatpush1.bf16.msra.mxu1 %v10919_v62  ;;  %v11000_v61 = vld [vmem:[%s15282_s1 + $0x1380] ss:$16 sps:$4 sm:$0xff]   ;;  %v11003_v62 = vld [vmem:[%s15282_s1 + $0x1388] ss:$16 sps:$4 sm:$0xff]  }
 0x23c   :  { %7009 = vmatprep.subr.bf16.mxu0 %v10924_v63  ;;  %7857 = vmatprep.subr.bf16.mxu1 %v10927_v0  ;;  %v11008_v63 = vld [vmem:[%s15282_s1 + $0x13a4] ss:$16 sps:$4 sm:$0xff]   ;;  %v11011_v0 = vld [vmem:[%s15282_s1 + $0x13ac] ss:$16 sps:$4 sm:$0xff]  }
 0x23f   :  { %7010 = vmatpush1.bf16.msra.mxu0 %v10922_v3  ;;  %7858 = vmatpush1.bf16.msra.mxu1 %v10925_v4  ;;  %v11006_v3 = vld [vmem:[%s15282_s1 + $0x13a0] ss:$16 sps:$4 sm:$0xff]   ;;  %v11009_v4 = vld [vmem:[%s15282_s1 + $0x13a8] ss:$16 sps:$4 sm:$0xff]  }
 0x240   :  { %7032 = vmatprep.subr.bf16.mxu0 %v10930_v1  ;;  %7880 = vmatprep.subr.bf16.mxu1 %v10933_v2  ;;  %v11014_v1 = vld [vmem:[%s15282_s1 + $0x13c4] ss:$16 sps:$4 sm:$0xff]   ;;  %v11017_v2 = vld [vmem:[%s15282_s1 + $0x13cc] ss:$16 sps:$4 sm:$0xff]  }
 0x242   :  { %7012 = vmatmul.mubr.bf16.vlgmr.msra.gmra.mrb[0].mxu0 %v8732_v7  ;;  %7860 = vmatmul.mubr.bf16.vlgmr.msra.gmra.mrb[0].mxu1 %v8732_v7  ;;  %v11020_v7 = vld [vmem:[%s15282_s1 + $0x13e4] ss:$16 sps:$4 sm:$0xff]  }
 0x243   :  { %7033 = vmatpush1.bf16.msra.mxu0 %v10928_v8  ;;  %7881 = vmatpush1.bf16.msra.mxu1 %v10931_v11  ;;  %v11023_v8 = vld [vmem:[%s15282_s1 + $0x13ec] ss:$16 sps:$4 sm:$0xff]   ;;  %v11018_v11 = vld [vmem:[%s15282_s1 + $0x13e0] ss:$16 sps:$4 sm:$0xff]  }
 0x244   :  { %7034 = vmatprep.subr.bf16.mxu0 %v10936_v12  ;;  %7882 = vmatprep.subr.bf16.mxu1 %v10939_v9  ;;  %v11021_v12 = vld [vmem:[%s15282_s1 + $0x13e8] ss:$16 sps:$4 sm:$0xff]   ;;  %v11026_v9 = vld [vmem:[%s15282_s1 + $0x1404] ss:$16 sps:$4 sm:$0xff]  }
 0x245   :  { %7021 = vmatprep.mubr.bf16.mxu0 %v8765_v14  ;;  %7869 = vmatprep.mubr.bf16.mxu1 %v8765_v14  ;;  %v68_v14 = vld [vmem:[%s15283_s0 + $0x148] sm:$0xff] }
 0x247   :  { %7035 = vmatpush1.bf16.msra.mxu0 %v10934_v10  ;;  %7883 = vmatpush1.bf16.msra.mxu1 %v10937_v13  ;;  %v11029_v10 = vld [vmem:[%s15282_s1 + $0x140c] ss:$16 sps:$4 sm:$0xff]   ;;  %v8734_v13 = vcombine.low %v13586_v17, %v13591_v18  ;;  %v11032_v17 = vld [vmem:[%s15282_s1 + $0x1424] ss:$16 sps:$4 sm:$0xff]  }
 0x248   :  { %7036 = vmatprep.subr.bf16.mxu0 %v10942_v15  ;;  %7884 = vmatprep.subr.bf16.mxu1 %v10945_v16  ;;  %v84_v15 = vld [vmem:[%s15283_s0 + $0x1c8] sm:$0xff]  ;;  %v11024_v16 = vld [vmem:[%s15282_s1 + $0x1400] ss:$16 sps:$4 sm:$0xff]  }
 0x249   :  { %v11035_v18 = vld [vmem:[%s15282_s1 + $0x142c] ss:$16 sps:$4 sm:$0xff]  }
 0x24a   :  { %7022 = vmatmul.mubr.bf16.gmra.mrb[4].mxu0 %v8764_v19  ;;  %7870 = vmatmul.mubr.bf16.gmra.mrb[4].mxu1 %v8764_v19  ;;  %v11027_v19 = vld [vmem:[%s15282_s1 + $0x1408] ss:$16 sps:$4 sm:$0xff]  }
 0x24b   :  { %7037 = vmatpush1.bf16.msra.mxu0 %v10940_v20  ;;  %7885 = vmatpush1.bf16.msra.mxu1 %v10943_v21  ;;  %v8767_v20 = vcombine.high %v68_v14, %v84_v15  ;;  %v11030_v21 = vld [vmem:[%s15282_s1 + $0x1420] ss:$16 sps:$4 sm:$0xff]  }
 0x24c   :  { %7038 = vmatprep.subr.bf16.mxu0 %v10948_v22  ;;  %7886 = vmatprep.subr.bf16.mxu1 %v10951_v23  ;;  %v11033_v22 = vld [vmem:[%s15282_s1 + $0x1428] ss:$16 sps:$4 sm:$0xff]   ;;  %v11038_v23 = vld [vmem:[%s15282_s1 + $0x1444] ss:$16 sps:$4 sm:$0xff]  }
 0x24d   :  { %7064 = vmatprep.mubr.bf16.mxu0 %v8735_v24  ;;  %7912 = vmatprep.mubr.bf16.mxu1 %v8735_v24  ;;  %v11041_v24 = vld [vmem:[%s15282_s1 + $0x144c] ss:$16 sps:$4 sm:$0xff]  }
 0x24f   :  { %7039 = vmatpush1.bf16.msra.mxu0 %v10946_v26  ;;  %7887 = vmatpush1.bf16.msra.mxu1 %v10949_v25  ;;  %v8766_v26 = vcombine.low %v68_v14, %v84_v15  ;;  %v13798_v25 = vld [vmem:[%s15283_s0 + $0x50] sm:$0xff]  ;;  %v11111_v14 = vld [vmem:[%s15282_s1 + $0x15c8] ss:$16 sps:$4 sm:$0xff]  }
 0x250   :  { %7040 = vmatprep.subr.bf16.mxu0 %v10954_v27  ;;  %7888 = vmatprep.subr.bf16.mxu1 %v10957_v28  ;;  %v13803_v27 = vld [vmem:[%s15283_s0 + $0xd0] sm:$0xff] }
 0x251   :  { %v11036_v28 = vld [vmem:[%s15282_s1 + $0x1440] ss:$16 sps:$4 sm:$0xff]   ;;  %v11116_v15 = vld [vmem:[%s15282_s1 + $0x15e4] ss:$16 sps:$4 sm:$0xff]  }
 0x253   :  { %7041 = vmatpush1.bf16.msra.mxu0 %v10952_v29  ;;  %7889 = vmatpush1.bf16.msra.mxu1 %v10955_v30  ;;  %v11039_v29 = vld [vmem:[%s15282_s1 + $0x1448] ss:$16 sps:$4 sm:$0xff]   ;;  %v11044_v30 = vld [vmem:[%s15282_s1 + $0x1464] ss:$16 sps:$4 sm:$0xff]  }
 0x254   :  { %7042 = vmatprep.subr.bf16.mxu0 %v10960_v31  ;;  %7890 = vmatprep.subr.bf16.mxu1 %v10963_v32  ;;  %v11047_v31 = vld [vmem:[%s15282_s1 + $0x146c] ss:$16 sps:$4 sm:$0xff]   ;;  %v8737_v32 = vcombine.high %v13798_v25, %v13803_v27 }
 0x257   :  { %7043 = vmatpush1.bf16.msra.mxu0 %v10958_v34  ;;  %7891 = vmatpush1.bf16.msra.mxu1 %v10961_v36  ;;  %v11042_v34 = vld [vmem:[%s15282_s1 + $0x1460] ss:$16 sps:$4 sm:$0xff]   ;;  %v11045_v36 = vld [vmem:[%s15282_s1 + $0x1468] ss:$16 sps:$4 sm:$0xff]  }
 0x258   :  { %7044 = vmatprep.subr.bf16.mxu0 %v10966_v33  ;;  %7892 = vmatprep.subr.bf16.mxu1 %v10969_v35  ;;  %v11050_v33 = vld [vmem:[%s15282_s1 + $0x1484] ss:$16 sps:$4 sm:$0xff]   ;;  %v11053_v35 = vld [vmem:[%s15282_s1 + $0x148c] ss:$16 sps:$4 sm:$0xff]  }
 0x25b   :  { %7045 = vmatpush1.bf16.msra.mxu0 %v10964_v37  ;;  %7893 = vmatpush1.bf16.msra.mxu1 %v10967_v38  ;;  %v11048_v37 = vld [vmem:[%s15282_s1 + $0x1480] ss:$16 sps:$4 sm:$0xff]   ;;  %v11051_v38 = vld [vmem:[%s15282_s1 + $0x1488] ss:$16 sps:$4 sm:$0xff]  }
 0x25c   :  { %7046 = vmatprep.subr.bf16.mxu0 %v10972_v39  ;;  %7894 = vmatprep.subr.bf16.mxu1 %v10975_v40  ;;  %v11056_v39 = vld [vmem:[%s15282_s1 + $0x14a4] ss:$16 sps:$4 sm:$0xff]   ;;  %v11059_v40 = vld [vmem:[%s15282_s1 + $0x14ac] ss:$16 sps:$4 sm:$0xff]  }
 0x25f   :  { %7047 = vmatpush1.bf16.msra.mxu0 %v10970_v42  ;;  %7895 = vmatpush1.bf16.msra.mxu1 %v10973_v44  ;;  %v11054_v42 = vld [vmem:[%s15282_s1 + $0x14a0] ss:$16 sps:$4 sm:$0xff]   ;;  %v11057_v44 = vld [vmem:[%s15282_s1 + $0x14a8] ss:$16 sps:$4 sm:$0xff]  }
 0x260   :  { %7048 = vmatprep.subr.bf16.mxu0 %v10978_v41  ;;  %7896 = vmatprep.subr.bf16.mxu1 %v10981_v43  ;;  %v11062_v41 = vld [vmem:[%s15282_s1 + $0x14c4] ss:$16 sps:$4 sm:$0xff]   ;;  %v11065_v43 = vld [vmem:[%s15282_s1 + $0x14cc] ss:$16 sps:$4 sm:$0xff]  }
 0x263   :  { %7049 = vmatpush1.bf16.msra.mxu0 %v10976_v45  ;;  %7897 = vmatpush1.bf16.msra.mxu1 %v10979_v46  ;;  %v11060_v45 = vld [vmem:[%s15282_s1 + $0x14c0] ss:$16 sps:$4 sm:$0xff]   ;;  %v11063_v46 = vld [vmem:[%s15282_s1 + $0x14c8] ss:$16 sps:$4 sm:$0xff]  }
 0x264   :  { %7050 = vmatprep.subr.bf16.mxu0 %v10984_v47  ;;  %7898 = vmatprep.subr.bf16.mxu1 %v10987_v48  ;;  %v11068_v47 = vld [vmem:[%s15282_s1 + $0x14e4] ss:$16 sps:$4 sm:$0xff]   ;;  %v11071_v48 = vld [vmem:[%s15282_s1 + $0x14ec] ss:$16 sps:$4 sm:$0xff]  }
 0x267   :  { %7051 = vmatpush1.bf16.msra.mxu0 %v10982_v51  ;;  %7899 = vmatpush1.bf16.msra.mxu1 %v10985_v52  ;;  %v11066_v51 = vld [vmem:[%s15282_s1 + $0x14e0] ss:$16 sps:$4 sm:$0xff]   ;;  %v11069_v52 = vld [vmem:[%s15282_s1 + $0x14e8] ss:$16 sps:$4 sm:$0xff]  }
 0x268   :  { %7052 = vmatprep.subr.bf16.mxu0 %v10990_v49  ;;  %7900 = vmatprep.subr.bf16.mxu1 %v10993_v50  ;;  %v11074_v49 = vld [vmem:[%s15282_s1 + $0x1504] ss:$16 sps:$4 sm:$0xff]   ;;  %v11077_v50 = vld [vmem:[%s15282_s1 + $0x150c] ss:$16 sps:$4 sm:$0xff]  }
 0x26b   :  { %7053 = vmatpush1.bf16.msra.mxu0 %v10988_v53  ;;  %7901 = vmatpush1.bf16.msra.mxu1 %v10991_v54  ;;  %v11072_v53 = vld [vmem:[%s15282_s1 + $0x1500] ss:$16 sps:$4 sm:$0xff]   ;;  %v11075_v54 = vld [vmem:[%s15282_s1 + $0x1508] ss:$16 sps:$4 sm:$0xff]  }
 0x26c   :  { %7054 = vmatprep.subr.bf16.mxu0 %v10996_v55  ;;  %7902 = vmatprep.subr.bf16.mxu1 %v10999_v56  ;;  %v11080_v55 = vld [vmem:[%s15282_s1 + $0x1524] ss:$16 sps:$4 sm:$0xff]   ;;  %v11083_v56 = vld [vmem:[%s15282_s1 + $0x152c] ss:$16 sps:$4 sm:$0xff]  }
 0x26f   :  { %7055 = vmatpush1.bf16.msra.mxu0 %v10994_v59  ;;  %7903 = vmatpush1.bf16.msra.mxu1 %v10997_v60  ;;  %v11078_v59 = vld [vmem:[%s15282_s1 + $0x1520] ss:$16 sps:$4 sm:$0xff]   ;;  %v11081_v60 = vld [vmem:[%s15282_s1 + $0x1528] ss:$16 sps:$4 sm:$0xff]  }
 0x270   :  { %7056 = vmatprep.subr.bf16.mxu0 %v11002_v57  ;;  %7904 = vmatprep.subr.bf16.mxu1 %v11005_v58  ;;  %v11086_v57 = vld [vmem:[%s15282_s1 + $0x1544] ss:$16 sps:$4 sm:$0xff]   ;;  %v11089_v58 = vld [vmem:[%s15282_s1 + $0x154c] ss:$16 sps:$4 sm:$0xff]  }
 0x273   :  { %7057 = vmatpush1.bf16.msra.mxu0 %v11000_v61  ;;  %7905 = vmatpush1.bf16.msra.mxu1 %v11003_v62  ;;  %v11084_v61 = vld [vmem:[%s15282_s1 + $0x1540] ss:$16 sps:$4 sm:$0xff]   ;;  %v11087_v62 = vld [vmem:[%s15282_s1 + $0x1548] ss:$16 sps:$4 sm:$0xff]  }
 0x274   :  { %7058 = vmatprep.subr.bf16.mxu0 %v11008_v63  ;;  %7906 = vmatprep.subr.bf16.mxu1 %v11011_v0  ;;  %v11092_v63 = vld [vmem:[%s15282_s1 + $0x1564] ss:$16 sps:$4 sm:$0xff]   ;;  %v11095_v0 = vld [vmem:[%s15282_s1 + $0x156c] ss:$16 sps:$4 sm:$0xff]  }
 0x277   :  { %7059 = vmatpush1.bf16.msra.mxu0 %v11006_v3  ;;  %7907 = vmatpush1.bf16.msra.mxu1 %v11009_v4  ;;  %v11090_v3 = vld [vmem:[%s15282_s1 + $0x1560] ss:$16 sps:$4 sm:$0xff]   ;;  %v11093_v4 = vld [vmem:[%s15282_s1 + $0x1568] ss:$16 sps:$4 sm:$0xff]  }
 0x278   :  { %7060 = vmatprep.subr.bf16.mxu0 %v11014_v1  ;;  %7908 = vmatprep.subr.bf16.mxu1 %v11017_v2  ;;  %v11098_v1 = vld [vmem:[%s15282_s1 + $0x1584] ss:$16 sps:$4 sm:$0xff]   ;;  %v11101_v2 = vld [vmem:[%s15282_s1 + $0x158c] ss:$16 sps:$4 sm:$0xff]  }
 0x27b   :  { %7061 = vmatpush1.bf16.msra.mxu0 %v11012_v5  ;;  %7909 = vmatpush1.bf16.msra.mxu1 %v11015_v6  ;;  %v11096_v5 = vld [vmem:[%s15282_s1 + $0x1580] ss:$16 sps:$4 sm:$0xff]   ;;  %v11099_v6 = vld [vmem:[%s15282_s1 + $0x1588] ss:$16 sps:$4 sm:$0xff]  }
 0x27c   :  { %7062 = vmatprep.subr.bf16.mxu0 %v11020_v7  ;;  %7910 = vmatprep.subr.bf16.mxu1 %v11023_v8  ;;  %v11104_v7 = vld [vmem:[%s15282_s1 + $0x15a4] ss:$16 sps:$4 sm:$0xff]   ;;  %v11107_v8 = vld [vmem:[%s15282_s1 + $0x15ac] ss:$16 sps:$4 sm:$0xff]  }
 0x27f   :  { %7063 = vmatpush1.bf16.msra.mxu0 %v11018_v11  ;;  %7911 = vmatpush1.bf16.msra.mxu1 %v11021_v12  ;;  %v11102_v11 = vld [vmem:[%s15282_s1 + $0x15a0] ss:$16 sps:$4 sm:$0xff]   ;;  %v11105_v12 = vld [vmem:[%s15282_s1 + $0x15a8] ss:$16 sps:$4 sm:$0xff]  }
 0x280   :  { %7085 = vmatprep.subr.bf16.mxu0 %v11026_v9  ;;  %7933 = vmatprep.subr.bf16.mxu1 %v11029_v10  ;;  %v11110_v9 = vld [vmem:[%s15282_s1 + $0x15c4] ss:$16 sps:$4 sm:$0xff]   ;;  %v11113_v10 = vld [vmem:[%s15282_s1 + $0x15cc] ss:$16 sps:$4 sm:$0xff]  }
 0x282   :  { %7065 = vmatmul.mubr.bf16.vlgmr.msra.gmra.mrb[0].mxu0 %v8734_v13  ;;  %7913 = vmatmul.mubr.bf16.vlgmr.msra.gmra.mrb[0].mxu1 %v8734_v13  ;;  %v11108_v13 = vld [vmem:[%s15282_s1 + $0x15c0] ss:$16 sps:$4 sm:$0xff]  }
 0x283   :  { %7086 = vmatpush1.bf16.msra.mxu0 %v11024_v16  ;;  %7934 = vmatpush1.bf16.msra.mxu1 %v11027_v19  ;;  %v11119_v16 = vld [vmem:[%s15282_s1 + $0x15ec] ss:$16 sps:$4 sm:$0xff]   ;;  %v11114_v19 = vld [vmem:[%s15282_s1 + $0x15e0] ss:$16 sps:$4 sm:$0xff]  }
 0x284   :  { %7087 = vmatprep.subr.bf16.mxu0 %v11032_v17  ;;  %7935 = vmatprep.subr.bf16.mxu1 %v11035_v18  ;;  %v11117_v17 = vld [vmem:[%s15282_s1 + $0x15e8] ss:$16 sps:$4 sm:$0xff]   ;;  %v11122_v18 = vld [vmem:[%s15282_s1 + $0x1604] ss:$16 sps:$4 sm:$0xff]  }
 0x285   :  { %7074 = vmatprep.mubr.bf16.mxu0 %v8767_v20  ;;  %7922 = vmatprep.mubr.bf16.mxu1 %v8767_v20  ;;  %v11125_v20 = vld [vmem:[%s15282_s1 + $0x160c] ss:$16 sps:$4 sm:$0xff]  }
 0x287   :  { %7088 = vmatpush1.bf16.msra.mxu0 %v11030_v21  ;;  %7936 = vmatpush1.bf16.msra.mxu1 %v11033_v22  ;;  %v8736_v21 = vcombine.low %v13798_v25, %v13803_v27  ;;  %v69_v22 = vld [vmem:[%s15283_s0 + $0x150] sm:$0xff]  ;;  %v11131_v27 = vld [vmem:[%s15282_s1 + $0x162c] ss:$16 sps:$4 sm:$0xff]  }
 0x288   :  { %7089 = vmatprep.subr.bf16.mxu0 %v11038_v23  ;;  %7937 = vmatprep.subr.bf16.mxu1 %v11041_v24  ;;  %v85_v23 = vld [vmem:[%s15283_s0 + $0x1d0] sm:$0xff] }
 0x289   :  { %v11120_v24 = vld [vmem:[%s15282_s1 + $0x1600] ss:$16 sps:$4 sm:$0xff]   ;;  %v11128_v25 = vld [vmem:[%s15282_s1 + $0x1624] ss:$16 sps:$4 sm:$0xff]  }
 0x28a   :  { %7075 = vmatmul.mubr.bf16.gmra.mrb[4].mxu0 %v8766_v26  ;;  %7923 = vmatmul.mubr.bf16.gmra.mrb[4].mxu1 %v8766_v26  ;;  %v11123_v26 = vld [vmem:[%s15282_s1 + $0x1608] ss:$16 sps:$4 sm:$0xff]  }
 0x28b   :  { %7090 = vmatpush1.bf16.msra.mxu0 %v11036_v28  ;;  %7938 = vmatpush1.bf16.msra.mxu1 %v11039_v29  ;;  %v8769_v28 = vcombine.high %v69_v22, %v85_v23  ;;  %v11126_v29 = vld [vmem:[%s15282_s1 + $0x1620] ss:$16 sps:$4 sm:$0xff]  }
 0x28c   :  { %7091 = vmatprep.subr.bf16.mxu0 %v11044_v30  ;;  %7939 = vmatprep.subr.bf16.mxu1 %v11047_v31  ;;  %v11129_v30 = vld [vmem:[%s15282_s1 + $0x1628] ss:$16 sps:$4 sm:$0xff]   ;;  %v11134_v31 = vld [vmem:[%s15282_s1 + $0x1644] ss:$16 sps:$4 sm:$0xff]  }
 0x28d   :  { %7117 = vmatprep.mubr.bf16.mxu0 %v8737_v32  ;;  %7965 = vmatprep.mubr.bf16.mxu1 %v8737_v32  ;;  %v11137_v32 = vld [vmem:[%s15282_s1 + $0x164c] ss:$16 sps:$4 sm:$0xff]  }
 0x28f   :  { %7092 = vmatpush1.bf16.msra.mxu0 %v11042_v34  ;;  %7940 = vmatpush1.bf16.msra.mxu1 %v11045_v36  ;;  %v8768_v34 = vcombine.low %v69_v22, %v85_v23  ;;  %v14010_v36 = vld [vmem:[%s15283_s0 + $0x58] sm:$0xff]  ;;  %v11212_v23 = vld [vmem:[%s15282_s1 + $0x17e4] ss:$16 sps:$4 sm:$0xff]  }
 0x290   :  { %7093 = vmatprep.subr.bf16.mxu0 %v11050_v33  ;;  %7941 = vmatprep.subr.bf16.mxu1 %v11053_v35  ;;  %v14015_v33 = vld [vmem:[%s15283_s0 + $0xd8] sm:$0xff]  ;;  %v11132_v35 = vld [vmem:[%s15282_s1 + $0x1640] ss:$16 sps:$4 sm:$0xff]  }
 0x291   :  { %v11207_v22 = vld [vmem:[%s15282_s1 + $0x17c8] ss:$16 sps:$4 sm:$0xff]  }
 0x293   :  { %7094 = vmatpush1.bf16.msra.mxu0 %v11048_v37  ;;  %7942 = vmatpush1.bf16.msra.mxu1 %v11051_v38  ;;  %v11135_v37 = vld [vmem:[%s15282_s1 + $0x1648] ss:$16 sps:$4 sm:$0xff]   ;;  %v11140_v38 = vld [vmem:[%s15282_s1 + $0x1664] ss:$16 sps:$4 sm:$0xff]  }
 0x294   :  { %7095 = vmatprep.subr.bf16.mxu0 %v11056_v39  ;;  %7943 = vmatprep.subr.bf16.mxu1 %v11059_v40  ;;  %v11143_v39 = vld [vmem:[%s15282_s1 + $0x166c] ss:$16 sps:$4 sm:$0xff]   ;;  %v8739_v40 = vcombine.high %v14010_v36, %v14015_v33 }
 0x297   :  { %7096 = vmatpush1.bf16.msra.mxu0 %v11054_v42  ;;  %7944 = vmatpush1.bf16.msra.mxu1 %v11057_v44  ;;  %v11138_v42 = vld [vmem:[%s15282_s1 + $0x1660] ss:$16 sps:$4 sm:$0xff]   ;;  %v11141_v44 = vld [vmem:[%s15282_s1 + $0x1668] ss:$16 sps:$4 sm:$0xff]  }
 0x298   :  { %7097 = vmatprep.subr.bf16.mxu0 %v11062_v41  ;;  %7945 = vmatprep.subr.bf16.mxu1 %v11065_v43  ;;  %v11146_v41 = vld [vmem:[%s15282_s1 + $0x1684] ss:$16 sps:$4 sm:$0xff]   ;;  %v11149_v43 = vld [vmem:[%s15282_s1 + $0x168c] ss:$16 sps:$4 sm:$0xff]  }
 0x29b   :  { %7098 = vmatpush1.bf16.msra.mxu0 %v11060_v45  ;;  %7946 = vmatpush1.bf16.msra.mxu1 %v11063_v46  ;;  %v11144_v45 = vld [vmem:[%s15282_s1 + $0x1680] ss:$16 sps:$4 sm:$0xff]   ;;  %v11147_v46 = vld [vmem:[%s15282_s1 + $0x1688] ss:$16 sps:$4 sm:$0xff]  }
 0x29c   :  { %7099 = vmatprep.subr.bf16.mxu0 %v11068_v47  ;;  %7947 = vmatprep.subr.bf16.mxu1 %v11071_v48  ;;  %v11152_v47 = vld [vmem:[%s15282_s1 + $0x16a4] ss:$16 sps:$4 sm:$0xff]   ;;  %v11155_v48 = vld [vmem:[%s15282_s1 + $0x16ac] ss:$16 sps:$4 sm:$0xff]  }
 0x29f   :  { %7100 = vmatpush1.bf16.msra.mxu0 %v11066_v51  ;;  %7948 = vmatpush1.bf16.msra.mxu1 %v11069_v52  ;;  %v11150_v51 = vld [vmem:[%s15282_s1 + $0x16a0] ss:$16 sps:$4 sm:$0xff]   ;;  %v11153_v52 = vld [vmem:[%s15282_s1 + $0x16a8] ss:$16 sps:$4 sm:$0xff]  }
 0x2a0   :  { %7101 = vmatprep.subr.bf16.mxu0 %v11074_v49  ;;  %7949 = vmatprep.subr.bf16.mxu1 %v11077_v50  ;;  %v11158_v49 = vld [vmem:[%s15282_s1 + $0x16c4] ss:$16 sps:$4 sm:$0xff]   ;;  %v11161_v50 = vld [vmem:[%s15282_s1 + $0x16cc] ss:$16 sps:$4 sm:$0xff]  }
 0x2a3   :  { %7102 = vmatpush1.bf16.msra.mxu0 %v11072_v53  ;;  %7950 = vmatpush1.bf16.msra.mxu1 %v11075_v54  ;;  %v11156_v53 = vld [vmem:[%s15282_s1 + $0x16c0] ss:$16 sps:$4 sm:$0xff]   ;;  %v11159_v54 = vld [vmem:[%s15282_s1 + $0x16c8] ss:$16 sps:$4 sm:$0xff]  }
 0x2a4   :  { %7103 = vmatprep.subr.bf16.mxu0 %v11080_v55  ;;  %7951 = vmatprep.subr.bf16.mxu1 %v11083_v56  ;;  %v11164_v55 = vld [vmem:[%s15282_s1 + $0x16e4] ss:$16 sps:$4 sm:$0xff]   ;;  %v11167_v56 = vld [vmem:[%s15282_s1 + $0x16ec] ss:$16 sps:$4 sm:$0xff]  }
 0x2a7   :  { %7104 = vmatpush1.bf16.msra.mxu0 %v11078_v59  ;;  %7952 = vmatpush1.bf16.msra.mxu1 %v11081_v60  ;;  %v11162_v59 = vld [vmem:[%s15282_s1 + $0x16e0] ss:$16 sps:$4 sm:$0xff]   ;;  %v11165_v60 = vld [vmem:[%s15282_s1 + $0x16e8] ss:$16 sps:$4 sm:$0xff]  }
 0x2a8   :  { %7105 = vmatprep.subr.bf16.mxu0 %v11086_v57  ;;  %7953 = vmatprep.subr.bf16.mxu1 %v11089_v58  ;;  %v11170_v57 = vld [vmem:[%s15282_s1 + $0x1704] ss:$16 sps:$4 sm:$0xff]   ;;  %v11173_v58 = vld [vmem:[%s15282_s1 + $0x170c] ss:$16 sps:$4 sm:$0xff]  }
 0x2ab   :  { %7106 = vmatpush1.bf16.msra.mxu0 %v11084_v61  ;;  %7954 = vmatpush1.bf16.msra.mxu1 %v11087_v62  ;;  %v11168_v61 = vld [vmem:[%s15282_s1 + $0x1700] ss:$16 sps:$4 sm:$0xff]   ;;  %v11171_v62 = vld [vmem:[%s15282_s1 + $0x1708] ss:$16 sps:$4 sm:$0xff]  }
 0x2ac   :  { %7107 = vmatprep.subr.bf16.mxu0 %v11092_v63  ;;  %7955 = vmatprep.subr.bf16.mxu1 %v11095_v0  ;;  %v11176_v63 = vld [vmem:[%s15282_s1 + $0x1724] ss:$16 sps:$4 sm:$0xff]   ;;  %v11179_v0 = vld [vmem:[%s15282_s1 + $0x172c] ss:$16 sps:$4 sm:$0xff]  }
 0x2af   :  { %7108 = vmatpush1.bf16.msra.mxu0 %v11090_v3  ;;  %7956 = vmatpush1.bf16.msra.mxu1 %v11093_v4  ;;  %v11174_v3 = vld [vmem:[%s15282_s1 + $0x1720] ss:$16 sps:$4 sm:$0xff]   ;;  %v11177_v4 = vld [vmem:[%s15282_s1 + $0x1728] ss:$16 sps:$4 sm:$0xff]  }
 0x2b0   :  { %7109 = vmatprep.subr.bf16.mxu0 %v11098_v1  ;;  %7957 = vmatprep.subr.bf16.mxu1 %v11101_v2  ;;  %v11182_v1 = vld [vmem:[%s15282_s1 + $0x1744] ss:$16 sps:$4 sm:$0xff]   ;;  %v11185_v2 = vld [vmem:[%s15282_s1 + $0x174c] ss:$16 sps:$4 sm:$0xff]  }
 0x2b3   :  { %7110 = vmatpush1.bf16.msra.mxu0 %v11096_v5  ;;  %7958 = vmatpush1.bf16.msra.mxu1 %v11099_v6  ;;  %v11180_v5 = vld [vmem:[%s15282_s1 + $0x1740] ss:$16 sps:$4 sm:$0xff]   ;;  %v11183_v6 = vld [vmem:[%s15282_s1 + $0x1748] ss:$16 sps:$4 sm:$0xff]  }
 0x2b4   :  { %7111 = vmatprep.subr.bf16.mxu0 %v11104_v7  ;;  %7959 = vmatprep.subr.bf16.mxu1 %v11107_v8  ;;  %v11188_v7 = vld [vmem:[%s15282_s1 + $0x1764] ss:$16 sps:$4 sm:$0xff]   ;;  %v11191_v8 = vld [vmem:[%s15282_s1 + $0x176c] ss:$16 sps:$4 sm:$0xff]  }
 0x2b7   :  { %7112 = vmatpush1.bf16.msra.mxu0 %v11102_v11  ;;  %7960 = vmatpush1.bf16.msra.mxu1 %v11105_v12  ;;  %v11186_v11 = vld [vmem:[%s15282_s1 + $0x1760] ss:$16 sps:$4 sm:$0xff]   ;;  %v11189_v12 = vld [vmem:[%s15282_s1 + $0x1768] ss:$16 sps:$4 sm:$0xff]  }
 0x2b8   :  { %7113 = vmatprep.subr.bf16.mxu0 %v11110_v9  ;;  %7961 = vmatprep.subr.bf16.mxu1 %v11113_v10  ;;  %v11194_v9 = vld [vmem:[%s15282_s1 + $0x1784] ss:$16 sps:$4 sm:$0xff]   ;;  %v11197_v10 = vld [vmem:[%s15282_s1 + $0x178c] ss:$16 sps:$4 sm:$0xff]  }
 0x2bb   :  { %7114 = vmatpush1.bf16.msra.mxu0 %v11108_v13  ;;  %7962 = vmatpush1.bf16.msra.mxu1 %v11111_v14  ;;  %v11192_v13 = vld [vmem:[%s15282_s1 + $0x1780] ss:$16 sps:$4 sm:$0xff]   ;;  %v11195_v14 = vld [vmem:[%s15282_s1 + $0x1788] ss:$16 sps:$4 sm:$0xff]  }
 0x2bc   :  { %7115 = vmatprep.subr.bf16.mxu0 %v11116_v15  ;;  %7963 = vmatprep.subr.bf16.mxu1 %v11119_v16  ;;  %v11200_v15 = vld [vmem:[%s15282_s1 + $0x17a4] ss:$16 sps:$4 sm:$0xff]   ;;  %v11203_v16 = vld [vmem:[%s15282_s1 + $0x17ac] ss:$16 sps:$4 sm:$0xff]  }
 0x2bf   :  { %7116 = vmatpush1.bf16.msra.mxu0 %v11114_v19  ;;  %7964 = vmatpush1.bf16.msra.mxu1 %v11117_v17  ;;  %v11198_v19 = vld [vmem:[%s15282_s1 + $0x17a0] ss:$16 sps:$4 sm:$0xff]   ;;  %v11201_v17 = vld [vmem:[%s15282_s1 + $0x17a8] ss:$16 sps:$4 sm:$0xff]  }
 0x2c0   :  { %7138 = vmatprep.subr.bf16.mxu0 %v11122_v18  ;;  %7986 = vmatprep.subr.bf16.mxu1 %v11125_v20  ;;  %v11206_v18 = vld [vmem:[%s15282_s1 + $0x17c4] ss:$16 sps:$4 sm:$0xff]   ;;  %v11209_v20 = vld [vmem:[%s15282_s1 + $0x17cc] ss:$16 sps:$4 sm:$0xff]  }
 0x2c2   :  { %7118 = vmatmul.mubr.bf16.vlgmr.msra.gmra.mrb[0].mxu0 %v8736_v21  ;;  %7966 = vmatmul.mubr.bf16.vlgmr.msra.gmra.mrb[0].mxu1 %v8736_v21  ;;  %v11204_v21 = vld [vmem:[%s15282_s1 + $0x17c0] ss:$16 sps:$4 sm:$0xff]  }
 0x2c3   :  { %7139 = vmatpush1.bf16.msra.mxu0 %v11120_v24  ;;  %7987 = vmatpush1.bf16.msra.mxu1 %v11123_v26  ;;  %v11215_v24 = vld [vmem:[%s15282_s1 + $0x17ec] ss:$16 sps:$4 sm:$0xff]   ;;  %v11210_v26 = vld [vmem:[%s15282_s1 + $0x17e0] ss:$16 sps:$4 sm:$0xff]  }
 0x2c4   :  { %7140 = vmatprep.subr.bf16.mxu0 %v11128_v25  ;;  %7988 = vmatprep.subr.bf16.mxu1 %v11131_v27  ;;  %v11213_v25 = vld [vmem:[%s15282_s1 + $0x17e8] ss:$16 sps:$4 sm:$0xff]   ;;  %v11218_v27 = vld [vmem:[%s15282_s1 + $0x1804] ss:$16 sps:$4 sm:$0xff]  }
 0x2c5   :  { %7127 = vmatprep.mubr.bf16.mxu0 %v8769_v28  ;;  %7975 = vmatprep.mubr.bf16.mxu1 %v8769_v28  ;;  %v11221_v28 = vld [vmem:[%s15282_s1 + $0x180c] ss:$16 sps:$4 sm:$0xff]  }
 0x2c7   :  { %7141 = vmatpush1.bf16.msra.mxu0 %v11126_v29  ;;  %7989 = vmatpush1.bf16.msra.mxu1 %v11129_v30  ;;  %v8738_v29 = vcombine.low %v14010_v36, %v14015_v33  ;;  %v70_v30 = vld [vmem:[%s15283_s0 + $0x158] sm:$0xff]  ;;  %v11224_v36 = vld [vmem:[%s15282_s1 + $0x1824] ss:$16 sps:$4 sm:$0xff]  }
 0x2c8   :  { %7142 = vmatprep.subr.bf16.mxu0 %v11134_v31  ;;  %7990 = vmatprep.subr.bf16.mxu1 %v11137_v32  ;;  %v86_v31 = vld [vmem:[%s15283_s0 + $0x1d8] sm:$0xff]  ;;  %v11216_v32 = vld [vmem:[%s15282_s1 + $0x1800] ss:$16 sps:$4 sm:$0xff]  }
 0x2c9   :  { %v11227_v33 = vld [vmem:[%s15282_s1 + $0x182c] ss:$16 sps:$4 sm:$0xff]  }
 0x2ca   :  { %7128 = vmatmul.mubr.bf16.gmra.mrb[4].mxu0 %v8768_v34  ;;  %7976 = vmatmul.mubr.bf16.gmra.mrb[4].mxu1 %v8768_v34  ;;  %v11219_v34 = vld [vmem:[%s15282_s1 + $0x1808] ss:$16 sps:$4 sm:$0xff]  }
 0x2cb   :  { %7143 = vmatpush1.bf16.msra.mxu0 %v11132_v35  ;;  %7991 = vmatpush1.bf16.msra.mxu1 %v11135_v37  ;;  %v8771_v35 = vcombine.high %v70_v30, %v86_v31  ;;  %v11222_v37 = vld [vmem:[%s15282_s1 + $0x1820] ss:$16 sps:$4 sm:$0xff]  }
 0x2cc   :  { %7144 = vmatprep.subr.bf16.mxu0 %v11140_v38  ;;  %7992 = vmatprep.subr.bf16.mxu1 %v11143_v39  ;;  %v11225_v38 = vld [vmem:[%s15282_s1 + $0x1828] ss:$16 sps:$4 sm:$0xff]   ;;  %v11230_v39 = vld [vmem:[%s15282_s1 + $0x1844] ss:$16 sps:$4 sm:$0xff]  }
 0x2cd   :  { %7170 = vmatprep.mubr.bf16.mxu0 %v8739_v40  ;;  %8018 = vmatprep.mubr.bf16.mxu1 %v8739_v40  ;;  %v11233_v40 = vld [vmem:[%s15282_s1 + $0x184c] ss:$16 sps:$4 sm:$0xff]  }
 0x2cf   :  { %7145 = vmatpush1.bf16.msra.mxu0 %v11138_v42  ;;  %7993 = vmatpush1.bf16.msra.mxu1 %v11141_v44  ;;  %v8770_v42 = vcombine.low %v70_v30, %v86_v31  ;;  %v14222_v44 = vld [vmem:[%s15283_s0 + $0x60] sm:$0xff]  ;;  %v11303_v30 = vld [vmem:[%s15282_s1 + $0x19c8] ss:$16 sps:$4 sm:$0xff]  }
 0x2d0   :  { %7146 = vmatprep.subr.bf16.mxu0 %v11146_v41  ;;  %7994 = vmatprep.subr.bf16.mxu1 %v11149_v43  ;;  %v14227_v41 = vld [vmem:[%s15283_s0 + $0xe0] sm:$0xff] }
 0x2d1   :  { %v11228_v43 = vld [vmem:[%s15282_s1 + $0x1840] ss:$16 sps:$4 sm:$0xff]   ;;  %v11308_v31 = vld [vmem:[%s15282_s1 + $0x19e4] ss:$16 sps:$4 sm:$0xff]  }
 0x2d3   :  { %7147 = vmatpush1.bf16.msra.mxu0 %v11144_v45  ;;  %7995 = vmatpush1.bf16.msra.mxu1 %v11147_v46  ;;  %v11231_v45 = vld [vmem:[%s15282_s1 + $0x1848] ss:$16 sps:$4 sm:$0xff]   ;;  %v11236_v46 = vld [vmem:[%s15282_s1 + $0x1864] ss:$16 sps:$4 sm:$0xff]  }
 0x2d4   :  { %7148 = vmatprep.subr.bf16.mxu0 %v11152_v47  ;;  %7996 = vmatprep.subr.bf16.mxu1 %v11155_v48  ;;  %v11239_v47 = vld [vmem:[%s15282_s1 + $0x186c] ss:$16 sps:$4 sm:$0xff]   ;;  %v8741_v48 = vcombine.high %v14222_v44, %v14227_v41 }
 0x2d7   :  { %7149 = vmatpush1.bf16.msra.mxu0 %v11150_v51  ;;  %7997 = vmatpush1.bf16.msra.mxu1 %v11153_v52  ;;  %v11234_v51 = vld [vmem:[%s15282_s1 + $0x1860] ss:$16 sps:$4 sm:$0xff]   ;;  %v11237_v52 = vld [vmem:[%s15282_s1 + $0x1868] ss:$16 sps:$4 sm:$0xff]  }
 0x2d8   :  { %7150 = vmatprep.subr.bf16.mxu0 %v11158_v49  ;;  %7998 = vmatprep.subr.bf16.mxu1 %v11161_v50  ;;  %v11242_v49 = vld [vmem:[%s15282_s1 + $0x1884] ss:$16 sps:$4 sm:$0xff]   ;;  %v11245_v50 = vld [vmem:[%s15282_s1 + $0x188c] ss:$16 sps:$4 sm:$0xff]  }
 0x2db   :  { %7151 = vmatpush1.bf16.msra.mxu0 %v11156_v53  ;;  %7999 = vmatpush1.bf16.msra.mxu1 %v11159_v54  ;;  %v11240_v53 = vld [vmem:[%s15282_s1 + $0x1880] ss:$16 sps:$4 sm:$0xff]   ;;  %v11243_v54 = vld [vmem:[%s15282_s1 + $0x1888] ss:$16 sps:$4 sm:$0xff]  }
 0x2dc   :  { %7152 = vmatprep.subr.bf16.mxu0 %v11164_v55  ;;  %8000 = vmatprep.subr.bf16.mxu1 %v11167_v56  ;;  %v11248_v55 = vld [vmem:[%s15282_s1 + $0x18a4] ss:$16 sps:$4 sm:$0xff]   ;;  %v11251_v56 = vld [vmem:[%s15282_s1 + $0x18ac] ss:$16 sps:$4 sm:$0xff]  }
 0x2df   :  { %7153 = vmatpush1.bf16.msra.mxu0 %v11162_v59  ;;  %8001 = vmatpush1.bf16.msra.mxu1 %v11165_v60  ;;  %v11246_v59 = vld [vmem:[%s15282_s1 + $0x18a0] ss:$16 sps:$4 sm:$0xff]   ;;  %v11249_v60 = vld [vmem:[%s15282_s1 + $0x18a8] ss:$16 sps:$4 sm:$0xff]  }
 0x2e0   :  { %7154 = vmatprep.subr.bf16.mxu0 %v11170_v57  ;;  %8002 = vmatprep.subr.bf16.mxu1 %v11173_v58  ;;  %v11254_v57 = vld [vmem:[%s15282_s1 + $0x18c4] ss:$16 sps:$4 sm:$0xff]   ;;  %v11257_v58 = vld [vmem:[%s15282_s1 + $0x18cc] ss:$16 sps:$4 sm:$0xff]  }
 0x2e3   :  { %7155 = vmatpush1.bf16.msra.mxu0 %v11168_v61  ;;  %8003 = vmatpush1.bf16.msra.mxu1 %v11171_v62  ;;  %v11252_v61 = vld [vmem:[%s15282_s1 + $0x18c0] ss:$16 sps:$4 sm:$0xff]   ;;  %v11255_v62 = vld [vmem:[%s15282_s1 + $0x18c8] ss:$16 sps:$4 sm:$0xff]  }
 0x2e4   :  { %7156 = vmatprep.subr.bf16.mxu0 %v11176_v63  ;;  %8004 = vmatprep.subr.bf16.mxu1 %v11179_v0  ;;  %v11260_v63 = vld [vmem:[%s15282_s1 + $0x18e4] ss:$16 sps:$4 sm:$0xff]   ;;  %v11263_v0 = vld [vmem:[%s15282_s1 + $0x18ec] ss:$16 sps:$4 sm:$0xff]  }
 0x2e7   :  { %7157 = vmatpush1.bf16.msra.mxu0 %v11174_v3  ;;  %8005 = vmatpush1.bf16.msra.mxu1 %v11177_v4  ;;  %v11258_v3 = vld [vmem:[%s15282_s1 + $0x18e0] ss:$16 sps:$4 sm:$0xff]   ;;  %v11261_v4 = vld [vmem:[%s15282_s1 + $0x18e8] ss:$16 sps:$4 sm:$0xff]  }
 0x2e8   :  { %7158 = vmatprep.subr.bf16.mxu0 %v11182_v1  ;;  %8006 = vmatprep.subr.bf16.mxu1 %v11185_v2  ;;  %v11266_v1 = vld [vmem:[%s15282_s1 + $0x1904] ss:$16 sps:$4 sm:$0xff]   ;;  %v11269_v2 = vld [vmem:[%s15282_s1 + $0x190c] ss:$16 sps:$4 sm:$0xff]  }
 0x2eb   :  { %7159 = vmatpush1.bf16.msra.mxu0 %v11180_v5  ;;  %8007 = vmatpush1.bf16.msra.mxu1 %v11183_v6  ;;  %v11264_v5 = vld [vmem:[%s15282_s1 + $0x1900] ss:$16 sps:$4 sm:$0xff]   ;;  %v11267_v6 = vld [vmem:[%s15282_s1 + $0x1908] ss:$16 sps:$4 sm:$0xff]  }
 0x2ec   :  { %7160 = vmatprep.subr.bf16.mxu0 %v11188_v7  ;;  %8008 = vmatprep.subr.bf16.mxu1 %v11191_v8  ;;  %v11272_v7 = vld [vmem:[%s15282_s1 + $0x1924] ss:$16 sps:$4 sm:$0xff]   ;;  %v11275_v8 = vld [vmem:[%s15282_s1 + $0x192c] ss:$16 sps:$4 sm:$0xff]  }
 0x2ef   :  { %7161 = vmatpush1.bf16.msra.mxu0 %v11186_v11  ;;  %8009 = vmatpush1.bf16.msra.mxu1 %v11189_v12  ;;  %v11270_v11 = vld [vmem:[%s15282_s1 + $0x1920] ss:$16 sps:$4 sm:$0xff]   ;;  %v11273_v12 = vld [vmem:[%s15282_s1 + $0x1928] ss:$16 sps:$4 sm:$0xff]  }
 0x2f0   :  { %7162 = vmatprep.subr.bf16.mxu0 %v11194_v9  ;;  %8010 = vmatprep.subr.bf16.mxu1 %v11197_v10  ;;  %v11278_v9 = vld [vmem:[%s15282_s1 + $0x1944] ss:$16 sps:$4 sm:$0xff]   ;;  %v11281_v10 = vld [vmem:[%s15282_s1 + $0x194c] ss:$16 sps:$4 sm:$0xff]  }
 0x2f3   :  { %7163 = vmatpush1.bf16.msra.mxu0 %v11192_v13  ;;  %8011 = vmatpush1.bf16.msra.mxu1 %v11195_v14  ;;  %v11276_v13 = vld [vmem:[%s15282_s1 + $0x1940] ss:$16 sps:$4 sm:$0xff]   ;;  %v11279_v14 = vld [vmem:[%s15282_s1 + $0x1948] ss:$16 sps:$4 sm:$0xff]  }
 0x2f4   :  { %7164 = vmatprep.subr.bf16.mxu0 %v11200_v15  ;;  %8012 = vmatprep.subr.bf16.mxu1 %v11203_v16  ;;  %v11284_v15 = vld [vmem:[%s15282_s1 + $0x1964] ss:$16 sps:$4 sm:$0xff]   ;;  %v11287_v16 = vld [vmem:[%s15282_s1 + $0x196c] ss:$16 sps:$4 sm:$0xff]  }
 0x2f7   :  { %7165 = vmatpush1.bf16.msra.mxu0 %v11198_v19  ;;  %8013 = vmatpush1.bf16.msra.mxu1 %v11201_v17  ;;  %v11282_v19 = vld [vmem:[%s15282_s1 + $0x1960] ss:$16 sps:$4 sm:$0xff]   ;;  %v11285_v17 = vld [vmem:[%s15282_s1 + $0x1968] ss:$16 sps:$4 sm:$0xff]  }
 0x2f8   :  { %7166 = vmatprep.subr.bf16.mxu0 %v11206_v18  ;;  %8014 = vmatprep.subr.bf16.mxu1 %v11209_v20  ;;  %v11290_v18 = vld [vmem:[%s15282_s1 + $0x1984] ss:$16 sps:$4 sm:$0xff]   ;;  %v11293_v20 = vld [vmem:[%s15282_s1 + $0x198c] ss:$16 sps:$4 sm:$0xff]  }
 0x2fb   :  { %7167 = vmatpush1.bf16.msra.mxu0 %v11204_v21  ;;  %8015 = vmatpush1.bf16.msra.mxu1 %v11207_v22  ;;  %v11288_v21 = vld [vmem:[%s15282_s1 + $0x1980] ss:$16 sps:$4 sm:$0xff]   ;;  %v11291_v22 = vld [vmem:[%s15282_s1 + $0x1988] ss:$16 sps:$4 sm:$0xff]  }
 0x2fc   :  { %7168 = vmatprep.subr.bf16.mxu0 %v11212_v23  ;;  %8016 = vmatprep.subr.bf16.mxu1 %v11215_v24  ;;  %v11296_v23 = vld [vmem:[%s15282_s1 + $0x19a4] ss:$16 sps:$4 sm:$0xff]   ;;  %v11299_v24 = vld [vmem:[%s15282_s1 + $0x19ac] ss:$16 sps:$4 sm:$0xff]  }
 0x2ff   :  { %7169 = vmatpush1.bf16.msra.mxu0 %v11210_v26  ;;  %8017 = vmatpush1.bf16.msra.mxu1 %v11213_v25  ;;  %v11294_v26 = vld [vmem:[%s15282_s1 + $0x19a0] ss:$16 sps:$4 sm:$0xff]   ;;  %v11297_v25 = vld [vmem:[%s15282_s1 + $0x19a8] ss:$16 sps:$4 sm:$0xff]  }
 0x300   :  { %7191 = vmatprep.subr.bf16.mxu0 %v11218_v27  ;;  %8039 = vmatprep.subr.bf16.mxu1 %v11221_v28  ;;  %v11302_v27 = vld [vmem:[%s15282_s1 + $0x19c4] ss:$16 sps:$4 sm:$0xff]   ;;  %v11305_v28 = vld [vmem:[%s15282_s1 + $0x19cc] ss:$16 sps:$4 sm:$0xff]  }
 0x302   :  { %7171 = vmatmul.mubr.bf16.vlgmr.msra.gmra.mrb[0].mxu0 %v8738_v29  ;;  %8019 = vmatmul.mubr.bf16.vlgmr.msra.gmra.mrb[0].mxu1 %v8738_v29  ;;  %v11300_v29 = vld [vmem:[%s15282_s1 + $0x19c0] ss:$16 sps:$4 sm:$0xff]  }
 0x303   :  { %7192 = vmatpush1.bf16.msra.mxu0 %v11216_v32  ;;  %8040 = vmatpush1.bf16.msra.mxu1 %v11219_v34  ;;  %v11311_v32 = vld [vmem:[%s15282_s1 + $0x19ec] ss:$16 sps:$4 sm:$0xff]   ;;  %v11306_v34 = vld [vmem:[%s15282_s1 + $0x19e0] ss:$16 sps:$4 sm:$0xff]  }
 0x304   :  { %7193 = vmatprep.subr.bf16.mxu0 %v11224_v36  ;;  %8041 = vmatprep.subr.bf16.mxu1 %v11227_v33  ;;  %v11309_v36 = vld [vmem:[%s15282_s1 + $0x19e8] ss:$16 sps:$4 sm:$0xff]   ;;  %v11314_v33 = vld [vmem:[%s15282_s1 + $0x1a04] ss:$16 sps:$4 sm:$0xff]  }
 0x305   :  { %7180 = vmatprep.mubr.bf16.mxu0 %v8771_v35  ;;  %8028 = vmatprep.mubr.bf16.mxu1 %v8771_v35  ;;  %v11317_v35 = vld [vmem:[%s15282_s1 + $0x1a0c] ss:$16 sps:$4 sm:$0xff]  }
 0x307   :  { %7194 = vmatpush1.bf16.msra.mxu0 %v11222_v37  ;;  %8042 = vmatpush1.bf16.msra.mxu1 %v11225_v38  ;;  %v8740_v37 = vcombine.low %v14222_v44, %v14227_v41  ;;  %v71_v38 = vld [vmem:[%s15283_s0 + $0x160] sm:$0xff]  ;;  %v11323_v41 = vld [vmem:[%s15282_s1 + $0x1a2c] ss:$16 sps:$4 sm:$0xff]  }
 0x308   :  { %7195 = vmatprep.subr.bf16.mxu0 %v11230_v39  ;;  %8043 = vmatprep.subr.bf16.mxu1 %v11233_v40  ;;  %v87_v39 = vld [vmem:[%s15283_s0 + $0x1e0] sm:$0xff] }
 0x309   :  { %v11312_v40 = vld [vmem:[%s15282_s1 + $0x1a00] ss:$16 sps:$4 sm:$0xff]   ;;  %v11320_v44 = vld [vmem:[%s15282_s1 + $0x1a24] ss:$16 sps:$4 sm:$0xff]  }
 0x30a   :  { %7181 = vmatmul.mubr.bf16.gmra.mrb[4].mxu0 %v8770_v42  ;;  %8029 = vmatmul.mubr.bf16.gmra.mrb[4].mxu1 %v8770_v42  ;;  %v11315_v42 = vld [vmem:[%s15282_s1 + $0x1a08] ss:$16 sps:$4 sm:$0xff]  }
 0x30b   :  { %7196 = vmatpush1.bf16.msra.mxu0 %v11228_v43  ;;  %8044 = vmatpush1.bf16.msra.mxu1 %v11231_v45  ;;  %v8773_v43 = vcombine.high %v71_v38, %v87_v39  ;;  %v11318_v45 = vld [vmem:[%s15282_s1 + $0x1a20] ss:$16 sps:$4 sm:$0xff]  }
 0x30c   :  { %7197 = vmatprep.subr.bf16.mxu0 %v11236_v46  ;;  %8045 = vmatprep.subr.bf16.mxu1 %v11239_v47  ;;  %v11321_v46 = vld [vmem:[%s15282_s1 + $0x1a28] ss:$16 sps:$4 sm:$0xff]   ;;  %v11326_v47 = vld [vmem:[%s15282_s1 + $0x1a44] ss:$16 sps:$4 sm:$0xff]  }
 0x30d   :  { %7223 = vmatprep.mubr.bf16.mxu0 %v8741_v48  ;;  %8071 = vmatprep.mubr.bf16.mxu1 %v8741_v48  ;;  %v11329_v48 = vld [vmem:[%s15282_s1 + $0x1a4c] ss:$16 sps:$4 sm:$0xff]  }
 0x30f   :  { %7198 = vmatpush1.bf16.msra.mxu0 %v11234_v51  ;;  %8046 = vmatpush1.bf16.msra.mxu1 %v11237_v52  ;;  %v8772_v51 = vcombine.low %v71_v38, %v87_v39  ;;  %v14434_v52 = vld [vmem:[%s15283_s0 + $0x68] sm:$0xff]  ;;  %v11404_v39 = vld [vmem:[%s15282_s1 + $0x1be4] ss:$16 sps:$4 sm:$0xff]  }
 0x310   :  { %7199 = vmatprep.subr.bf16.mxu0 %v11242_v49  ;;  %8047 = vmatprep.subr.bf16.mxu1 %v11245_v50  ;;  %v14439_v49 = vld [vmem:[%s15283_s0 + $0xe8] sm:$0xff]  ;;  %v11324_v50 = vld [vmem:[%s15282_s1 + $0x1a40] ss:$16 sps:$4 sm:$0xff]  }
 0x311   :  { %v11399_v38 = vld [vmem:[%s15282_s1 + $0x1bc8] ss:$16 sps:$4 sm:$0xff]  }
 0x313   :  { %7200 = vmatpush1.bf16.msra.mxu0 %v11240_v53  ;;  %8048 = vmatpush1.bf16.msra.mxu1 %v11243_v54  ;;  %v11327_v53 = vld [vmem:[%s15282_s1 + $0x1a48] ss:$16 sps:$4 sm:$0xff]   ;;  %v11332_v54 = vld [vmem:[%s15282_s1 + $0x1a64] ss:$16 sps:$4 sm:$0xff]  }
 0x314   :  { %7201 = vmatprep.subr.bf16.mxu0 %v11248_v55  ;;  %8049 = vmatprep.subr.bf16.mxu1 %v11251_v56  ;;  %v11335_v55 = vld [vmem:[%s15282_s1 + $0x1a6c] ss:$16 sps:$4 sm:$0xff]   ;;  %v8743_v56 = vcombine.high %v14434_v52, %v14439_v49 }
 0x317   :  { %7202 = vmatpush1.bf16.msra.mxu0 %v11246_v59  ;;  %8050 = vmatpush1.bf16.msra.mxu1 %v11249_v60  ;;  %v11330_v59 = vld [vmem:[%s15282_s1 + $0x1a60] ss:$16 sps:$4 sm:$0xff]   ;;  %v11333_v60 = vld [vmem:[%s15282_s1 + $0x1a68] ss:$16 sps:$4 sm:$0xff]  }
 0x318   :  { %7203 = vmatprep.subr.bf16.mxu0 %v11254_v57  ;;  %8051 = vmatprep.subr.bf16.mxu1 %v11257_v58  ;;  %v11338_v57 = vld [vmem:[%s15282_s1 + $0x1a84] ss:$16 sps:$4 sm:$0xff]   ;;  %v11341_v58 = vld [vmem:[%s15282_s1 + $0x1a8c] ss:$16 sps:$4 sm:$0xff]  }
 0x31b   :  { %7204 = vmatpush1.bf16.msra.mxu0 %v11252_v61  ;;  %8052 = vmatpush1.bf16.msra.mxu1 %v11255_v62  ;;  %v11336_v61 = vld [vmem:[%s15282_s1 + $0x1a80] ss:$16 sps:$4 sm:$0xff]   ;;  %v11339_v62 = vld [vmem:[%s15282_s1 + $0x1a88] ss:$16 sps:$4 sm:$0xff]  }
 0x31c   :  { %7205 = vmatprep.subr.bf16.mxu0 %v11260_v63  ;;  %8053 = vmatprep.subr.bf16.mxu1 %v11263_v0  ;;  %v11344_v63 = vld [vmem:[%s15282_s1 + $0x1aa4] ss:$16 sps:$4 sm:$0xff]   ;;  %v11347_v0 = vld [vmem:[%s15282_s1 + $0x1aac] ss:$16 sps:$4 sm:$0xff]  }
 0x31f   :  { %7206 = vmatpush1.bf16.msra.mxu0 %v11258_v3  ;;  %8054 = vmatpush1.bf16.msra.mxu1 %v11261_v4  ;;  %v11342_v3 = vld [vmem:[%s15282_s1 + $0x1aa0] ss:$16 sps:$4 sm:$0xff]   ;;  %v11345_v4 = vld [vmem:[%s15282_s1 + $0x1aa8] ss:$16 sps:$4 sm:$0xff]  }
 0x320   :  { %7207 = vmatprep.subr.bf16.mxu0 %v11266_v1  ;;  %8055 = vmatprep.subr.bf16.mxu1 %v11269_v2  ;;  %v11350_v1 = vld [vmem:[%s15282_s1 + $0x1ac4] ss:$16 sps:$4 sm:$0xff]   ;;  %v11353_v2 = vld [vmem:[%s15282_s1 + $0x1acc] ss:$16 sps:$4 sm:$0xff]  }
 0x323   :  { %7208 = vmatpush1.bf16.msra.mxu0 %v11264_v5  ;;  %8056 = vmatpush1.bf16.msra.mxu1 %v11267_v6  ;;  %v11348_v5 = vld [vmem:[%s15282_s1 + $0x1ac0] ss:$16 sps:$4 sm:$0xff]   ;;  %v11351_v6 = vld [vmem:[%s15282_s1 + $0x1ac8] ss:$16 sps:$4 sm:$0xff]  }
 0x324   :  { %7209 = vmatprep.subr.bf16.mxu0 %v11272_v7  ;;  %8057 = vmatprep.subr.bf16.mxu1 %v11275_v8  ;;  %v11356_v7 = vld [vmem:[%s15282_s1 + $0x1ae4] ss:$16 sps:$4 sm:$0xff]   ;;  %v11359_v8 = vld [vmem:[%s15282_s1 + $0x1aec] ss:$16 sps:$4 sm:$0xff]  }
 0x327   :  { %7210 = vmatpush1.bf16.msra.mxu0 %v11270_v11  ;;  %8058 = vmatpush1.bf16.msra.mxu1 %v11273_v12  ;;  %v11354_v11 = vld [vmem:[%s15282_s1 + $0x1ae0] ss:$16 sps:$4 sm:$0xff]   ;;  %v11357_v12 = vld [vmem:[%s15282_s1 + $0x1ae8] ss:$16 sps:$4 sm:$0xff]  }
 0x328   :  { %7211 = vmatprep.subr.bf16.mxu0 %v11278_v9  ;;  %8059 = vmatprep.subr.bf16.mxu1 %v11281_v10  ;;  %v11362_v9 = vld [vmem:[%s15282_s1 + $0x1b04] ss:$16 sps:$4 sm:$0xff]   ;;  %v11365_v10 = vld [vmem:[%s15282_s1 + $0x1b0c] ss:$16 sps:$4 sm:$0xff]  }
 0x32b   :  { %7212 = vmatpush1.bf16.msra.mxu0 %v11276_v13  ;;  %8060 = vmatpush1.bf16.msra.mxu1 %v11279_v14  ;;  %v11360_v13 = vld [vmem:[%s15282_s1 + $0x1b00] ss:$16 sps:$4 sm:$0xff]   ;;  %v11363_v14 = vld [vmem:[%s15282_s1 + $0x1b08] ss:$16 sps:$4 sm:$0xff]  }
 0x32c   :  { %7213 = vmatprep.subr.bf16.mxu0 %v11284_v15  ;;  %8061 = vmatprep.subr.bf16.mxu1 %v11287_v16  ;;  %v11368_v15 = vld [vmem:[%s15282_s1 + $0x1b24] ss:$16 sps:$4 sm:$0xff]   ;;  %v11371_v16 = vld [vmem:[%s15282_s1 + $0x1b2c] ss:$16 sps:$4 sm:$0xff]  }
 0x32f   :  { %7214 = vmatpush1.bf16.msra.mxu0 %v11282_v19  ;;  %8062 = vmatpush1.bf16.msra.mxu1 %v11285_v17  ;;  %v11366_v19 = vld [vmem:[%s15282_s1 + $0x1b20] ss:$16 sps:$4 sm:$0xff]   ;;  %v11369_v17 = vld [vmem:[%s15282_s1 + $0x1b28] ss:$16 sps:$4 sm:$0xff]  }
 0x330   :  { %7215 = vmatprep.subr.bf16.mxu0 %v11290_v18  ;;  %8063 = vmatprep.subr.bf16.mxu1 %v11293_v20  ;;  %v11374_v18 = vld [vmem:[%s15282_s1 + $0x1b44] ss:$16 sps:$4 sm:$0xff]   ;;  %v11377_v20 = vld [vmem:[%s15282_s1 + $0x1b4c] ss:$16 sps:$4 sm:$0xff]  }
 0x333   :  { %7216 = vmatpush1.bf16.msra.mxu0 %v11288_v21  ;;  %8064 = vmatpush1.bf16.msra.mxu1 %v11291_v22  ;;  %v11372_v21 = vld [vmem:[%s15282_s1 + $0x1b40] ss:$16 sps:$4 sm:$0xff]   ;;  %v11375_v22 = vld [vmem:[%s15282_s1 + $0x1b48] ss:$16 sps:$4 sm:$0xff]  }
 0x334   :  { %7217 = vmatprep.subr.bf16.mxu0 %v11296_v23  ;;  %8065 = vmatprep.subr.bf16.mxu1 %v11299_v24  ;;  %v11380_v23 = vld [vmem:[%s15282_s1 + $0x1b64] ss:$16 sps:$4 sm:$0xff]   ;;  %v11383_v24 = vld [vmem:[%s15282_s1 + $0x1b6c] ss:$16 sps:$4 sm:$0xff]  }
 0x337   :  { %7218 = vmatpush1.bf16.msra.mxu0 %v11294_v26  ;;  %8066 = vmatpush1.bf16.msra.mxu1 %v11297_v25  ;;  %v11378_v26 = vld [vmem:[%s15282_s1 + $0x1b60] ss:$16 sps:$4 sm:$0xff]   ;;  %v11381_v25 = vld [vmem:[%s15282_s1 + $0x1b68] ss:$16 sps:$4 sm:$0xff]  }
 0x338   :  { %7219 = vmatprep.subr.bf16.mxu0 %v11302_v27  ;;  %8067 = vmatprep.subr.bf16.mxu1 %v11305_v28  ;;  %v11386_v27 = vld [vmem:[%s15282_s1 + $0x1b84] ss:$16 sps:$4 sm:$0xff]   ;;  %v11389_v28 = vld [vmem:[%s15282_s1 + $0x1b8c] ss:$16 sps:$4 sm:$0xff]  }
 0x33b   :  { %7220 = vmatpush1.bf16.msra.mxu0 %v11300_v29  ;;  %8068 = vmatpush1.bf16.msra.mxu1 %v11303_v30  ;;  %v11384_v29 = vld [vmem:[%s15282_s1 + $0x1b80] ss:$16 sps:$4 sm:$0xff]   ;;  %v11387_v30 = vld [vmem:[%s15282_s1 + $0x1b88] ss:$16 sps:$4 sm:$0xff]  }
 0x33c   :  { %7221 = vmatprep.subr.bf16.mxu0 %v11308_v31  ;;  %8069 = vmatprep.subr.bf16.mxu1 %v11311_v32  ;;  %v11392_v31 = vld [vmem:[%s15282_s1 + $0x1ba4] ss:$16 sps:$4 sm:$0xff]   ;;  %v11395_v32 = vld [vmem:[%s15282_s1 + $0x1bac] ss:$16 sps:$4 sm:$0xff]  }
 0x33f   :  { %7222 = vmatpush1.bf16.msra.mxu0 %v11306_v34  ;;  %8070 = vmatpush1.bf16.msra.mxu1 %v11309_v36  ;;  %v11390_v34 = vld [vmem:[%s15282_s1 + $0x1ba0] ss:$16 sps:$4 sm:$0xff]   ;;  %v11393_v36 = vld [vmem:[%s15282_s1 + $0x1ba8] ss:$16 sps:$4 sm:$0xff]  }
 0x340   :  { %7244 = vmatprep.subr.bf16.mxu0 %v11314_v33  ;;  %8092 = vmatprep.subr.bf16.mxu1 %v11317_v35  ;;  %v11398_v33 = vld [vmem:[%s15282_s1 + $0x1bc4] ss:$16 sps:$4 sm:$0xff]   ;;  %v11401_v35 = vld [vmem:[%s15282_s1 + $0x1bcc] ss:$16 sps:$4 sm:$0xff]  }
 0x342   :  { %7224 = vmatmul.mubr.bf16.vlgmr.msra.gmra.mrb[0].mxu0 %v8740_v37  ;;  %8072 = vmatmul.mubr.bf16.vlgmr.msra.gmra.mrb[0].mxu1 %v8740_v37  ;;  %v11396_v37 = vld [vmem:[%s15282_s1 + $0x1bc0] ss:$16 sps:$4 sm:$0xff]  }
 0x343   :  { %7245 = vmatpush1.bf16.msra.mxu0 %v11312_v40  ;;  %8093 = vmatpush1.bf16.msra.mxu1 %v11315_v42  ;;  %v11407_v40 = vld [vmem:[%s15282_s1 + $0x1bec] ss:$16 sps:$4 sm:$0xff]   ;;  %v11402_v42 = vld [vmem:[%s15282_s1 + $0x1be0] ss:$16 sps:$4 sm:$0xff]  }
 0x344   :  { %7246 = vmatprep.subr.bf16.mxu0 %v11320_v44  ;;  %8094 = vmatprep.subr.bf16.mxu1 %v11323_v41  ;;  %v11405_v44 = vld [vmem:[%s15282_s1 + $0x1be8] ss:$16 sps:$4 sm:$0xff]   ;;  %v11410_v41 = vld [vmem:[%s15282_s1 + $0x1c04] ss:$16 sps:$4 sm:$0xff]  }
 0x345   :  { %7233 = vmatprep.mubr.bf16.mxu0 %v8773_v43  ;;  %8081 = vmatprep.mubr.bf16.mxu1 %v8773_v43  ;;  %v11413_v43 = vld [vmem:[%s15282_s1 + $0x1c0c] ss:$16 sps:$4 sm:$0xff]  }
 0x347   :  { %7247 = vmatpush1.bf16.msra.mxu0 %v11318_v45  ;;  %8095 = vmatpush1.bf16.msra.mxu1 %v11321_v46  ;;  %v8742_v45 = vcombine.low %v14434_v52, %v14439_v49  ;;  %v72_v46 = vld [vmem:[%s15283_s0 + $0x168] sm:$0xff]  ;;  %v11416_v52 = vld [vmem:[%s15282_s1 + $0x1c24] ss:$16 sps:$4 sm:$0xff]  }
 0x348   :  { %7248 = vmatprep.subr.bf16.mxu0 %v11326_v47  ;;  %8096 = vmatprep.subr.bf16.mxu1 %v11329_v48  ;;  %v88_v47 = vld [vmem:[%s15283_s0 + $0x1e8] sm:$0xff]  ;;  %v11408_v48 = vld [vmem:[%s15282_s1 + $0x1c00] ss:$16 sps:$4 sm:$0xff]  }
 0x349   :  { %v11419_v49 = vld [vmem:[%s15282_s1 + $0x1c2c] ss:$16 sps:$4 sm:$0xff]  }
 0x34a   :  { %7234 = vmatmul.mubr.bf16.gmra.mrb[4].mxu0 %v8772_v51  ;;  %8082 = vmatmul.mubr.bf16.gmra.mrb[4].mxu1 %v8772_v51  ;;  %v11411_v51 = vld [vmem:[%s15282_s1 + $0x1c08] ss:$16 sps:$4 sm:$0xff]  }
 0x34b   :  { %7249 = vmatpush1.bf16.msra.mxu0 %v11324_v50  ;;  %8097 = vmatpush1.bf16.msra.mxu1 %v11327_v53  ;;  %v8775_v50 = vcombine.high %v72_v46, %v88_v47  ;;  %v11414_v53 = vld [vmem:[%s15282_s1 + $0x1c20] ss:$16 sps:$4 sm:$0xff]  }
 0x34c   :  { %7250 = vmatprep.subr.bf16.mxu0 %v11332_v54  ;;  %8098 = vmatprep.subr.bf16.mxu1 %v11335_v55  ;;  %v11417_v54 = vld [vmem:[%s15282_s1 + $0x1c28] ss:$16 sps:$4 sm:$0xff]   ;;  %v11422_v55 = vld [vmem:[%s15282_s1 + $0x1c44] ss:$16 sps:$4 sm:$0xff]  }
 0x34d   :  { %7276 = vmatprep.mubr.bf16.mxu0 %v8743_v56  ;;  %8124 = vmatprep.mubr.bf16.mxu1 %v8743_v56  ;;  %v11425_v56 = vld [vmem:[%s15282_s1 + $0x1c4c] ss:$16 sps:$4 sm:$0xff]  }
 0x34f   :  { %7251 = vmatpush1.bf16.msra.mxu0 %v11330_v59  ;;  %8099 = vmatpush1.bf16.msra.mxu1 %v11333_v60  ;;  %v8774_v59 = vcombine.low %v72_v46, %v88_v47  ;;  %v14646_v60 = vld [vmem:[%s15283_s0 + $0x70] sm:$0xff]  ;;  %v11495_v46 = vld [vmem:[%s15282_s1 + $0x1dc8] ss:$16 sps:$4 sm:$0xff]  }
 0x350   :  { %7252 = vmatprep.subr.bf16.mxu0 %v11338_v57  ;;  %8100 = vmatprep.subr.bf16.mxu1 %v11341_v58  ;;  %v14651_v57 = vld [vmem:[%s15283_s0 + $0xf0] sm:$0xff] }
 0x351   :  { %v11420_v58 = vld [vmem:[%s15282_s1 + $0x1c40] ss:$16 sps:$4 sm:$0xff]   ;;  %v11500_v47 = vld [vmem:[%s15282_s1 + $0x1de4] ss:$16 sps:$4 sm:$0xff]  }
 0x353   :  { %7253 = vmatpush1.bf16.msra.mxu0 %v11336_v61  ;;  %8101 = vmatpush1.bf16.msra.mxu1 %v11339_v62  ;;  %v11423_v61 = vld [vmem:[%s15282_s1 + $0x1c48] ss:$16 sps:$4 sm:$0xff]   ;;  %v11428_v62 = vld [vmem:[%s15282_s1 + $0x1c64] ss:$16 sps:$4 sm:$0xff]  }
 0x354   :  { %7254 = vmatprep.subr.bf16.mxu0 %v11344_v63  ;;  %8102 = vmatprep.subr.bf16.mxu1 %v11347_v0  ;;  %v11431_v63 = vld [vmem:[%s15282_s1 + $0x1c6c] ss:$16 sps:$4 sm:$0xff]   ;;  %v8745_v0 = vcombine.high %v14646_v60, %v14651_v57 }
 0x357   :  { %7255 = vmatpush1.bf16.msra.mxu0 %v11342_v3  ;;  %8103 = vmatpush1.bf16.msra.mxu1 %v11345_v4  ;;  %v11426_v3 = vld [vmem:[%s15282_s1 + $0x1c60] ss:$16 sps:$4 sm:$0xff]   ;;  %v11429_v4 = vld [vmem:[%s15282_s1 + $0x1c68] ss:$16 sps:$4 sm:$0xff]  }
 0x358   :  { %7256 = vmatprep.subr.bf16.mxu0 %v11350_v1  ;;  %8104 = vmatprep.subr.bf16.mxu1 %v11353_v2  ;;  %v11434_v1 = vld [vmem:[%s15282_s1 + $0x1c84] ss:$16 sps:$4 sm:$0xff]   ;;  %v11437_v2 = vld [vmem:[%s15282_s1 + $0x1c8c] ss:$16 sps:$4 sm:$0xff]  }
 0x35b   :  { %7257 = vmatpush1.bf16.msra.mxu0 %v11348_v5  ;;  %8105 = vmatpush1.bf16.msra.mxu1 %v11351_v6  ;;  %v11432_v5 = vld [vmem:[%s15282_s1 + $0x1c80] ss:$16 sps:$4 sm:$0xff]   ;;  %v11435_v6 = vld [vmem:[%s15282_s1 + $0x1c88] ss:$16 sps:$4 sm:$0xff]  }
 0x35c   :  { %7258 = vmatprep.subr.bf16.mxu0 %v11356_v7  ;;  %8106 = vmatprep.subr.bf16.mxu1 %v11359_v8  ;;  %v11440_v7 = vld [vmem:[%s15282_s1 + $0x1ca4] ss:$16 sps:$4 sm:$0xff]   ;;  %v11443_v8 = vld [vmem:[%s15282_s1 + $0x1cac] ss:$16 sps:$4 sm:$0xff]  }
 0x35f   :  { %7259 = vmatpush1.bf16.msra.mxu0 %v11354_v11  ;;  %8107 = vmatpush1.bf16.msra.mxu1 %v11357_v12  ;;  %v11438_v11 = vld [vmem:[%s15282_s1 + $0x1ca0] ss:$16 sps:$4 sm:$0xff]   ;;  %v11441_v12 = vld [vmem:[%s15282_s1 + $0x1ca8] ss:$16 sps:$4 sm:$0xff]  }
 0x360   :  { %7260 = vmatprep.subr.bf16.mxu0 %v11362_v9  ;;  %8108 = vmatprep.subr.bf16.mxu1 %v11365_v10  ;;  %v11446_v9 = vld [vmem:[%s15282_s1 + $0x1cc4] ss:$16 sps:$4 sm:$0xff]   ;;  %v11449_v10 = vld [vmem:[%s15282_s1 + $0x1ccc] ss:$16 sps:$4 sm:$0xff]  }
 0x363   :  { %7261 = vmatpush1.bf16.msra.mxu0 %v11360_v13  ;;  %8109 = vmatpush1.bf16.msra.mxu1 %v11363_v14  ;;  %v11444_v13 = vld [vmem:[%s15282_s1 + $0x1cc0] ss:$16 sps:$4 sm:$0xff]   ;;  %v11447_v14 = vld [vmem:[%s15282_s1 + $0x1cc8] ss:$16 sps:$4 sm:$0xff]  }
 0x364   :  { %7262 = vmatprep.subr.bf16.mxu0 %v11368_v15  ;;  %8110 = vmatprep.subr.bf16.mxu1 %v11371_v16  ;;  %v11452_v15 = vld [vmem:[%s15282_s1 + $0x1ce4] ss:$16 sps:$4 sm:$0xff]   ;;  %v11455_v16 = vld [vmem:[%s15282_s1 + $0x1cec] ss:$16 sps:$4 sm:$0xff]  }
 0x367   :  { %7263 = vmatpush1.bf16.msra.mxu0 %v11366_v19  ;;  %8111 = vmatpush1.bf16.msra.mxu1 %v11369_v17  ;;  %v11450_v19 = vld [vmem:[%s15282_s1 + $0x1ce0] ss:$16 sps:$4 sm:$0xff]   ;;  %v11453_v17 = vld [vmem:[%s15282_s1 + $0x1ce8] ss:$16 sps:$4 sm:$0xff]  }
 0x368   :  { %7264 = vmatprep.subr.bf16.mxu0 %v11374_v18  ;;  %8112 = vmatprep.subr.bf16.mxu1 %v11377_v20  ;;  %v11458_v18 = vld [vmem:[%s15282_s1 + $0x1d04] ss:$16 sps:$4 sm:$0xff]   ;;  %v11461_v20 = vld [vmem:[%s15282_s1 + $0x1d0c] ss:$16 sps:$4 sm:$0xff]  }
 0x36b   :  { %7265 = vmatpush1.bf16.msra.mxu0 %v11372_v21  ;;  %8113 = vmatpush1.bf16.msra.mxu1 %v11375_v22  ;;  %v11456_v21 = vld [vmem:[%s15282_s1 + $0x1d00] ss:$16 sps:$4 sm:$0xff]   ;;  %v11459_v22 = vld [vmem:[%s15282_s1 + $0x1d08] ss:$16 sps:$4 sm:$0xff]  }
 0x36c   :  { %7266 = vmatprep.subr.bf16.mxu0 %v11380_v23  ;;  %8114 = vmatprep.subr.bf16.mxu1 %v11383_v24  ;;  %v11464_v23 = vld [vmem:[%s15282_s1 + $0x1d24] ss:$16 sps:$4 sm:$0xff]   ;;  %v11467_v24 = vld [vmem:[%s15282_s1 + $0x1d2c] ss:$16 sps:$4 sm:$0xff]  }
 0x36f   :  { %7267 = vmatpush1.bf16.msra.mxu0 %v11378_v26  ;;  %8115 = vmatpush1.bf16.msra.mxu1 %v11381_v25  ;;  %v11462_v26 = vld [vmem:[%s15282_s1 + $0x1d20] ss:$16 sps:$4 sm:$0xff]   ;;  %v11465_v25 = vld [vmem:[%s15282_s1 + $0x1d28] ss:$16 sps:$4 sm:$0xff]  }
 0x370   :  { %7268 = vmatprep.subr.bf16.mxu0 %v11386_v27  ;;  %8116 = vmatprep.subr.bf16.mxu1 %v11389_v28  ;;  %v11470_v27 = vld [vmem:[%s15282_s1 + $0x1d44] ss:$16 sps:$4 sm:$0xff]   ;;  %v11473_v28 = vld [vmem:[%s15282_s1 + $0x1d4c] ss:$16 sps:$4 sm:$0xff]  }
 0x373   :  { %7269 = vmatpush1.bf16.msra.mxu0 %v11384_v29  ;;  %8117 = vmatpush1.bf16.msra.mxu1 %v11387_v30  ;;  %v11468_v29 = vld [vmem:[%s15282_s1 + $0x1d40] ss:$16 sps:$4 sm:$0xff]   ;;  %v11471_v30 = vld [vmem:[%s15282_s1 + $0x1d48] ss:$16 sps:$4 sm:$0xff]  }
 0x374   :  { %7270 = vmatprep.subr.bf16.mxu0 %v11392_v31  ;;  %8118 = vmatprep.subr.bf16.mxu1 %v11395_v32  ;;  %v11476_v31 = vld [vmem:[%s15282_s1 + $0x1d64] ss:$16 sps:$4 sm:$0xff]   ;;  %v11479_v32 = vld [vmem:[%s15282_s1 + $0x1d6c] ss:$16 sps:$4 sm:$0xff]  }
 0x377   :  { %7271 = vmatpush1.bf16.msra.mxu0 %v11390_v34  ;;  %8119 = vmatpush1.bf16.msra.mxu1 %v11393_v36  ;;  %v11474_v34 = vld [vmem:[%s15282_s1 + $0x1d60] ss:$16 sps:$4 sm:$0xff]   ;;  %v11477_v36 = vld [vmem:[%s15282_s1 + $0x1d68] ss:$16 sps:$4 sm:$0xff]  }
 0x378   :  { %7272 = vmatprep.subr.bf16.mxu0 %v11398_v33  ;;  %8120 = vmatprep.subr.bf16.mxu1 %v11401_v35  ;;  %v11482_v33 = vld [vmem:[%s15282_s1 + $0x1d84] ss:$16 sps:$4 sm:$0xff]   ;;  %v11485_v35 = vld [vmem:[%s15282_s1 + $0x1d8c] ss:$16 sps:$4 sm:$0xff]  }
 0x37b   :  { %7273 = vmatpush1.bf16.msra.mxu0 %v11396_v37  ;;  %8121 = vmatpush1.bf16.msra.mxu1 %v11399_v38  ;;  %v11480_v37 = vld [vmem:[%s15282_s1 + $0x1d80] ss:$16 sps:$4 sm:$0xff]   ;;  %v11483_v38 = vld [vmem:[%s15282_s1 + $0x1d88] ss:$16 sps:$4 sm:$0xff]  }
 0x37c   :  { %7274 = vmatprep.subr.bf16.mxu0 %v11404_v39  ;;  %8122 = vmatprep.subr.bf16.mxu1 %v11407_v40  ;;  %v11488_v39 = vld [vmem:[%s15282_s1 + $0x1da4] ss:$16 sps:$4 sm:$0xff]   ;;  %v11491_v40 = vld [vmem:[%s15282_s1 + $0x1dac] ss:$16 sps:$4 sm:$0xff]  }
 0x37f   :  { %7275 = vmatpush1.bf16.msra.mxu0 %v11402_v42  ;;  %8123 = vmatpush1.bf16.msra.mxu1 %v11405_v44  ;;  %v11486_v42 = vld [vmem:[%s15282_s1 + $0x1da0] ss:$16 sps:$4 sm:$0xff]   ;;  %v11489_v44 = vld [vmem:[%s15282_s1 + $0x1da8] ss:$16 sps:$4 sm:$0xff]  }
 0x380   :  { %7297 = vmatprep.subr.bf16.mxu0 %v11410_v41  ;;  %8145 = vmatprep.subr.bf16.mxu1 %v11413_v43  ;;  %v11494_v41 = vld [vmem:[%s15282_s1 + $0x1dc4] ss:$16 sps:$4 sm:$0xff]   ;;  %v11497_v43 = vld [vmem:[%s15282_s1 + $0x1dcc] ss:$16 sps:$4 sm:$0xff]  }
 0x382   :  { %7277 = vmatmul.mubr.bf16.vlgmr.msra.gmra.mrb[0].mxu0 %v8742_v45  ;;  %8125 = vmatmul.mubr.bf16.vlgmr.msra.gmra.mrb[0].mxu1 %v8742_v45  ;;  %v11492_v45 = vld [vmem:[%s15282_s1 + $0x1dc0] ss:$16 sps:$4 sm:$0xff]  }
 0x383   :  { %7298 = vmatpush1.bf16.msra.mxu0 %v11408_v48  ;;  %8146 = vmatpush1.bf16.msra.mxu1 %v11411_v51  ;;  %v11503_v48 = vld [vmem:[%s15282_s1 + $0x1dec] ss:$16 sps:$4 sm:$0xff]   ;;  %v11498_v51 = vld [vmem:[%s15282_s1 + $0x1de0] ss:$16 sps:$4 sm:$0xff]  }
 0x384   :  { %7299 = vmatprep.subr.bf16.mxu0 %v11416_v52  ;;  %8147 = vmatprep.subr.bf16.mxu1 %v11419_v49  ;;  %v11501_v52 = vld [vmem:[%s15282_s1 + $0x1de8] ss:$16 sps:$4 sm:$0xff]   ;;  %v11506_v49 = vld [vmem:[%s15282_s1 + $0x1e04] ss:$16 sps:$4 sm:$0xff]  }
 0x385   :  { %7286 = vmatprep.mubr.bf16.mxu0 %v8775_v50  ;;  %8134 = vmatprep.mubr.bf16.mxu1 %v8775_v50  ;;  %v11509_v50 = vld [vmem:[%s15282_s1 + $0x1e0c] ss:$16 sps:$4 sm:$0xff]  }
 0x387   :  { %7300 = vmatpush1.bf16.msra.mxu0 %v11414_v53  ;;  %8148 = vmatpush1.bf16.msra.mxu1 %v11417_v54  ;;  %v8744_v53 = vcombine.low %v14646_v60, %v14651_v57  ;;  %v73_v54 = vld [vmem:[%s15283_s0 + $0x170] sm:$0xff]  ;;  %v11515_v57 = vld [vmem:[%s15282_s1 + $0x1e2c] ss:$16 sps:$4 sm:$0xff]  }
 0x388   :  { %7301 = vmatprep.subr.bf16.mxu0 %v11422_v55  ;;  %8149 = vmatprep.subr.bf16.mxu1 %v11425_v56  ;;  %v89_v55 = vld [vmem:[%s15283_s0 + $0x1f0] sm:$0xff] }
 0x389   :  { %v11504_v56 = vld [vmem:[%s15282_s1 + $0x1e00] ss:$16 sps:$4 sm:$0xff]   ;;  %v11512_v60 = vld [vmem:[%s15282_s1 + $0x1e24] ss:$16 sps:$4 sm:$0xff]  }
 0x38a   :  { %7287 = vmatmul.mubr.bf16.gmra.mrb[4].mxu0 %v8774_v59  ;;  %8135 = vmatmul.mubr.bf16.gmra.mrb[4].mxu1 %v8774_v59  ;;  %v11507_v59 = vld [vmem:[%s15282_s1 + $0x1e08] ss:$16 sps:$4 sm:$0xff]  }
 0x38b   :  { %7302 = vmatpush1.bf16.msra.mxu0 %v11420_v58  ;;  %8150 = vmatpush1.bf16.msra.mxu1 %v11423_v61  ;;  %v8777_v58 = vcombine.high %v73_v54, %v89_v55  ;;  %v11510_v61 = vld [vmem:[%s15282_s1 + $0x1e20] ss:$16 sps:$4 sm:$0xff]  }
 0x38c   :  { %7303 = vmatprep.subr.bf16.mxu0 %v11428_v62  ;;  %8151 = vmatprep.subr.bf16.mxu1 %v11431_v63  ;;  %v11513_v62 = vld [vmem:[%s15282_s1 + $0x1e28] ss:$16 sps:$4 sm:$0xff]   ;;  %v11518_v63 = vld [vmem:[%s15282_s1 + $0x1e44] ss:$16 sps:$4 sm:$0xff]  }
 0x38d   :  { %7329 = vmatprep.mubr.bf16.mxu0 %v8745_v0  ;;  %8177 = vmatprep.mubr.bf16.mxu1 %v8745_v0  ;;  %v11521_v0 = vld [vmem:[%s15282_s1 + $0x1e4c] ss:$16 sps:$4 sm:$0xff]  }
 0x38f   :  { %7304 = vmatpush1.bf16.msra.mxu0 %v11426_v3  ;;  %8152 = vmatpush1.bf16.msra.mxu1 %v11429_v4  ;;  %v8776_v3 = vcombine.low %v73_v54, %v89_v55  ;;  %v14858_v4 = vld [vmem:[%s15283_s0 + $0x78] sm:$0xff]  ;;  %v11596_v55 = vld [vmem:[%s15282_s1 + $0x1fe4] ss:$16 sps:$4 sm:$0xff]  }
 0x390   :  { %7305 = vmatprep.subr.bf16.mxu0 %v11434_v1  ;;  %8153 = vmatprep.subr.bf16.mxu1 %v11437_v2  ;;  %v14863_v1 = vld [vmem:[%s15283_s0 + $0xf8] sm:$0xff]  ;;  %v11516_v2 = vld [vmem:[%s15282_s1 + $0x1e40] ss:$16 sps:$4 sm:$0xff]  }
 0x391   :  { %v11591_v54 = vld [vmem:[%s15282_s1 + $0x1fc8] ss:$16 sps:$4 sm:$0xff]  }
 0x393   :  { %7306 = vmatpush1.bf16.msra.mxu0 %v11432_v5  ;;  %8154 = vmatpush1.bf16.msra.mxu1 %v11435_v6  ;;  %v11519_v5 = vld [vmem:[%s15282_s1 + $0x1e48] ss:$16 sps:$4 sm:$0xff]   ;;  %v11524_v6 = vld [vmem:[%s15282_s1 + $0x1e64] ss:$16 sps:$4 sm:$0xff]  }
 0x394   :  { %7307 = vmatprep.subr.bf16.mxu0 %v11440_v7  ;;  %8155 = vmatprep.subr.bf16.mxu1 %v11443_v8  ;;  %v11527_v7 = vld [vmem:[%s15282_s1 + $0x1e6c] ss:$16 sps:$4 sm:$0xff]   ;;  %v8747_v8 = vcombine.high %v14858_v4, %v14863_v1 }
 0x397   :  { %7308 = vmatpush1.bf16.msra.mxu0 %v11438_v11  ;;  %8156 = vmatpush1.bf16.msra.mxu1 %v11441_v12  ;;  %v11522_v11 = vld [vmem:[%s15282_s1 + $0x1e60] ss:$16 sps:$4 sm:$0xff]   ;;  %v11525_v12 = vld [vmem:[%s15282_s1 + $0x1e68] ss:$16 sps:$4 sm:$0xff]  }
 0x398   :  { %7309 = vmatprep.subr.bf16.mxu0 %v11446_v9  ;;  %8157 = vmatprep.subr.bf16.mxu1 %v11449_v10  ;;  %v11530_v9 = vld [vmem:[%s15282_s1 + $0x1e84] ss:$16 sps:$4 sm:$0xff]   ;;  %v11533_v10 = vld [vmem:[%s15282_s1 + $0x1e8c] ss:$16 sps:$4 sm:$0xff]  }
 0x39b   :  { %7310 = vmatpush1.bf16.msra.mxu0 %v11444_v13  ;;  %8158 = vmatpush1.bf16.msra.mxu1 %v11447_v14  ;;  %v11528_v13 = vld [vmem:[%s15282_s1 + $0x1e80] ss:$16 sps:$4 sm:$0xff]   ;;  %v11531_v14 = vld [vmem:[%s15282_s1 + $0x1e88] ss:$16 sps:$4 sm:$0xff]  }
 0x39c   :  { %7311 = vmatprep.subr.bf16.mxu0 %v11452_v15  ;;  %8159 = vmatprep.subr.bf16.mxu1 %v11455_v16  ;;  %v11536_v15 = vld [vmem:[%s15282_s1 + $0x1ea4] ss:$16 sps:$4 sm:$0xff]   ;;  %v11539_v16 = vld [vmem:[%s15282_s1 + $0x1eac] ss:$16 sps:$4 sm:$0xff]  }
 0x39f   :  { %7312 = vmatpush1.bf16.msra.mxu0 %v11450_v19  ;;  %8160 = vmatpush1.bf16.msra.mxu1 %v11453_v17  ;;  %v11534_v19 = vld [vmem:[%s15282_s1 + $0x1ea0] ss:$16 sps:$4 sm:$0xff]   ;;  %v11537_v17 = vld [vmem:[%s15282_s1 + $0x1ea8] ss:$16 sps:$4 sm:$0xff]  }
 0x3a0   :  { %7313 = vmatprep.subr.bf16.mxu0 %v11458_v18  ;;  %8161 = vmatprep.subr.bf16.mxu1 %v11461_v20  ;;  %v11542_v18 = vld [vmem:[%s15282_s1 + $0x1ec4] ss:$16 sps:$4 sm:$0xff]   ;;  %v11545_v20 = vld [vmem:[%s15282_s1 + $0x1ecc] ss:$16 sps:$4 sm:$0xff]  }
 0x3a3   :  { %7314 = vmatpush1.bf16.msra.mxu0 %v11456_v21  ;;  %8162 = vmatpush1.bf16.msra.mxu1 %v11459_v22  ;;  %v11540_v21 = vld [vmem:[%s15282_s1 + $0x1ec0] ss:$16 sps:$4 sm:$0xff]   ;;  %v11543_v22 = vld [vmem:[%s15282_s1 + $0x1ec8] ss:$16 sps:$4 sm:$0xff]  }
 0x3a4   :  { %7315 = vmatprep.subr.bf16.mxu0 %v11464_v23  ;;  %8163 = vmatprep.subr.bf16.mxu1 %v11467_v24  ;;  %v11548_v23 = vld [vmem:[%s15282_s1 + $0x1ee4] ss:$16 sps:$4 sm:$0xff]   ;;  %v11551_v24 = vld [vmem:[%s15282_s1 + $0x1eec] ss:$16 sps:$4 sm:$0xff]  }
 0x3a7   :  { %7316 = vmatpush1.bf16.msra.mxu0 %v11462_v26  ;;  %8164 = vmatpush1.bf16.msra.mxu1 %v11465_v25  ;;  %v11546_v26 = vld [vmem:[%s15282_s1 + $0x1ee0] ss:$16 sps:$4 sm:$0xff]   ;;  %v11549_v25 = vld [vmem:[%s15282_s1 + $0x1ee8] ss:$16 sps:$4 sm:$0xff]  }
 0x3a8   :  { %7317 = vmatprep.subr.bf16.mxu0 %v11470_v27  ;;  %8165 = vmatprep.subr.bf16.mxu1 %v11473_v28  ;;  %v11554_v27 = vld [vmem:[%s15282_s1 + $0x1f04] ss:$16 sps:$4 sm:$0xff]   ;;  %v11557_v28 = vld [vmem:[%s15282_s1 + $0x1f0c] ss:$16 sps:$4 sm:$0xff]  }
 0x3ab   :  { %7318 = vmatpush1.bf16.msra.mxu0 %v11468_v29  ;;  %8166 = vmatpush1.bf16.msra.mxu1 %v11471_v30  ;;  %v11552_v29 = vld [vmem:[%s15282_s1 + $0x1f00] ss:$16 sps:$4 sm:$0xff]   ;;  %v11555_v30 = vld [vmem:[%s15282_s1 + $0x1f08] ss:$16 sps:$4 sm:$0xff]  }
 0x3ac   :  { %7319 = vmatprep.subr.bf16.mxu0 %v11476_v31  ;;  %8167 = vmatprep.subr.bf16.mxu1 %v11479_v32  ;;  %v11560_v31 = vld [vmem:[%s15282_s1 + $0x1f24] ss:$16 sps:$4 sm:$0xff]   ;;  %v11563_v32 = vld [vmem:[%s15282_s1 + $0x1f2c] ss:$16 sps:$4 sm:$0xff]  }
 0x3af   :  { %7320 = vmatpush1.bf16.msra.mxu0 %v11474_v34  ;;  %8168 = vmatpush1.bf16.msra.mxu1 %v11477_v36  ;;  %v11558_v34 = vld [vmem:[%s15282_s1 + $0x1f20] ss:$16 sps:$4 sm:$0xff]   ;;  %v11561_v36 = vld [vmem:[%s15282_s1 + $0x1f28] ss:$16 sps:$4 sm:$0xff]  }
 0x3b0   :  { %7321 = vmatprep.subr.bf16.mxu0 %v11482_v33  ;;  %8169 = vmatprep.subr.bf16.mxu1 %v11485_v35  ;;  %v11566_v33 = vld [vmem:[%s15282_s1 + $0x1f44] ss:$16 sps:$4 sm:$0xff]   ;;  %v11569_v35 = vld [vmem:[%s15282_s1 + $0x1f4c] ss:$16 sps:$4 sm:$0xff]  }
 0x3b3   :  { %7322 = vmatpush1.bf16.msra.mxu0 %v11480_v37  ;;  %8170 = vmatpush1.bf16.msra.mxu1 %v11483_v38  ;;  %v11564_v37 = vld [vmem:[%s15282_s1 + $0x1f40] ss:$16 sps:$4 sm:$0xff]   ;;  %v11567_v38 = vld [vmem:[%s15282_s1 + $0x1f48] ss:$16 sps:$4 sm:$0xff]  }
 0x3b4   :  { %7323 = vmatprep.subr.bf16.mxu0 %v11488_v39  ;;  %8171 = vmatprep.subr.bf16.mxu1 %v11491_v40  ;;  %v11572_v39 = vld [vmem:[%s15282_s1 + $0x1f64] ss:$16 sps:$4 sm:$0xff]   ;;  %v11575_v40 = vld [vmem:[%s15282_s1 + $0x1f6c] ss:$16 sps:$4 sm:$0xff]  }
 0x3b7   :  { %7324 = vmatpush1.bf16.msra.mxu0 %v11486_v42  ;;  %8172 = vmatpush1.bf16.msra.mxu1 %v11489_v44  ;;  %v11570_v42 = vld [vmem:[%s15282_s1 + $0x1f60] ss:$16 sps:$4 sm:$0xff]   ;;  %v11573_v44 = vld [vmem:[%s15282_s1 + $0x1f68] ss:$16 sps:$4 sm:$0xff]  }
 0x3b8   :  { %7325 = vmatprep.subr.bf16.mxu0 %v11494_v41  ;;  %8173 = vmatprep.subr.bf16.mxu1 %v11497_v43  ;;  %v11578_v41 = vld [vmem:[%s15282_s1 + $0x1f84] ss:$16 sps:$4 sm:$0xff]   ;;  %v11581_v43 = vld [vmem:[%s15282_s1 + $0x1f8c] ss:$16 sps:$4 sm:$0xff]  }
 0x3bb   :  { %7326 = vmatpush1.bf16.msra.mxu0 %v11492_v45  ;;  %8174 = vmatpush1.bf16.msra.mxu1 %v11495_v46  ;;  %v11576_v45 = vld [vmem:[%s15282_s1 + $0x1f80] ss:$16 sps:$4 sm:$0xff]   ;;  %v11579_v46 = vld [vmem:[%s15282_s1 + $0x1f88] ss:$16 sps:$4 sm:$0xff]  }
 0x3bc   :  { %7327 = vmatprep.subr.bf16.mxu0 %v11500_v47  ;;  %8175 = vmatprep.subr.bf16.mxu1 %v11503_v48  ;;  %v11584_v47 = vld [vmem:[%s15282_s1 + $0x1fa4] ss:$16 sps:$4 sm:$0xff]   ;;  %v11587_v48 = vld [vmem:[%s15282_s1 + $0x1fac] ss:$16 sps:$4 sm:$0xff]  }
 0x3bf   :  { %7328 = vmatpush1.bf16.msra.mxu0 %v11498_v51  ;;  %8176 = vmatpush1.bf16.msra.mxu1 %v11501_v52  ;;  %v11582_v51 = vld [vmem:[%s15282_s1 + $0x1fa0] ss:$16 sps:$4 sm:$0xff]   ;;  %v11585_v52 = vld [vmem:[%s15282_s1 + $0x1fa8] ss:$16 sps:$4 sm:$0xff]  }
 0x3c0   :  { %7350 = vmatprep.subr.bf16.mxu0 %v11506_v49  ;;  %8198 = vmatprep.subr.bf16.mxu1 %v11509_v50  ;;  %v11590_v49 = vld [vmem:[%s15282_s1 + $0x1fc4] ss:$16 sps:$4 sm:$0xff]   ;;  %v11593_v50 = vld [vmem:[%s15282_s1 + $0x1fcc] ss:$16 sps:$4 sm:$0xff]  }
 0x3c2   :  { %7330 = vmatmul.mubr.bf16.vlgmr.msra.gmra.mrb[0].mxu0 %v8744_v53  ;;  %8178 = vmatmul.mubr.bf16.vlgmr.msra.gmra.mrb[0].mxu1 %v8744_v53  ;;  %v11588_v53 = vld [vmem:[%s15282_s1 + $0x1fc0] ss:$16 sps:$4 sm:$0xff]  }
 0x3c3   :  { %7351 = vmatpush1.bf16.msra.mxu0 %v11504_v56  ;;  %8199 = vmatpush1.bf16.msra.mxu1 %v11507_v59  ;;  %v11599_v56 = vld [vmem:[%s15282_s1 + $0x1fec] ss:$16 sps:$4 sm:$0xff]   ;;  %v11594_v59 = vld [vmem:[%s15282_s1 + $0x1fe0] ss:$16 sps:$4 sm:$0xff]  }
 0x3c4   :  { %7352 = vmatprep.subr.bf16.mxu0 %v11512_v60  ;;  %8200 = vmatprep.subr.bf16.mxu1 %v11515_v57  ;;  %v11597_v60 = vld [vmem:[%s15282_s1 + $0x1fe8] ss:$16 sps:$4 sm:$0xff]  }
 0x3c5   :  { %7339 = vmatprep.mubr.bf16.mxu0 %v8777_v58  ;;  %8187 = vmatprep.mubr.bf16.mxu1 %v8777_v58  ;;  %v74_v57 = vld [vmem:[%s15283_s0 + $0x178] sm:$0xff] }
 0x3c6   :  { %v90_v58 = vld [vmem:[%s15283_s0 + $0x1f8] sm:$0xff] }
 0x3c7   :  { %7353 = vmatpush1.bf16.msra.mxu0 %v11510_v61  ;;  %8201 = vmatpush1.bf16.msra.mxu1 %v11513_v62  ;;  %v8746_v61 = vcombine.low %v14858_v4, %v14863_v1  ;;  %v8779_v62 = vcombine.high %v74_v57, %v90_v58 }
 0x3c8   :  { %7354 = vmatprep.subr.bf16.mxu0 %v11518_v63  ;;  %8202 = vmatprep.subr.bf16.mxu1 %v11521_v0  ;;  %v8778_v63 = vcombine.low %v74_v57, %v90_v58  ;;  %v11612_v0 = vmov 0.0  }
 0x3ca   :  { %7340 = vmatmul.mubr.bf16.gmra.mrb[4].mxu0 %v8776_v3  ;;  %8188 = vmatmul.mubr.bf16.gmra.mrb[4].mxu1 %v8776_v3 }
 0x3cb   :  { %7355 = vmatpush1.bf16.msra.mxu0 %v11516_v2  ;;  %8203 = vmatpush1.bf16.msra.mxu1 %v11519_v5 }
 0x3cc   :  { %7356 = vmatprep.subr.bf16.mxu0 %v11524_v6  ;;  %8204 = vmatprep.subr.bf16.mxu1 %v11527_v7 }
 0x3cd   :  { %7382 = vmatprep.mubr.bf16.mxu0 %v8747_v8  ;;  %8230 = vmatprep.mubr.bf16.mxu1 %v8747_v8 }
 0x3cf   :  { %7357 = vmatpush1.bf16.msra.mxu0 %v11522_v11  ;;  %8205 = vmatpush1.bf16.msra.mxu1 %v11525_v12 }
 0x3d0   :  { %7358 = vmatprep.subr.bf16.mxu0 %v11530_v9  ;;  %8206 = vmatprep.subr.bf16.mxu1 %v11533_v10 }
 0x3d3   :  { %7359 = vmatpush1.bf16.msra.mxu0 %v11528_v13  ;;  %8207 = vmatpush1.bf16.msra.mxu1 %v11531_v14 }
 0x3d4   :  { %7360 = vmatprep.subr.bf16.mxu0 %v11536_v15  ;;  %8208 = vmatprep.subr.bf16.mxu1 %v11539_v16 }
 0x3d7   :  { %7361 = vmatpush1.bf16.msra.mxu0 %v11534_v19  ;;  %8209 = vmatpush1.bf16.msra.mxu1 %v11537_v17 }
 0x3d8   :  { %7362 = vmatprep.subr.bf16.mxu0 %v11542_v18  ;;  %8210 = vmatprep.subr.bf16.mxu1 %v11545_v20 }
 0x3db   :  { %7363 = vmatpush1.bf16.msra.mxu0 %v11540_v21  ;;  %8211 = vmatpush1.bf16.msra.mxu1 %v11543_v22 }
 0x3dc   :  { %7364 = vmatprep.subr.bf16.mxu0 %v11548_v23  ;;  %8212 = vmatprep.subr.bf16.mxu1 %v11551_v24 }
 0x3df   :  { %7365 = vmatpush1.bf16.msra.mxu0 %v11546_v26  ;;  %8213 = vmatpush1.bf16.msra.mxu1 %v11549_v25 }
 0x3e0   :  { %7366 = vmatprep.subr.bf16.mxu0 %v11554_v27  ;;  %8214 = vmatprep.subr.bf16.mxu1 %v11557_v28 }
 0x3e3   :  { %7367 = vmatpush1.bf16.msra.mxu0 %v11552_v29  ;;  %8215 = vmatpush1.bf16.msra.mxu1 %v11555_v30 }
 0x3e4   :  { %7368 = vmatprep.subr.bf16.mxu0 %v11560_v31  ;;  %8216 = vmatprep.subr.bf16.mxu1 %v11563_v32 }
 0x3e7   :  { %7369 = vmatpush1.bf16.msra.mxu0 %v11558_v34  ;;  %8217 = vmatpush1.bf16.msra.mxu1 %v11561_v36 }
 0x3e8   :  { %7370 = vmatprep.subr.bf16.mxu0 %v11566_v33  ;;  %8218 = vmatprep.subr.bf16.mxu1 %v11569_v35 }
 0x3eb   :  { %7371 = vmatpush1.bf16.msra.mxu0 %v11564_v37  ;;  %8219 = vmatpush1.bf16.msra.mxu1 %v11567_v38 }
 0x3ec   :  { %7372 = vmatprep.subr.bf16.mxu0 %v11572_v39  ;;  %8220 = vmatprep.subr.bf16.mxu1 %v11575_v40 }
 0x3ef   :  { %7373 = vmatpush1.bf16.msra.mxu0 %v11570_v42  ;;  %8221 = vmatpush1.bf16.msra.mxu1 %v11573_v44 }
 0x3f0   :  { %7374 = vmatprep.subr.bf16.mxu0 %v11578_v41  ;;  %8222 = vmatprep.subr.bf16.mxu1 %v11581_v43 }
 0x3f3   :  { %7375 = vmatpush1.bf16.msra.mxu0 %v11576_v45  ;;  %8223 = vmatpush1.bf16.msra.mxu1 %v11579_v46 }
 0x3f4   :  { %7376 = vmatprep.subr.bf16.mxu0 %v11584_v47  ;;  %8224 = vmatprep.subr.bf16.mxu1 %v11587_v48 }
 0x3f7   :  { %7377 = vmatpush1.bf16.msra.mxu0 %v11582_v51  ;;  %8225 = vmatpush1.bf16.msra.mxu1 %v11585_v52 }
 0x3f8   :  { %7378 = vmatprep.subr.bf16.mxu0 %v11590_v49  ;;  %8226 = vmatprep.subr.bf16.mxu1 %v11593_v50 }
 0x3fb   :  { %7379 = vmatpush1.bf16.msra.mxu0 %v11588_v53  ;;  %8227 = vmatpush1.bf16.msra.mxu1 %v11591_v54 }
 0x3fc   :  { %7380 = vmatprep.subr.bf16.mxu0 %v11596_v55  ;;  %8228 = vmatprep.subr.bf16.mxu1 %v11599_v56 }
 0x3ff   :  { %7381 = vmatpush1.bf16.msra.mxu0 %v11594_v59  ;;  %8229 = vmatpush1.bf16.msra.mxu1 %v11597_v60 }
 0x402   :  { %7383 = vmatmul.mubr.bf16.vlgmr.msra.gmra.mrb[0].mxu0 %v8746_v61  ;;  %8231 = vmatmul.mubr.bf16.vlgmr.msra.gmra.mrb[0].mxu1 %v8746_v61 }
 0x403   :  { %7392 = vmatprep.mubr.bf16.mxu0 %v8779_v62  ;;  %8240 = vmatprep.mubr.bf16.mxu1 %v8779_v62 }
 0x40a   :  { %7393 = vmatmul.mubr.bf16.gmra.mrb[4].mxu0 %v8778_v63  ;;  %8241 = vmatmul.mubr.bf16.gmra.mrb[4].mxu1 %v8778_v63 }
 0x40b   :  { %8613 = vmatprep.mubr.f32.mxu0 %v11612_v0  ;;  %8684 = vmatprep.mubr.f32.mxu1 %v11612_v0 }
 0x4d5   :  { %v7384_v3 = vpop.f32.mrb[0].mxu0  ;;  %v8232_v2 = vpop.f32.mrb[0].mxu1 }
 0x4d6   :  { %v15037_v5 = vpop.f32.mrb[1].mxu0  ;;  %v15039_v6 = vpop.f32.mrb[1].mxu1 }
 0x4d7   :  { %v7388_v4 = vpop.f32.mrb[2].mxu0  ;;  %v8236_v1 = vpop.f32.mrb[2].mxu1 }
 0x4d8   :  { %v8251_v7 = vadd.f32 %v7388_v4, %v7384_v3  ;;  %v8269_v8 = vadd.f32 %v8236_v1, %v8232_v2  ;;  %v15041_v11 = vpop.f32.mrb[3].mxu0  ;;  %v15043_v12 = vpop.f32.mrb[3].mxu1 }
 0x4d9   :  { %v8260_v9 = vadd.f32 %v15041_v11, %v15037_v5  ;;  %v8278_v10 = vadd.f32 %v15043_v12, %v15039_v6 }
 0x4dd   :  { %v7394_v13 = vpop.f32.mrb[4].mxu0  ;;  %v8242_v14 = vpop.f32.mrb[4].mxu1 }
 0x4de   :  { %v8252_v15 = vadd.f32 %v8251_v7, %v7394_v13  ;;  %v8270_v16 = vadd.f32 %v8269_v8, %v8242_v14  ;;  %v7396_v19 = vpop.f32.mrb[5].mxu0  ;;  %v15049_v17 = vpop.f32.mrb[5].mxu1 }
 0x4df   :  { %v8261_v18 = vadd.f32 %v8260_v9, %v7396_v19  ;;  %v8279_v20 = vadd.f32 %v8278_v10, %v15049_v17  ;;  %v7398_v21 = vpop.f32.mrb[6].mxu0  ;;  %v8246_v22 = vpop.f32.mrb[6].mxu1 }
 0x4e0   :  { %v8253_v23 = vadd.f32 %v8252_v15, %v7398_v21  ;;  %v8271_v24 = vadd.f32 %v8270_v16, %v8246_v22  ;;  %v7400_v26 = vpop.f32.mrb[7].mxu0  ;;  %v8248_v25 = vpop.f32.mrb[7].mxu1 }
 0x4e1   :  { %v8262_v27 = vadd.f32 %v8261_v18, %v7400_v26  ;;  %v8280_v28 = vadd.f32 %v8279_v20, %v8248_v25 }
 0x4e2   :  { %v8254_v29 = vrot.slane %v8253_v23, 4  ;;  %v8272_v30 = vrot.slane %v8271_v24, 4 }
 0x4e3   :  { %v8263_v31 = vrot.slane %v8262_v27, 4  ;;  %v8281_v32 = vrot.slane %v8280_v28, 4 }
 0x4e4   :  { %v8255_v34 = vadd.f32 %v8254_v29, %v8253_v23  ;;  %v8273_v36 = vadd.f32 %v8272_v30, %v8271_v24 }
 0x4e5   :  { %v8264_v33 = vadd.f32 %v8263_v31, %v8262_v27  ;;  %v8282_v35 = vadd.f32 %v8281_v32, %v8280_v28 }
 0x4e6   :  { %v8256_v37 = vrot.slane %v8255_v34, 2  ;;  %v8274_v38 = vrot.slane %v8273_v36, 2 }
 0x4e7   :  { %v8265_v39 = vrot.slane %v8264_v33, 2  ;;  %v8283_v40 = vrot.slane %v8282_v35, 2 }
 0x4e8   :  { %v8257_v42 = vadd.f32 %v8256_v37, %v8255_v34  ;;  %v8275_v44 = vadd.f32 %v8274_v38, %v8273_v36 }
 0x4e9   :  { %v8266_v41 = vadd.f32 %v8265_v39, %v8264_v33  ;;  %v8284_v43 = vadd.f32 %v8283_v40, %v8282_v35 }
 0x4ea   :  { %v8258_v45 = vrot.slane %v8257_v42, 1  ;;  %v8276_v46 = vrot.slane %v8275_v44, 1 }
 0x4eb   :  { %v8267_v47 = vrot.slane %v8266_v41, 1  ;;  %v8285_v48 = vrot.slane %v8284_v43, 1 }
 0x4ec   :  { %v8259_v51 = vadd.f32 %v8258_v45, %v8257_v42  ;;  %v8277_v52 = vadd.f32 %v8276_v46, %v8275_v44 }
 0x4ed   :  { %v8268_v49 = vadd.f32 %v8267_v47, %v8266_v41  ;;  %v8286_v50 = vadd.f32 %v8285_v48, %v8284_v43 }
 0x4ee   :  { %v8288_v53 = vmul.f32 0.03125, %v8259_v51  ;;  %v8290_v54 = vmul.f32 0.03125, %v8277_v52 }
 0x4ef   :  { %v8289_v55 = vmul.f32 0.03125, %v8268_v49  ;;  %v8291_v56 = vmul.f32 0.03125, %v8286_v50 }
 0x4f0   :  { %v15052_v59 = vsub.f32 %v7384_v3, %v8288_v53  ;;  %v15054_v60 = vsub.f32 %v7388_v4, %v8288_v53  ;;  %v15056_v57 = vsub.f32 %v7394_v13, %v8288_v53  ;;  %v15058_v58 = vsub.f32 %v7398_v21, %v8288_v53 }
 0x4f1   :  { %v15060_v61 = vsub.f32 %v8232_v2, %v8290_v54  ;;  %v15062_v62 = vsub.f32 %v8236_v1, %v8290_v54  ;;  %v15064_v63 = vsub.f32 %v8242_v14, %v8290_v54  ;;  %v15066_v0 = vsub.f32 %v8246_v22, %v8290_v54 }
 0x4f2   :  { %v8308_v7 = vmul.f32 %v15052_v59, %v15052_v59  ;;  %v8312_v3 = vmul.f32 %v15054_v60, %v15054_v60  ;;  %v8316_v4 = vmul.f32 %v15056_v57, %v15056_v57  ;;  %v8320_v8 = vmul.f32 %v15058_v58, %v15058_v58 }
 0x4f3   :  { %v8310_v2 = vmul.f32 %v15060_v61, %v15060_v61  ;;  %v8314_v1 = vmul.f32 %v15062_v62, %v15062_v62  ;;  %v8318_v9 = vmul.f32 %v15064_v63, %v15064_v63  ;;  %v15083_v13 = vsub.f32 %v15037_v5, %v8289_v55 }
 0x4f4   :  { %v8324_v10 = vadd.f32 %v8312_v3, %v8308_v7  ;;  %v15086_v14 = vsub.f32 %v15041_v11, %v8289_v55  ;;  %v15088_v15 = vsub.f32 %v7396_v19, %v8289_v55  ;;  %v15090_v18 = vsub.f32 %v7400_v26, %v8289_v55 }
 0x4f5   :  { %v8342_v16 = vadd.f32 %v8314_v1, %v8310_v2  ;;  %v15093_v20 = vsub.f32 %v15039_v6, %v8291_v56  ;;  %v15096_v21 = vsub.f32 %v15043_v12, %v8291_v56  ;;  %v8322_v23 = vmul.f32 %v15066_v0, %v15066_v0 }
 0x4f6   :  { %v8325_v22 = vadd.f32 %v8324_v10, %v8316_v4  ;;  %v8309_v5 = vmul.f32 %v15083_v13, %v15083_v13  ;;  %v8313_v11 = vmul.f32 %v15086_v14, %v15086_v14  ;;  %v8317_v24 = vmul.f32 %v15088_v15, %v15088_v15 }
 0x4f7   :  { %v8343_v19 = vadd.f32 %v8342_v16, %v8318_v9  ;;  %v15107_v6 = vsub.f32 %v15049_v17, %v8291_v56  ;;  %v15109_v26 = vsub.f32 %v8248_v25, %v8291_v56  ;;  %v8311_v28 = vmul.f32 %v15093_v20, %v15093_v20 }
 0x4f8   :  { %v8326_v12 = vadd.f32 %v8325_v22, %v8320_v8  ;;  %v8333_v27 = vadd.f32 %v8313_v11, %v8309_v5  ;;  %v8315_v29 = vmul.f32 %v15096_v21, %v15096_v21  ;;  %v8321_v31 = vmul.f32 %v15090_v18, %v15090_v18 }
 0x4f9   :  { %v8344_v30 = vadd.f32 %v8343_v19, %v8322_v23  ;;  %v8319_v17 = vmul.f32 %v15107_v6, %v15107_v6  ;;  %v8323_v37 = vmul.f32 %v15109_v26, %v15109_v26  ;;  %v8390_v4 = vlaneseq }
 0x4fa   :  { %v8327_v32 = vrot.slane %v8326_v12, 4  ;;  %v8334_v34 = vadd.f32 %v8333_v27, %v8317_v24  ;;  %v8351_v36 = vadd.f32 %v8315_v29, %v8311_v28  ;;  %v8388_v27 = vld [vmem:[%s15284_s2] sm:$0xf] }
 0x4fb   :  { %v8345_v25 = vrot.slane %v8344_v30, 4  ;;  %v8391_v23 = vshrl.u32 %v8390_v4, 7  ;;  %v8426_v29 = vld [vmem:[%s15285_s3] sm:$0xf] }
 0x4fc   :  { %v8328_v33 = vadd.f32 %v8327_v32, %v8326_v12  ;;  %v8335_v35 = vadd.f32 %v8334_v34, %v8321_v31  ;;  %v8352_v38 = vadd.f32 %v8351_v36, %v8319_v17 }
 0x4fd   :  { %v8346_v39 = vadd.f32 %v8345_v25, %v8344_v30  ;;  %v8392_v24 = vsub.s32 0, %v8391_v23  ;;  %v8400_v12 = vsub.s32 2, %v8391_v23  ;;  %v8396_v28 = vsub.s32 1, %v8391_v23 }
 0x4fe   :  { %v8329_v40 = vrot.slane %v8328_v33, 2  ;;  %v8336_v42 = vrot.slane %v8335_v35, 4  ;;  %v8353_v44 = vadd.f32 %v8352_v38, %v8323_v37  ;;  %v8404_v32 = vsub.s32 3, %v8391_v23 }
 0x4ff   :  { %v8347_v41 = vrot.slane %v8346_v39, 2  ;;  %v8393_v30 = vrot.slane %v8388_v27, %v8392_v24  ;;  %v8401_v31 = vrot.slane %v8388_v27, %v8400_v12  ;;  %v15127_v17 = vrot.slane %v8426_v29, %v8392_v24 }
 0x500   :  { %v8330_v43 = vadd.f32 %v8329_v40, %v8328_v33  ;;  %v8337_v45 = vadd.f32 %v8336_v42, %v8335_v35  ;;  %v8354_v46 = vrot.slane %v8353_v44, 4  ;;  %v15129_v36 = vrot.slane %v8426_v29, %v8400_v12 }
 0x501   :  { %v8348_v47 = vadd.f32 %v8347_v41, %v8346_v39  ;;  %v15131_v25 = vrot.slane %v8388_v27, %v8396_v28  ;;  %v15133_v33 = vrot.slane %v8426_v29, %v8396_v28 }
 0x502   :  { %v8331_v48 = vrot.slane %v8330_v43, 1  ;;  %v8338_v51 = vrot.slane %v8337_v45, 2  ;;  %v8355_v52 = vadd.f32 %v8354_v46, %v8353_v44  ;;  %v15143_v46 = vrot.slane %v8388_v27, %v8404_v32  ;;  %v8513_v27 = vld [vmem:[%s15286_s4] sm:$0xff] }
 0x503   :  { %v8349_v49 = vrot.slane %v8348_v47, 1 }
 0x504   :  { %v8332_v50 = vadd.f32 %v8331_v48, %v8330_v43  ;;  %v8339_v53 = vadd.f32 %v8338_v51, %v8337_v45  ;;  %v8356_v54 = vrot.slane %v8355_v52, 2 }
 0x505   :  { %v8350_v55 = vadd.f32 %v8349_v49, %v8348_v47 }
 0x506   :  { %v8360_v56 = vmul.f32 0.03125, %v8332_v50  ;;  %v8340_v7 = vrot.slane %v8339_v53, 1  ;;  %v8357_v3 = vadd.f32 %v8356_v54, %v8355_v52 }
 0x507   :  { %v8362_v8 = vmul.f32 0.03125, %v8350_v55 }
 0x508   :  { %v8364_v2 = vadd.f32 1e-05, %v8360_v56  ;;  %v8341_v1 = vadd.f32 %v8340_v7, %v8339_v53  ;;  %v8358_v9 = vrot.slane %v8357_v3, 1 }
 0x509   :  { %v8366_v10 = vadd.f32 1e-05, %v8362_v8 }
 0x50a   :  { %11600 = vrsqrt.f32 %v8364_v2  ;;  %v8361_v16 = vmul.f32 0.03125, %v8341_v1  ;;  %v8359_v22 = vadd.f32 %v8358_v9, %v8357_v3 }
 0x50b   :  { %11602 = vrsqrt.f32 %v8366_v10 }
 0x50c   :  { %v8365_v5 = vadd.f32 1e-05, %v8361_v16  ;;  %v8363_v11 = vmul.f32 0.03125, %v8359_v22 }
 0x50e   :  { %11604 = vrsqrt.f32 %v8365_v5  ;;  %v8367_v19 = vadd.f32 1e-05, %v8363_v11 }
 0x510   :  { %11606 = vrsqrt.f32 %v8367_v19  ;;  %v8518_v19 = vld [vmem:[%s15286_s4 + $0x28] sm:$0xff] }
 0x514   :  { %v11601_v34 = vpop.eup %11600 }
 0x515   :  { %v11603_v35 = vpop.eup %11602  ;;  %v8372_v37 = vmul.f32 %v11601_v34, %v15052_v59  ;;  %v8376_v38 = vmul.f32 %v11601_v34, %v15054_v60  ;;  %v8380_v39 = vmul.f32 %v11601_v34, %v15056_v57  ;;  %v8384_v40 = vmul.f32 %v11601_v34, %v15058_v58 }
 0x516   :  { %v8374_v42 = vmul.f32 %v11603_v35, %v15060_v61  ;;  %v8378_v44 = vmul.f32 %v11603_v35, %v15062_v62  ;;  %v8382_v41 = vmul.f32 %v11603_v35, %v15064_v63  ;;  %v8386_v43 = vmul.f32 %v11603_v35, %v15066_v0 }
 0x517   :  { %v8422_v45 = vmul.f32 %v8393_v30, %v8384_v40  ;;  %v8410_v47 = vmul.f32 %v8393_v30, %v8372_v37  ;;  %v8414_v48 = vmul.f32 %v8393_v30, %v8376_v38  ;;  %v15145_v51 = vmul.f32 %v8393_v30, %v8380_v39  ;;  %v8516_v40 = vld [vmem:[%s15286_s4 + $0x18] sm:$0xff] }
 0x518   :  { %v11605_v59 = vpop.eup %11604  ;;  %v15147_v60 = vmul.f32 %v8401_v31, %v8382_v41  ;;  %v8424_v57 = vmul.f32 %v8401_v31, %v8386_v43  ;;  %v15149_v58 = vrot.slane %v8426_v29, %v8404_v32  ;;  %v8416_v7 = vmul.f32 %v8401_v31, %v8378_v44 }
 0x519   :  { %v15152_v61 = vadd.f32 %v15127_v17, %v8422_v45  ;;  %v15155_v62 = vmul.f32 %v11605_v59, %v15088_v15  ;;  %v8385_v63 = vmul.f32 %v11605_v59, %v15090_v18  ;;  %v8373_v0 = vmul.f32 %v11605_v59, %v15083_v13 }
 0x51a   :  { %v11607_v52 = vpop.eup %11606  ;;  %v15160_v49 = vadd.f32 %v15129_v36, %v8424_v57  ;;  %v8377_v50 = vmul.f32 %v11605_v59, %v15086_v14  ;;  %v8448_v53 = vadd.f32 %v15127_v17, %v8410_v47  ;;  %v8452_v54 = vadd.f32 %v15127_v17, %v8414_v48  ;;  %v8515_v57 = vld [vmem:[%s15286_s4 + $0x10] sm:$0xff] }
 0x51b   :  { %v8423_v55 = vmul.f32 %v15131_v25, %v8385_v63  ;;  %v15167_v56 = vmul.f32 %v11607_v52, %v15107_v6  ;;  %v8412_v15 = vmul.f32 %v8401_v31, %v8374_v42  ;;  %v15170_v18 = vmul.f32 0.2, %v15152_v61  ;;  %v8517_v31 = vld [vmem:[%s15286_s4 + $0x20] sm:$0xff]  ;;  %v8520_v42 = vld [vmem:[%s15286_s4 + $0x38] sm:$0xff] }
 0x51c   :  { %v15173_v13 = vmul.f32 0.2, %v15160_v49  ;;  %v8387_v3 = vmul.f32 %v11607_v52, %v15109_v26  ;;  %v8411_v14 = vmul.f32 %v15131_v25, %v8373_v0  ;;  %v8415_v8 = vmul.f32 %v15131_v25, %v8377_v50 }
 0x51d   :  { %v15178_v4 = vadd.f32 %v15133_v33, %v8423_v55  ;;  %v8375_v6 = vmul.f32 %v11607_v52, %v15093_v20  ;;  %v8379_v2 = vmul.f32 %v11607_v52, %v15096_v21  ;;  %vm8464_vm0 = vcmp.ge.f32.partialorder %v8448_v53, 0.0  ;;  %v8514_v21 = vld [vmem:[%s15286_s4 + $0x8] sm:$0xff]  ;;  %v8519_v55 = vld [vmem:[%s15286_s4 + $0x30] sm:$0xff] }
 0x51e   :  { %v8425_v1 = vmul.f32 %v15143_v46, %v8387_v3  ;;  %v8449_v9 = vadd.f32 %v15133_v33, %v8411_v14  ;;  %vm8468_vm1 = vcmp.ge.f32.partialorder %v8452_v54, 0.0  ;;  %v8453_v10 = vadd.f32 %v15133_v33, %v8415_v8 }
 0x51f   :  { %v8413_v26 = vmul.f32 %v15143_v46, %v8375_v6  ;;  %v8417_v16 = vmul.f32 %v15143_v46, %v8379_v2  ;;  %v8480_v22 = vmul.f32 0.2, %v8448_v53  ;;  %v8484_v5 = vmul.f32 0.2, %v8452_v54 }
 0x520   :  { %v15189_v23 = vadd.f32 %v15149_v58, %v8425_v1  ;;  %vm8465_vm2 = vcmp.ge.f32.partialorder %v8449_v9, 0.0  ;;  %v8481_v20 = vmul.f32 0.2, %v8449_v9  ;;  %vm8476_vm3 = vcmp.ge.f32.partialorder %v15152_v61, 0.0 }
 0x521   :  { %vm8469_vm4 = vcmp.ge.f32.partialorder %v8453_v10, 0.0  ;;  %v8485_v11 = vmul.f32 0.2, %v8453_v10  ;;  %v8451_v24 = vadd.f32 %v15149_v58, %v8413_v26  ;;  %v8455_v12 = vadd.f32 %v15149_v58, %v8417_v16  ;;  %v8528_v16 = vld [vmem:[%s15286_s4 + $0x78] sm:$0xff] }
 0x522   :  { %v8497_v28 = vsel %vm8465_vm2, %v8449_v9, %v8481_v20  ;;  %v8496_v29 = vsel %vm8464_vm0, %v8448_v53, %v8480_v22  ;;  %v8500_v30 = vsel %vm8468_vm1, %v8452_v54, %v8484_v5  ;;  %v8450_v32 = vadd.f32 %v15129_v36, %v8412_v15  ;;  %v8524_v5 = vld [vmem:[%s15286_s4 + $0x58] sm:$0xff] }
 0x523   :  { %v8501_v34 = vsel %vm8469_vm4, %v8453_v10, %v8485_v11  ;;  %v8530_v35 = vmul.f32 %v8514_v21, %v8497_v28  ;;  %vm8467_vm5 = vcmp.ge.f32.partialorder %v8451_v24, 0.0  ;;  %vm8471_vm6 = vcmp.ge.f32.partialorder %v8455_v12, 0.0 }
 0x524   :  { %v8534_v37 = vmul.f32 %v8518_v19, %v8501_v34  ;;  %v8483_v38 = vmul.f32 0.2, %v8451_v24  ;;  %v8487_v39 = vmul.f32 0.2, %v8455_v12  ;;  %v8529_v44 = vmul.f32 %v8513_v27, %v8496_v29  ;;  %v8527_v27 = vld [vmem:[%s15286_s4 + $0x70] sm:$0xff] }
 0x525   :  { %vm8478_vm7 = vcmp.ge.f32.partialorder %v15160_v49, 0.0  ;;  %v8533_v41 = vmul.f32 %v8517_v31, %v8500_v30  ;;  %v8454_v43 = vadd.f32 %v15129_v36, %v8416_v7  ;;  %vm8466_vm8 = vcmp.ge.f32.partialorder %v8450_v32, 0.0 }
 0x526   :  { %v8482_v45 = vmul.f32 0.2, %v8450_v32  ;;  %v9807_v47 = vpack.c.bf16 %v8534_v37, %v8530_v35  ;;  %v8499_v48 = vsel %vm8467_vm5, %v8451_v24, %v8483_v38  ;;  %v8503_v59 = vsel %vm8471_vm6, %v8455_v12, %v8487_v39  ;;  %v8512_v38 = vld [vmem:[%s15287_s5] sm:$0x3] }
 0x527   :  { %v8419_v63 = vmul.f32 %v15131_v25, %v15155_v62  ;;  %v8532_v0 = vmul.f32 %v8516_v40, %v8499_v48  ;;  %v8536_v52 = vmul.f32 %v8520_v42, %v8503_v59  ;;  %v9809_v50 = vpack.c.bf16 %v8533_v41, %v8529_v44  ;;  %v8526_v62 = vld [vmem:[%s15286_s4 + $0x68] sm:$0xff] }
 0x528   :  { %vm8470_vm9 = vcmp.ge.f32.partialorder %v8454_v43, 0.0  ;;  %9808 = vmatprep.subr.bf16.mxu0 %v9807_v47  ;;  %v8486_v53 = vmul.f32 0.2, %v8454_v43  ;;  %v8498_v54 = vsel %vm8466_vm8, %v8450_v32, %v8482_v45  ;;  %vm8477_vm10 = vcmp.ge.f32.partialorder %v15178_v4, 0.0  ;;  %v8523_v32 = vld [vmem:[%s15286_s4 + $0x50] sm:$0xff] }
 0x529   :  { %v8457_v15 = vadd.f32 %v15133_v33, %v8419_v63  ;;  %v9815_v7 = vpack.c.bf16 %v8536_v52, %v8532_v0  ;;  %9810 = vmatpush1.bf16.msra.mxu0 %v9809_v50  ;;  %v8531_v3 = vmul.f32 %v8515_v57, %v8498_v54  ;;  %v8493_v25 = vmul.f32 0.2, %v15178_v4  ;;  %v8522_v33 = vld [vmem:[%s15286_s4 + $0x48] sm:$0xff] }
 0x52a   :  { %v8421_v14 = vmul.f32 %v15143_v46, %v15167_v56  ;;  %v8502_v8 = vsel %vm8470_vm9, %v8454_v43, %v8486_v53  ;;  %vm8479_vm12 = vcmp.ge.f32.partialorder %v15189_v23, 0.0  ;;  %v8495_v10 = vmul.f32 0.2, %v15189_v23  ;;  %v8525_v46 = vld [vmem:[%s15286_s4 + $0x60] sm:$0xff] }
 0x52b   :  { %vm8473_vm11 = vcmp.ge.f32.partialorder %v8457_v15, 0.0  ;;  %v8489_v6 = vmul.f32 0.2, %v8457_v15  ;;  %9816 = vmatprep.subr.bf16.mxu1 %v9815_v7  ;;  %v8535_v2 = vmul.f32 %v8519_v55, %v8502_v8  ;;  %v8509_v1 = vsel %vm8477_vm10, %v15178_v4, %v8493_v25 }
 0x52c   :  { %v8459_v9 = vadd.f32 %v15149_v58, %v8421_v14  ;;  %v8542_v26 = vmul.f32 %v8526_v62, %v8509_v1  ;;  %v8456_v22 = vadd.f32 %v15127_v17, %v15145_v51  ;;  %v8508_v58 = vsel %vm8476_vm3, %v15152_v61, %v15170_v18  ;;  %v8521_v17 = vld [vmem:[%s15286_s4 + $0x40] sm:$0xff] }
 0x52d   :  { %v8505_v56 = vsel %vm8473_vm11, %v8457_v15, %v8489_v6  ;;  %v9817_v4 = vpack.c.bf16 %v8535_v2, %v8531_v3  ;;  %v8511_v11 = vsel %vm8479_vm12, %v15189_v23, %v8495_v10  ;;  %v8541_v51 = vmul.f32 %v8525_v46, %v8508_v58 }
 0x52e   :  { %v8538_v20 = vmul.f32 %v8522_v33, %v8505_v56  ;;  %vm8475_vm13 = vcmp.ge.f32.partialorder %v8459_v9, 0.0  ;;  %v8491_v21 = vmul.f32 0.2, %v8459_v9  ;;  %vm8472_vm14 = vcmp.ge.f32.partialorder %v8456_v22, 0.0 }
 0x52f   :  { %v8488_v19 = vmul.f32 0.2, %v8456_v22  ;;  %9818 = vmatpush1.bf16.msra.mxu1 %v9817_v4  ;;  %v8544_v24 = vmul.f32 %v8528_v16, %v8511_v11  ;;  %v8458_v12 = vadd.f32 %v15129_v36, %v15147_v60  ;;  %v8510_v29 = vsel %vm8478_vm7, %v15160_v49, %v15173_v13 }
 0x530   :  { %v9811_v61 = vpack.c.bf16 %v8542_v26, %v8538_v20  ;;  %v8507_v18 = vsel %vm8475_vm13, %v8459_v9, %v8491_v21  ;;  %v8543_v60 = vmul.f32 %v8527_v27, %v8510_v29  ;;  %vm8545_vm0 = vcmask 261120  }
 0x531   :  { %v8540_v28 = vmul.f32 %v8524_v5, %v8507_v18  ;;  %v8504_v23 = vsel %vm8472_vm14, %v8456_v22, %v8488_v19  ;;  %vm8474_vm15 = vcmp.ge.f32.partialorder %v8458_v12, 0.0  ;;  %v8490_v31 = vmul.f32 0.2, %v8458_v12 }
 0x532   :  { %9812 = vmatprep.subr.bf16.mxu0 %v9811_v61  ;;  %v8537_v30 = vmul.f32 %v8521_v17, %v8504_v23  ;;  %vm8691_vm1 = vcmask 1041408   ;;  %v8702_v57 = vstv %s15288_s6  ;;  %vm8710_vm2 = vcmask 1024  }
 0x533   :  { %v9819_v36 = vpack.c.bf16 %v8544_v24, %v8540_v28  ;;  %v8506_v35 = vsel %vm8474_vm15, %v8458_v12, %v8490_v31 }
 0x534   :  { %v9813_v34 = vpack.c.bf16 %v8541_v51, %v8537_v30  ;;  %v8539_v37 = vmul.f32 %v8523_v32, %v8506_v35 }
 0x535   :  { %9820 = vmatprep.subr.bf16.mxu1 %v9819_v36 }
 0x536   :  { %9814 = vmatpush1.bf16.msra.mxu0 %v9813_v34  ;;  %v9821_v49 = vpack.c.bf16 %v8543_v60, %v8539_v37 }
 0x538   :  { %9822 = vmatpush1.bf16.msra.mxu1 %v9821_v49 }
 0x539   :  { %9804 = vmatmul.mubr.msk.f32.vlgmr.msra.gmra.mrb[8].mxu0 %vm8545_vm0, %v8512_v38 }
 0x53b   :  { %9805 = vmatmul.mubr.msk.f32.vlgmr.msra.gmra.mrb[8].mxu1 %vm8545_vm0, %v8512_v38 }
 0x60c   :  { %v8615_v13 = vpop.f32.mrb[8].mxu0 }
 0x60d   :  { %v8692_v39 = vsel %vm8691_vm1, %v8615_v13, 0.0  ;;  %v8617_v40 = vpop.f32.mrb[9].mxu0 }
 0x60e   :  { %v8693_v42 = vsel %vm8691_vm1, %v8617_v40, 0.0  ;;  %v8686_v41 = vpop.f32.mrb[8].mxu1 }
 0x60f   :  { %v8694_v44 = vadd.f32 %v8693_v42, %v8692_v39  ;;  %v8695_v43 = vsel %vm8691_vm1, %v8686_v41, 0.0  ;;  %v8688_v45 = vpop.f32.mrb[9].mxu1 }
 0x610   :  { %v8697_v48 = vsel %vm8691_vm1, %v8688_v45, 0.0 }
 0x611   :  { %v8696_v47 = vadd.f32 %v8695_v43, %v8694_v44 }
 0x613   :  { %v8698_v59 = vadd.f32 %v8697_v48, %v8696_v47 }
 0x615   :  { %8699 = vadd.xlane.f32.xlu0 %v8698_v59 }
 0x6a2   :  { %v8700_v63 = vpop.xlane.xlu0 %8699 }
 0x6a3   :  { %v8703_v0 = vadd.f32 %v8702_v57, %v8700_v63 }
 0x6a5   :  { %v9806_v52 = vmul.f32 -1.442695, %v8703_v0 }
 0x6a7   :  { %11608 = vpow2.f32 %v9806_v52 }
 0x6b1   :  { %v11609_v50 = vpop.eup %11608 }
 0x6b2   :  { %v8707_v53 = vadd.f32 1.0, %v11609_v50 }
 0x6b4   :  { %11610 = vrcp.f32 %v8707_v53 }
 0x6be   :  { %v11611_v54 = vpop.eup %11610 }
 0x6bf   :  { %8711 = vst.msk [vmem:[%s15289_s7] sm:$0x3] %vm8710_vm2, %v11611_v54 }

</bundles_post_ra>
